<compile_context>
chip_gen: v5e
topology: v5e:2x2
jax: 0.10.0
libtpu: 0.0.40
codegen_flags: <defaults>
</compile_context>

<pallas_src>
import functools
from itertools import product

import numpy as np
import jax
import jax.numpy as jnp
from jax import lax
from jax.experimental import pallas as pl
from jax.experimental.pallas import tpu as pltpu


# --------------------------------------------------------------------------
# Static (trace-time) helpers
# --------------------------------------------------------------------------

def _round_up(x, m):
    return ((x + m - 1) // m) * m


def _per_dim_tap(k):
    # source index = 2*o + k - 1  (stride 2, pad 1)
    #   k == 0 -> odd parity, shifted back one output position (a = 1)
    #   k == 1 -> even parity, no shift
    #   k == 2 -> odd parity, no shift
    if k == 0:
        return 1, 1
    if k == 1:
        return 0, 0
    return 1, 0


def _tap_meta(Oh, Ow):
    """Static metadata for the 27 taps; order matches w[:, :, kd, kh, kw]."""
    metas = []
    for kd, kh, kw in product(range(3), repeat=3):
        (pd, ad), (ph, ah), (pw_, aw) = _per_dim_tap(kd), _per_dim_tap(kh), _per_dim_tap(kw)
        pidx = pd * 4 + ph * 2 + pw_            # parity segment of the input
        aidx = ad * 4 + ah * 2 + aw             # which boundary mask
        delta = ad * Oh * Ow + ah * Ow + aw     # uniform column shift inside a segment
        metas.append((pidx, aidx, delta))
    return metas


def _boundary_masks_np(N, Od, Oh, Ow):
    """(8, M) {0,1} masks: row a zeroes output columns whose coords underflow."""
    od = np.arange(Od)[:, None, None]
    oh = np.arange(Oh)[None, :, None]
    ow = np.arange(Ow)[None, None, :]
    out = np.empty((8, N * Od * Oh * Ow), np.float32)
    for ad, ah, aw in product(range(2), repeat=3):
        m3 = (od >= ad) & (oh >= ah) & (ow >= aw)
        out[ad * 4 + ah * 2 + aw] = np.broadcast_to(
            m3[None], (N, Od, Oh, Ow)).reshape(-1).astype(np.float32)
    return out


def _parity_perm_matrix_np(N, Od, Oh, Ow):
    """(M, M) permutation P with (h_natural @ P) having parity-major columns."""
    D, H, W = 2 * Od, 2 * Oh, 2 * Ow
    Mn = N * Od * Oh * Ow
    M = 8 * Mn
    new = np.arange(M)
    p = new // Mn
    r = new % Mn
    ow = r % Ow
    r = r // Ow
    oh = r % Oh
    r = r // Oh
    od = r % Od
    n = r // Od
    pw = p % 2
    ph = (p // 2) % 2
    pd = p // 4
    src = ((n * D + 2 * od + pd) * H + 2 * oh + ph) * W + 2 * ow + pw
    P = np.zeros((M, M), np.float32)
    P[src, new] = 1.0
    return P


def _parity_permute(x_cm):
    """(C, N, D, H, W) -> (C, 8*M), columns ordered (pd, ph, pw, n, od, oh, ow)."""
    C, N, D, H, W = x_cm.shape
    t = x_cm.reshape(C, N, D // 2, 2, H // 2, 2, W // 2, 2)
    t = jnp.transpose(t, (0, 3, 5, 7, 1, 2, 4, 6))
    return t.reshape(C, -1)


def _resident_spec(shape):
    zeros = (0,) * len(shape)
    return pl.BlockSpec(shape, lambda i, _z=zeros: _z)


def _conv_weights(d, compute_dtype):
    w = d["w"]
    cout, cin = w.shape[0], w.shape[1]
    w_taps = jnp.transpose(w, (2, 3, 4, 0, 1)).reshape(27, cout, cin).astype(compute_dtype)
    b2d = d["b"].reshape(cout, 1).astype(jnp.float32)
    return w_taps, b2d


# --------------------------------------------------------------------------
# In-kernel conv helper (shared by both kernels)
# --------------------------------------------------------------------------

def _accumulate_conv(take, mask, w_ref, taps, seg, off, width):
    """f32 accumulation of the 27 tap matmuls of one Conv3d(k=3, s=2, p=1).

    take(start, width) -> (Cin, width) parity-major input slab.
    mask: (8, width) {0,1} boundary masks.  w_ref: (27, Cout, Cin).
    """
    acc = None
    for t, (pidx, aidx, delta) in enumerate(taps):
        xt = take(pidx * seg + off - delta, width)
        if aidx:
            xt = xt * mask[aidx:aidx + 1, :]
        p = jnp.dot(w_ref[t], xt, preferred_element_type=jnp.float32)
        acc = p if acc is None else acc + p
    return acc


# --------------------------------------------------------------------------
# Kernel 1: single conv, gridded over M (>= 2 "parallel" blocks when possible)
# --------------------------------------------------------------------------

def _make_gridded_kernel(taps, seg, off, tm):
    def kernel(xw_ref, mask_ref, w_ref, b_ref, o_ref):
        # xw_ref: (1, Cin, 8*seg) per-block halo window, parity-major.
        take = lambda s, n: xw_ref[0, :, s:s + n]
        acc = _accumulate_conv(take, mask_ref[...], w_ref, taps, seg, off, tm)
        o_ref[...] = jnp.maximum(acc + b_ref[...], 0.0).astype(o_ref.dtype)
    return kernel


def _run_gridded_conv(x_cm, d, compute_dtype, tm_target):
    cin, N = x_cm.shape[0], x_cm.shape[1]
    Od, Oh, Ow = d["out_sp"]
    m_out = d["m_out"]
    cout = d["w"].shape[0]
    taps = _tap_meta(Oh, Ow)

    halo = _round_up(Oh * Ow + Ow + 1, 128)          # >= max tap shift, lane aligned
    tm = min(tm_target, max(128, _round_up(-(-m_out // 2), 128)))  # >= 2 blocks if possible
    m_pad = _round_up(m_out, tm)
    n_blocks = m_pad // tm
    seg = halo + tm

    # Single-pass layout glue on the (already compute-dtype) activation:
    # parity-major + per-parity front halo + per-block overlapping windows.
    xp = _parity_permute(x_cm).reshape(cin, 8, m_out)
    xp = jnp.pad(xp, ((0, 0), (0, 0), (halo, m_pad - m_out)))
    windows = jnp.stack(
        [lax.slice_in_dim(xp, i * tm, i * tm + seg, axis=2) for i in range(n_blocks)],
        axis=0).reshape(n_blocks, cin, 8 * seg)

    mask = jnp.pad(jnp.asarray(_boundary_masks_np(N, Od, Oh, Ow), dtype=compute_dtype),
                   ((0, 0), (0, m_pad - m_out)))
    w_taps, b2d = _conv_weights(d, compute_dtype)

    itemsize = jnp.dtype(compute_dtype).itemsize
    cost = pl.CostEstimate(
        flops=2 * m_pad * 27 * cin * cout,
        transcendentals=0,
        bytes_accessed=(n_blocks * cin * 8 * seg + 8 * m_pad + 27 * cout * cin
                        + cout * m_pad) * itemsize + cout * 4,
    )

    out = pl.pallas_call(
        _make_gridded_kernel(taps, seg, halo, tm),
        grid=(n_blocks,),
        in_specs=[
            pl.BlockSpec((1, cin, 8 * seg), lambda i: (i, 0, 0)),  # halo windows (pipelined)
            pl.BlockSpec((8, tm), lambda i: (0, i)),               # boundary masks
            pl.BlockSpec((27, cout, cin), lambda i: (0, 0, 0)),    # resident weights
            pl.BlockSpec((cout, 1), lambda i: (0, 0)),             # resident bias
        ],
        out_specs=pl.BlockSpec((cout, tm), lambda i: (0, i)),
        out_shape=jax.ShapeDtypeStruct((cout, m_pad), compute_dtype),
        compiler_params=pltpu.CompilerParams(
            dimension_semantics=("parallel",),
            vmem_limit_bytes=32 * 1024 * 1024),
        cost_estimate=cost,
    )(windows, mask, w_taps, b2d)

    if m_pad != m_out:
        out = out[:, :m_out]
    return out


# --------------------------------------------------------------------------
# Kernel 2: fused tail -- several convs in ONE pallas_call, intermediates in VMEM
# --------------------------------------------------------------------------

def _make_fused_kernel(metas, compute_dtype):
    n_convs = len(metas)
    n_perms = n_convs - 1

    def kernel(*refs):
        x0_ref = refs[0]
        mwb = [(refs[1 + 3 * c], refs[2 + 3 * c], refs[3 + 3 * c]) for c in range(n_convs)]
        perms = [refs[1 + 3 * n_convs + c] for c in range(n_perms)]
        outs = refs[1 + 3 * n_convs + n_perms:]

        x_val = None
        out_i = 0
        for c, (taps, m_out, is_out) in enumerate(metas):
            mask_ref, w_ref, b_ref = mwb[c]
            mask = mask_ref[...]
            if c == 0:
                take = lambda s, n, _r=x0_ref: _r[:, s:s + n]
            else:
                take = lambda s, n, _v=x_val: _v[:, s:s + n]
            acc = _accumulate_conv(take, mask, w_ref, taps, m_out, 0, m_out)
            h = jnp.maximum(acc + b_ref[...], 0.0)               # (Cout, m_out) f32
            if is_out:
                outs[out_i][...] = h.astype(outs[out_i].dtype)
                out_i += 1
            if c < n_convs - 1:
                # In-kernel parity repack for the next conv (exact: 0/1 matrix).
                x_val = jnp.dot(h.astype(compute_dtype), perms[c][...],
                                preferred_element_type=jnp.float32).astype(compute_dtype)

    return kernel


def _run_fused_tail(x_par0, tail, N, compute_dtype):
    n_convs = len(tail)
    inputs = [x_par0]
    metas = []
    for d in tail:
        Od, Oh, Ow = d["out_sp"]
        w_taps, b2d = _conv_weights(d, compute_dtype)
        mask = jnp.asarray(_boundary_masks_np(N, Od, Oh, Ow), dtype=compute_dtype)
        inputs += [mask, w_taps, b2d]
        metas.append((_tap_meta(Oh, Ow), d["m_out"], d["is_end"]))
    for c in range(n_convs - 1):
        Od, Oh, Ow = tail[c + 1]["out_sp"]
        inputs.append(jnp.asarray(_parity_perm_matrix_np(N, Od, Oh, Ow),
                                  dtype=compute_dtype))

    out_meta = [(d["w"].shape[0], d["m_out"]) for d in tail if d["is_end"]]
    out_shape = tuple(jax.ShapeDtypeStruct((co, m), compute_dtype) for co, m in out_meta)

    outs = pl.pallas_call(
        _make_fused_kernel(metas, compute_dtype),
        grid=(1,),
        in_specs=[_resident_spec(a.shape) for a in inputs],
        out_specs=tuple(_resident_spec((co, m)) for co, m in out_meta),
        out_shape=out_shape,
        compiler_params=pltpu.CompilerParams(
            dimension_semantics=("arbitrary",),
            vmem_limit_bytes=32 * 1024 * 1024),
    )(*inputs)
    if not isinstance(outs, (tuple, list)):
        outs = (outs,)
    return list(outs)


# --------------------------------------------------------------------------
# Encoder module
# --------------------------------------------------------------------------

def init_encoder_params(key, in_channels, channels):
    """Deterministic parameter init (shapes match nn.Conv3d in EncoderBlock)."""
    params = []
    cin = in_channels
    for cout in channels:
        block = {}
        for name, (ci, co) in (("conv1", (cin, cout)), ("conv2", (cout, cout))):
            key, kw_, kb_ = jax.random.split(key, 3)
            fan_in = ci * 27
            bound = 1.0 / jnp.sqrt(fan_in)
            block[name + "_w"] = jax.random.uniform(
                kw_, (co, ci, 3, 3, 3), jnp.float32, -bound, bound)
            block[name + "_b"] = jax.random.uniform(
                kb_, (co,), jnp.float32, -bound, bound)
        params.append(block)
        cin = cout
    return params


def encoder_forward(params, x, compute_dtype=jnp.bfloat16,
                    fuse_max_m=256, tm_target=2048):
    """Mirrors Encoder.forward: returns (x, skip_connections), NCDHW externally.

    Fast path keeps activations / outputs in compute_dtype (bf16); use
    compute_dtype=float32 for strict validation.
    """
    N = x.shape[0]
    x_cm = jnp.transpose(x, (1, 0, 2, 3, 4)).astype(compute_dtype)  # cast once, early

    # Flatten the per-block convs into one list with static shape metadata.
    descs = []
    sp = x.shape[2:]
    for blk in params:
        for name, is_end in (("conv1", False), ("conv2", True)):
            D, H, W = sp
            assert D % 2 == 0 and H % 2 == 0 and W % 2 == 0, (
                "encoder kernel requires even spatial dims at every stage")
            Od, Oh, Ow = D // 2, H // 2, W // 2
            descs.append(dict(w=blk[name + "_w"], b=blk[name + "_b"], is_end=is_end,
                              out_sp=(Od, Oh, Ow), m_out=N * Od * Oh * Ow))
            sp = (Od, Oh, Ow)

    # Large-M convs run as standalone gridded calls; the small-M tail is fused.
    split = len(descs)
    for i, d in enumerate(descs):
        if d["m_out"] <= fuse_max_m:
            split = i
            break

    block_outs = []            # (out2d, cout, out_sp) per EncoderBlock
    cur_cm = x_cm
    for d in descs[:split]:
        out2d = _run_gridded_conv(cur_cm, d, compute_dtype, tm_target)
        cout = d["w"].shape[0]
        Od, Oh, Ow = d["out_sp"]
        cur_cm = out2d.reshape(cout, N, Od, Oh, Ow)
        if d["is_end"]:
            block_outs.append((out2d, cout, d["out_sp"]))

    if split < len(descs):
        tail = descs[split:]
        x_par0 = _parity_permute(cur_cm)
        outs = _run_fused_tail(x_par0, tail, N, compute_dtype)
        k = 0
        for d in tail:
            if d["is_end"]:
                block_outs.append((outs[k], d["w"].shape[0], d["out_sp"]))
                k += 1

    # Module boundary: back to NCDHW (skips are tiny by this point).
    # TODO(synk): a decoder consuming channel-major / compute-dtype skips directly
    # would avoid these boundary transposes.
    skips = []
    for out2d, cout, (Od, Oh, Ow) in block_outs:
        a = out2d.reshape(cout, N, Od, Oh, Ow)
        skips.append(jnp.transpose(a, (1, 0, 2, 3, 4)))
    return skips[-1], skips


# --------------------------------------------------------------------------
# Reference (lax.conv) for validation
# --------------------------------------------------------------------------

def _conv3d_ref(x, w, b, compute_dtype):
    y = lax.conv_general_dilated(
        x.astype(compute_dtype), w.astype(compute_dtype),
        window_strides=(2, 2, 2), padding=[(1, 1)] * 3,
        dimension_numbers=("NCDHW", "OIDHW", "NCDHW"),
        preferred_element_type=jnp.float32)
    return jnp.maximum(y + b.reshape(1, -1, 1, 1, 1), 0.0)


def encoder_forward_ref(params, x, compute_dtype):
    skips = []
    for blk in params:
        x = _conv3d_ref(x, blk["conv1_w"], blk["conv1_b"], compute_dtype)
        x = _conv3d_ref(x, blk["conv2_w"], blk["conv2_b"], compute_dtype)
        skips.append(x)
    return x, skips


# --------------------------------------------------------------------------
# Main
# --------------------------------------------------------------------------

if __name__ == "__main__":
    key = jax.random.PRNGKey(0)
    k_x, k_p = jax.random.split(key)

    # Small shapes: batch=2, in_channels=4, spatial 16^3, channels=[8, 16].
    # (The `strides` arg of the PyTorch module is unused: stride is hard-coded to 2.)
    N, Cin, S = 2, 4, 16
    channels = [8, 16]
    x = jax.random.normal(k_x, (N, Cin, S, S, S), jnp.float32)
    params = init_encoder_params(k_p, Cin, channels)

    # 1) Strict f32 validation of the Pallas path against lax.conv.
    fwd_f32 = jax.jit(functools.partial(encoder_forward, compute_dtype=jnp.float32))
    out32, skips32 = fwd_f32(params, x)
    out32 = jax.block_until_ready(out32)
    ref32, sref32 = encoder_forward_ref(params, x, jnp.float32)
    assert out32.shape == (N, channels[-1], 1, 1, 1), out32.shape
    assert jnp.allclose(out32, ref32, atol=1e-4, rtol=1e-4)
    for s, sr in zip(skips32, sref32):
        assert s.shape == sr.shape
        assert jnp.allclose(s, sr, atol=1e-4, rtol=1e-4)

    # 2) bf16 fast path (default for v5e/v6e/v7x), checked against a
    #    matched-precision bf16 reference conv.
    fwd_bf16 = jax.jit(functools.partial(encoder_forward, compute_dtype=jnp.bfloat16))
    out, skips = fwd_bf16(params, x)
    out = jax.block_until_ready(out)
    skips = [jax.block_until_ready(s) for s in skips]
    refb, srefb = encoder_forward_ref(params, x, jnp.bfloat16)
    assert out.shape == (N, channels[-1], 1, 1, 1), out.shape
    assert jnp.allclose(out.astype(jnp.float32), refb, atol=2e-2, rtol=2e-2)
    for s, sr in zip(skips, srefb):
        assert jnp.allclose(s.astype(jnp.float32), sr, atol=2e-2, rtol=2e-2)

    print("KERNEL_OK")
</pallas_src>

<mosaic_0001>
module attributes {stable_mosaic.version = 11 : i64} {
  func.func @kernel(%arg0: i32, %arg1: memref<1x4x5120xf32, #tpu.memory_space<vmem>>, %arg2: memref<8x512xf32, #tpu.memory_space<vmem>>, %arg3: memref<27x8x4xf32, #tpu.memory_space<vmem>>, %arg4: memref<8x1xf32, #tpu.memory_space<vmem>>, %arg5: memref<8x512xf32, #tpu.memory_space<vmem>>) attributes {dimension_semantics = [#tpu.dimension_semantics<parallel>], iteration_bounds = array<i64: 2>, scalar_prefetch = 0 : i64, scratch_operands = 0 : i64, tpu.core_type = #tpu.core_type<tc>, window_params = [{transform_indices = @transform_0, window_bounds = array<i64: 1, 4, 5120>}, {transform_indices = @transform_1, window_bounds = array<i64: 8, 512>}, {pipeline_mode = #tpu.pipeline_mode<synchronous>, transform_indices = @transform_2, window_bounds = array<i64: 27, 8, 4>}, {pipeline_mode = #tpu.pipeline_mode<synchronous>, transform_indices = @transform_3, window_bounds = array<i64: 8, 1>}, {transform_indices = @transform_4, window_bounds = array<i64: 8, 512>}]} {
    %c0 = arith.constant 0 : index
    %c0_0 = arith.constant 0 : index
    %0 = vector.load %arg2[%c0, %c0_0] : memref<8x512xf32, #tpu.memory_space<vmem>>, vector<8x512xf32>
    %c0_1 = arith.constant 0 : index
    %c0_2 = arith.constant 0 : index
    %c4535 = arith.constant 4535 : index
    %1 = vector.load %arg1[%c0_1, %c0_2, %c4535] : memref<1x4x5120xf32, #tpu.memory_space<vmem>>, vector<1x4x512xf32>
    %2 = vector.shape_cast %1 : vector<1x4x512xf32> to vector<4x512xf32>
    %3 = vector.extract_strided_slice %0 {offsets = [7, 0], sizes = [1, 512], strides = [1, 1]} : vector<8x512xf32> to vector<1x512xf32>
    %4 = vector.broadcast %3 : vector<1x512xf32> to vector<4x512xf32>
    %5 = arith.mulf %2, %4 : vector<4x512xf32>
    %c0_3 = arith.constant 0 : index
    %c0_4 = arith.constant 0 : index
    %c0_5 = arith.constant 0 : index
    %6 = vector.load %arg3[%c0_3, %c0_4, %c0_5] : memref<27x8x4xf32, #tpu.memory_space<vmem>>, vector<1x8x4xf32>
    %7 = vector.shape_cast %6 : vector<1x8x4xf32> to vector<8x4xf32>
    %cst = arith.constant dense<0.000000e+00> : vector<8x512xf32>
    %8 = tpu.matmul %7, %5, %cst {dimension_numbers = #tpu.dot_dimension_numbers<[1], [0], [0], [1], [0, 0, 1, 1], [], []>} : vector<8x4xf32>, vector<4x512xf32>, vector<8x512xf32> -> vector<8x512xf32>
    %c0_6 = arith.constant 0 : index
    %c0_7 = arith.constant 0 : index
    %c3896 = arith.constant 3896 : index
    %9 = vector.load %arg1[%c0_6, %c0_7, %c3896] : memref<1x4x5120xf32, #tpu.memory_space<vmem>>, vector<1x4x512xf32>
    %10 = vector.shape_cast %9 : vector<1x4x512xf32> to vector<4x512xf32>
    %11 = vector.extract_strided_slice %0 {offsets = [6, 0], sizes = [1, 512], strides = [1, 1]} : vector<8x512xf32> to vector<1x512xf32>
    %12 = vector.broadcast %11 : vector<1x512xf32> to vector<4x512xf32>
    %13 = arith.mulf %10, %12 : vector<4x512xf32>
    %c1 = arith.constant 1 : index
    %c0_8 = arith.constant 0 : index
    %c0_9 = arith.constant 0 : index
    %14 = vector.load %arg3[%c1, %c0_8, %c0_9] : memref<27x8x4xf32, #tpu.memory_space<vmem>>, vector<1x8x4xf32>
    %15 = vector.shape_cast %14 : vector<1x8x4xf32> to vector<8x4xf32>
    %cst_10 = arith.constant dense<0.000000e+00> : vector<8x512xf32>
    %16 = tpu.matmul %15, %13, %cst_10 {dimension_numbers = #tpu.dot_dimension_numbers<[1], [0], [0], [1], [0, 0, 1, 1], [], []>} : vector<8x4xf32>, vector<4x512xf32>, vector<8x512xf32> -> vector<8x512xf32>
    %17 = arith.addf %8, %16 : vector<8x512xf32>
    %c0_11 = arith.constant 0 : index
    %c0_12 = arith.constant 0 : index
    %c4536 = arith.constant 4536 : index
    %18 = vector.load %arg1[%c0_11, %c0_12, %c4536] : memref<1x4x5120xf32, #tpu.memory_space<vmem>>, vector<1x4x512xf32>
    %19 = vector.shape_cast %18 : vector<1x4x512xf32> to vector<4x512xf32>
    %20 = vector.extract_strided_slice %0 {offsets = [6, 0], sizes = [1, 512], strides = [1, 1]} : vector<8x512xf32> to vector<1x512xf32>
    %21 = vector.broadcast %20 : vector<1x512xf32> to vector<4x512xf32>
    %22 = arith.mulf %19, %21 : vector<4x512xf32>
    %c2 = arith.constant 2 : index
    %c0_13 = arith.constant 0 : index
    %c0_14 = arith.constant 0 : index
    %23 = vector.load %arg3[%c2, %c0_13, %c0_14] : memref<27x8x4xf32, #tpu.memory_space<vmem>>, vector<1x8x4xf32>
    %24 = vector.shape_cast %23 : vector<1x8x4xf32> to vector<8x4xf32>
    %cst_15 = arith.constant dense<0.000000e+00> : vector<8x512xf32>
    %25 = tpu.matmul %24, %22, %cst_15 {dimension_numbers = #tpu.dot_dimension_numbers<[1], [0], [0], [1], [0, 0, 1, 1], [], []>} : vector<8x4xf32>, vector<4x512xf32>, vector<8x512xf32> -> vector<8x512xf32>
    %26 = arith.addf %17, %25 : vector<8x512xf32>
    %c0_16 = arith.constant 0 : index
    %c0_17 = arith.constant 0 : index
    %c3263 = arith.constant 3263 : index
    %27 = vector.load %arg1[%c0_16, %c0_17, %c3263] : memref<1x4x5120xf32, #tpu.memory_space<vmem>>, vector<1x4x512xf32>
    %28 = vector.shape_cast %27 : vector<1x4x512xf32> to vector<4x512xf32>
    %29 = vector.extract_strided_slice %0 {offsets = [5, 0], sizes = [1, 512], strides = [1, 1]} : vector<8x512xf32> to vector<1x512xf32>
    %30 = vector.broadcast %29 : vector<1x512xf32> to vector<4x512xf32>
    %31 = arith.mulf %28, %30 : vector<4x512xf32>
    %c3 = arith.constant 3 : index
    %c0_18 = arith.constant 0 : index
    %c0_19 = arith.constant 0 : index
    %32 = vector.load %arg3[%c3, %c0_18, %c0_19] : memref<27x8x4xf32, #tpu.memory_space<vmem>>, vector<1x8x4xf32>
    %33 = vector.shape_cast %32 : vector<1x8x4xf32> to vector<8x4xf32>
    %cst_20 = arith.constant dense<0.000000e+00> : vector<8x512xf32>
    %34 = tpu.matmul %33, %31, %cst_20 {dimension_numbers = #tpu.dot_dimension_numbers<[1], [0], [0], [1], [0, 0, 1, 1], [], []>} : vector<8x4xf32>, vector<4x512xf32>, vector<8x512xf32> -> vector<8x512xf32>
    %35 = arith.addf %26, %34 : vector<8x512xf32>
    %c0_21 = arith.constant 0 : index
    %c0_22 = arith.constant 0 : index
    %c2624 = arith.constant 2624 : index
    %36 = vector.load %arg1[%c0_21, %c0_22, %c2624] : memref<1x4x5120xf32, #tpu.memory_space<vmem>>, vector<1x4x512xf32>
    %37 = vector.shape_cast %36 : vector<1x4x512xf32> to vector<4x512xf32>
    %38 = vector.extract_strided_slice %0 {offsets = [4, 0], sizes = [1, 512], strides = [1, 1]} : vector<8x512xf32> to vector<1x512xf32>
    %39 = vector.broadcast %38 : vector<1x512xf32> to vector<4x512xf32>
    %40 = arith.mulf %37, %39 : vector<4x512xf32>
    %c4 = arith.constant 4 : index
    %c0_23 = arith.constant 0 : index
    %c0_24 = arith.constant 0 : index
    %41 = vector.load %arg3[%c4, %c0_23, %c0_24] : memref<27x8x4xf32, #tpu.memory_space<vmem>>, vector<1x8x4xf32>
    %42 = vector.shape_cast %41 : vector<1x8x4xf32> to vector<8x4xf32>
    %cst_25 = arith.constant dense<0.000000e+00> : vector<8x512xf32>
    %43 = tpu.matmul %42, %40, %cst_25 {dimension_numbers = #tpu.dot_dimension_numbers<[1], [0], [0], [1], [0, 0, 1, 1], [], []>} : vector<8x4xf32>, vector<4x512xf32>, vector<8x512xf32> -> vector<8x512xf32>
    %44 = arith.addf %35, %43 : vector<8x512xf32>
    %c0_26 = arith.constant 0 : index
    %c0_27 = arith.constant 0 : index
    %c3264 = arith.constant 3264 : index
    %45 = vector.load %arg1[%c0_26, %c0_27, %c3264] : memref<1x4x5120xf32, #tpu.memory_space<vmem>>, vector<1x4x512xf32>
    %46 = vector.shape_cast %45 : vector<1x4x512xf32> to vector<4x512xf32>
    %47 = vector.extract_strided_slice %0 {offsets = [4, 0], sizes = [1, 512], strides = [1, 1]} : vector<8x512xf32> to vector<1x512xf32>
    %48 = vector.broadcast %47 : vector<1x512xf32> to vector<4x512xf32>
    %49 = arith.mulf %46, %48 : vector<4x512xf32>
    %c5 = arith.constant 5 : index
    %c0_28 = arith.constant 0 : index
    %c0_29 = arith.constant 0 : index
    %50 = vector.load %arg3[%c5, %c0_28, %c0_29] : memref<27x8x4xf32, #tpu.memory_space<vmem>>, vector<1x8x4xf32>
    %51 = vector.shape_cast %50 : vector<1x8x4xf32> to vector<8x4xf32>
    %cst_30 = arith.constant dense<0.000000e+00> : vector<8x512xf32>
    %52 = tpu.matmul %51, %49, %cst_30 {dimension_numbers = #tpu.dot_dimension_numbers<[1], [0], [0], [1], [0, 0, 1, 1], [], []>} : vector<8x4xf32>, vector<4x512xf32>, vector<8x512xf32> -> vector<8x512xf32>
    %53 = arith.addf %44, %52 : vector<8x512xf32>
    %c0_31 = arith.constant 0 : index
    %c0_32 = arith.constant 0 : index
    %c4543 = arith.constant 4543 : index
    %54 = vector.load %arg1[%c0_31, %c0_32, %c4543] : memref<1x4x5120xf32, #tpu.memory_space<vmem>>, vector<1x4x512xf32>
    %55 = vector.shape_cast %54 : vector<1x4x512xf32> to vector<4x512xf32>
    %56 = vector.extract_strided_slice %0 {offsets = [5, 0], sizes = [1, 512], strides = [1, 1]} : vector<8x512xf32> to vector<1x512xf32>
    %57 = vector.broadcast %56 : vector<1x512xf32> to vector<4x512xf32>
    %58 = arith.mulf %55, %57 : vector<4x512xf32>
    %c6 = arith.constant 6 : index
    %c0_33 = arith.constant 0 : index
    %c0_34 = arith.constant 0 : index
    %59 = vector.load %arg3[%c6, %c0_33, %c0_34] : memref<27x8x4xf32, #tpu.memory_space<vmem>>, vector<1x8x4xf32>
    %60 = vector.shape_cast %59 : vector<1x8x4xf32> to vector<8x4xf32>
    %cst_35 = arith.constant dense<0.000000e+00> : vector<8x512xf32>
    %61 = tpu.matmul %60, %58, %cst_35 {dimension_numbers = #tpu.dot_dimension_numbers<[1], [0], [0], [1], [0, 0, 1, 1], [], []>} : vector<8x4xf32>, vector<4x512xf32>, vector<8x512xf32> -> vector<8x512xf32>
    %62 = arith.addf %53, %61 : vector<8x512xf32>
    %c0_36 = arith.constant 0 : index
    %c0_37 = arith.constant 0 : index
    %c3904 = arith.constant 3904 : index
    %63 = vector.load %arg1[%c0_36, %c0_37, %c3904] : memref<1x4x5120xf32, #tpu.memory_space<vmem>>, vector<1x4x512xf32>
    %64 = vector.shape_cast %63 : vector<1x4x512xf32> to vector<4x512xf32>
    %65 = vector.extract_strided_slice %0 {offsets = [4, 0], sizes = [1, 512], strides = [1, 1]} : vector<8x512xf32> to vector<1x512xf32>
    %66 = vector.broadcast %65 : vector<1x512xf32> to vector<4x512xf32>
    %67 = arith.mulf %64, %66 : vector<4x512xf32>
    %c7 = arith.constant 7 : index
    %c0_38 = arith.constant 0 : index
    %c0_39 = arith.constant 0 : index
    %68 = vector.load %arg3[%c7, %c0_38, %c0_39] : memref<27x8x4xf32, #tpu.memory_space<vmem>>, vector<1x8x4xf32>
    %69 = vector.shape_cast %68 : vector<1x8x4xf32> to vector<8x4xf32>
    %cst_40 = arith.constant dense<0.000000e+00> : vector<8x512xf32>
    %70 = tpu.matmul %69, %67, %cst_40 {dimension_numbers = #tpu.dot_dimension_numbers<[1], [0], [0], [1], [0, 0, 1, 1], [], []>} : vector<8x4xf32>, vector<4x512xf32>, vector<8x512xf32> -> vector<8x512xf32>
    %71 = arith.addf %62, %70 : vector<8x512xf32>
    %c0_41 = arith.constant 0 : index
    %c0_42 = arith.constant 0 : index
    %c4544 = arith.constant 4544 : index
    %72 = vector.load %arg1[%c0_41, %c0_42, %c4544] : memref<1x4x5120xf32, #tpu.memory_space<vmem>>, vector<1x4x512xf32>
    %73 = vector.shape_cast %72 : vector<1x4x512xf32> to vector<4x512xf32>
    %74 = vector.extract_strided_slice %0 {offsets = [4, 0], sizes = [1, 512], strides = [1, 1]} : vector<8x512xf32> to vector<1x512xf32>
    %75 = vector.broadcast %74 : vector<1x512xf32> to vector<4x512xf32>
    %76 = arith.mulf %73, %75 : vector<4x512xf32>
    %c8 = arith.constant 8 : index
    %c0_43 = arith.constant 0 : index
    %c0_44 = arith.constant 0 : index
    %77 = vector.load %arg3[%c8, %c0_43, %c0_44] : memref<27x8x4xf32, #tpu.memory_space<vmem>>, vector<1x8x4xf32>
    %78 = vector.shape_cast %77 : vector<1x8x4xf32> to vector<8x4xf32>
    %cst_45 = arith.constant dense<0.000000e+00> : vector<8x512xf32>
    %79 = tpu.matmul %78, %76, %cst_45 {dimension_numbers = #tpu.dot_dimension_numbers<[1], [0], [0], [1], [0, 0, 1, 1], [], []>} : vector<8x4xf32>, vector<4x512xf32>, vector<8x512xf32> -> vector<8x512xf32>
    %80 = arith.addf %71, %79 : vector<8x512xf32>
    %c0_46 = arith.constant 0 : index
    %c0_47 = arith.constant 0 : index
    %c2039 = arith.constant 2039 : index
    %81 = vector.load %arg1[%c0_46, %c0_47, %c2039] : memref<1x4x5120xf32, #tpu.memory_space<vmem>>, vector<1x4x512xf32>
    %82 = vector.shape_cast %81 : vector<1x4x512xf32> to vector<4x512xf32>
    %83 = vector.extract_strided_slice %0 {offsets = [3, 0], sizes = [1, 512], strides = [1, 1]} : vector<8x512xf32> to vector<1x512xf32>
    %84 = vector.broadcast %83 : vector<1x512xf32> to vector<4x512xf32>
    %85 = arith.mulf %82, %84 : vector<4x512xf32>
    %c9 = arith.constant 9 : index
    %c0_48 = arith.constant 0 : index
    %c0_49 = arith.constant 0 : index
    %86 = vector.load %arg3[%c9, %c0_48, %c0_49] : memref<27x8x4xf32, #tpu.memory_space<vmem>>, vector<1x8x4xf32>
    %87 = vector.shape_cast %86 : vector<1x8x4xf32> to vector<8x4xf32>
    %cst_50 = arith.constant dense<0.000000e+00> : vector<8x512xf32>
    %88 = tpu.matmul %87, %85, %cst_50 {dimension_numbers = #tpu.dot_dimension_numbers<[1], [0], [0], [1], [0, 0, 1, 1], [], []>} : vector<8x4xf32>, vector<4x512xf32>, vector<8x512xf32> -> vector<8x512xf32>
    %89 = arith.addf %80, %88 : vector<8x512xf32>
    %c0_51 = arith.constant 0 : index
    %c0_52 = arith.constant 0 : index
    %c1400 = arith.constant 1400 : index
    %90 = vector.load %arg1[%c0_51, %c0_52, %c1400] : memref<1x4x5120xf32, #tpu.memory_space<vmem>>, vector<1x4x512xf32>
    %91 = vector.shape_cast %90 : vector<1x4x512xf32> to vector<4x512xf32>
    %92 = vector.extract_strided_slice %0 {offsets = [2, 0], sizes = [1, 512], strides = [1, 1]} : vector<8x512xf32> to vector<1x512xf32>
    %93 = vector.broadcast %92 : vector<1x512xf32> to vector<4x512xf32>
    %94 = arith.mulf %91, %93 : vector<4x512xf32>
    %c10 = arith.constant 10 : index
    %c0_53 = arith.constant 0 : index
    %c0_54 = arith.constant 0 : index
    %95 = vector.load %arg3[%c10, %c0_53, %c0_54] : memref<27x8x4xf32, #tpu.memory_space<vmem>>, vector<1x8x4xf32>
    %96 = vector.shape_cast %95 : vector<1x8x4xf32> to vector<8x4xf32>
    %cst_55 = arith.constant dense<0.000000e+00> : vector<8x512xf32>
    %97 = tpu.matmul %96, %94, %cst_55 {dimension_numbers = #tpu.dot_dimension_numbers<[1], [0], [0], [1], [0, 0, 1, 1], [], []>} : vector<8x4xf32>, vector<4x512xf32>, vector<8x512xf32> -> vector<8x512xf32>
    %98 = arith.addf %89, %97 : vector<8x512xf32>
    %c0_56 = arith.constant 0 : index
    %c0_57 = arith.constant 0 : index
    %c2040 = arith.constant 2040 : index
    %99 = vector.load %arg1[%c0_56, %c0_57, %c2040] : memref<1x4x5120xf32, #tpu.memory_space<vmem>>, vector<1x4x512xf32>
    %100 = vector.shape_cast %99 : vector<1x4x512xf32> to vector<4x512xf32>
    %101 = vector.extract_strided_slice %0 {offsets = [2, 0], sizes = [1, 512], strides = [1, 1]} : vector<8x512xf32> to vector<1x512xf32>
    %102 = vector.broadcast %101 : vector<1x512xf32> to vector<4x512xf32>
    %103 = arith.mulf %100, %102 : vector<4x512xf32>
    %c11 = arith.constant 11 : index
    %c0_58 = arith.constant 0 : index
    %c0_59 = arith.constant 0 : index
    %104 = vector.load %arg3[%c11, %c0_58, %c0_59] : memref<27x8x4xf32, #tpu.memory_space<vmem>>, vector<1x8x4xf32>
    %105 = vector.shape_cast %104 : vector<1x8x4xf32> to vector<8x4xf32>
    %cst_60 = arith.constant dense<0.000000e+00> : vector<8x512xf32>
    %106 = tpu.matmul %105, %103, %cst_60 {dimension_numbers = #tpu.dot_dimension_numbers<[1], [0], [0], [1], [0, 0, 1, 1], [], []>} : vector<8x4xf32>, vector<4x512xf32>, vector<8x512xf32> -> vector<8x512xf32>
    %107 = arith.addf %98, %106 : vector<8x512xf32>
    %c0_61 = arith.constant 0 : index
    %c0_62 = arith.constant 0 : index
    %c767 = arith.constant 767 : index
    %108 = vector.load %arg1[%c0_61, %c0_62, %c767] : memref<1x4x5120xf32, #tpu.memory_space<vmem>>, vector<1x4x512xf32>
    %109 = vector.shape_cast %108 : vector<1x4x512xf32> to vector<4x512xf32>
    %110 = vector.extract_strided_slice %0 {offsets = [1, 0], sizes = [1, 512], strides = [1, 1]} : vector<8x512xf32> to vector<1x512xf32>
    %111 = vector.broadcast %110 : vector<1x512xf32> to vector<4x512xf32>
    %112 = arith.mulf %109, %111 : vector<4x512xf32>
    %c12 = arith.constant 12 : index
    %c0_63 = arith.constant 0 : index
    %c0_64 = arith.constant 0 : index
    %113 = vector.load %arg3[%c12, %c0_63, %c0_64] : memref<27x8x4xf32, #tpu.memory_space<vmem>>, vector<1x8x4xf32>
    %114 = vector.shape_cast %113 : vector<1x8x4xf32> to vector<8x4xf32>
    %cst_65 = arith.constant dense<0.000000e+00> : vector<8x512xf32>
    %115 = tpu.matmul %114, %112, %cst_65 {dimension_numbers = #tpu.dot_dimension_numbers<[1], [0], [0], [1], [0, 0, 1, 1], [], []>} : vector<8x4xf32>, vector<4x512xf32>, vector<8x512xf32> -> vector<8x512xf32>
    %116 = arith.addf %107, %115 : vector<8x512xf32>
    %c0_66 = arith.constant 0 : index
    %c0_67 = arith.constant 0 : index
    %c128 = arith.constant 128 : index
    %117 = vector.load %arg1[%c0_66, %c0_67, %c128] : memref<1x4x5120xf32, #tpu.memory_space<vmem>>, vector<1x4x512xf32>
    %118 = vector.shape_cast %117 : vector<1x4x512xf32> to vector<4x512xf32>
    %c13 = arith.constant 13 : index
    %c0_68 = arith.constant 0 : index
    %c0_69 = arith.constant 0 : index
    %119 = vector.load %arg3[%c13, %c0_68, %c0_69] : memref<27x8x4xf32, #tpu.memory_space<vmem>>, vector<1x8x4xf32>
    %120 = vector.shape_cast %119 : vector<1x8x4xf32> to vector<8x4xf32>
    %cst_70 = arith.constant dense<0.000000e+00> : vector<8x512xf32>
    %121 = tpu.matmul %120, %118, %cst_70 {dimension_numbers = #tpu.dot_dimension_numbers<[1], [0], [0], [1], [0, 0, 1, 1], [], []>} : vector<8x4xf32>, vector<4x512xf32>, vector<8x512xf32> -> vector<8x512xf32>
    %122 = arith.addf %116, %121 : vector<8x512xf32>
    %c0_71 = arith.constant 0 : index
    %c0_72 = arith.constant 0 : index
    %c768 = arith.constant 768 : index
    %123 = vector.load %arg1[%c0_71, %c0_72, %c768] : memref<1x4x5120xf32, #tpu.memory_space<vmem>>, vector<1x4x512xf32>
    %124 = vector.shape_cast %123 : vector<1x4x512xf32> to vector<4x512xf32>
    %c14 = arith.constant 14 : index
    %c0_73 = arith.constant 0 : index
    %c0_74 = arith.constant 0 : index
    %125 = vector.load %arg3[%c14, %c0_73, %c0_74] : memref<27x8x4xf32, #tpu.memory_space<vmem>>, vector<1x8x4xf32>
    %126 = vector.shape_cast %125 : vector<1x8x4xf32> to vector<8x4xf32>
    %cst_75 = arith.constant dense<0.000000e+00> : vector<8x512xf32>
    %127 = tpu.matmul %126, %124, %cst_75 {dimension_numbers = #tpu.dot_dimension_numbers<[1], [0], [0], [1], [0, 0, 1, 1], [], []>} : vector<8x4xf32>, vector<4x512xf32>, vector<8x512xf32> -> vector<8x512xf32>
    %128 = arith.addf %122, %127 : vector<8x512xf32>
    %c0_76 = arith.constant 0 : index
    %c0_77 = arith.constant 0 : index
    %c2047 = arith.constant 2047 : index
    %129 = vector.load %arg1[%c0_76, %c0_77, %c2047] : memref<1x4x5120xf32, #tpu.memory_space<vmem>>, vector<1x4x512xf32>
    %130 = vector.shape_cast %129 : vector<1x4x512xf32> to vector<4x512xf32>
    %131 = vector.extract_strided_slice %0 {offsets = [1, 0], sizes = [1, 512], strides = [1, 1]} : vector<8x512xf32> to vector<1x512xf32>
    %132 = vector.broadcast %131 : vector<1x512xf32> to vector<4x512xf32>
    %133 = arith.mulf %130, %132 : vector<4x512xf32>
    %c15 = arith.constant 15 : index
    %c0_78 = arith.constant 0 : index
    %c0_79 = arith.constant 0 : index
    %134 = vector.load %arg3[%c15, %c0_78, %c0_79] : memref<27x8x4xf32, #tpu.memory_space<vmem>>, vector<1x8x4xf32>
    %135 = vector.shape_cast %134 : vector<1x8x4xf32> to vector<8x4xf32>
    %cst_80 = arith.constant dense<0.000000e+00> : vector<8x512xf32>
    %136 = tpu.matmul %135, %133, %cst_80 {dimension_numbers = #tpu.dot_dimension_numbers<[1], [0], [0], [1], [0, 0, 1, 1], [], []>} : vector<8x4xf32>, vector<4x512xf32>, vector<8x512xf32> -> vector<8x512xf32>
    %137 = arith.addf %128, %136 : vector<8x512xf32>
    %c0_81 = arith.constant 0 : index
    %c0_82 = arith.constant 0 : index
    %c1408 = arith.constant 1408 : index
    %138 = vector.load %arg1[%c0_81, %c0_82, %c1408] : memref<1x4x5120xf32, #tpu.memory_space<vmem>>, vector<1x4x512xf32>
    %139 = vector.shape_cast %138 : vector<1x4x512xf32> to vector<4x512xf32>
    %c16 = arith.constant 16 : index
    %c0_83 = arith.constant 0 : index
    %c0_84 = arith.constant 0 : index
    %140 = vector.load %arg3[%c16, %c0_83, %c0_84] : memref<27x8x4xf32, #tpu.memory_space<vmem>>, vector<1x8x4xf32>
    %141 = vector.shape_cast %140 : vector<1x8x4xf32> to vector<8x4xf32>
    %cst_85 = arith.constant dense<0.000000e+00> : vector<8x512xf32>
    %142 = tpu.matmul %141, %139, %cst_85 {dimension_numbers = #tpu.dot_dimension_numbers<[1], [0], [0], [1], [0, 0, 1, 1], [], []>} : vector<8x4xf32>, vector<4x512xf32>, vector<8x512xf32> -> vector<8x512xf32>
    %143 = arith.addf %137, %142 : vector<8x512xf32>
    %c0_86 = arith.constant 0 : index
    %c0_87 = arith.constant 0 : index
    %c2048 = arith.constant 2048 : index
    %144 = vector.load %arg1[%c0_86, %c0_87, %c2048] : memref<1x4x5120xf32, #tpu.memory_space<vmem>>, vector<1x4x512xf32>
    %145 = vector.shape_cast %144 : vector<1x4x512xf32> to vector<4x512xf32>
    %c17 = arith.constant 17 : index
    %c0_88 = arith.constant 0 : index
    %c0_89 = arith.constant 0 : index
    %146 = vector.load %arg3[%c17, %c0_88, %c0_89] : memref<27x8x4xf32, #tpu.memory_space<vmem>>, vector<1x8x4xf32>
    %147 = vector.shape_cast %146 : vector<1x8x4xf32> to vector<8x4xf32>
    %cst_90 = arith.constant dense<0.000000e+00> : vector<8x512xf32>
    %148 = tpu.matmul %147, %145, %cst_90 {dimension_numbers = #tpu.dot_dimension_numbers<[1], [0], [0], [1], [0, 0, 1, 1], [], []>} : vector<8x4xf32>, vector<4x512xf32>, vector<8x512xf32> -> vector<8x512xf32>
    %149 = arith.addf %143, %148 : vector<8x512xf32>
    %c0_91 = arith.constant 0 : index
    %c0_92 = arith.constant 0 : index
    %c4599 = arith.constant 4599 : index
    %150 = vector.load %arg1[%c0_91, %c0_92, %c4599] : memref<1x4x5120xf32, #tpu.memory_space<vmem>>, vector<1x4x512xf32>
    %151 = vector.shape_cast %150 : vector<1x4x512xf32> to vector<4x512xf32>
    %152 = vector.extract_strided_slice %0 {offsets = [3, 0], sizes = [1, 512], strides = [1, 1]} : vector<8x512xf32> to vector<1x512xf32>
    %153 = vector.broadcast %152 : vector<1x512xf32> to vector<4x512xf32>
    %154 = arith.mulf %151, %153 : vector<4x512xf32>
    %c18 = arith.constant 18 : index
    %c0_93 = arith.constant 0 : index
    %c0_94 = arith.constant 0 : index
    %155 = vector.load %arg3[%c18, %c0_93, %c0_94] : memref<27x8x4xf32, #tpu.memory_space<vmem>>, vector<1x8x4xf32>
    %156 = vector.shape_cast %155 : vector<1x8x4xf32> to vector<8x4xf32>
    %cst_95 = arith.constant dense<0.000000e+00> : vector<8x512xf32>
    %157 = tpu.matmul %156, %154, %cst_95 {dimension_numbers = #tpu.dot_dimension_numbers<[1], [0], [0], [1], [0, 0, 1, 1], [], []>} : vector<8x4xf32>, vector<4x512xf32>, vector<8x512xf32> -> vector<8x512xf32>
    %158 = arith.addf %149, %157 : vector<8x512xf32>
    %c0_96 = arith.constant 0 : index
    %c0_97 = arith.constant 0 : index
    %c3960 = arith.constant 3960 : index
    %159 = vector.load %arg1[%c0_96, %c0_97, %c3960] : memref<1x4x5120xf32, #tpu.memory_space<vmem>>, vector<1x4x512xf32>
    %160 = vector.shape_cast %159 : vector<1x4x512xf32> to vector<4x512xf32>
    %161 = vector.extract_strided_slice %0 {offsets = [2, 0], sizes = [1, 512], strides = [1, 1]} : vector<8x512xf32> to vector<1x512xf32>
    %162 = vector.broadcast %161 : vector<1x512xf32> to vector<4x512xf32>
    %163 = arith.mulf %160, %162 : vector<4x512xf32>
    %c19 = arith.constant 19 : index
    %c0_98 = arith.constant 0 : index
    %c0_99 = arith.constant 0 : index
    %164 = vector.load %arg3[%c19, %c0_98, %c0_99] : memref<27x8x4xf32, #tpu.memory_space<vmem>>, vector<1x8x4xf32>
    %165 = vector.shape_cast %164 : vector<1x8x4xf32> to vector<8x4xf32>
    %cst_100 = arith.constant dense<0.000000e+00> : vector<8x512xf32>
    %166 = tpu.matmul %165, %163, %cst_100 {dimension_numbers = #tpu.dot_dimension_numbers<[1], [0], [0], [1], [0, 0, 1, 1], [], []>} : vector<8x4xf32>, vector<4x512xf32>, vector<8x512xf32> -> vector<8x512xf32>
    %167 = arith.addf %158, %166 : vector<8x512xf32>
    %c0_101 = arith.constant 0 : index
    %c0_102 = arith.constant 0 : index
    %c4600 = arith.constant 4600 : index
    %168 = vector.load %arg1[%c0_101, %c0_102, %c4600] : memref<1x4x5120xf32, #tpu.memory_space<vmem>>, vector<1x4x512xf32>
    %169 = vector.shape_cast %168 : vector<1x4x512xf32> to vector<4x512xf32>
    %170 = vector.extract_strided_slice %0 {offsets = [2, 0], sizes = [1, 512], strides = [1, 1]} : vector<8x512xf32> to vector<1x512xf32>
    %171 = vector.broadcast %170 : vector<1x512xf32> to vector<4x512xf32>
    %172 = arith.mulf %169, %171 : vector<4x512xf32>
    %c20 = arith.constant 20 : index
    %c0_103 = arith.constant 0 : index
    %c0_104 = arith.constant 0 : index
    %173 = vector.load %arg3[%c20, %c0_103, %c0_104] : memref<27x8x4xf32, #tpu.memory_space<vmem>>, vector<1x8x4xf32>
    %174 = vector.shape_cast %173 : vector<1x8x4xf32> to vector<8x4xf32>
    %cst_105 = arith.constant dense<0.000000e+00> : vector<8x512xf32>
    %175 = tpu.matmul %174, %172, %cst_105 {dimension_numbers = #tpu.dot_dimension_numbers<[1], [0], [0], [1], [0, 0, 1, 1], [], []>} : vector<8x4xf32>, vector<4x512xf32>, vector<8x512xf32> -> vector<8x512xf32>
    %176 = arith.addf %167, %175 : vector<8x512xf32>
    %c0_106 = arith.constant 0 : index
    %c0_107 = arith.constant 0 : index
    %c3327 = arith.constant 3327 : index
    %177 = vector.load %arg1[%c0_106, %c0_107, %c3327] : memref<1x4x5120xf32, #tpu.memory_space<vmem>>, vector<1x4x512xf32>
    %178 = vector.shape_cast %177 : vector<1x4x512xf32> to vector<4x512xf32>
    %179 = vector.extract_strided_slice %0 {offsets = [1, 0], sizes = [1, 512], strides = [1, 1]} : vector<8x512xf32> to vector<1x512xf32>
    %180 = vector.broadcast %179 : vector<1x512xf32> to vector<4x512xf32>
    %181 = arith.mulf %178, %180 : vector<4x512xf32>
    %c21 = arith.constant 21 : index
    %c0_108 = arith.constant 0 : index
    %c0_109 = arith.constant 0 : index
    %182 = vector.load %arg3[%c21, %c0_108, %c0_109] : memref<27x8x4xf32, #tpu.memory_space<vmem>>, vector<1x8x4xf32>
    %183 = vector.shape_cast %182 : vector<1x8x4xf32> to vector<8x4xf32>
    %cst_110 = arith.constant dense<0.000000e+00> : vector<8x512xf32>
    %184 = tpu.matmul %183, %181, %cst_110 {dimension_numbers = #tpu.dot_dimension_numbers<[1], [0], [0], [1], [0, 0, 1, 1], [], []>} : vector<8x4xf32>, vector<4x512xf32>, vector<8x512xf32> -> vector<8x512xf32>
    %185 = arith.addf %176, %184 : vector<8x512xf32>
    %c0_111 = arith.constant 0 : index
    %c0_112 = arith.constant 0 : index
    %c2688 = arith.constant 2688 : index
    %186 = vector.load %arg1[%c0_111, %c0_112, %c2688] : memref<1x4x5120xf32, #tpu.memory_space<vmem>>, vector<1x4x512xf32>
    %187 = vector.shape_cast %186 : vector<1x4x512xf32> to vector<4x512xf32>
    %c22 = arith.constant 22 : index
    %c0_113 = arith.constant 0 : index
    %c0_114 = arith.constant 0 : index
    %188 = vector.load %arg3[%c22, %c0_113, %c0_114] : memref<27x8x4xf32, #tpu.memory_space<vmem>>, vector<1x8x4xf32>
    %189 = vector.shape_cast %188 : vector<1x8x4xf32> to vector<8x4xf32>
    %cst_115 = arith.constant dense<0.000000e+00> : vector<8x512xf32>
    %190 = tpu.matmul %189, %187, %cst_115 {dimension_numbers = #tpu.dot_dimension_numbers<[1], [0], [0], [1], [0, 0, 1, 1], [], []>} : vector<8x4xf32>, vector<4x512xf32>, vector<8x512xf32> -> vector<8x512xf32>
    %191 = arith.addf %185, %190 : vector<8x512xf32>
    %c0_116 = arith.constant 0 : index
    %c0_117 = arith.constant 0 : index
    %c3328 = arith.constant 3328 : index
    %192 = vector.load %arg1[%c0_116, %c0_117, %c3328] : memref<1x4x5120xf32, #tpu.memory_space<vmem>>, vector<1x4x512xf32>
    %193 = vector.shape_cast %192 : vector<1x4x512xf32> to vector<4x512xf32>
    %c23 = arith.constant 23 : index
    %c0_118 = arith.constant 0 : index
    %c0_119 = arith.constant 0 : index
    %194 = vector.load %arg3[%c23, %c0_118, %c0_119] : memref<27x8x4xf32, #tpu.memory_space<vmem>>, vector<1x8x4xf32>
    %195 = vector.shape_cast %194 : vector<1x8x4xf32> to vector<8x4xf32>
    %cst_120 = arith.constant dense<0.000000e+00> : vector<8x512xf32>
    %196 = tpu.matmul %195, %193, %cst_120 {dimension_numbers = #tpu.dot_dimension_numbers<[1], [0], [0], [1], [0, 0, 1, 1], [], []>} : vector<8x4xf32>, vector<4x512xf32>, vector<8x512xf32> -> vector<8x512xf32>
    %197 = arith.addf %191, %196 : vector<8x512xf32>
    %c0_121 = arith.constant 0 : index
    %c0_122 = arith.constant 0 : index
    %c4607 = arith.constant 4607 : index
    %198 = vector.load %arg1[%c0_121, %c0_122, %c4607] : memref<1x4x5120xf32, #tpu.memory_space<vmem>>, vector<1x4x512xf32>
    %199 = vector.shape_cast %198 : vector<1x4x512xf32> to vector<4x512xf32>
    %200 = vector.extract_strided_slice %0 {offsets = [1, 0], sizes = [1, 512], strides = [1, 1]} : vector<8x512xf32> to vector<1x512xf32>
    %201 = vector.broadcast %200 : vector<1x512xf32> to vector<4x512xf32>
    %202 = arith.mulf %199, %201 : vector<4x512xf32>
    %c24 = arith.constant 24 : index
    %c0_123 = arith.constant 0 : index
    %c0_124 = arith.constant 0 : index
    %203 = vector.load %arg3[%c24, %c0_123, %c0_124] : memref<27x8x4xf32, #tpu.memory_space<vmem>>, vector<1x8x4xf32>
    %204 = vector.shape_cast %203 : vector<1x8x4xf32> to vector<8x4xf32>
    %cst_125 = arith.constant dense<0.000000e+00> : vector<8x512xf32>
    %205 = tpu.matmul %204, %202, %cst_125 {dimension_numbers = #tpu.dot_dimension_numbers<[1], [0], [0], [1], [0, 0, 1, 1], [], []>} : vector<8x4xf32>, vector<4x512xf32>, vector<8x512xf32> -> vector<8x512xf32>
    %206 = arith.addf %197, %205 : vector<8x512xf32>
    %c0_126 = arith.constant 0 : index
    %c0_127 = arith.constant 0 : index
    %c3968 = arith.constant 3968 : index
    %207 = vector.load %arg1[%c0_126, %c0_127, %c3968] : memref<1x4x5120xf32, #tpu.memory_space<vmem>>, vector<1x4x512xf32>
    %208 = vector.shape_cast %207 : vector<1x4x512xf32> to vector<4x512xf32>
    %c25 = arith.constant 25 : index
    %c0_128 = arith.constant 0 : index
    %c0_129 = arith.constant 0 : index
    %209 = vector.load %arg3[%c25, %c0_128, %c0_129] : memref<27x8x4xf32, #tpu.memory_space<vmem>>, vector<1x8x4xf32>
    %210 = vector.shape_cast %209 : vector<1x8x4xf32> to vector<8x4xf32>
    %cst_130 = arith.constant dense<0.000000e+00> : vector<8x512xf32>
    %211 = tpu.matmul %210, %208, %cst_130 {dimension_numbers = #tpu.dot_dimension_numbers<[1], [0], [0], [1], [0, 0, 1, 1], [], []>} : vector<8x4xf32>, vector<4x512xf32>, vector<8x512xf32> -> vector<8x512xf32>
    %212 = arith.addf %206, %211 : vector<8x512xf32>
    %c0_131 = arith.constant 0 : index
    %c0_132 = arith.constant 0 : index
    %c4608 = arith.constant 4608 : index
    %213 = vector.load %arg1[%c0_131, %c0_132, %c4608] : memref<1x4x5120xf32, #tpu.memory_space<vmem>>, vector<1x4x512xf32>
    %214 = vector.shape_cast %213 : vector<1x4x512xf32> to vector<4x512xf32>
    %c26 = arith.constant 26 : index
    %c0_133 = arith.constant 0 : index
    %c0_134 = arith.constant 0 : index
    %215 = vector.load %arg3[%c26, %c0_133, %c0_134] : memref<27x8x4xf32, #tpu.memory_space<vmem>>, vector<1x8x4xf32>
    %216 = vector.shape_cast %215 : vector<1x8x4xf32> to vector<8x4xf32>
    %cst_135 = arith.constant dense<0.000000e+00> : vector<8x512xf32>
    %217 = tpu.matmul %216, %214, %cst_135 {dimension_numbers = #tpu.dot_dimension_numbers<[1], [0], [0], [1], [0, 0, 1, 1], [], []>} : vector<8x4xf32>, vector<4x512xf32>, vector<8x512xf32> -> vector<8x512xf32>
    %218 = arith.addf %212, %217 : vector<8x512xf32>
    %c0_136 = arith.constant 0 : index
    %c0_137 = arith.constant 0 : index
    %219 = vector.load %arg4[%c0_136, %c0_137] : memref<8x1xf32, #tpu.memory_space<vmem>>, vector<8x1xf32>
    %220 = vector.broadcast %219 : vector<8x1xf32> to vector<8x512xf32>
    %221 = arith.addf %218, %220 : vector<8x512xf32>
    %cst_138 = arith.constant 0.000000e+00 : f32
    %222 = vector.broadcast %cst_138 : f32 to vector<8x512xf32>
    %223 = arith.maximumf %221, %222 : vector<8x512xf32>
    %c0_139 = arith.constant 0 : index
    %c0_140 = arith.constant 0 : index
    %224 = vector.load %arg5[%c0_139, %c0_140] : memref<8x512xf32, #tpu.memory_space<vmem>>, vector<8x512xf32>
    tpu.vector_store %arg5[%c0_139, %c0_140], %223 {strides = array<i32>} : memref<8x512xf32, #tpu.memory_space<vmem>>, vector<8x512xf32>,
    return
  }
  func.func @transform_0(%arg0: i32) -> (i32, i32, i32) {
    %c0_i32 = arith.constant 0 : i32
    %c0_i32_0 = arith.constant 0 : i32
    %c0_i32_1 = arith.constant 0 : i32
    return %arg0, %c0_i32, %c0_i32_0 : i32, i32, i32
  }
  func.func @transform_1(%arg0: i32) -> (i32, i32) {
    %c0_i32 = arith.constant 0 : i32
    %c0_i32_0 = arith.constant 0 : i32
    return %c0_i32, %arg0 : i32, i32
  }
  func.func @transform_2(%arg0: i32) -> (i32, i32, i32) {
    %c0_i32 = arith.constant 0 : i32
    %c0_i32_0 = arith.constant 0 : i32
    %c0_i32_1 = arith.constant 0 : i32
    %c0_i32_2 = arith.constant 0 : i32
    return %c0_i32, %c0_i32_0, %c0_i32_1 : i32, i32, i32
  }
  func.func @transform_3(%arg0: i32) -> (i32, i32) {
    %c0_i32 = arith.constant 0 : i32
    %c0_i32_0 = arith.constant 0 : i32
    %c0_i32_1 = arith.constant 0 : i32
    return %c0_i32, %c0_i32_0 : i32, i32
  }
  func.func @transform_4(%arg0: i32) -> (i32, i32) {
    %c0_i32 = arith.constant 0 : i32
    %c0_i32_0 = arith.constant 0 : i32
    return %c0_i32, %arg0 : i32, i32
  }
}

module attributes {stable_mosaic.version = 11 : i64} {
  func.func @kernel(%arg0: i32, %arg1: memref<8x1024xf32, #tpu.memory_space<vmem>>, %arg2: memref<8x128xf32, #tpu.memory_space<vmem>>, %arg3: memref<27x8x8xf32, #tpu.memory_space<vmem>>, %arg4: memref<8x1xf32, #tpu.memory_space<vmem>>, %arg5: memref<8x16xf32, #tpu.memory_space<vmem>>, %arg6: memref<27x16x8xf32, #tpu.memory_space<vmem>>, %arg7: memref<16x1xf32, #tpu.memory_space<vmem>>, %arg8: memref<8x2xf32, #tpu.memory_space<vmem>>, %arg9: memref<27x16x16xf32, #tpu.memory_space<vmem>>, %arg10: memref<16x1xf32, #tpu.memory_space<vmem>>, %arg11: memref<128x128xf32, #tpu.memory_space<vmem>>, %arg12: memref<16x16xf32, #tpu.memory_space<vmem>>, %arg13: memref<8x128xf32, #tpu.memory_space<vmem>>, %arg14: memref<16x2xf32, #tpu.memory_space<vmem>>) attributes {dimension_semantics = [#tpu.dimension_semantics<arbitrary>], iteration_bounds = array<i64: 1>, scalar_prefetch = 0 : i64, scratch_operands = 0 : i64, tpu.core_type = #tpu.core_type<tc>, window_params = [{pipeline_mode = #tpu.pipeline_mode<synchronous>, transform_indices = @transform_0, window_bounds = array<i64: 8, 1024>}, {pipeline_mode = #tpu.pipeline_mode<synchronous>, transform_indices = @transform_1, window_bounds = array<i64: 8, 128>}, {pipeline_mode = #tpu.pipeline_mode<synchronous>, transform_indices = @transform_2, window_bounds = array<i64: 27, 8, 8>}, {pipeline_mode = #tpu.pipeline_mode<synchronous>, transform_indices = @transform_3, window_bounds = array<i64: 8, 1>}, {pipeline_mode = #tpu.pipeline_mode<synchronous>, transform_indices = @transform_4, window_bounds = array<i64: 8, 16>}, {pipeline_mode = #tpu.pipeline_mode<synchronous>, transform_indices = @transform_5, window_bounds = array<i64: 27, 16, 8>}, {pipeline_mode = #tpu.pipeline_mode<synchronous>, transform_indices = @transform_6, window_bounds = array<i64: 16, 1>}, {pipeline_mode = #tpu.pipeline_mode<synchronous>, transform_indices = @transform_7, window_bounds = array<i64: 8, 2>}, {pipeline_mode = #tpu.pipeline_mode<synchronous>, transform_indices = @transform_8, window_bounds = array<i64: 27, 16, 16>}, {pipeline_mode = #tpu.pipeline_mode<synchronous>, transform_indices = @transform_9, window_bounds = array<i64: 16, 1>}, {pipeline_mode = #tpu.pipeline_mode<synchronous>, transform_indices = @transform_10, window_bounds = array<i64: 128, 128>}, {pipeline_mode = #tpu.pipeline_mode<synchronous>, transform_indices = @transform_11, window_bounds = array<i64: 16, 16>}, {pipeline_mode = #tpu.pipeline_mode<synchronous>, transform_indices = @transform_12, window_bounds = array<i64: 8, 128>}, {pipeline_mode = #tpu.pipeline_mode<synchronous>, transform_indices = @transform_13, window_bounds = array<i64: 16, 2>}]} {
    %c0 = arith.constant 0 : index
    %c0_0 = arith.constant 0 : index
    %0 = vector.load %arg2[%c0, %c0_0] : memref<8x128xf32, #tpu.memory_space<vmem>>, vector<8x128xf32>
    %c0_1 = arith.constant 0 : index
    %c875 = arith.constant 875 : index
    %1 = vector.load %arg1[%c0_1, %c875] : memref<8x1024xf32, #tpu.memory_space<vmem>>, vector<8x128xf32>
    %2 = vector.extract_strided_slice %0 {offsets = [7, 0], sizes = [1, 128], strides = [1, 1]} : vector<8x128xf32> to vector<1x128xf32>
    %3 = vector.broadcast %2 : vector<1x128xf32> to vector<8x128xf32>
    %4 = arith.mulf %1, %3 : vector<8x128xf32>
    %c0_2 = arith.constant 0 : index
    %c0_3 = arith.constant 0 : index
    %c0_4 = arith.constant 0 : index
    %5 = vector.load %arg3[%c0_2, %c0_3, %c0_4] : memref<27x8x8xf32, #tpu.memory_space<vmem>>, vector<1x8x8xf32>
    %6 = vector.shape_cast %5 : vector<1x8x8xf32> to vector<8x8xf32>
    %cst = arith.constant dense<0.000000e+00> : vector<8x128xf32>
    %7 = tpu.matmul %6, %4, %cst {dimension_numbers = #tpu.dot_dimension_numbers<[1], [0], [0], [1], [0, 0, 1, 1], [], []>} : vector<8x8xf32>, vector<8x128xf32>, vector<8x128xf32> -> vector<8x128xf32>
    %c0_5 = arith.constant 0 : index
    %c748 = arith.constant 748 : index
    %8 = vector.load %arg1[%c0_5, %c748] : memref<8x1024xf32, #tpu.memory_space<vmem>>, vector<8x128xf32>
    %9 = vector.extract_strided_slice %0 {offsets = [6, 0], sizes = [1, 128], strides = [1, 1]} : vector<8x128xf32> to vector<1x128xf32>
    %10 = vector.broadcast %9 : vector<1x128xf32> to vector<8x128xf32>
    %11 = arith.mulf %8, %10 : vector<8x128xf32>
    %c1 = arith.constant 1 : index
    %c0_6 = arith.constant 0 : index
    %c0_7 = arith.constant 0 : index
    %12 = vector.load %arg3[%c1, %c0_6, %c0_7] : memref<27x8x8xf32, #tpu.memory_space<vmem>>, vector<1x8x8xf32>
    %13 = vector.shape_cast %12 : vector<1x8x8xf32> to vector<8x8xf32>
    %cst_8 = arith.constant dense<0.000000e+00> : vector<8x128xf32>
    %14 = tpu.matmul %13, %11, %cst_8 {dimension_numbers = #tpu.dot_dimension_numbers<[1], [0], [0], [1], [0, 0, 1, 1], [], []>} : vector<8x8xf32>, vector<8x128xf32>, vector<8x128xf32> -> vector<8x128xf32>
    %15 = arith.addf %7, %14 : vector<8x128xf32>
    %c0_9 = arith.constant 0 : index
    %c876 = arith.constant 876 : index
    %16 = vector.load %arg1[%c0_9, %c876] : memref<8x1024xf32, #tpu.memory_space<vmem>>, vector<8x128xf32>
    %17 = vector.extract_strided_slice %0 {offsets = [6, 0], sizes = [1, 128], strides = [1, 1]} : vector<8x128xf32> to vector<1x128xf32>
    %18 = vector.broadcast %17 : vector<1x128xf32> to vector<8x128xf32>
    %19 = arith.mulf %16, %18 : vector<8x128xf32>
    %c2 = arith.constant 2 : index
    %c0_10 = arith.constant 0 : index
    %c0_11 = arith.constant 0 : index
    %20 = vector.load %arg3[%c2, %c0_10, %c0_11] : memref<27x8x8xf32, #tpu.memory_space<vmem>>, vector<1x8x8xf32>
    %21 = vector.shape_cast %20 : vector<1x8x8xf32> to vector<8x8xf32>
    %cst_12 = arith.constant dense<0.000000e+00> : vector<8x128xf32>
    %22 = tpu.matmul %21, %19, %cst_12 {dimension_numbers = #tpu.dot_dimension_numbers<[1], [0], [0], [1], [0, 0, 1, 1], [], []>} : vector<8x8xf32>, vector<8x128xf32>, vector<8x128xf32> -> vector<8x128xf32>
    %23 = arith.addf %15, %22 : vector<8x128xf32>
    %c0_13 = arith.constant 0 : index
    %c623 = arith.constant 623 : index
    %24 = vector.load %arg1[%c0_13, %c623] : memref<8x1024xf32, #tpu.memory_space<vmem>>, vector<8x128xf32>
    %25 = vector.extract_strided_slice %0 {offsets = [5, 0], sizes = [1, 128], strides = [1, 1]} : vector<8x128xf32> to vector<1x128xf32>
    %26 = vector.broadcast %25 : vector<1x128xf32> to vector<8x128xf32>
    %27 = arith.mulf %24, %26 : vector<8x128xf32>
    %c3 = arith.constant 3 : index
    %c0_14 = arith.constant 0 : index
    %c0_15 = arith.constant 0 : index
    %28 = vector.load %arg3[%c3, %c0_14, %c0_15] : memref<27x8x8xf32, #tpu.memory_space<vmem>>, vector<1x8x8xf32>
    %29 = vector.shape_cast %28 : vector<1x8x8xf32> to vector<8x8xf32>
    %cst_16 = arith.constant dense<0.000000e+00> : vector<8x128xf32>
    %30 = tpu.matmul %29, %27, %cst_16 {dimension_numbers = #tpu.dot_dimension_numbers<[1], [0], [0], [1], [0, 0, 1, 1], [], []>} : vector<8x8xf32>, vector<8x128xf32>, vector<8x128xf32> -> vector<8x128xf32>
    %31 = arith.addf %23, %30 : vector<8x128xf32>
    %c0_17 = arith.constant 0 : index
    %c496 = arith.constant 496 : index
    %32 = vector.load %arg1[%c0_17, %c496] : memref<8x1024xf32, #tpu.memory_space<vmem>>, vector<8x128xf32>
    %33 = vector.extract_strided_slice %0 {offsets = [4, 0], sizes = [1, 128], strides = [1, 1]} : vector<8x128xf32> to vector<1x128xf32>
    %34 = vector.broadcast %33 : vector<1x128xf32> to vector<8x128xf32>
    %35 = arith.mulf %32, %34 : vector<8x128xf32>
    %c4 = arith.constant 4 : index
    %c0_18 = arith.constant 0 : index
    %c0_19 = arith.constant 0 : index
    %36 = vector.load %arg3[%c4, %c0_18, %c0_19] : memref<27x8x8xf32, #tpu.memory_space<vmem>>, vector<1x8x8xf32>
    %37 = vector.shape_cast %36 : vector<1x8x8xf32> to vector<8x8xf32>
    %cst_20 = arith.constant dense<0.000000e+00> : vector<8x128xf32>
    %38 = tpu.matmul %37, %35, %cst_20 {dimension_numbers = #tpu.dot_dimension_numbers<[1], [0], [0], [1], [0, 0, 1, 1], [], []>} : vector<8x8xf32>, vector<8x128xf32>, vector<8x128xf32> -> vector<8x128xf32>
    %39 = arith.addf %31, %38 : vector<8x128xf32>
    %c0_21 = arith.constant 0 : index
    %c624 = arith.constant 624 : index
    %40 = vector.load %arg1[%c0_21, %c624] : memref<8x1024xf32, #tpu.memory_space<vmem>>, vector<8x128xf32>
    %41 = vector.extract_strided_slice %0 {offsets = [4, 0], sizes = [1, 128], strides = [1, 1]} : vector<8x128xf32> to vector<1x128xf32>
    %42 = vector.broadcast %41 : vector<1x128xf32> to vector<8x128xf32>
    %43 = arith.mulf %40, %42 : vector<8x128xf32>
    %c5 = arith.constant 5 : index
    %c0_22 = arith.constant 0 : index
    %c0_23 = arith.constant 0 : index
    %44 = vector.load %arg3[%c5, %c0_22, %c0_23] : memref<27x8x8xf32, #tpu.memory_space<vmem>>, vector<1x8x8xf32>
    %45 = vector.shape_cast %44 : vector<1x8x8xf32> to vector<8x8xf32>
    %cst_24 = arith.constant dense<0.000000e+00> : vector<8x128xf32>
    %46 = tpu.matmul %45, %43, %cst_24 {dimension_numbers = #tpu.dot_dimension_numbers<[1], [0], [0], [1], [0, 0, 1, 1], [], []>} : vector<8x8xf32>, vector<8x128xf32>, vector<8x128xf32> -> vector<8x128xf32>
    %47 = arith.addf %39, %46 : vector<8x128xf32>
    %c0_25 = arith.constant 0 : index
    %c879 = arith.constant 879 : index
    %48 = vector.load %arg1[%c0_25, %c879] : memref<8x1024xf32, #tpu.memory_space<vmem>>, vector<8x128xf32>
    %49 = vector.extract_strided_slice %0 {offsets = [5, 0], sizes = [1, 128], strides = [1, 1]} : vector<8x128xf32> to vector<1x128xf32>
    %50 = vector.broadcast %49 : vector<1x128xf32> to vector<8x128xf32>
    %51 = arith.mulf %48, %50 : vector<8x128xf32>
    %c6 = arith.constant 6 : index
    %c0_26 = arith.constant 0 : index
    %c0_27 = arith.constant 0 : index
    %52 = vector.load %arg3[%c6, %c0_26, %c0_27] : memref<27x8x8xf32, #tpu.memory_space<vmem>>, vector<1x8x8xf32>
    %53 = vector.shape_cast %52 : vector<1x8x8xf32> to vector<8x8xf32>
    %cst_28 = arith.constant dense<0.000000e+00> : vector<8x128xf32>
    %54 = tpu.matmul %53, %51, %cst_28 {dimension_numbers = #tpu.dot_dimension_numbers<[1], [0], [0], [1], [0, 0, 1, 1], [], []>} : vector<8x8xf32>, vector<8x128xf32>, vector<8x128xf32> -> vector<8x128xf32>
    %55 = arith.addf %47, %54 : vector<8x128xf32>
    %c0_29 = arith.constant 0 : index
    %c752 = arith.constant 752 : index
    %56 = vector.load %arg1[%c0_29, %c752] : memref<8x1024xf32, #tpu.memory_space<vmem>>, vector<8x128xf32>
    %57 = vector.extract_strided_slice %0 {offsets = [4, 0], sizes = [1, 128], strides = [1, 1]} : vector<8x128xf32> to vector<1x128xf32>
    %58 = vector.broadcast %57 : vector<1x128xf32> to vector<8x128xf32>
    %59 = arith.mulf %56, %58 : vector<8x128xf32>
    %c7 = arith.constant 7 : index
    %c0_30 = arith.constant 0 : index
    %c0_31 = arith.constant 0 : index
    %60 = vector.load %arg3[%c7, %c0_30, %c0_31] : memref<27x8x8xf32, #tpu.memory_space<vmem>>, vector<1x8x8xf32>
    %61 = vector.shape_cast %60 : vector<1x8x8xf32> to vector<8x8xf32>
    %cst_32 = arith.constant dense<0.000000e+00> : vector<8x128xf32>
    %62 = tpu.matmul %61, %59, %cst_32 {dimension_numbers = #tpu.dot_dimension_numbers<[1], [0], [0], [1], [0, 0, 1, 1], [], []>} : vector<8x8xf32>, vector<8x128xf32>, vector<8x128xf32> -> vector<8x128xf32>
    %63 = arith.addf %55, %62 : vector<8x128xf32>
    %c0_33 = arith.constant 0 : index
    %c880 = arith.constant 880 : index
    %64 = vector.load %arg1[%c0_33, %c880] : memref<8x1024xf32, #tpu.memory_space<vmem>>, vector<8x128xf32>
    %65 = vector.extract_strided_slice %0 {offsets = [4, 0], sizes = [1, 128], strides = [1, 1]} : vector<8x128xf32> to vector<1x128xf32>
    %66 = vector.broadcast %65 : vector<1x128xf32> to vector<8x128xf32>
    %67 = arith.mulf %64, %66 : vector<8x128xf32>
    %c8 = arith.constant 8 : index
    %c0_34 = arith.constant 0 : index
    %c0_35 = arith.constant 0 : index
    %68 = vector.load %arg3[%c8, %c0_34, %c0_35] : memref<27x8x8xf32, #tpu.memory_space<vmem>>, vector<1x8x8xf32>
    %69 = vector.shape_cast %68 : vector<1x8x8xf32> to vector<8x8xf32>
    %cst_36 = arith.constant dense<0.000000e+00> : vector<8x128xf32>
    %70 = tpu.matmul %69, %67, %cst_36 {dimension_numbers = #tpu.dot_dimension_numbers<[1], [0], [0], [1], [0, 0, 1, 1], [], []>} : vector<8x8xf32>, vector<8x128xf32>, vector<8x128xf32> -> vector<8x128xf32>
    %71 = arith.addf %63, %70 : vector<8x128xf32>
    %c0_37 = arith.constant 0 : index
    %c379 = arith.constant 379 : index
    %72 = vector.load %arg1[%c0_37, %c379] : memref<8x1024xf32, #tpu.memory_space<vmem>>, vector<8x128xf32>
    %73 = vector.extract_strided_slice %0 {offsets = [3, 0], sizes = [1, 128], strides = [1, 1]} : vector<8x128xf32> to vector<1x128xf32>
    %74 = vector.broadcast %73 : vector<1x128xf32> to vector<8x128xf32>
    %75 = arith.mulf %72, %74 : vector<8x128xf32>
    %c9 = arith.constant 9 : index
    %c0_38 = arith.constant 0 : index
    %c0_39 = arith.constant 0 : index
    %76 = vector.load %arg3[%c9, %c0_38, %c0_39] : memref<27x8x8xf32, #tpu.memory_space<vmem>>, vector<1x8x8xf32>
    %77 = vector.shape_cast %76 : vector<1x8x8xf32> to vector<8x8xf32>
    %cst_40 = arith.constant dense<0.000000e+00> : vector<8x128xf32>
    %78 = tpu.matmul %77, %75, %cst_40 {dimension_numbers = #tpu.dot_dimension_numbers<[1], [0], [0], [1], [0, 0, 1, 1], [], []>} : vector<8x8xf32>, vector<8x128xf32>, vector<8x128xf32> -> vector<8x128xf32>
    %79 = arith.addf %71, %78 : vector<8x128xf32>
    %c0_41 = arith.constant 0 : index
    %c252 = arith.constant 252 : index
    %80 = vector.load %arg1[%c0_41, %c252] : memref<8x1024xf32, #tpu.memory_space<vmem>>, vector<8x128xf32>
    %81 = vector.extract_strided_slice %0 {offsets = [2, 0], sizes = [1, 128], strides = [1, 1]} : vector<8x128xf32> to vector<1x128xf32>
    %82 = vector.broadcast %81 : vector<1x128xf32> to vector<8x128xf32>
    %83 = arith.mulf %80, %82 : vector<8x128xf32>
    %c10 = arith.constant 10 : index
    %c0_42 = arith.constant 0 : index
    %c0_43 = arith.constant 0 : index
    %84 = vector.load %arg3[%c10, %c0_42, %c0_43] : memref<27x8x8xf32, #tpu.memory_space<vmem>>, vector<1x8x8xf32>
    %85 = vector.shape_cast %84 : vector<1x8x8xf32> to vector<8x8xf32>
    %cst_44 = arith.constant dense<0.000000e+00> : vector<8x128xf32>
    %86 = tpu.matmul %85, %83, %cst_44 {dimension_numbers = #tpu.dot_dimension_numbers<[1], [0], [0], [1], [0, 0, 1, 1], [], []>} : vector<8x8xf32>, vector<8x128xf32>, vector<8x128xf32> -> vector<8x128xf32>
    %87 = arith.addf %79, %86 : vector<8x128xf32>
    %c0_45 = arith.constant 0 : index
    %c380 = arith.constant 380 : index
    %88 = vector.load %arg1[%c0_45, %c380] : memref<8x1024xf32, #tpu.memory_space<vmem>>, vector<8x128xf32>
    %89 = vector.extract_strided_slice %0 {offsets = [2, 0], sizes = [1, 128], strides = [1, 1]} : vector<8x128xf32> to vector<1x128xf32>
    %90 = vector.broadcast %89 : vector<1x128xf32> to vector<8x128xf32>
    %91 = arith.mulf %88, %90 : vector<8x128xf32>
    %c11 = arith.constant 11 : index
    %c0_46 = arith.constant 0 : index
    %c0_47 = arith.constant 0 : index
    %92 = vector.load %arg3[%c11, %c0_46, %c0_47] : memref<27x8x8xf32, #tpu.memory_space<vmem>>, vector<1x8x8xf32>
    %93 = vector.shape_cast %92 : vector<1x8x8xf32> to vector<8x8xf32>
    %cst_48 = arith.constant dense<0.000000e+00> : vector<8x128xf32>
    %94 = tpu.matmul %93, %91, %cst_48 {dimension_numbers = #tpu.dot_dimension_numbers<[1], [0], [0], [1], [0, 0, 1, 1], [], []>} : vector<8x8xf32>, vector<8x128xf32>, vector<8x128xf32> -> vector<8x128xf32>
    %95 = arith.addf %87, %94 : vector<8x128xf32>
    %c0_49 = arith.constant 0 : index
    %c127 = arith.constant 127 : index
    %96 = vector.load %arg1[%c0_49, %c127] : memref<8x1024xf32, #tpu.memory_space<vmem>>, vector<8x128xf32>
    %97 = vector.extract_strided_slice %0 {offsets = [1, 0], sizes = [1, 128], strides = [1, 1]} : vector<8x128xf32> to vector<1x128xf32>
    %98 = vector.broadcast %97 : vector<1x128xf32> to vector<8x128xf32>
    %99 = arith.mulf %96, %98 : vector<8x128xf32>
    %c12 = arith.constant 12 : index
    %c0_50 = arith.constant 0 : index
    %c0_51 = arith.constant 0 : index
    %100 = vector.load %arg3[%c12, %c0_50, %c0_51] : memref<27x8x8xf32, #tpu.memory_space<vmem>>, vector<1x8x8xf32>
    %101 = vector.shape_cast %100 : vector<1x8x8xf32> to vector<8x8xf32>
    %cst_52 = arith.constant dense<0.000000e+00> : vector<8x128xf32>
    %102 = tpu.matmul %101, %99, %cst_52 {dimension_numbers = #tpu.dot_dimension_numbers<[1], [0], [0], [1], [0, 0, 1, 1], [], []>} : vector<8x8xf32>, vector<8x128xf32>, vector<8x128xf32> -> vector<8x128xf32>
    %103 = arith.addf %95, %102 : vector<8x128xf32>
    %c0_53 = arith.constant 0 : index
    %c0_54 = arith.constant 0 : index
    %104 = vector.load %arg1[%c0_53, %c0_54] : memref<8x1024xf32, #tpu.memory_space<vmem>>, vector<8x128xf32>
    %c13 = arith.constant 13 : index
    %c0_55 = arith.constant 0 : index
    %c0_56 = arith.constant 0 : index
    %105 = vector.load %arg3[%c13, %c0_55, %c0_56] : memref<27x8x8xf32, #tpu.memory_space<vmem>>, vector<1x8x8xf32>
    %106 = vector.shape_cast %105 : vector<1x8x8xf32> to vector<8x8xf32>
    %cst_57 = arith.constant dense<0.000000e+00> : vector<8x128xf32>
    %107 = tpu.matmul %106, %104, %cst_57 {dimension_numbers = #tpu.dot_dimension_numbers<[1], [0], [0], [1], [0, 0, 1, 1], [], []>} : vector<8x8xf32>, vector<8x128xf32>, vector<8x128xf32> -> vector<8x128xf32>
    %108 = arith.addf %103, %107 : vector<8x128xf32>
    %c0_58 = arith.constant 0 : index
    %c128 = arith.constant 128 : index
    %109 = vector.load %arg1[%c0_58, %c128] : memref<8x1024xf32, #tpu.memory_space<vmem>>, vector<8x128xf32>
    %c14 = arith.constant 14 : index
    %c0_59 = arith.constant 0 : index
    %c0_60 = arith.constant 0 : index
    %110 = vector.load %arg3[%c14, %c0_59, %c0_60] : memref<27x8x8xf32, #tpu.memory_space<vmem>>, vector<1x8x8xf32>
    %111 = vector.shape_cast %110 : vector<1x8x8xf32> to vector<8x8xf32>
    %cst_61 = arith.constant dense<0.000000e+00> : vector<8x128xf32>
    %112 = tpu.matmul %111, %109, %cst_61 {dimension_numbers = #tpu.dot_dimension_numbers<[1], [0], [0], [1], [0, 0, 1, 1], [], []>} : vector<8x8xf32>, vector<8x128xf32>, vector<8x128xf32> -> vector<8x128xf32>
    %113 = arith.addf %108, %112 : vector<8x128xf32>
    %c0_62 = arith.constant 0 : index
    %c383 = arith.constant 383 : index
    %114 = vector.load %arg1[%c0_62, %c383] : memref<8x1024xf32, #tpu.memory_space<vmem>>, vector<8x128xf32>
    %115 = vector.extract_strided_slice %0 {offsets = [1, 0], sizes = [1, 128], strides = [1, 1]} : vector<8x128xf32> to vector<1x128xf32>
    %116 = vector.broadcast %115 : vector<1x128xf32> to vector<8x128xf32>
    %117 = arith.mulf %114, %116 : vector<8x128xf32>
    %c15 = arith.constant 15 : index
    %c0_63 = arith.constant 0 : index
    %c0_64 = arith.constant 0 : index
    %118 = vector.load %arg3[%c15, %c0_63, %c0_64] : memref<27x8x8xf32, #tpu.memory_space<vmem>>, vector<1x8x8xf32>
    %119 = vector.shape_cast %118 : vector<1x8x8xf32> to vector<8x8xf32>
    %cst_65 = arith.constant dense<0.000000e+00> : vector<8x128xf32>
    %120 = tpu.matmul %119, %117, %cst_65 {dimension_numbers = #tpu.dot_dimension_numbers<[1], [0], [0], [1], [0, 0, 1, 1], [], []>} : vector<8x8xf32>, vector<8x128xf32>, vector<8x128xf32> -> vector<8x128xf32>
    %121 = arith.addf %113, %120 : vector<8x128xf32>
    %c0_66 = arith.constant 0 : index
    %c256 = arith.constant 256 : index
    %122 = vector.load %arg1[%c0_66, %c256] : memref<8x1024xf32, #tpu.memory_space<vmem>>, vector<8x128xf32>
    %c16 = arith.constant 16 : index
    %c0_67 = arith.constant 0 : index
    %c0_68 = arith.constant 0 : index
    %123 = vector.load %arg3[%c16, %c0_67, %c0_68] : memref<27x8x8xf32, #tpu.memory_space<vmem>>, vector<1x8x8xf32>
    %124 = vector.shape_cast %123 : vector<1x8x8xf32> to vector<8x8xf32>
    %cst_69 = arith.constant dense<0.000000e+00> : vector<8x128xf32>
    %125 = tpu.matmul %124, %122, %cst_69 {dimension_numbers = #tpu.dot_dimension_numbers<[1], [0], [0], [1], [0, 0, 1, 1], [], []>} : vector<8x8xf32>, vector<8x128xf32>, vector<8x128xf32> -> vector<8x128xf32>
    %126 = arith.addf %121, %125 : vector<8x128xf32>
    %c0_70 = arith.constant 0 : index
    %c384 = arith.constant 384 : index
    %127 = vector.load %arg1[%c0_70, %c384] : memref<8x1024xf32, #tpu.memory_space<vmem>>, vector<8x128xf32>
    %c17 = arith.constant 17 : index
    %c0_71 = arith.constant 0 : index
    %c0_72 = arith.constant 0 : index
    %128 = vector.load %arg3[%c17, %c0_71, %c0_72] : memref<27x8x8xf32, #tpu.memory_space<vmem>>, vector<1x8x8xf32>
    %129 = vector.shape_cast %128 : vector<1x8x8xf32> to vector<8x8xf32>
    %cst_73 = arith.constant dense<0.000000e+00> : vector<8x128xf32>
    %130 = tpu.matmul %129, %127, %cst_73 {dimension_numbers = #tpu.dot_dimension_numbers<[1], [0], [0], [1], [0, 0, 1, 1], [], []>} : vector<8x8xf32>, vector<8x128xf32>, vector<8x128xf32> -> vector<8x128xf32>
    %131 = arith.addf %126, %130 : vector<8x128xf32>
    %c0_74 = arith.constant 0 : index
    %c891 = arith.constant 891 : index
    %132 = vector.load %arg1[%c0_74, %c891] : memref<8x1024xf32, #tpu.memory_space<vmem>>, vector<8x128xf32>
    %133 = vector.extract_strided_slice %0 {offsets = [3, 0], sizes = [1, 128], strides = [1, 1]} : vector<8x128xf32> to vector<1x128xf32>
    %134 = vector.broadcast %133 : vector<1x128xf32> to vector<8x128xf32>
    %135 = arith.mulf %132, %134 : vector<8x128xf32>
    %c18 = arith.constant 18 : index
    %c0_75 = arith.constant 0 : index
    %c0_76 = arith.constant 0 : index
    %136 = vector.load %arg3[%c18, %c0_75, %c0_76] : memref<27x8x8xf32, #tpu.memory_space<vmem>>, vector<1x8x8xf32>
    %137 = vector.shape_cast %136 : vector<1x8x8xf32> to vector<8x8xf32>
    %cst_77 = arith.constant dense<0.000000e+00> : vector<8x128xf32>
    %138 = tpu.matmul %137, %135, %cst_77 {dimension_numbers = #tpu.dot_dimension_numbers<[1], [0], [0], [1], [0, 0, 1, 1], [], []>} : vector<8x8xf32>, vector<8x128xf32>, vector<8x128xf32> -> vector<8x128xf32>
    %139 = arith.addf %131, %138 : vector<8x128xf32>
    %c0_78 = arith.constant 0 : index
    %c764 = arith.constant 764 : index
    %140 = vector.load %arg1[%c0_78, %c764] : memref<8x1024xf32, #tpu.memory_space<vmem>>, vector<8x128xf32>
    %141 = vector.extract_strided_slice %0 {offsets = [2, 0], sizes = [1, 128], strides = [1, 1]} : vector<8x128xf32> to vector<1x128xf32>
    %142 = vector.broadcast %141 : vector<1x128xf32> to vector<8x128xf32>
    %143 = arith.mulf %140, %142 : vector<8x128xf32>
    %c19 = arith.constant 19 : index
    %c0_79 = arith.constant 0 : index
    %c0_80 = arith.constant 0 : index
    %144 = vector.load %arg3[%c19, %c0_79, %c0_80] : memref<27x8x8xf32, #tpu.memory_space<vmem>>, vector<1x8x8xf32>
    %145 = vector.shape_cast %144 : vector<1x8x8xf32> to vector<8x8xf32>
    %cst_81 = arith.constant dense<0.000000e+00> : vector<8x128xf32>
    %146 = tpu.matmul %145, %143, %cst_81 {dimension_numbers = #tpu.dot_dimension_numbers<[1], [0], [0], [1], [0, 0, 1, 1], [], []>} : vector<8x8xf32>, vector<8x128xf32>, vector<8x128xf32> -> vector<8x128xf32>
    %147 = arith.addf %139, %146 : vector<8x128xf32>
    %c0_82 = arith.constant 0 : index
    %c892 = arith.constant 892 : index
    %148 = vector.load %arg1[%c0_82, %c892] : memref<8x1024xf32, #tpu.memory_space<vmem>>, vector<8x128xf32>
    %149 = vector.extract_strided_slice %0 {offsets = [2, 0], sizes = [1, 128], strides = [1, 1]} : vector<8x128xf32> to vector<1x128xf32>
    %150 = vector.broadcast %149 : vector<1x128xf32> to vector<8x128xf32>
    %151 = arith.mulf %148, %150 : vector<8x128xf32>
    %c20 = arith.constant 20 : index
    %c0_83 = arith.constant 0 : index
    %c0_84 = arith.constant 0 : index
    %152 = vector.load %arg3[%c20, %c0_83, %c0_84] : memref<27x8x8xf32, #tpu.memory_space<vmem>>, vector<1x8x8xf32>
    %153 = vector.shape_cast %152 : vector<1x8x8xf32> to vector<8x8xf32>
    %cst_85 = arith.constant dense<0.000000e+00> : vector<8x128xf32>
    %154 = tpu.matmul %153, %151, %cst_85 {dimension_numbers = #tpu.dot_dimension_numbers<[1], [0], [0], [1], [0, 0, 1, 1], [], []>} : vector<8x8xf32>, vector<8x128xf32>, vector<8x128xf32> -> vector<8x128xf32>
    %155 = arith.addf %147, %154 : vector<8x128xf32>
    %c0_86 = arith.constant 0 : index
    %c639 = arith.constant 639 : index
    %156 = vector.load %arg1[%c0_86, %c639] : memref<8x1024xf32, #tpu.memory_space<vmem>>, vector<8x128xf32>
    %157 = vector.extract_strided_slice %0 {offsets = [1, 0], sizes = [1, 128], strides = [1, 1]} : vector<8x128xf32> to vector<1x128xf32>
    %158 = vector.broadcast %157 : vector<1x128xf32> to vector<8x128xf32>
    %159 = arith.mulf %156, %158 : vector<8x128xf32>
    %c21 = arith.constant 21 : index
    %c0_87 = arith.constant 0 : index
    %c0_88 = arith.constant 0 : index
    %160 = vector.load %arg3[%c21, %c0_87, %c0_88] : memref<27x8x8xf32, #tpu.memory_space<vmem>>, vector<1x8x8xf32>
    %161 = vector.shape_cast %160 : vector<1x8x8xf32> to vector<8x8xf32>
    %cst_89 = arith.constant dense<0.000000e+00> : vector<8x128xf32>
    %162 = tpu.matmul %161, %159, %cst_89 {dimension_numbers = #tpu.dot_dimension_numbers<[1], [0], [0], [1], [0, 0, 1, 1], [], []>} : vector<8x8xf32>, vector<8x128xf32>, vector<8x128xf32> -> vector<8x128xf32>
    %163 = arith.addf %155, %162 : vector<8x128xf32>
    %c0_90 = arith.constant 0 : index
    %c512 = arith.constant 512 : index
    %164 = vector.load %arg1[%c0_90, %c512] : memref<8x1024xf32, #tpu.memory_space<vmem>>, vector<8x128xf32>
    %c22 = arith.constant 22 : index
    %c0_91 = arith.constant 0 : index
    %c0_92 = arith.constant 0 : index
    %165 = vector.load %arg3[%c22, %c0_91, %c0_92] : memref<27x8x8xf32, #tpu.memory_space<vmem>>, vector<1x8x8xf32>
    %166 = vector.shape_cast %165 : vector<1x8x8xf32> to vector<8x8xf32>
    %cst_93 = arith.constant dense<0.000000e+00> : vector<8x128xf32>
    %167 = tpu.matmul %166, %164, %cst_93 {dimension_numbers = #tpu.dot_dimension_numbers<[1], [0], [0], [1], [0, 0, 1, 1], [], []>} : vector<8x8xf32>, vector<8x128xf32>, vector<8x128xf32> -> vector<8x128xf32>
    %168 = arith.addf %163, %167 : vector<8x128xf32>
    %c0_94 = arith.constant 0 : index
    %c640 = arith.constant 640 : index
    %169 = vector.load %arg1[%c0_94, %c640] : memref<8x1024xf32, #tpu.memory_space<vmem>>, vector<8x128xf32>
    %c23 = arith.constant 23 : index
    %c0_95 = arith.constant 0 : index
    %c0_96 = arith.constant 0 : index
    %170 = vector.load %arg3[%c23, %c0_95, %c0_96] : memref<27x8x8xf32, #tpu.memory_space<vmem>>, vector<1x8x8xf32>
    %171 = vector.shape_cast %170 : vector<1x8x8xf32> to vector<8x8xf32>
    %cst_97 = arith.constant dense<0.000000e+00> : vector<8x128xf32>
    %172 = tpu.matmul %171, %169, %cst_97 {dimension_numbers = #tpu.dot_dimension_numbers<[1], [0], [0], [1], [0, 0, 1, 1], [], []>} : vector<8x8xf32>, vector<8x128xf32>, vector<8x128xf32> -> vector<8x128xf32>
    %173 = arith.addf %168, %172 : vector<8x128xf32>
    %c0_98 = arith.constant 0 : index
    %c895 = arith.constant 895 : index
    %174 = vector.load %arg1[%c0_98, %c895] : memref<8x1024xf32, #tpu.memory_space<vmem>>, vector<8x128xf32>
    %175 = vector.extract_strided_slice %0 {offsets = [1, 0], sizes = [1, 128], strides = [1, 1]} : vector<8x128xf32> to vector<1x128xf32>
    %176 = vector.broadcast %175 : vector<1x128xf32> to vector<8x128xf32>
    %177 = arith.mulf %174, %176 : vector<8x128xf32>
    %c24 = arith.constant 24 : index
    %c0_99 = arith.constant 0 : index
    %c0_100 = arith.constant 0 : index
    %178 = vector.load %arg3[%c24, %c0_99, %c0_100] : memref<27x8x8xf32, #tpu.memory_space<vmem>>, vector<1x8x8xf32>
    %179 = vector.shape_cast %178 : vector<1x8x8xf32> to vector<8x8xf32>
    %cst_101 = arith.constant dense<0.000000e+00> : vector<8x128xf32>
    %180 = tpu.matmul %179, %177, %cst_101 {dimension_numbers = #tpu.dot_dimension_numbers<[1], [0], [0], [1], [0, 0, 1, 1], [], []>} : vector<8x8xf32>, vector<8x128xf32>, vector<8x128xf32> -> vector<8x128xf32>
    %181 = arith.addf %173, %180 : vector<8x128xf32>
    %c0_102 = arith.constant 0 : index
    %c768 = arith.constant 768 : index
    %182 = vector.load %arg1[%c0_102, %c768] : memref<8x1024xf32, #tpu.memory_space<vmem>>, vector<8x128xf32>
    %c25 = arith.constant 25 : index
    %c0_103 = arith.constant 0 : index
    %c0_104 = arith.constant 0 : index
    %183 = vector.load %arg3[%c25, %c0_103, %c0_104] : memref<27x8x8xf32, #tpu.memory_space<vmem>>, vector<1x8x8xf32>
    %184 = vector.shape_cast %183 : vector<1x8x8xf32> to vector<8x8xf32>
    %cst_105 = arith.constant dense<0.000000e+00> : vector<8x128xf32>
    %185 = tpu.matmul %184, %182, %cst_105 {dimension_numbers = #tpu.dot_dimension_numbers<[1], [0], [0], [1], [0, 0, 1, 1], [], []>} : vector<8x8xf32>, vector<8x128xf32>, vector<8x128xf32> -> vector<8x128xf32>
    %186 = arith.addf %181, %185 : vector<8x128xf32>
    %c0_106 = arith.constant 0 : index
    %c896 = arith.constant 896 : index
    %187 = vector.load %arg1[%c0_106, %c896] : memref<8x1024xf32, #tpu.memory_space<vmem>>, vector<8x128xf32>
    %c26 = arith.constant 26 : index
    %c0_107 = arith.constant 0 : index
    %c0_108 = arith.constant 0 : index
    %188 = vector.load %arg3[%c26, %c0_107, %c0_108] : memref<27x8x8xf32, #tpu.memory_space<vmem>>, vector<1x8x8xf32>
    %189 = vector.shape_cast %188 : vector<1x8x8xf32> to vector<8x8xf32>
    %cst_109 = arith.constant dense<0.000000e+00> : vector<8x128xf32>
    %190 = tpu.matmul %189, %187, %cst_109 {dimension_numbers = #tpu.dot_dimension_numbers<[1], [0], [0], [1], [0, 0, 1, 1], [], []>} : vector<8x8xf32>, vector<8x128xf32>, vector<8x128xf32> -> vector<8x128xf32>
    %191 = arith.addf %186, %190 : vector<8x128xf32>
    %c0_110 = arith.constant 0 : index
    %c0_111 = arith.constant 0 : index
    %192 = vector.load %arg4[%c0_110, %c0_111] : memref<8x1xf32, #tpu.memory_space<vmem>>, vector<8x1xf32>
    %193 = vector.broadcast %192 : vector<8x1xf32> to vector<8x128xf32>
    %194 = arith.addf %191, %193 : vector<8x128xf32>
    %cst_112 = arith.constant 0.000000e+00 : f32
    %195 = vector.broadcast %cst_112 : f32 to vector<8x128xf32>
    %196 = arith.maximumf %194, %195 : vector<8x128xf32>
    %c0_113 = arith.constant 0 : index
    %c0_114 = arith.constant 0 : index
    %197 = vector.load %arg13[%c0_113, %c0_114] : memref<8x128xf32, #tpu.memory_space<vmem>>, vector<8x128xf32>
    tpu.vector_store %arg13[%c0_113, %c0_114], %196 {strides = array<i32>} : memref<8x128xf32, #tpu.memory_space<vmem>>, vector<8x128xf32>,
    %c0_115 = arith.constant 0 : index
    %c0_116 = arith.constant 0 : index
    %198 = vector.load %arg11[%c0_115, %c0_116] : memref<128x128xf32, #tpu.memory_space<vmem>>, vector<128x128xf32>
    %cst_117 = arith.constant dense<0.000000e+00> : vector<8x128xf32>
    %199 = tpu.matmul %196, %198, %cst_117 {dimension_numbers = #tpu.dot_dimension_numbers<[1], [0], [0], [1], [0, 0, 1, 1], [], []>} : vector<8x128xf32>, vector<128x128xf32>, vector<8x128xf32> -> vector<8x128xf32>
    %c0_118 = arith.constant 0 : index
    %c0_119 = arith.constant 0 : index
    %200 = vector.load %arg5[%c0_118, %c0_119] : memref<8x16xf32, #tpu.memory_space<vmem>>, vector<8x16xf32>
    %201 = vector.extract_strided_slice %199 {offsets = [0, 105], sizes = [8, 16], strides = [1, 1]} : vector<8x128xf32> to vector<8x16xf32>
    %202 = vector.extract_strided_slice %200 {offsets = [7, 0], sizes = [1, 16], strides = [1, 1]} : vector<8x16xf32> to vector<1x16xf32>
    %203 = vector.broadcast %202 : vector<1x16xf32> to vector<8x16xf32>
    %204 = arith.mulf %201, %203 : vector<8x16xf32>
    %c0_120 = arith.constant 0 : index
    %c0_121 = arith.constant 0 : index
    %c0_122 = arith.constant 0 : index
    %205 = vector.load %arg6[%c0_120, %c0_121, %c0_122] : memref<27x16x8xf32, #tpu.memory_space<vmem>>, vector<1x16x8xf32>
    %206 = vector.shape_cast %205 : vector<1x16x8xf32> to vector<16x8xf32>
    %cst_123 = arith.constant dense<0.000000e+00> : vector<16x16xf32>
    %207 = tpu.matmul %206, %204, %cst_123 {dimension_numbers = #tpu.dot_dimension_numbers<[1], [0], [0], [1], [0, 0, 1, 1], [], []>} : vector<16x8xf32>, vector<8x16xf32>, vector<16x16xf32> -> vector<16x16xf32>
    %208 = vector.extract_strided_slice %199 {offsets = [0, 90], sizes = [8, 16], strides = [1, 1]} : vector<8x128xf32> to vector<8x16xf32>
    %209 = vector.extract_strided_slice %200 {offsets = [6, 0], sizes = [1, 16], strides = [1, 1]} : vector<8x16xf32> to vector<1x16xf32>
    %210 = vector.broadcast %209 : vector<1x16xf32> to vector<8x16xf32>
    %211 = arith.mulf %208, %210 : vector<8x16xf32>
    %c1_124 = arith.constant 1 : index
    %c0_125 = arith.constant 0 : index
    %c0_126 = arith.constant 0 : index
    %212 = vector.load %arg6[%c1_124, %c0_125, %c0_126] : memref<27x16x8xf32, #tpu.memory_space<vmem>>, vector<1x16x8xf32>
    %213 = vector.shape_cast %212 : vector<1x16x8xf32> to vector<16x8xf32>
    %cst_127 = arith.constant dense<0.000000e+00> : vector<16x16xf32>
    %214 = tpu.matmul %213, %211, %cst_127 {dimension_numbers = #tpu.dot_dimension_numbers<[1], [0], [0], [1], [0, 0, 1, 1], [], []>} : vector<16x8xf32>, vector<8x16xf32>, vector<16x16xf32> -> vector<16x16xf32>
    %215 = arith.addf %207, %214 : vector<16x16xf32>
    %216 = vector.extract_strided_slice %199 {offsets = [0, 106], sizes = [8, 16], strides = [1, 1]} : vector<8x128xf32> to vector<8x16xf32>
    %217 = vector.extract_strided_slice %200 {offsets = [6, 0], sizes = [1, 16], strides = [1, 1]} : vector<8x16xf32> to vector<1x16xf32>
    %218 = vector.broadcast %217 : vector<1x16xf32> to vector<8x16xf32>
    %219 = arith.mulf %216, %218 : vector<8x16xf32>
    %c2_128 = arith.constant 2 : index
    %c0_129 = arith.constant 0 : index
    %c0_130 = arith.constant 0 : index
    %220 = vector.load %arg6[%c2_128, %c0_129, %c0_130] : memref<27x16x8xf32, #tpu.memory_space<vmem>>, vector<1x16x8xf32>
    %221 = vector.shape_cast %220 : vector<1x16x8xf32> to vector<16x8xf32>
    %cst_131 = arith.constant dense<0.000000e+00> : vector<16x16xf32>
    %222 = tpu.matmul %221, %219, %cst_131 {dimension_numbers = #tpu.dot_dimension_numbers<[1], [0], [0], [1], [0, 0, 1, 1], [], []>} : vector<16x8xf32>, vector<8x16xf32>, vector<16x16xf32> -> vector<16x16xf32>
    %223 = arith.addf %215, %222 : vector<16x16xf32>
    %224 = vector.extract_strided_slice %199 {offsets = [0, 75], sizes = [8, 16], strides = [1, 1]} : vector<8x128xf32> to vector<8x16xf32>
    %225 = vector.extract_strided_slice %200 {offsets = [5, 0], sizes = [1, 16], strides = [1, 1]} : vector<8x16xf32> to vector<1x16xf32>
    %226 = vector.broadcast %225 : vector<1x16xf32> to vector<8x16xf32>
    %227 = arith.mulf %224, %226 : vector<8x16xf32>
    %c3_132 = arith.constant 3 : index
    %c0_133 = arith.constant 0 : index
    %c0_134 = arith.constant 0 : index
    %228 = vector.load %arg6[%c3_132, %c0_133, %c0_134] : memref<27x16x8xf32, #tpu.memory_space<vmem>>, vector<1x16x8xf32>
    %229 = vector.shape_cast %228 : vector<1x16x8xf32> to vector<16x8xf32>
    %cst_135 = arith.constant dense<0.000000e+00> : vector<16x16xf32>
    %230 = tpu.matmul %229, %227, %cst_135 {dimension_numbers = #tpu.dot_dimension_numbers<[1], [0], [0], [1], [0, 0, 1, 1], [], []>} : vector<16x8xf32>, vector<8x16xf32>, vector<16x16xf32> -> vector<16x16xf32>
    %231 = arith.addf %223, %230 : vector<16x16xf32>
    %232 = vector.extract_strided_slice %199 {offsets = [0, 60], sizes = [8, 16], strides = [1, 1]} : vector<8x128xf32> to vector<8x16xf32>
    %233 = vector.extract_strided_slice %200 {offsets = [4, 0], sizes = [1, 16], strides = [1, 1]} : vector<8x16xf32> to vector<1x16xf32>
    %234 = vector.broadcast %233 : vector<1x16xf32> to vector<8x16xf32>
    %235 = arith.mulf %232, %234 : vector<8x16xf32>
    %c4_136 = arith.constant 4 : index
    %c0_137 = arith.constant 0 : index
    %c0_138 = arith.constant 0 : index
    %236 = vector.load %arg6[%c4_136, %c0_137, %c0_138] : memref<27x16x8xf32, #tpu.memory_space<vmem>>, vector<1x16x8xf32>
    %237 = vector.shape_cast %236 : vector<1x16x8xf32> to vector<16x8xf32>
    %cst_139 = arith.constant dense<0.000000e+00> : vector<16x16xf32>
    %238 = tpu.matmul %237, %235, %cst_139 {dimension_numbers = #tpu.dot_dimension_numbers<[1], [0], [0], [1], [0, 0, 1, 1], [], []>} : vector<16x8xf32>, vector<8x16xf32>, vector<16x16xf32> -> vector<16x16xf32>
    %239 = arith.addf %231, %238 : vector<16x16xf32>
    %240 = vector.extract_strided_slice %199 {offsets = [0, 76], sizes = [8, 16], strides = [1, 1]} : vector<8x128xf32> to vector<8x16xf32>
    %241 = vector.extract_strided_slice %200 {offsets = [4, 0], sizes = [1, 16], strides = [1, 1]} : vector<8x16xf32> to vector<1x16xf32>
    %242 = vector.broadcast %241 : vector<1x16xf32> to vector<8x16xf32>
    %243 = arith.mulf %240, %242 : vector<8x16xf32>
    %c5_140 = arith.constant 5 : index
    %c0_141 = arith.constant 0 : index
    %c0_142 = arith.constant 0 : index
    %244 = vector.load %arg6[%c5_140, %c0_141, %c0_142] : memref<27x16x8xf32, #tpu.memory_space<vmem>>, vector<1x16x8xf32>
    %245 = vector.shape_cast %244 : vector<1x16x8xf32> to vector<16x8xf32>
    %cst_143 = arith.constant dense<0.000000e+00> : vector<16x16xf32>
    %246 = tpu.matmul %245, %243, %cst_143 {dimension_numbers = #tpu.dot_dimension_numbers<[1], [0], [0], [1], [0, 0, 1, 1], [], []>} : vector<16x8xf32>, vector<8x16xf32>, vector<16x16xf32> -> vector<16x16xf32>
    %247 = arith.addf %239, %246 : vector<16x16xf32>
    %248 = vector.extract_strided_slice %199 {offsets = [0, 107], sizes = [8, 16], strides = [1, 1]} : vector<8x128xf32> to vector<8x16xf32>
    %249 = vector.extract_strided_slice %200 {offsets = [5, 0], sizes = [1, 16], strides = [1, 1]} : vector<8x16xf32> to vector<1x16xf32>
    %250 = vector.broadcast %249 : vector<1x16xf32> to vector<8x16xf32>
    %251 = arith.mulf %248, %250 : vector<8x16xf32>
    %c6_144 = arith.constant 6 : index
    %c0_145 = arith.constant 0 : index
    %c0_146 = arith.constant 0 : index
    %252 = vector.load %arg6[%c6_144, %c0_145, %c0_146] : memref<27x16x8xf32, #tpu.memory_space<vmem>>, vector<1x16x8xf32>
    %253 = vector.shape_cast %252 : vector<1x16x8xf32> to vector<16x8xf32>
    %cst_147 = arith.constant dense<0.000000e+00> : vector<16x16xf32>
    %254 = tpu.matmul %253, %251, %cst_147 {dimension_numbers = #tpu.dot_dimension_numbers<[1], [0], [0], [1], [0, 0, 1, 1], [], []>} : vector<16x8xf32>, vector<8x16xf32>, vector<16x16xf32> -> vector<16x16xf32>
    %255 = arith.addf %247, %254 : vector<16x16xf32>
    %256 = vector.extract_strided_slice %199 {offsets = [0, 92], sizes = [8, 16], strides = [1, 1]} : vector<8x128xf32> to vector<8x16xf32>
    %257 = vector.extract_strided_slice %200 {offsets = [4, 0], sizes = [1, 16], strides = [1, 1]} : vector<8x16xf32> to vector<1x16xf32>
    %258 = vector.broadcast %257 : vector<1x16xf32> to vector<8x16xf32>
    %259 = arith.mulf %256, %258 : vector<8x16xf32>
    %c7_148 = arith.constant 7 : index
    %c0_149 = arith.constant 0 : index
    %c0_150 = arith.constant 0 : index
    %260 = vector.load %arg6[%c7_148, %c0_149, %c0_150] : memref<27x16x8xf32, #tpu.memory_space<vmem>>, vector<1x16x8xf32>
    %261 = vector.shape_cast %260 : vector<1x16x8xf32> to vector<16x8xf32>
    %cst_151 = arith.constant dense<0.000000e+00> : vector<16x16xf32>
    %262 = tpu.matmul %261, %259, %cst_151 {dimension_numbers = #tpu.dot_dimension_numbers<[1], [0], [0], [1], [0, 0, 1, 1], [], []>} : vector<16x8xf32>, vector<8x16xf32>, vector<16x16xf32> -> vector<16x16xf32>
    %263 = arith.addf %255, %262 : vector<16x16xf32>
    %264 = vector.extract_strided_slice %199 {offsets = [0, 108], sizes = [8, 16], strides = [1, 1]} : vector<8x128xf32> to vector<8x16xf32>
    %265 = vector.extract_strided_slice %200 {offsets = [4, 0], sizes = [1, 16], strides = [1, 1]} : vector<8x16xf32> to vector<1x16xf32>
    %266 = vector.broadcast %265 : vector<1x16xf32> to vector<8x16xf32>
    %267 = arith.mulf %264, %266 : vector<8x16xf32>
    %c8_152 = arith.constant 8 : index
    %c0_153 = arith.constant 0 : index
    %c0_154 = arith.constant 0 : index
    %268 = vector.load %arg6[%c8_152, %c0_153, %c0_154] : memref<27x16x8xf32, #tpu.memory_space<vmem>>, vector<1x16x8xf32>
    %269 = vector.shape_cast %268 : vector<1x16x8xf32> to vector<16x8xf32>
    %cst_155 = arith.constant dense<0.000000e+00> : vector<16x16xf32>
    %270 = tpu.matmul %269, %267, %cst_155 {dimension_numbers = #tpu.dot_dimension_numbers<[1], [0], [0], [1], [0, 0, 1, 1], [], []>} : vector<16x8xf32>, vector<8x16xf32>, vector<16x16xf32> -> vector<16x16xf32>
    %271 = arith.addf %263, %270 : vector<16x16xf32>
    %272 = vector.extract_strided_slice %199 {offsets = [0, 45], sizes = [8, 16], strides = [1, 1]} : vector<8x128xf32> to vector<8x16xf32>
    %273 = vector.extract_strided_slice %200 {offsets = [3, 0], sizes = [1, 16], strides = [1, 1]} : vector<8x16xf32> to vector<1x16xf32>
    %274 = vector.broadcast %273 : vector<1x16xf32> to vector<8x16xf32>
    %275 = arith.mulf %272, %274 : vector<8x16xf32>
    %c9_156 = arith.constant 9 : index
    %c0_157 = arith.constant 0 : index
    %c0_158 = arith.constant 0 : index
    %276 = vector.load %arg6[%c9_156, %c0_157, %c0_158] : memref<27x16x8xf32, #tpu.memory_space<vmem>>, vector<1x16x8xf32>
    %277 = vector.shape_cast %276 : vector<1x16x8xf32> to vector<16x8xf32>
    %cst_159 = arith.constant dense<0.000000e+00> : vector<16x16xf32>
    %278 = tpu.matmul %277, %275, %cst_159 {dimension_numbers = #tpu.dot_dimension_numbers<[1], [0], [0], [1], [0, 0, 1, 1], [], []>} : vector<16x8xf32>, vector<8x16xf32>, vector<16x16xf32> -> vector<16x16xf32>
    %279 = arith.addf %271, %278 : vector<16x16xf32>
    %280 = vector.extract_strided_slice %199 {offsets = [0, 30], sizes = [8, 16], strides = [1, 1]} : vector<8x128xf32> to vector<8x16xf32>
    %281 = vector.extract_strided_slice %200 {offsets = [2, 0], sizes = [1, 16], strides = [1, 1]} : vector<8x16xf32> to vector<1x16xf32>
    %282 = vector.broadcast %281 : vector<1x16xf32> to vector<8x16xf32>
    %283 = arith.mulf %280, %282 : vector<8x16xf32>
    %c10_160 = arith.constant 10 : index
    %c0_161 = arith.constant 0 : index
    %c0_162 = arith.constant 0 : index
    %284 = vector.load %arg6[%c10_160, %c0_161, %c0_162] : memref<27x16x8xf32, #tpu.memory_space<vmem>>, vector<1x16x8xf32>
    %285 = vector.shape_cast %284 : vector<1x16x8xf32> to vector<16x8xf32>
    %cst_163 = arith.constant dense<0.000000e+00> : vector<16x16xf32>
    %286 = tpu.matmul %285, %283, %cst_163 {dimension_numbers = #tpu.dot_dimension_numbers<[1], [0], [0], [1], [0, 0, 1, 1], [], []>} : vector<16x8xf32>, vector<8x16xf32>, vector<16x16xf32> -> vector<16x16xf32>
    %287 = arith.addf %279, %286 : vector<16x16xf32>
    %288 = vector.extract_strided_slice %199 {offsets = [0, 46], sizes = [8, 16], strides = [1, 1]} : vector<8x128xf32> to vector<8x16xf32>
    %289 = vector.extract_strided_slice %200 {offsets = [2, 0], sizes = [1, 16], strides = [1, 1]} : vector<8x16xf32> to vector<1x16xf32>
    %290 = vector.broadcast %289 : vector<1x16xf32> to vector<8x16xf32>
    %291 = arith.mulf %288, %290 : vector<8x16xf32>
    %c11_164 = arith.constant 11 : index
    %c0_165 = arith.constant 0 : index
    %c0_166 = arith.constant 0 : index
    %292 = vector.load %arg6[%c11_164, %c0_165, %c0_166] : memref<27x16x8xf32, #tpu.memory_space<vmem>>, vector<1x16x8xf32>
    %293 = vector.shape_cast %292 : vector<1x16x8xf32> to vector<16x8xf32>
    %cst_167 = arith.constant dense<0.000000e+00> : vector<16x16xf32>
    %294 = tpu.matmul %293, %291, %cst_167 {dimension_numbers = #tpu.dot_dimension_numbers<[1], [0], [0], [1], [0, 0, 1, 1], [], []>} : vector<16x8xf32>, vector<8x16xf32>, vector<16x16xf32> -> vector<16x16xf32>
    %295 = arith.addf %287, %294 : vector<16x16xf32>
    %296 = vector.extract_strided_slice %199 {offsets = [0, 15], sizes = [8, 16], strides = [1, 1]} : vector<8x128xf32> to vector<8x16xf32>
    %297 = vector.extract_strided_slice %200 {offsets = [1, 0], sizes = [1, 16], strides = [1, 1]} : vector<8x16xf32> to vector<1x16xf32>
    %298 = vector.broadcast %297 : vector<1x16xf32> to vector<8x16xf32>
    %299 = arith.mulf %296, %298 : vector<8x16xf32>
    %c12_168 = arith.constant 12 : index
    %c0_169 = arith.constant 0 : index
    %c0_170 = arith.constant 0 : index
    %300 = vector.load %arg6[%c12_168, %c0_169, %c0_170] : memref<27x16x8xf32, #tpu.memory_space<vmem>>, vector<1x16x8xf32>
    %301 = vector.shape_cast %300 : vector<1x16x8xf32> to vector<16x8xf32>
    %cst_171 = arith.constant dense<0.000000e+00> : vector<16x16xf32>
    %302 = tpu.matmul %301, %299, %cst_171 {dimension_numbers = #tpu.dot_dimension_numbers<[1], [0], [0], [1], [0, 0, 1, 1], [], []>} : vector<16x8xf32>, vector<8x16xf32>, vector<16x16xf32> -> vector<16x16xf32>
    %303 = arith.addf %295, %302 : vector<16x16xf32>
    %304 = vector.extract_strided_slice %199 {offsets = [0, 0], sizes = [8, 16], strides = [1, 1]} : vector<8x128xf32> to vector<8x16xf32>
    %c13_172 = arith.constant 13 : index
    %c0_173 = arith.constant 0 : index
    %c0_174 = arith.constant 0 : index
    %305 = vector.load %arg6[%c13_172, %c0_173, %c0_174] : memref<27x16x8xf32, #tpu.memory_space<vmem>>, vector<1x16x8xf32>
    %306 = vector.shape_cast %305 : vector<1x16x8xf32> to vector<16x8xf32>
    %cst_175 = arith.constant dense<0.000000e+00> : vector<16x16xf32>
    %307 = tpu.matmul %306, %304, %cst_175 {dimension_numbers = #tpu.dot_dimension_numbers<[1], [0], [0], [1], [0, 0, 1, 1], [], []>} : vector<16x8xf32>, vector<8x16xf32>, vector<16x16xf32> -> vector<16x16xf32>
    %308 = arith.addf %303, %307 : vector<16x16xf32>
    %309 = vector.extract_strided_slice %199 {offsets = [0, 16], sizes = [8, 16], strides = [1, 1]} : vector<8x128xf32> to vector<8x16xf32>
    %c14_176 = arith.constant 14 : index
    %c0_177 = arith.constant 0 : index
    %c0_178 = arith.constant 0 : index
    %310 = vector.load %arg6[%c14_176, %c0_177, %c0_178] : memref<27x16x8xf32, #tpu.memory_space<vmem>>, vector<1x16x8xf32>
    %311 = vector.shape_cast %310 : vector<1x16x8xf32> to vector<16x8xf32>
    %cst_179 = arith.constant dense<0.000000e+00> : vector<16x16xf32>
    %312 = tpu.matmul %311, %309, %cst_179 {dimension_numbers = #tpu.dot_dimension_numbers<[1], [0], [0], [1], [0, 0, 1, 1], [], []>} : vector<16x8xf32>, vector<8x16xf32>, vector<16x16xf32> -> vector<16x16xf32>
    %313 = arith.addf %308, %312 : vector<16x16xf32>
    %314 = vector.extract_strided_slice %199 {offsets = [0, 47], sizes = [8, 16], strides = [1, 1]} : vector<8x128xf32> to vector<8x16xf32>
    %315 = vector.extract_strided_slice %200 {offsets = [1, 0], sizes = [1, 16], strides = [1, 1]} : vector<8x16xf32> to vector<1x16xf32>
    %316 = vector.broadcast %315 : vector<1x16xf32> to vector<8x16xf32>
    %317 = arith.mulf %314, %316 : vector<8x16xf32>
    %c15_180 = arith.constant 15 : index
    %c0_181 = arith.constant 0 : index
    %c0_182 = arith.constant 0 : index
    %318 = vector.load %arg6[%c15_180, %c0_181, %c0_182] : memref<27x16x8xf32, #tpu.memory_space<vmem>>, vector<1x16x8xf32>
    %319 = vector.shape_cast %318 : vector<1x16x8xf32> to vector<16x8xf32>
    %cst_183 = arith.constant dense<0.000000e+00> : vector<16x16xf32>
    %320 = tpu.matmul %319, %317, %cst_183 {dimension_numbers = #tpu.dot_dimension_numbers<[1], [0], [0], [1], [0, 0, 1, 1], [], []>} : vector<16x8xf32>, vector<8x16xf32>, vector<16x16xf32> -> vector<16x16xf32>
    %321 = arith.addf %313, %320 : vector<16x16xf32>
    %322 = vector.extract_strided_slice %199 {offsets = [0, 32], sizes = [8, 16], strides = [1, 1]} : vector<8x128xf32> to vector<8x16xf32>
    %c16_184 = arith.constant 16 : index
    %c0_185 = arith.constant 0 : index
    %c0_186 = arith.constant 0 : index
    %323 = vector.load %arg6[%c16_184, %c0_185, %c0_186] : memref<27x16x8xf32, #tpu.memory_space<vmem>>, vector<1x16x8xf32>
    %324 = vector.shape_cast %323 : vector<1x16x8xf32> to vector<16x8xf32>
    %cst_187 = arith.constant dense<0.000000e+00> : vector<16x16xf32>
    %325 = tpu.matmul %324, %322, %cst_187 {dimension_numbers = #tpu.dot_dimension_numbers<[1], [0], [0], [1], [0, 0, 1, 1], [], []>} : vector<16x8xf32>, vector<8x16xf32>, vector<16x16xf32> -> vector<16x16xf32>
    %326 = arith.addf %321, %325 : vector<16x16xf32>
    %327 = vector.extract_strided_slice %199 {offsets = [0, 48], sizes = [8, 16], strides = [1, 1]} : vector<8x128xf32> to vector<8x16xf32>
    %c17_188 = arith.constant 17 : index
    %c0_189 = arith.constant 0 : index
    %c0_190 = arith.constant 0 : index
    %328 = vector.load %arg6[%c17_188, %c0_189, %c0_190] : memref<27x16x8xf32, #tpu.memory_space<vmem>>, vector<1x16x8xf32>
    %329 = vector.shape_cast %328 : vector<1x16x8xf32> to vector<16x8xf32>
    %cst_191 = arith.constant dense<0.000000e+00> : vector<16x16xf32>
    %330 = tpu.matmul %329, %327, %cst_191 {dimension_numbers = #tpu.dot_dimension_numbers<[1], [0], [0], [1], [0, 0, 1, 1], [], []>} : vector<16x8xf32>, vector<8x16xf32>, vector<16x16xf32> -> vector<16x16xf32>
    %331 = arith.addf %326, %330 : vector<16x16xf32>
    %332 = vector.extract_strided_slice %199 {offsets = [0, 109], sizes = [8, 16], strides = [1, 1]} : vector<8x128xf32> to vector<8x16xf32>
    %333 = vector.extract_strided_slice %200 {offsets = [3, 0], sizes = [1, 16], strides = [1, 1]} : vector<8x16xf32> to vector<1x16xf32>
    %334 = vector.broadcast %333 : vector<1x16xf32> to vector<8x16xf32>
    %335 = arith.mulf %332, %334 : vector<8x16xf32>
    %c18_192 = arith.constant 18 : index
    %c0_193 = arith.constant 0 : index
    %c0_194 = arith.constant 0 : index
    %336 = vector.load %arg6[%c18_192, %c0_193, %c0_194] : memref<27x16x8xf32, #tpu.memory_space<vmem>>, vector<1x16x8xf32>
    %337 = vector.shape_cast %336 : vector<1x16x8xf32> to vector<16x8xf32>
    %cst_195 = arith.constant dense<0.000000e+00> : vector<16x16xf32>
    %338 = tpu.matmul %337, %335, %cst_195 {dimension_numbers = #tpu.dot_dimension_numbers<[1], [0], [0], [1], [0, 0, 1, 1], [], []>} : vector<16x8xf32>, vector<8x16xf32>, vector<16x16xf32> -> vector<16x16xf32>
    %339 = arith.addf %331, %338 : vector<16x16xf32>
    %340 = vector.extract_strided_slice %199 {offsets = [0, 94], sizes = [8, 16], strides = [1, 1]} : vector<8x128xf32> to vector<8x16xf32>
    %341 = vector.extract_strided_slice %200 {offsets = [2, 0], sizes = [1, 16], strides = [1, 1]} : vector<8x16xf32> to vector<1x16xf32>
    %342 = vector.broadcast %341 : vector<1x16xf32> to vector<8x16xf32>
    %343 = arith.mulf %340, %342 : vector<8x16xf32>
    %c19_196 = arith.constant 19 : index
    %c0_197 = arith.constant 0 : index
    %c0_198 = arith.constant 0 : index
    %344 = vector.load %arg6[%c19_196, %c0_197, %c0_198] : memref<27x16x8xf32, #tpu.memory_space<vmem>>, vector<1x16x8xf32>
    %345 = vector.shape_cast %344 : vector<1x16x8xf32> to vector<16x8xf32>
    %cst_199 = arith.constant dense<0.000000e+00> : vector<16x16xf32>
    %346 = tpu.matmul %345, %343, %cst_199 {dimension_numbers = #tpu.dot_dimension_numbers<[1], [0], [0], [1], [0, 0, 1, 1], [], []>} : vector<16x8xf32>, vector<8x16xf32>, vector<16x16xf32> -> vector<16x16xf32>
    %347 = arith.addf %339, %346 : vector<16x16xf32>
    %348 = vector.extract_strided_slice %199 {offsets = [0, 110], sizes = [8, 16], strides = [1, 1]} : vector<8x128xf32> to vector<8x16xf32>
    %349 = vector.extract_strided_slice %200 {offsets = [2, 0], sizes = [1, 16], strides = [1, 1]} : vector<8x16xf32> to vector<1x16xf32>
    %350 = vector.broadcast %349 : vector<1x16xf32> to vector<8x16xf32>
    %351 = arith.mulf %348, %350 : vector<8x16xf32>
    %c20_200 = arith.constant 20 : index
    %c0_201 = arith.constant 0 : index
    %c0_202 = arith.constant 0 : index
    %352 = vector.load %arg6[%c20_200, %c0_201, %c0_202] : memref<27x16x8xf32, #tpu.memory_space<vmem>>, vector<1x16x8xf32>
    %353 = vector.shape_cast %352 : vector<1x16x8xf32> to vector<16x8xf32>
    %cst_203 = arith.constant dense<0.000000e+00> : vector<16x16xf32>
    %354 = tpu.matmul %353, %351, %cst_203 {dimension_numbers = #tpu.dot_dimension_numbers<[1], [0], [0], [1], [0, 0, 1, 1], [], []>} : vector<16x8xf32>, vector<8x16xf32>, vector<16x16xf32> -> vector<16x16xf32>
    %355 = arith.addf %347, %354 : vector<16x16xf32>
    %356 = vector.extract_strided_slice %199 {offsets = [0, 79], sizes = [8, 16], strides = [1, 1]} : vector<8x128xf32> to vector<8x16xf32>
    %357 = vector.extract_strided_slice %200 {offsets = [1, 0], sizes = [1, 16], strides = [1, 1]} : vector<8x16xf32> to vector<1x16xf32>
    %358 = vector.broadcast %357 : vector<1x16xf32> to vector<8x16xf32>
    %359 = arith.mulf %356, %358 : vector<8x16xf32>
    %c21_204 = arith.constant 21 : index
    %c0_205 = arith.constant 0 : index
    %c0_206 = arith.constant 0 : index
    %360 = vector.load %arg6[%c21_204, %c0_205, %c0_206] : memref<27x16x8xf32, #tpu.memory_space<vmem>>, vector<1x16x8xf32>
    %361 = vector.shape_cast %360 : vector<1x16x8xf32> to vector<16x8xf32>
    %cst_207 = arith.constant dense<0.000000e+00> : vector<16x16xf32>
    %362 = tpu.matmul %361, %359, %cst_207 {dimension_numbers = #tpu.dot_dimension_numbers<[1], [0], [0], [1], [0, 0, 1, 1], [], []>} : vector<16x8xf32>, vector<8x16xf32>, vector<16x16xf32> -> vector<16x16xf32>
    %363 = arith.addf %355, %362 : vector<16x16xf32>
    %364 = vector.extract_strided_slice %199 {offsets = [0, 64], sizes = [8, 16], strides = [1, 1]} : vector<8x128xf32> to vector<8x16xf32>
    %c22_208 = arith.constant 22 : index
    %c0_209 = arith.constant 0 : index
    %c0_210 = arith.constant 0 : index
    %365 = vector.load %arg6[%c22_208, %c0_209, %c0_210] : memref<27x16x8xf32, #tpu.memory_space<vmem>>, vector<1x16x8xf32>
    %366 = vector.shape_cast %365 : vector<1x16x8xf32> to vector<16x8xf32>
    %cst_211 = arith.constant dense<0.000000e+00> : vector<16x16xf32>
    %367 = tpu.matmul %366, %364, %cst_211 {dimension_numbers = #tpu.dot_dimension_numbers<[1], [0], [0], [1], [0, 0, 1, 1], [], []>} : vector<16x8xf32>, vector<8x16xf32>, vector<16x16xf32> -> vector<16x16xf32>
    %368 = arith.addf %363, %367 : vector<16x16xf32>
    %369 = vector.extract_strided_slice %199 {offsets = [0, 80], sizes = [8, 16], strides = [1, 1]} : vector<8x128xf32> to vector<8x16xf32>
    %c23_212 = arith.constant 23 : index
    %c0_213 = arith.constant 0 : index
    %c0_214 = arith.constant 0 : index
    %370 = vector.load %arg6[%c23_212, %c0_213, %c0_214] : memref<27x16x8xf32, #tpu.memory_space<vmem>>, vector<1x16x8xf32>
    %371 = vector.shape_cast %370 : vector<1x16x8xf32> to vector<16x8xf32>
    %cst_215 = arith.constant dense<0.000000e+00> : vector<16x16xf32>
    %372 = tpu.matmul %371, %369, %cst_215 {dimension_numbers = #tpu.dot_dimension_numbers<[1], [0], [0], [1], [0, 0, 1, 1], [], []>} : vector<16x8xf32>, vector<8x16xf32>, vector<16x16xf32> -> vector<16x16xf32>
    %373 = arith.addf %368, %372 : vector<16x16xf32>
    %374 = vector.extract_strided_slice %199 {offsets = [0, 111], sizes = [8, 16], strides = [1, 1]} : vector<8x128xf32> to vector<8x16xf32>
    %375 = vector.extract_strided_slice %200 {offsets = [1, 0], sizes = [1, 16], strides = [1, 1]} : vector<8x16xf32> to vector<1x16xf32>
    %376 = vector.broadcast %375 : vector<1x16xf32> to vector<8x16xf32>
    %377 = arith.mulf %374, %376 : vector<8x16xf32>
    %c24_216 = arith.constant 24 : index
    %c0_217 = arith.constant 0 : index
    %c0_218 = arith.constant 0 : index
    %378 = vector.load %arg6[%c24_216, %c0_217, %c0_218] : memref<27x16x8xf32, #tpu.memory_space<vmem>>, vector<1x16x8xf32>
    %379 = vector.shape_cast %378 : vector<1x16x8xf32> to vector<16x8xf32>
    %cst_219 = arith.constant dense<0.000000e+00> : vector<16x16xf32>
    %380 = tpu.matmul %379, %377, %cst_219 {dimension_numbers = #tpu.dot_dimension_numbers<[1], [0], [0], [1], [0, 0, 1, 1], [], []>} : vector<16x8xf32>, vector<8x16xf32>, vector<16x16xf32> -> vector<16x16xf32>
    %381 = arith.addf %373, %380 : vector<16x16xf32>
    %382 = vector.extract_strided_slice %199 {offsets = [0, 96], sizes = [8, 16], strides = [1, 1]} : vector<8x128xf32> to vector<8x16xf32>
    %c25_220 = arith.constant 25 : index
    %c0_221 = arith.constant 0 : index
    %c0_222 = arith.constant 0 : index
    %383 = vector.load %arg6[%c25_220, %c0_221, %c0_222] : memref<27x16x8xf32, #tpu.memory_space<vmem>>, vector<1x16x8xf32>
    %384 = vector.shape_cast %383 : vector<1x16x8xf32> to vector<16x8xf32>
    %cst_223 = arith.constant dense<0.000000e+00> : vector<16x16xf32>
    %385 = tpu.matmul %384, %382, %cst_223 {dimension_numbers = #tpu.dot_dimension_numbers<[1], [0], [0], [1], [0, 0, 1, 1], [], []>} : vector<16x8xf32>, vector<8x16xf32>, vector<16x16xf32> -> vector<16x16xf32>
    %386 = arith.addf %381, %385 : vector<16x16xf32>
    %387 = vector.extract_strided_slice %199 {offsets = [0, 112], sizes = [8, 16], strides = [1, 1]} : vector<8x128xf32> to vector<8x16xf32>
    %c26_224 = arith.constant 26 : index
    %c0_225 = arith.constant 0 : index
    %c0_226 = arith.constant 0 : index
    %388 = vector.load %arg6[%c26_224, %c0_225, %c0_226] : memref<27x16x8xf32, #tpu.memory_space<vmem>>, vector<1x16x8xf32>
    %389 = vector.shape_cast %388 : vector<1x16x8xf32> to vector<16x8xf32>
    %cst_227 = arith.constant dense<0.000000e+00> : vector<16x16xf32>
    %390 = tpu.matmul %389, %387, %cst_227 {dimension_numbers = #tpu.dot_dimension_numbers<[1], [0], [0], [1], [0, 0, 1, 1], [], []>} : vector<16x8xf32>, vector<8x16xf32>, vector<16x16xf32> -> vector<16x16xf32>
    %391 = arith.addf %386, %390 : vector<16x16xf32>
    %c0_228 = arith.constant 0 : index
    %c0_229 = arith.constant 0 : index
    %392 = vector.load %arg7[%c0_228, %c0_229] : memref<16x1xf32, #tpu.memory_space<vmem>>, vector<16x1xf32>
    %393 = vector.broadcast %392 : vector<16x1xf32> to vector<16x16xf32>
    %394 = arith.addf %391, %393 : vector<16x16xf32>
    %cst_230 = arith.constant 0.000000e+00 : f32
    %395 = vector.broadcast %cst_230 : f32 to vector<16x16xf32>
    %396 = arith.maximumf %394, %395 : vector<16x16xf32>
    %c0_231 = arith.constant 0 : index
    %c0_232 = arith.constant 0 : index
    %397 = vector.load %arg12[%c0_231, %c0_232] : memref<16x16xf32, #tpu.memory_space<vmem>>, vector<16x16xf32>
    %cst_233 = arith.constant dense<0.000000e+00> : vector<16x16xf32>
    %398 = tpu.matmul %396, %397, %cst_233 {dimension_numbers = #tpu.dot_dimension_numbers<[1], [0], [0], [1], [0, 0, 1, 1], [], []>} : vector<16x16xf32>, vector<16x16xf32>, vector<16x16xf32> -> vector<16x16xf32>
    %c0_234 = arith.constant 0 : index
    %c0_235 = arith.constant 0 : index
    %399 = vector.load %arg8[%c0_234, %c0_235] : memref<8x2xf32, #tpu.memory_space<vmem>>, vector<8x2xf32>
    %400 = vector.extract_strided_slice %398 {offsets = [0, 11], sizes = [16, 2], strides = [1, 1]} : vector<16x16xf32> to vector<16x2xf32>
    %401 = vector.extract_strided_slice %399 {offsets = [7, 0], sizes = [1, 2], strides = [1, 1]} : vector<8x2xf32> to vector<1x2xf32>
    %402 = vector.broadcast %401 : vector<1x2xf32> to vector<16x2xf32>
    %403 = arith.mulf %400, %402 : vector<16x2xf32>
    %c0_236 = arith.constant 0 : index
    %c0_237 = arith.constant 0 : index
    %c0_238 = arith.constant 0 : index
    %404 = vector.load %arg9[%c0_236, %c0_237, %c0_238] : memref<27x16x16xf32, #tpu.memory_space<vmem>>, vector<1x16x16xf32>
    %405 = vector.shape_cast %404 : vector<1x16x16xf32> to vector<16x16xf32>
    %cst_239 = arith.constant dense<0.000000e+00> : vector<16x2xf32>
    %406 = tpu.matmul %405, %403, %cst_239 {dimension_numbers = #tpu.dot_dimension_numbers<[1], [0], [0], [1], [0, 0, 1, 1], [], []>} : vector<16x16xf32>, vector<16x2xf32>, vector<16x2xf32> -> vector<16x2xf32>
    %407 = vector.extract_strided_slice %398 {offsets = [0, 10], sizes = [16, 2], strides = [1, 1]} : vector<16x16xf32> to vector<16x2xf32>
    %408 = vector.extract_strided_slice %399 {offsets = [6, 0], sizes = [1, 2], strides = [1, 1]} : vector<8x2xf32> to vector<1x2xf32>
    %409 = vector.broadcast %408 : vector<1x2xf32> to vector<16x2xf32>
    %410 = arith.mulf %407, %409 : vector<16x2xf32>
    %c1_240 = arith.constant 1 : index
    %c0_241 = arith.constant 0 : index
    %c0_242 = arith.constant 0 : index
    %411 = vector.load %arg9[%c1_240, %c0_241, %c0_242] : memref<27x16x16xf32, #tpu.memory_space<vmem>>, vector<1x16x16xf32>
    %412 = vector.shape_cast %411 : vector<1x16x16xf32> to vector<16x16xf32>
    %cst_243 = arith.constant dense<0.000000e+00> : vector<16x2xf32>
    %413 = tpu.matmul %412, %410, %cst_243 {dimension_numbers = #tpu.dot_dimension_numbers<[1], [0], [0], [1], [0, 0, 1, 1], [], []>} : vector<16x16xf32>, vector<16x2xf32>, vector<16x2xf32> -> vector<16x2xf32>
    %414 = arith.addf %406, %413 : vector<16x2xf32>
    %415 = vector.extract_strided_slice %398 {offsets = [0, 12], sizes = [16, 2], strides = [1, 1]} : vector<16x16xf32> to vector<16x2xf32>
    %416 = vector.extract_strided_slice %399 {offsets = [6, 0], sizes = [1, 2], strides = [1, 1]} : vector<8x2xf32> to vector<1x2xf32>
    %417 = vector.broadcast %416 : vector<1x2xf32> to vector<16x2xf32>
    %418 = arith.mulf %415, %417 : vector<16x2xf32>
    %c2_244 = arith.constant 2 : index
    %c0_245 = arith.constant 0 : index
    %c0_246 = arith.constant 0 : index
    %419 = vector.load %arg9[%c2_244, %c0_245, %c0_246] : memref<27x16x16xf32, #tpu.memory_space<vmem>>, vector<1x16x16xf32>
    %420 = vector.shape_cast %419 : vector<1x16x16xf32> to vector<16x16xf32>
    %cst_247 = arith.constant dense<0.000000e+00> : vector<16x2xf32>
    %421 = tpu.matmul %420, %418, %cst_247 {dimension_numbers = #tpu.dot_dimension_numbers<[1], [0], [0], [1], [0, 0, 1, 1], [], []>} : vector<16x16xf32>, vector<16x2xf32>, vector<16x2xf32> -> vector<16x2xf32>
    %422 = arith.addf %414, %421 : vector<16x2xf32>
    %423 = vector.extract_strided_slice %398 {offsets = [0, 8], sizes = [16, 2], strides = [1, 1]} : vector<16x16xf32> to vector<16x2xf32>
    %424 = vector.extract_strided_slice %399 {offsets = [5, 0], sizes = [1, 2], strides = [1, 1]} : vector<8x2xf32> to vector<1x2xf32>
    %425 = vector.broadcast %424 : vector<1x2xf32> to vector<16x2xf32>
    %426 = arith.mulf %423, %425 : vector<16x2xf32>
    %c3_248 = arith.constant 3 : index
    %c0_249 = arith.constant 0 : index
    %c0_250 = arith.constant 0 : index
    %427 = vector.load %arg9[%c3_248, %c0_249, %c0_250] : memref<27x16x16xf32, #tpu.memory_space<vmem>>, vector<1x16x16xf32>
    %428 = vector.shape_cast %427 : vector<1x16x16xf32> to vector<16x16xf32>
    %cst_251 = arith.constant dense<0.000000e+00> : vector<16x2xf32>
    %429 = tpu.matmul %428, %426, %cst_251 {dimension_numbers = #tpu.dot_dimension_numbers<[1], [0], [0], [1], [0, 0, 1, 1], [], []>} : vector<16x16xf32>, vector<16x2xf32>, vector<16x2xf32> -> vector<16x2xf32>
    %430 = arith.addf %422, %429 : vector<16x2xf32>
    %431 = vector.extract_strided_slice %398 {offsets = [0, 7], sizes = [16, 2], strides = [1, 1]} : vector<16x16xf32> to vector<16x2xf32>
    %432 = vector.extract_strided_slice %399 {offsets = [4, 0], sizes = [1, 2], strides = [1, 1]} : vector<8x2xf32> to vector<1x2xf32>
    %433 = vector.broadcast %432 : vector<1x2xf32> to vector<16x2xf32>
    %434 = arith.mulf %431, %433 : vector<16x2xf32>
    %c4_252 = arith.constant 4 : index
    %c0_253 = arith.constant 0 : index
    %c0_254 = arith.constant 0 : index
    %435 = vector.load %arg9[%c4_252, %c0_253, %c0_254] : memref<27x16x16xf32, #tpu.memory_space<vmem>>, vector<1x16x16xf32>
    %436 = vector.shape_cast %435 : vector<1x16x16xf32> to vector<16x16xf32>
    %cst_255 = arith.constant dense<0.000000e+00> : vector<16x2xf32>
    %437 = tpu.matmul %436, %434, %cst_255 {dimension_numbers = #tpu.dot_dimension_numbers<[1], [0], [0], [1], [0, 0, 1, 1], [], []>} : vector<16x16xf32>, vector<16x2xf32>, vector<16x2xf32> -> vector<16x2xf32>
    %438 = arith.addf %430, %437 : vector<16x2xf32>
    %439 = vector.extract_strided_slice %398 {offsets = [0, 9], sizes = [16, 2], strides = [1, 1]} : vector<16x16xf32> to vector<16x2xf32>
    %440 = vector.extract_strided_slice %399 {offsets = [4, 0], sizes = [1, 2], strides = [1, 1]} : vector<8x2xf32> to vector<1x2xf32>
    %441 = vector.broadcast %440 : vector<1x2xf32> to vector<16x2xf32>
    %442 = arith.mulf %439, %441 : vector<16x2xf32>
    %c5_256 = arith.constant 5 : index
    %c0_257 = arith.constant 0 : index
    %c0_258 = arith.constant 0 : index
    %443 = vector.load %arg9[%c5_256, %c0_257, %c0_258] : memref<27x16x16xf32, #tpu.memory_space<vmem>>, vector<1x16x16xf32>
    %444 = vector.shape_cast %443 : vector<1x16x16xf32> to vector<16x16xf32>
    %cst_259 = arith.constant dense<0.000000e+00> : vector<16x2xf32>
    %445 = tpu.matmul %444, %442, %cst_259 {dimension_numbers = #tpu.dot_dimension_numbers<[1], [0], [0], [1], [0, 0, 1, 1], [], []>} : vector<16x16xf32>, vector<16x2xf32>, vector<16x2xf32> -> vector<16x2xf32>
    %446 = arith.addf %438, %445 : vector<16x2xf32>
    %447 = vector.extract_strided_slice %398 {offsets = [0, 12], sizes = [16, 2], strides = [1, 1]} : vector<16x16xf32> to vector<16x2xf32>
    %448 = vector.extract_strided_slice %399 {offsets = [5, 0], sizes = [1, 2], strides = [1, 1]} : vector<8x2xf32> to vector<1x2xf32>
    %449 = vector.broadcast %448 : vector<1x2xf32> to vector<16x2xf32>
    %450 = arith.mulf %447, %449 : vector<16x2xf32>
    %c6_260 = arith.constant 6 : index
    %c0_261 = arith.constant 0 : index
    %c0_262 = arith.constant 0 : index
    %451 = vector.load %arg9[%c6_260, %c0_261, %c0_262] : memref<27x16x16xf32, #tpu.memory_space<vmem>>, vector<1x16x16xf32>
    %452 = vector.shape_cast %451 : vector<1x16x16xf32> to vector<16x16xf32>
    %cst_263 = arith.constant dense<0.000000e+00> : vector<16x2xf32>
    %453 = tpu.matmul %452, %450, %cst_263 {dimension_numbers = #tpu.dot_dimension_numbers<[1], [0], [0], [1], [0, 0, 1, 1], [], []>} : vector<16x16xf32>, vector<16x2xf32>, vector<16x2xf32> -> vector<16x2xf32>
    %454 = arith.addf %446, %453 : vector<16x2xf32>
    %455 = vector.extract_strided_slice %398 {offsets = [0, 11], sizes = [16, 2], strides = [1, 1]} : vector<16x16xf32> to vector<16x2xf32>
    %456 = vector.extract_strided_slice %399 {offsets = [4, 0], sizes = [1, 2], strides = [1, 1]} : vector<8x2xf32> to vector<1x2xf32>
    %457 = vector.broadcast %456 : vector<1x2xf32> to vector<16x2xf32>
    %458 = arith.mulf %455, %457 : vector<16x2xf32>
    %c7_264 = arith.constant 7 : index
    %c0_265 = arith.constant 0 : index
    %c0_266 = arith.constant 0 : index
    %459 = vector.load %arg9[%c7_264, %c0_265, %c0_266] : memref<27x16x16xf32, #tpu.memory_space<vmem>>, vector<1x16x16xf32>
    %460 = vector.shape_cast %459 : vector<1x16x16xf32> to vector<16x16xf32>
    %cst_267 = arith.constant dense<0.000000e+00> : vector<16x2xf32>
    %461 = tpu.matmul %460, %458, %cst_267 {dimension_numbers = #tpu.dot_dimension_numbers<[1], [0], [0], [1], [0, 0, 1, 1], [], []>} : vector<16x16xf32>, vector<16x2xf32>, vector<16x2xf32> -> vector<16x2xf32>
    %462 = arith.addf %454, %461 : vector<16x2xf32>
    %463 = vector.extract_strided_slice %398 {offsets = [0, 13], sizes = [16, 2], strides = [1, 1]} : vector<16x16xf32> to vector<16x2xf32>
    %464 = vector.extract_strided_slice %399 {offsets = [4, 0], sizes = [1, 2], strides = [1, 1]} : vector<8x2xf32> to vector<1x2xf32>
    %465 = vector.broadcast %464 : vector<1x2xf32> to vector<16x2xf32>
    %466 = arith.mulf %463, %465 : vector<16x2xf32>
    %c8_268 = arith.constant 8 : index
    %c0_269 = arith.constant 0 : index
    %c0_270 = arith.constant 0 : index
    %467 = vector.load %arg9[%c8_268, %c0_269, %c0_270] : memref<27x16x16xf32, #tpu.memory_space<vmem>>, vector<1x16x16xf32>
    %468 = vector.shape_cast %467 : vector<1x16x16xf32> to vector<16x16xf32>
    %cst_271 = arith.constant dense<0.000000e+00> : vector<16x2xf32>
    %469 = tpu.matmul %468, %466, %cst_271 {dimension_numbers = #tpu.dot_dimension_numbers<[1], [0], [0], [1], [0, 0, 1, 1], [], []>} : vector<16x16xf32>, vector<16x2xf32>, vector<16x2xf32> -> vector<16x2xf32>
    %470 = arith.addf %462, %469 : vector<16x2xf32>
    %471 = vector.extract_strided_slice %398 {offsets = [0, 4], sizes = [16, 2], strides = [1, 1]} : vector<16x16xf32> to vector<16x2xf32>
    %472 = vector.extract_strided_slice %399 {offsets = [3, 0], sizes = [1, 2], strides = [1, 1]} : vector<8x2xf32> to vector<1x2xf32>
    %473 = vector.broadcast %472 : vector<1x2xf32> to vector<16x2xf32>
    %474 = arith.mulf %471, %473 : vector<16x2xf32>
    %c9_272 = arith.constant 9 : index
    %c0_273 = arith.constant 0 : index
    %c0_274 = arith.constant 0 : index
    %475 = vector.load %arg9[%c9_272, %c0_273, %c0_274] : memref<27x16x16xf32, #tpu.memory_space<vmem>>, vector<1x16x16xf32>
    %476 = vector.shape_cast %475 : vector<1x16x16xf32> to vector<16x16xf32>
    %cst_275 = arith.constant dense<0.000000e+00> : vector<16x2xf32>
    %477 = tpu.matmul %476, %474, %cst_275 {dimension_numbers = #tpu.dot_dimension_numbers<[1], [0], [0], [1], [0, 0, 1, 1], [], []>} : vector<16x16xf32>, vector<16x2xf32>, vector<16x2xf32> -> vector<16x2xf32>
    %478 = arith.addf %470, %477 : vector<16x2xf32>
    %479 = vector.extract_strided_slice %398 {offsets = [0, 3], sizes = [16, 2], strides = [1, 1]} : vector<16x16xf32> to vector<16x2xf32>
    %480 = vector.extract_strided_slice %399 {offsets = [2, 0], sizes = [1, 2], strides = [1, 1]} : vector<8x2xf32> to vector<1x2xf32>
    %481 = vector.broadcast %480 : vector<1x2xf32> to vector<16x2xf32>
    %482 = arith.mulf %479, %481 : vector<16x2xf32>
    %c10_276 = arith.constant 10 : index
    %c0_277 = arith.constant 0 : index
    %c0_278 = arith.constant 0 : index
    %483 = vector.load %arg9[%c10_276, %c0_277, %c0_278] : memref<27x16x16xf32, #tpu.memory_space<vmem>>, vector<1x16x16xf32>
    %484 = vector.shape_cast %483 : vector<1x16x16xf32> to vector<16x16xf32>
    %cst_279 = arith.constant dense<0.000000e+00> : vector<16x2xf32>
    %485 = tpu.matmul %484, %482, %cst_279 {dimension_numbers = #tpu.dot_dimension_numbers<[1], [0], [0], [1], [0, 0, 1, 1], [], []>} : vector<16x16xf32>, vector<16x2xf32>, vector<16x2xf32> -> vector<16x2xf32>
    %486 = arith.addf %478, %485 : vector<16x2xf32>
    %487 = vector.extract_strided_slice %398 {offsets = [0, 5], sizes = [16, 2], strides = [1, 1]} : vector<16x16xf32> to vector<16x2xf32>
    %488 = vector.extract_strided_slice %399 {offsets = [2, 0], sizes = [1, 2], strides = [1, 1]} : vector<8x2xf32> to vector<1x2xf32>
    %489 = vector.broadcast %488 : vector<1x2xf32> to vector<16x2xf32>
    %490 = arith.mulf %487, %489 : vector<16x2xf32>
    %c11_280 = arith.constant 11 : index
    %c0_281 = arith.constant 0 : index
    %c0_282 = arith.constant 0 : index
    %491 = vector.load %arg9[%c11_280, %c0_281, %c0_282] : memref<27x16x16xf32, #tpu.memory_space<vmem>>, vector<1x16x16xf32>
    %492 = vector.shape_cast %491 : vector<1x16x16xf32> to vector<16x16xf32>
    %cst_283 = arith.constant dense<0.000000e+00> : vector<16x2xf32>
    %493 = tpu.matmul %492, %490, %cst_283 {dimension_numbers = #tpu.dot_dimension_numbers<[1], [0], [0], [1], [0, 0, 1, 1], [], []>} : vector<16x16xf32>, vector<16x2xf32>, vector<16x2xf32> -> vector<16x2xf32>
    %494 = arith.addf %486, %493 : vector<16x2xf32>
    %495 = vector.extract_strided_slice %398 {offsets = [0, 1], sizes = [16, 2], strides = [1, 1]} : vector<16x16xf32> to vector<16x2xf32>
    %496 = vector.extract_strided_slice %399 {offsets = [1, 0], sizes = [1, 2], strides = [1, 1]} : vector<8x2xf32> to vector<1x2xf32>
    %497 = vector.broadcast %496 : vector<1x2xf32> to vector<16x2xf32>
    %498 = arith.mulf %495, %497 : vector<16x2xf32>
    %c12_284 = arith.constant 12 : index
    %c0_285 = arith.constant 0 : index
    %c0_286 = arith.constant 0 : index
    %499 = vector.load %arg9[%c12_284, %c0_285, %c0_286] : memref<27x16x16xf32, #tpu.memory_space<vmem>>, vector<1x16x16xf32>
    %500 = vector.shape_cast %499 : vector<1x16x16xf32> to vector<16x16xf32>
    %cst_287 = arith.constant dense<0.000000e+00> : vector<16x2xf32>
    %501 = tpu.matmul %500, %498, %cst_287 {dimension_numbers = #tpu.dot_dimension_numbers<[1], [0], [0], [1], [0, 0, 1, 1], [], []>} : vector<16x16xf32>, vector<16x2xf32>, vector<16x2xf32> -> vector<16x2xf32>
    %502 = arith.addf %494, %501 : vector<16x2xf32>
    %503 = vector.extract_strided_slice %398 {offsets = [0, 0], sizes = [16, 2], strides = [1, 1]} : vector<16x16xf32> to vector<16x2xf32>
    %c13_288 = arith.constant 13 : index
    %c0_289 = arith.constant 0 : index
    %c0_290 = arith.constant 0 : index
    %504 = vector.load %arg9[%c13_288, %c0_289, %c0_290] : memref<27x16x16xf32, #tpu.memory_space<vmem>>, vector<1x16x16xf32>
    %505 = vector.shape_cast %504 : vector<1x16x16xf32> to vector<16x16xf32>
    %cst_291 = arith.constant dense<0.000000e+00> : vector<16x2xf32>
    %506 = tpu.matmul %505, %503, %cst_291 {dimension_numbers = #tpu.dot_dimension_numbers<[1], [0], [0], [1], [0, 0, 1, 1], [], []>} : vector<16x16xf32>, vector<16x2xf32>, vector<16x2xf32> -> vector<16x2xf32>
    %507 = arith.addf %502, %506 : vector<16x2xf32>
    %508 = vector.extract_strided_slice %398 {offsets = [0, 2], sizes = [16, 2], strides = [1, 1]} : vector<16x16xf32> to vector<16x2xf32>
    %c14_292 = arith.constant 14 : index
    %c0_293 = arith.constant 0 : index
    %c0_294 = arith.constant 0 : index
    %509 = vector.load %arg9[%c14_292, %c0_293, %c0_294] : memref<27x16x16xf32, #tpu.memory_space<vmem>>, vector<1x16x16xf32>
    %510 = vector.shape_cast %509 : vector<1x16x16xf32> to vector<16x16xf32>
    %cst_295 = arith.constant dense<0.000000e+00> : vector<16x2xf32>
    %511 = tpu.matmul %510, %508, %cst_295 {dimension_numbers = #tpu.dot_dimension_numbers<[1], [0], [0], [1], [0, 0, 1, 1], [], []>} : vector<16x16xf32>, vector<16x2xf32>, vector<16x2xf32> -> vector<16x2xf32>
    %512 = arith.addf %507, %511 : vector<16x2xf32>
    %513 = vector.extract_strided_slice %398 {offsets = [0, 5], sizes = [16, 2], strides = [1, 1]} : vector<16x16xf32> to vector<16x2xf32>
    %514 = vector.extract_strided_slice %399 {offsets = [1, 0], sizes = [1, 2], strides = [1, 1]} : vector<8x2xf32> to vector<1x2xf32>
    %515 = vector.broadcast %514 : vector<1x2xf32> to vector<16x2xf32>
    %516 = arith.mulf %513, %515 : vector<16x2xf32>
    %c15_296 = arith.constant 15 : index
    %c0_297 = arith.constant 0 : index
    %c0_298 = arith.constant 0 : index
    %517 = vector.load %arg9[%c15_296, %c0_297, %c0_298] : memref<27x16x16xf32, #tpu.memory_space<vmem>>, vector<1x16x16xf32>
    %518 = vector.shape_cast %517 : vector<1x16x16xf32> to vector<16x16xf32>
    %cst_299 = arith.constant dense<0.000000e+00> : vector<16x2xf32>
    %519 = tpu.matmul %518, %516, %cst_299 {dimension_numbers = #tpu.dot_dimension_numbers<[1], [0], [0], [1], [0, 0, 1, 1], [], []>} : vector<16x16xf32>, vector<16x2xf32>, vector<16x2xf32> -> vector<16x2xf32>
    %520 = arith.addf %512, %519 : vector<16x2xf32>
    %521 = vector.extract_strided_slice %398 {offsets = [0, 4], sizes = [16, 2], strides = [1, 1]} : vector<16x16xf32> to vector<16x2xf32>
    %c16_300 = arith.constant 16 : index
    %c0_301 = arith.constant 0 : index
    %c0_302 = arith.constant 0 : index
    %522 = vector.load %arg9[%c16_300, %c0_301, %c0_302] : memref<27x16x16xf32, #tpu.memory_space<vmem>>, vector<1x16x16xf32>
    %523 = vector.shape_cast %522 : vector<1x16x16xf32> to vector<16x16xf32>
    %cst_303 = arith.constant dense<0.000000e+00> : vector<16x2xf32>
    %524 = tpu.matmul %523, %521, %cst_303 {dimension_numbers = #tpu.dot_dimension_numbers<[1], [0], [0], [1], [0, 0, 1, 1], [], []>} : vector<16x16xf32>, vector<16x2xf32>, vector<16x2xf32> -> vector<16x2xf32>
    %525 = arith.addf %520, %524 : vector<16x2xf32>
    %526 = vector.extract_strided_slice %398 {offsets = [0, 6], sizes = [16, 2], strides = [1, 1]} : vector<16x16xf32> to vector<16x2xf32>
    %c17_304 = arith.constant 17 : index
    %c0_305 = arith.constant 0 : index
    %c0_306 = arith.constant 0 : index
    %527 = vector.load %arg9[%c17_304, %c0_305, %c0_306] : memref<27x16x16xf32, #tpu.memory_space<vmem>>, vector<1x16x16xf32>
    %528 = vector.shape_cast %527 : vector<1x16x16xf32> to vector<16x16xf32>
    %cst_307 = arith.constant dense<0.000000e+00> : vector<16x2xf32>
    %529 = tpu.matmul %528, %526, %cst_307 {dimension_numbers = #tpu.dot_dimension_numbers<[1], [0], [0], [1], [0, 0, 1, 1], [], []>} : vector<16x16xf32>, vector<16x2xf32>, vector<16x2xf32> -> vector<16x2xf32>
    %530 = arith.addf %525, %529 : vector<16x2xf32>
    %531 = vector.extract_strided_slice %398 {offsets = [0, 12], sizes = [16, 2], strides = [1, 1]} : vector<16x16xf32> to vector<16x2xf32>
    %532 = vector.extract_strided_slice %399 {offsets = [3, 0], sizes = [1, 2], strides = [1, 1]} : vector<8x2xf32> to vector<1x2xf32>
    %533 = vector.broadcast %532 : vector<1x2xf32> to vector<16x2xf32>
    %534 = arith.mulf %531, %533 : vector<16x2xf32>
    %c18_308 = arith.constant 18 : index
    %c0_309 = arith.constant 0 : index
    %c0_310 = arith.constant 0 : index
    %535 = vector.load %arg9[%c18_308, %c0_309, %c0_310] : memref<27x16x16xf32, #tpu.memory_space<vmem>>, vector<1x16x16xf32>
    %536 = vector.shape_cast %535 : vector<1x16x16xf32> to vector<16x16xf32>
    %cst_311 = arith.constant dense<0.000000e+00> : vector<16x2xf32>
    %537 = tpu.matmul %536, %534, %cst_311 {dimension_numbers = #tpu.dot_dimension_numbers<[1], [0], [0], [1], [0, 0, 1, 1], [], []>} : vector<16x16xf32>, vector<16x2xf32>, vector<16x2xf32> -> vector<16x2xf32>
    %538 = arith.addf %530, %537 : vector<16x2xf32>
    %539 = vector.extract_strided_slice %398 {offsets = [0, 11], sizes = [16, 2], strides = [1, 1]} : vector<16x16xf32> to vector<16x2xf32>
    %540 = vector.extract_strided_slice %399 {offsets = [2, 0], sizes = [1, 2], strides = [1, 1]} : vector<8x2xf32> to vector<1x2xf32>
    %541 = vector.broadcast %540 : vector<1x2xf32> to vector<16x2xf32>
    %542 = arith.mulf %539, %541 : vector<16x2xf32>
    %c19_312 = arith.constant 19 : index
    %c0_313 = arith.constant 0 : index
    %c0_314 = arith.constant 0 : index
    %543 = vector.load %arg9[%c19_312, %c0_313, %c0_314] : memref<27x16x16xf32, #tpu.memory_space<vmem>>, vector<1x16x16xf32>
    %544 = vector.shape_cast %543 : vector<1x16x16xf32> to vector<16x16xf32>
    %cst_315 = arith.constant dense<0.000000e+00> : vector<16x2xf32>
    %545 = tpu.matmul %544, %542, %cst_315 {dimension_numbers = #tpu.dot_dimension_numbers<[1], [0], [0], [1], [0, 0, 1, 1], [], []>} : vector<16x16xf32>, vector<16x2xf32>, vector<16x2xf32> -> vector<16x2xf32>
    %546 = arith.addf %538, %545 : vector<16x2xf32>
    %547 = vector.extract_strided_slice %398 {offsets = [0, 13], sizes = [16, 2], strides = [1, 1]} : vector<16x16xf32> to vector<16x2xf32>
    %548 = vector.extract_strided_slice %399 {offsets = [2, 0], sizes = [1, 2], strides = [1, 1]} : vector<8x2xf32> to vector<1x2xf32>
    %549 = vector.broadcast %548 : vector<1x2xf32> to vector<16x2xf32>
    %550 = arith.mulf %547, %549 : vector<16x2xf32>
    %c20_316 = arith.constant 20 : index
    %c0_317 = arith.constant 0 : index
    %c0_318 = arith.constant 0 : index
    %551 = vector.load %arg9[%c20_316, %c0_317, %c0_318] : memref<27x16x16xf32, #tpu.memory_space<vmem>>, vector<1x16x16xf32>
    %552 = vector.shape_cast %551 : vector<1x16x16xf32> to vector<16x16xf32>
    %cst_319 = arith.constant dense<0.000000e+00> : vector<16x2xf32>
    %553 = tpu.matmul %552, %550, %cst_319 {dimension_numbers = #tpu.dot_dimension_numbers<[1], [0], [0], [1], [0, 0, 1, 1], [], []>} : vector<16x16xf32>, vector<16x2xf32>, vector<16x2xf32> -> vector<16x2xf32>
    %554 = arith.addf %546, %553 : vector<16x2xf32>
    %555 = vector.extract_strided_slice %398 {offsets = [0, 9], sizes = [16, 2], strides = [1, 1]} : vector<16x16xf32> to vector<16x2xf32>
    %556 = vector.extract_strided_slice %399 {offsets = [1, 0], sizes = [1, 2], strides = [1, 1]} : vector<8x2xf32> to vector<1x2xf32>
    %557 = vector.broadcast %556 : vector<1x2xf32> to vector<16x2xf32>
    %558 = arith.mulf %555, %557 : vector<16x2xf32>
    %c21_320 = arith.constant 21 : index
    %c0_321 = arith.constant 0 : index
    %c0_322 = arith.constant 0 : index
    %559 = vector.load %arg9[%c21_320, %c0_321, %c0_322] : memref<27x16x16xf32, #tpu.memory_space<vmem>>, vector<1x16x16xf32>
    %560 = vector.shape_cast %559 : vector<1x16x16xf32> to vector<16x16xf32>
    %cst_323 = arith.constant dense<0.000000e+00> : vector<16x2xf32>
    %561 = tpu.matmul %560, %558, %cst_323 {dimension_numbers = #tpu.dot_dimension_numbers<[1], [0], [0], [1], [0, 0, 1, 1], [], []>} : vector<16x16xf32>, vector<16x2xf32>, vector<16x2xf32> -> vector<16x2xf32>
    %562 = arith.addf %554, %561 : vector<16x2xf32>
    %563 = vector.extract_strided_slice %398 {offsets = [0, 8], sizes = [16, 2], strides = [1, 1]} : vector<16x16xf32> to vector<16x2xf32>
    %c22_324 = arith.constant 22 : index
    %c0_325 = arith.constant 0 : index
    %c0_326 = arith.constant 0 : index
    %564 = vector.load %arg9[%c22_324, %c0_325, %c0_326] : memref<27x16x16xf32, #tpu.memory_space<vmem>>, vector<1x16x16xf32>
    %565 = vector.shape_cast %564 : vector<1x16x16xf32> to vector<16x16xf32>
    %cst_327 = arith.constant dense<0.000000e+00> : vector<16x2xf32>
    %566 = tpu.matmul %565, %563, %cst_327 {dimension_numbers = #tpu.dot_dimension_numbers<[1], [0], [0], [1], [0, 0, 1, 1], [], []>} : vector<16x16xf32>, vector<16x2xf32>, vector<16x2xf32> -> vector<16x2xf32>
    %567 = arith.addf %562, %566 : vector<16x2xf32>
    %568 = vector.extract_strided_slice %398 {offsets = [0, 10], sizes = [16, 2], strides = [1, 1]} : vector<16x16xf32> to vector<16x2xf32>
    %c23_328 = arith.constant 23 : index
    %c0_329 = arith.constant 0 : index
    %c0_330 = arith.constant 0 : index
    %569 = vector.load %arg9[%c23_328, %c0_329, %c0_330] : memref<27x16x16xf32, #tpu.memory_space<vmem>>, vector<1x16x16xf32>
    %570 = vector.shape_cast %569 : vector<1x16x16xf32> to vector<16x16xf32>
    %cst_331 = arith.constant dense<0.000000e+00> : vector<16x2xf32>
    %571 = tpu.matmul %570, %568, %cst_331 {dimension_numbers = #tpu.dot_dimension_numbers<[1], [0], [0], [1], [0, 0, 1, 1], [], []>} : vector<16x16xf32>, vector<16x2xf32>, vector<16x2xf32> -> vector<16x2xf32>
    %572 = arith.addf %567, %571 : vector<16x2xf32>
    %573 = vector.extract_strided_slice %398 {offsets = [0, 13], sizes = [16, 2], strides = [1, 1]} : vector<16x16xf32> to vector<16x2xf32>
    %574 = vector.extract_strided_slice %399 {offsets = [1, 0], sizes = [1, 2], strides = [1, 1]} : vector<8x2xf32> to vector<1x2xf32>
    %575 = vector.broadcast %574 : vector<1x2xf32> to vector<16x2xf32>
    %576 = arith.mulf %573, %575 : vector<16x2xf32>
    %c24_332 = arith.constant 24 : index
    %c0_333 = arith.constant 0 : index
    %c0_334 = arith.constant 0 : index
    %577 = vector.load %arg9[%c24_332, %c0_333, %c0_334] : memref<27x16x16xf32, #tpu.memory_space<vmem>>, vector<1x16x16xf32>
    %578 = vector.shape_cast %577 : vector<1x16x16xf32> to vector<16x16xf32>
    %cst_335 = arith.constant dense<0.000000e+00> : vector<16x2xf32>
    %579 = tpu.matmul %578, %576, %cst_335 {dimension_numbers = #tpu.dot_dimension_numbers<[1], [0], [0], [1], [0, 0, 1, 1], [], []>} : vector<16x16xf32>, vector<16x2xf32>, vector<16x2xf32> -> vector<16x2xf32>
    %580 = arith.addf %572, %579 : vector<16x2xf32>
    %581 = vector.extract_strided_slice %398 {offsets = [0, 12], sizes = [16, 2], strides = [1, 1]} : vector<16x16xf32> to vector<16x2xf32>
    %c25_336 = arith.constant 25 : index
    %c0_337 = arith.constant 0 : index
    %c0_338 = arith.constant 0 : index
    %582 = vector.load %arg9[%c25_336, %c0_337, %c0_338] : memref<27x16x16xf32, #tpu.memory_space<vmem>>, vector<1x16x16xf32>
    %583 = vector.shape_cast %582 : vector<1x16x16xf32> to vector<16x16xf32>
    %cst_339 = arith.constant dense<0.000000e+00> : vector<16x2xf32>
    %584 = tpu.matmul %583, %581, %cst_339 {dimension_numbers = #tpu.dot_dimension_numbers<[1], [0], [0], [1], [0, 0, 1, 1], [], []>} : vector<16x16xf32>, vector<16x2xf32>, vector<16x2xf32> -> vector<16x2xf32>
    %585 = arith.addf %580, %584 : vector<16x2xf32>
    %586 = vector.extract_strided_slice %398 {offsets = [0, 14], sizes = [16, 2], strides = [1, 1]} : vector<16x16xf32> to vector<16x2xf32>
    %c26_340 = arith.constant 26 : index
    %c0_341 = arith.constant 0 : index
    %c0_342 = arith.constant 0 : index
    %587 = vector.load %arg9[%c26_340, %c0_341, %c0_342] : memref<27x16x16xf32, #tpu.memory_space<vmem>>, vector<1x16x16xf32>
    %588 = vector.shape_cast %587 : vector<1x16x16xf32> to vector<16x16xf32>
    %cst_343 = arith.constant dense<0.000000e+00> : vector<16x2xf32>
    %589 = tpu.matmul %588, %586, %cst_343 {dimension_numbers = #tpu.dot_dimension_numbers<[1], [0], [0], [1], [0, 0, 1, 1], [], []>} : vector<16x16xf32>, vector<16x2xf32>, vector<16x2xf32> -> vector<16x2xf32>
    %590 = arith.addf %585, %589 : vector<16x2xf32>
    %c0_344 = arith.constant 0 : index
    %c0_345 = arith.constant 0 : index
    %591 = vector.load %arg10[%c0_344, %c0_345] : memref<16x1xf32, #tpu.memory_space<vmem>>, vector<16x1xf32>
    %592 = vector.broadcast %591 : vector<16x1xf32> to vector<16x2xf32>
    %593 = arith.addf %590, %592 : vector<16x2xf32>
    %cst_346 = arith.constant 0.000000e+00 : f32
    %594 = vector.broadcast %cst_346 : f32 to vector<16x2xf32>
    %595 = arith.maximumf %593, %594 : vector<16x2xf32>
    %c0_347 = arith.constant 0 : index
    %c0_348 = arith.constant 0 : index
    %596 = vector.load %arg14[%c0_347, %c0_348] : memref<16x2xf32, #tpu.memory_space<vmem>>, vector<16x2xf32>
    tpu.vector_store %arg14[%c0_347, %c0_348], %595 {strides = array<i32>} : memref<16x2xf32, #tpu.memory_space<vmem>>, vector<16x2xf32>,
    return
  }
  func.func @transform_0(%arg0: i32) -> (i32, i32) {
    %c0_i32 = arith.constant 0 : i32
    %c0_i32_0 = arith.constant 0 : i32
    %c0_i32_1 = arith.constant 0 : i32
    return %c0_i32, %c0_i32_0 : i32, i32
  }
  func.func @transform_1(%arg0: i32) -> (i32, i32) {
    %c0_i32 = arith.constant 0 : i32
    %c0_i32_0 = arith.constant 0 : i32
    %c0_i32_1 = arith.constant 0 : i32
    return %c0_i32, %c0_i32_0 : i32, i32
  }
  func.func @transform_2(%arg0: i32) -> (i32, i32, i32) {
    %c0_i32 = arith.constant 0 : i32
    %c0_i32_0 = arith.constant 0 : i32
    %c0_i32_1 = arith.constant 0 : i32
    %c0_i32_2 = arith.constant 0 : i32
    return %c0_i32, %c0_i32_0, %c0_i32_1 : i32, i32, i32
  }
  func.func @transform_3(%arg0: i32) -> (i32, i32) {
    %c0_i32 = arith.constant 0 : i32
    %c0_i32_0 = arith.constant 0 : i32
    %c0_i32_1 = arith.constant 0 : i32
    return %c0_i32, %c0_i32_0 : i32, i32
  }
  func.func @transform_4(%arg0: i32) -> (i32, i32) {
    %c0_i32 = arith.constant 0 : i32
    %c0_i32_0 = arith.constant 0 : i32
    %c0_i32_1 = arith.constant 0 : i32
    return %c0_i32, %c0_i32_0 : i32, i32
  }
  func.func @transform_5(%arg0: i32) -> (i32, i32, i32) {
    %c0_i32 = arith.constant 0 : i32
    %c0_i32_0 = arith.constant 0 : i32
    %c0_i32_1 = arith.constant 0 : i32
    %c0_i32_2 = arith.constant 0 : i32
    return %c0_i32, %c0_i32_0, %c0_i32_1 : i32, i32, i32
  }
  func.func @transform_6(%arg0: i32) -> (i32, i32) {
    %c0_i32 = arith.constant 0 : i32
    %c0_i32_0 = arith.constant 0 : i32
    %c0_i32_1 = arith.constant 0 : i32
    return %c0_i32, %c0_i32_0 : i32, i32
  }
  func.func @transform_7(%arg0: i32) -> (i32, i32) {
    %c0_i32 = arith.constant 0 : i32
    %c0_i32_0 = arith.constant 0 : i32
    %c0_i32_1 = arith.constant 0 : i32
    return %c0_i32, %c0_i32_0 : i32, i32
  }
  func.func @transform_8(%arg0: i32) -> (i32, i32, i32) {
    %c0_i32 = arith.constant 0 : i32
    %c0_i32_0 = arith.constant 0 : i32
    %c0_i32_1 = arith.constant 0 : i32
    %c0_i32_2 = arith.constant 0 : i32
    return %c0_i32, %c0_i32_0, %c0_i32_1 : i32, i32, i32
  }
  func.func @transform_9(%arg0: i32) -> (i32, i32) {
    %c0_i32 = arith.constant 0 : i32
    %c0_i32_0 = arith.constant 0 : i32
    %c0_i32_1 = arith.constant 0 : i32
    return %c0_i32, %c0_i32_0 : i32, i32
  }
  func.func @transform_10(%arg0: i32) -> (i32, i32) {
    %c0_i32 = arith.constant 0 : i32
    %c0_i32_0 = arith.constant 0 : i32
    %c0_i32_1 = arith.constant 0 : i32
    return %c0_i32, %c0_i32_0 : i32, i32
  }
  func.func @transform_11(%arg0: i32) -> (i32, i32) {
    %c0_i32 = arith.constant 0 : i32
    %c0_i32_0 = arith.constant 0 : i32
    %c0_i32_1 = arith.constant 0 : i32
    return %c0_i32, %c0_i32_0 : i32, i32
  }
  func.func @transform_12(%arg0: i32) -> (i32, i32) {
    %c0_i32 = arith.constant 0 : i32
    %c0_i32_0 = arith.constant 0 : i32
    %c0_i32_1 = arith.constant 0 : i32
    return %c0_i32, %c0_i32_0 : i32, i32
  }
  func.func @transform_13(%arg0: i32) -> (i32, i32) {
    %c0_i32 = arith.constant 0 : i32
    %c0_i32_0 = arith.constant 0 : i32
    %c0_i32_1 = arith.constant 0 : i32
    return %c0_i32, %c0_i32_0 : i32, i32
  }
}

</mosaic_0001>

<bundles_post_ra>
// kernel: encoder_forward.2
= control target key start
LH: loop header
LB: loop body
LE: loop exit
PB: predicated region body
PF: predicated region fallthrough
CT: control target
= control target key end

     0   :  { %s4145_s15 = smov 0   ;;  %s5264_s0 = inlined_call_operand.vmem [shape: f32[2,4,5120], index: 0, kind: input, shape index: {}]   ;;  %s5265_s1 = inlined_call_operand.vmem [shape: f32[8,1024], index: 1, kind: input, shape index: {}]   ;;  %s5266_s2 = inlined_call_operand.vmem [shape: f32[27,8,4], index: 2, kind: input, shape index: {}]   ;;  %s5267_s3 = inlined_call_operand.vmem [shape: f32[8,1], index: 3, kind: input, shape index: {}]   ;;  %s5268_s4 = inlined_call_operand.vmem [shape: f32[8,1024], index: 4, kind: output, shape index: {}]  }
   0x1 LB: > { %s4151_s16 = sadd.s32 4294967295, %s4104_s15   ;;  %p3823_p0 = scmp.ge.s32.totalorder %s4104_s15, 1  ;;  %s4104_s15 = sphi %s4145_s15, %s14_s15  }
   0x2   : > { %p173_p1 = scmp.lt.s32.totalorder %s4104_s15, 3 }
   0x4   : > { %p174_p2 = pnand %p3823_p0, %p173_p1 }
   0x5   : > { %s3825_s17 = sshll.u32 (!%p174_p2), %s4151_s16, 2  ;;  %s4106_s22 = smov (!%p174_p2), 56  }
   0x6   : > { %177 = sbr.rel (%p174_p2) target bundleno = 691 (0x2b3), region = 36  ;;  %p210_p3 = scmp.lt.s32.totalorder (!%p174_p2), %s3825_s17, 7 }
   0x7   : > { %s4107_s23 = smov (!%p174_p2), 55   ;;  %s4108_s24 = smov (!%p174_p2), 63  }
   0x8   : > { %s4109_s25 = smov (!%p174_p2), 64   ;;  %s4110_s26 = smov (!%p174_p2), 120  }
   0x9   : > { %s4111_s27 = smov (!%p174_p2), 119   ;;  %s4112_s28 = smov (!%p174_p2), 127  }
   0xa   : > { %p204_p4 = scmp.lt.s32.totalorder (!%p174_p2), %s4151_s16, 1  ;;  %s4113_s7 = smov (!%p174_p2), 72  }
   0xb   : > { %s5270_s17 = smov (!%p210_p3, %s3825_s17), 7  ;;  %vm238_vm0 = vcmask 1043456   ;;  %vm279_vm1 = vcmask 457728   ;;  %vm247_vm2 = vcmask 449536   ;;  %vm681_vm3 = vcmask 515072   ;;  %s4114_s8 = smov 73  }
   0xc   : > { %s3826_s18 = sshll.u32 %s5270_s17, 3  ;;  %s5272_s16 = smov (!%p204_p4, %s4151_s16), 1  ;;  %vm837_vm4 = vcmask 523264   ;;  %vm1512_vm5 = vcmask 973824   ;;  %vm1668_vm6 = vcmask 982016   ;;  %vm1954_vm7 = vcmask 1039360  }
   0xd   : > { %s213_s21 = scalar_lea.vmem %s5265_s1, %s3826_s18  ;;  %s4073_s29 = smul.u32 160, %s5272_s16  ;;  %vm314_vm8 = vcmask 588800   ;;  %vm319_vm9 = vcmask 31744   ;;  %vm434_vm10 = vcmask 596992   ;;  %vm716_vm11 = vcmask 531456  }
   0xe   : > { %v4164_v0 = vld [vmem:[%s213_s21] sm:$0xff]  ;;  %v4166_v1 = vld [vmem:[%s213_s21 + $0x8] sm:$0xff]  ;;  %v4172_v6 = vld [vmem:[%s213_s21 + $0x18] sm:$0xff]  ;;  %s4115_s9 = smov 65   ;;  %s4116_s12 = smov 9   ;;  %vm1547_vm12 = vcmask 72704  }
   0xf   : > { %v261_v2 = vperm.slane %v4164_v0, 6  ;;  %v262_v3 = vperm.slane %v4166_v1, 6  ;;  %v228_v4 = vperm.slane %v4164_v0, 7  ;;  %v229_v5 = vperm.slane %v4166_v1, 7  ;;  %v4176_v11 = vld [vmem:[%s213_s21 + $0x10] sm:$0xff]  ;;  %s4221_s6 = scalar_lea.vmem %s5264_s0, %s4073_s29  ;;  %s4117_s13 = smov 8  }
  0x10   : > { %v264_v9 = vperm.slane %v4172_v6, 6  ;;  %v231_v10 = vperm.slane %v4172_v6, 7  ;;  %v663_v14 = vperm.slane %v4164_v0, 5  ;;  %v664_v15 = vperm.slane %v4166_v1, 5  ;;  %v4224_v62 = vld [vmem:[%s4221_s6 + $0x78] sm:$0xff]  ;;  %s219_s29 = scalar_lea.vmem %s5268_s4, %s3826_s18 }
  0x11   : > { %v269_v7 = vrot.slane %v262_v3, 4  ;;  %v236_v8 = vrot.slane %v229_v5, 4  ;;  %v263_v16 = vperm.slane %v4176_v11, 6  ;;  %v230_v18 = vperm.slane %v4176_v11, 7  ;;  %v4230_v5 = vld [vmem:[%s4221_s6 + $0x8c] sm:$0xff] }
  0x12   : > { %v270_v17 = vrot.slane %v264_v9, 4  ;;  %v237_v19 = vrot.slane %v231_v10, 4  ;;  %v671_v20 = vrot.slane %v664_v15, 4  ;;  %v666_v21 = vperm.slane %v4172_v6, 5  ;;  %v4235_v10 = vld [vmem:[%s4221_s6 + $0x80] sm:$0xff] }
  0x13   : > { %v271_v12 = vsel %vm238_vm0, %v261_v2, %v269_v7  ;;  %v239_v13 = vsel %vm238_vm0, %v228_v4, %v236_v8  ;;  %v820_v25 = vperm.slane %v4166_v1, 4  ;;  %v822_v26 = vperm.slane %v4172_v6, 4 }
  0x14   : > { %273 = vrot.lane.b32.xlu0 %v271_v12, %s4106_s22  ;;  %241 = vrot.lane.b32.xlu1 %v239_v13, %s4107_s23  ;;  %v673_v22 = vsel %vm238_vm0, %v663_v14, %v671_v20  ;;  %v272_v23 = vsel %vm238_vm0, %v263_v16, %v270_v17  ;;  %v240_v24 = vsel %vm238_vm0, %v230_v18, %v237_v19  ;;  %v665_v27 = vperm.slane %v4176_v11, 5  ;;  %v227_v20 = vld [vmem:[%s4221_s6 + $0x9c] sm:$0xf] }
  0x15   : > { %675 = vrot.lane.b32.xlu2 %v673_v22, %s4108_s24  ;;  %v672_v28 = vrot.slane %v666_v21, 4  ;;  %v819_v29 = vperm.slane %v4164_v0, 4  ;;  %v827_v30 = vrot.slane %v820_v25, 4  ;;  %v821_v31 = vperm.slane %v4176_v11, 4 }
  0x16   : > { %v828_v32 = vrot.slane %v822_v26, 4  ;;  %v1653_v34 = vperm.slane %v4172_v6, 2  ;;  %v1495_v37 = vperm.slane %v4166_v1, 3  ;;  %v1497_v38 = vperm.slane %v4172_v6, 3 }
  0x17   : > { %v674_v33 = vsel %vm238_vm0, %v665_v27, %v672_v28  ;;  %v829_v35 = vsel %vm238_vm0, %v819_v29, %v827_v30  ;;  %v1652_v39 = vperm.slane %v4176_v11, 2  ;;  %v1494_v41 = vperm.slane %v4164_v0, 3  ;;  %v4251_v30 = vld [vmem:[%s4221_s6 + $0x64] sm:$0xff] }
  0x18   : > { %v830_v36 = vsel %vm238_vm0, %v821_v31, %v828_v32  ;;  %v1659_v40 = vrot.slane %v1653_v34, 4  ;;  %v1502_v42 = vrot.slane %v1495_v37, 4  ;;  %v1496_v43 = vperm.slane %v4176_v11, 3 }
  0x19   : > { %v1503_v44 = vrot.slane %v1497_v38, 4  ;;  %v1651_v48 = vperm.slane %v4166_v1, 2  ;;  %v1650_v49 = vperm.slane %v4164_v0, 2  ;;  %v1937_v52 = vperm.slane %v4166_v1, 1 }
  0x1a   : > { %v1661_v45 = vsel %vm238_vm0, %v1652_v39, %v1659_v40  ;;  %v1504_v46 = vsel %vm238_vm0, %v1494_v41, %v1502_v42  ;;  %v1936_v53 = vperm.slane %v4164_v0, 1  ;;  %v1939_v56 = vperm.slane %v4172_v6, 1  ;;  %v260_v6 = vld [vmem:[%s4221_s6 + $0x88] sm:$0xf]  ;;  %v532_v39 = vld [vmem:[%s4221_s6 + $0x9c] sm:$0xf] }
  0x1b   : > { %v1505_v47 = vsel %vm238_vm0, %v1496_v43, %v1503_v44  ;;  %v1658_v50 = vrot.slane %v1651_v48, 4  ;;  %v1944_v54 = vrot.slane %v1937_v52, 4  ;;  %v1938_v57 = vperm.slane %v4176_v11, 1  ;;  %v816_v44 = vld [vmem:[%s4221_s6 + $0x50] sm:$0xff] }
  0x1c   : > { %275 = vrot.lane.b32.xlu0 %v272_v23, %s4106_s22  ;;  %243 = vrot.lane.b32.xlu1 %v240_v24, %s4107_s23  ;;  %v1945_v58 = vrot.slane %v1939_v56, 4  ;;  %v4247_v24 = vld [vmem:[%s4221_s6 + $0x94] sm:$0xff]  ;;  %s4118_s23 = smov 1   ;;  %vm1703_vm13 = vcmask 64512   ;;  %vm1989_vm14 = vcmask 7168  }
  0x1d   : > { %677 = vrot.lane.b32.xlu2 %v674_v33, %s4108_s24  ;;  %v1660_v51 = vsel %vm238_vm0, %v1650_v49, %v1658_v50  ;;  %v1946_v55 = vsel %vm238_vm0, %v1936_v53, %v1944_v54  ;;  %v662_v53 = vld [vmem:[%s4221_s6 + $0x74] sm:$0xf] }
  0x1e   : > { %v1947_v59 = vsel %vm238_vm0, %v1938_v57, %v1945_v58 }
  0x24   : > { %831 = vrot.lane.b32.xlu0 %v829_v35, %s4109_s25  ;;  %833 = vrot.lane.b32.xlu1 %v830_v36, %s4109_s25 }
  0x25   : > { %1664 = vrot.lane.b32.xlu2 %v1661_v45, %s4110_s26 }
  0x2c   : > { %1506 = vrot.lane.b32.xlu0 %v1504_v46, %s4111_s27  ;;  %1508 = vrot.lane.b32.xlu1 %v1505_v47, %s4111_s27 }
  0x2d   : > { %1950 = vrot.lane.b32.xlu2 %v1947_v59, %s4112_s28 }
  0x34   : > { %1662 = vrot.lane.b32.xlu1 %v1660_v51, %s4110_s26  ;;  %v4274_v51 = vld [vmem:[%s4221_s6 + $0x6c] sm:$0xff] }
  0x3c   : > { %1948 = vrot.lane.b32.xlu1 %v1946_v55, %s4112_s28 }
  0x6f   : > { %v676_v18 = vpop.permute.xlu2 %675 }
  0x70   : > { %v679_v22 = vrot.slane %v676_v18, 4 }
  0x72   : > { %v4255_v33 = vsel %vm681_vm3, %v679_v22, %v676_v18 }
  0x73   : > { %v688_v36 = vmul.f32 %v4255_v33, %v4251_v30 }
  0x77   : > { %v678_v34 = vpop.permute.xlu2 %677 }
  0x78   : > { %v4261_v37 = vrot.slane %v678_v34, 4 }
  0x7a   : > { %v683_v43 = vsel %vm238_vm0, %v679_v22, %v4261_v37  ;;  %v690_v59 = vmul.f32 %v4261_v37, %v662_v53  ;;  %v973_v22 = vld [vmem:[%s4221_s6 + $0x74] sm:$0xf] }
  0x7b   : > { %v4277_v52 = vsel %vm681_vm3, %v683_v43, %v678_v34 }
  0x7c   : > { %v689_v56 = vmul.f32 %v4277_v52, %v4274_v51 }
  0x86   : > { %v274_v60 = vpop.permute.xlu0 %273  ;;  %v242_v61 = vpop.permute.xlu1 %241 }
  0x87   : > { %v277_v63 = vrot.slane %v274_v60, 4  ;;  %v245_v1 = vrot.slane %v242_v61, 4 }
  0x89   : > { %v280_v0 = vsel %vm279_vm1, %v277_v63, %v274_v60  ;;  %v248_v3 = vsel %vm247_vm2, %v245_v1, %v242_v61 }
  0x8a   : > { %v286_v2 = vmul.f32 %v280_v0, %v4224_v62  ;;  %v254_v9 = vmul.f32 %v4230_v5, %v248_v3  ;;  %v533_v23 = vmul.f32 %v4230_v5, %v280_v0 }
  0x8c   : > { %294 = vst [vmem:[#allocation1] ss:$2 sm:$0xff] %v286_v2 }
  0x8e   : > { %v276_v4 = vpop.permute.xlu0 %275  ;;  %v244_v8 = vpop.permute.xlu1 %243 }
  0x8f   : > { %v278_v7 = vrot.slane %v276_v4, 4  ;;  %v246_v14 = vrot.slane %v244_v8, 4 }
  0x91   : > { %v281_v11 = vsel %vm238_vm0, %v277_v63, %v278_v7  ;;  %v288_v13 = vmul.f32 %v278_v7, %v260_v6  ;;  %v249_v19 = vsel %vm238_vm0, %v245_v1, %v246_v14  ;;  %v256_v27 = vmul.f32 %v246_v14, %v227_v20  ;;  %v817_v1 = vld [vmem:[%s4221_s6 + $0x58] sm:$0xff] }
  0x92   : > { %v282_v12 = vsel %vm279_vm1, %v281_v11, %v276_v4  ;;  %v250_v21 = vsel %vm247_vm2, %v249_v19, %v244_v8  ;;  %v535_v45 = vmul.f32 %v532_v39, %v278_v7  ;;  %v818_v7 = vld [vmem:[%s4221_s6 + $0x60] sm:$0xf] }
  0x93   : > { %v299_v15 = vld.sshfl [vmem:[#allocation1] sm:$0xff pattern:$0x75316420]  ;;  %v300_v16 = vld.sshfl [vmem:[#allocation1 + $0x8] sm:$0xff pattern:$0x75316420]  ;;  %v287_v17 = vmul.f32 %v282_v12, %v4235_v10  ;;  %v255_v29 = vmul.f32 %v4247_v24, %v250_v21  ;;  %v534_v42 = vmul.f32 %v4247_v24, %v282_v12 }
  0x94   : > { %414 = vst [vmem:[#allocation1] ss:$2 sm:$0xff] %v254_v9  ;;  %306 = vrot.lane.b32.xlu0 %v300_v16, %s4113_s7  ;;  %304 = vrot.lane.b32.xlu2 %v299_v15, %s4113_s7 }
  0x95   : > { %296 = vst [vmem:[#allocation1 + $0x10] ss:$2 sm:$0xff] %v287_v17 }
  0x96   : > { %298 = vst [vmem:[#allocation1 + $0x20] ss:$2 sm:$0xff] %v288_v13  ;;  %v832_v35 = vpop.permute.xlu0 %831  ;;  %v834_v49 = vpop.permute.xlu1 %833 }
  0x97   : > { %v835_v38 = vrot.slane %v832_v35, 4  ;;  %v4281_v55 = vrot.slane %v834_v49, 4 }
  0x99   : > { %v4271_v48 = vsel %vm837_vm4, %v835_v38, %v832_v35  ;;  %v839_v60 = vsel %vm238_vm0, %v835_v38, %v4281_v55  ;;  %v846_v15 = vmul.f32 %v4281_v55, %v818_v7 }
  0x9a   : > { %v844_v54 = vmul.f32 %v4271_v48, %v816_v44  ;;  %v4293_v2 = vsel %vm837_vm4, %v839_v60, %v834_v49  ;;  %v974_v6 = vmul.f32 %v4271_v48, %v4251_v30  ;;  %v1234_v38 = vmul.f32 %v4271_v48, %v4224_v62 }
  0x9b   : > { %v419_v25 = vld.sshfl [vmem:[#allocation1] sm:$0xff pattern:$0x75316420]  ;;  %v420_v26 = vld.sshfl [vmem:[#allocation1 + $0x8] sm:$0xff pattern:$0x75316420]  ;;  %v845_v11 = vmul.f32 %v4293_v2, %v817_v1 }
  0x9c   : > { %541 = vst [vmem:[#allocation1] ss:$2 sm:$0xff] %v533_v23  ;;  %v301_v28 = vld.sshfl [vmem:[#allocation1 + $0x10] sm:$0xff pattern:$0x75316420]  ;;  %v4397_v1 = vld [vmem:[%s4221_s6 + $0x3c] sm:$0xff] }
  0x9d   : > { %v302_v31 = vld.sshfl [vmem:[#allocation1 + $0x18] sm:$0xff pattern:$0x75316420]  ;;  %v303_v32 = vld.sshfl [vmem:[#allocation1 + $0x20] sm:$0xff pattern:$0x75316420]  ;;  %308 = vrot.lane.b32.xlu2 %v301_v28, %s4113_s7 }
  0x9e   : > { %416 = vst [vmem:[#allocation1 + $0x10] ss:$2 sm:$0xff] %v255_v29  ;;  %312 = vrot.lane.b32.xlu1 %v303_v32, %s4113_s7  ;;  %310 = vrot.lane.b32.xlu0 %v302_v31, %s4113_s7  ;;  %v4295_v3 = vpop.permute.xlu0 %1506  ;;  %v1509_v4 = vpop.permute.xlu1 %1508  ;;  %v976_v31 = vmul.f32 %v973_v22, %v4281_v55  ;;  %v4447_v22 = vld [vmem:[%s4221_s6 + $0x44] sm:$0xff] }
  0x9f   : > { %418 = vst [vmem:[#allocation1 + $0x20] ss:$2 sm:$0xff] %v256_v27  ;;  %v1510_v8 = vrot.slane %v4295_v3, 4  ;;  %v4301_v9 = vrot.slane %v1509_v4, 4 }
  0xa1   : > { %v1514_v12 = vsel %vm238_vm0, %v1510_v8, %v4301_v9 }
  0xa2   : > { %v4314_v16 = vsel %vm1512_vm5, %v1514_v12, %v1509_v4 }
  0xa3   : > { %v4264_v40 = vld.sshfl [vmem:[#allocation1] sm:$0xff pattern:$0x75316420]  ;;  %v547_v41 = vld.sshfl [vmem:[#allocation1 + $0x8] sm:$0xff pattern:$0x75316420]  ;;  %v4318_v17 = vmul.f32 %v4314_v16, %v4247_v24 }
  0xa4   : > { %696 = vst [vmem:[#allocation1] ss:$2 sm:$0xff] %v688_v36  ;;  %v1665_v36 = vpop.permute.xlu2 %1664 }
  0xa5   : > { %v421_v46 = vld.sshfl [vmem:[#allocation1 + $0x10] sm:$0xff pattern:$0x75316420]  ;;  %v422_v47 = vld.sshfl [vmem:[#allocation1 + $0x18] sm:$0xff pattern:$0x75316420]  ;;  %426 = vrot.lane.b32.xlu2 %v420_v26, %s4114_s8  ;;  %v975_v26 = vmul.f32 %v4293_v2, %v4274_v51 }
  0xa6   : > { %v423_v50 = vld.sshfl [vmem:[#allocation1 + $0x20] sm:$0xff pattern:$0x75316420]  ;;  %543 = vst [vmem:[#allocation1 + $0x10] ss:$2 sm:$0xff] %v534_v42  ;;  %424 = vrot.lane.b32.xlu1 %v419_v25, %s4114_s8  ;;  %v1663_v21 = vpop.permute.xlu1 %1662  ;;  %v1104_v25 = vmul.f32 %v4255_v33, %v4230_v5  ;;  %v4350_v39 = vrot.slane %v1665_v36, 4 }
  0xa7   : > { %545 = vst [vmem:[#allocation1 + $0x20] ss:$2 sm:$0xff] %v535_v45  ;;  %432 = vrot.lane.b32.xlu0 %v423_v50, %s4114_s8  ;;  %v1666_v23 = vrot.slane %v1663_v21, 4  ;;  %v1105_v45 = vmul.f32 %v4277_v52, %v4247_v24 }
  0xa9   : > { %v4329_v27 = vsel %vm1668_vm6, %v1666_v23, %v1663_v21  ;;  %v1670_v42 = vsel %vm238_vm0, %v1666_v23, %v4350_v39 }
  0xaa   : > { %v4338_v32 = vmul.f32 %v4329_v27, %v4224_v62 }
  0xab   : > { %v4285_v57 = vld.sshfl [vmem:[#allocation1] sm:$0xff pattern:$0x75316420]  ;;  %v702_v58 = vld.sshfl [vmem:[#allocation1 + $0x8] sm:$0xff pattern:$0x75316420] }
  0xac   : > { %852 = vst [vmem:[#allocation1] ss:$2 sm:$0xff] %v844_v54  ;;  %v1951_v53 = vpop.permute.xlu2 %1950 }
  0xad   : > { %v548_v61 = vld.sshfl [vmem:[#allocation1 + $0x10] sm:$0xff pattern:$0x75316420]  ;;  %v549_v63 = vld.sshfl [vmem:[#allocation1 + $0x18] sm:$0xff pattern:$0x75316420]  ;;  %430 = vrot.lane.b32.xlu2 %v422_v47, %s4114_s8 }
  0xae   : > { %v550_v0 = vld.sshfl [vmem:[#allocation1 + $0x20] sm:$0xff pattern:$0x75316420]  ;;  %698 = vst [vmem:[#allocation1 + $0x10] ss:$2 sm:$0xff] %v689_v56  ;;  %428 = vrot.lane.b32.xlu1 %v421_v46, %s4114_s8  ;;  %v4377_v54 = vpop.permute.xlu1 %1948 }
  0xaf   : > { %700 = vst [vmem:[#allocation1 + $0x20] ss:$2 sm:$0xff] %v690_v59  ;;  %553 = vrot.lane.b32.xlu0 %v547_v41, %s4113_s7  ;;  %v1103_v41 = vld [vmem:[%s4221_s6 + $0x9c] sm:$0xf]  ;;  %v1233_v56 = vld [vmem:[%s4221_s6 + $0x88] sm:$0xf]  ;;  %v1364_v59 = vmul.f32 %v4271_v48, %v4230_v5 }
  0xb0   : > { %v1106_v47 = vmul.f32 %v1103_v41, %v4261_v37  ;;  %v1952_v37 = vrot.slane %v4377_v54, 4  ;;  %v1236_v60 = vmul.f32 %v1233_v56, %v4281_v55 }
  0xb3   : > { %v4308_v13 = vld.sshfl [vmem:[#allocation1] sm:$0xff pattern:$0x75316420]  ;;  %v4310_v14 = vld.sshfl [vmem:[#allocation1 + $0x8] sm:$0xff pattern:$0x75316420] }
  0xb4   : > { %982 = vst [vmem:[#allocation1] ss:$2 sm:$0xff] %v974_v6  ;;  %v4410_v6 = vsel %vm1512_vm5, %v1510_v8, %v4295_v3 }
  0xb5   : > { %v703_v18 = vld.sshfl [vmem:[#allocation1 + $0x10] sm:$0xff pattern:$0x75316420]  ;;  %v704_v19 = vld.sshfl [vmem:[#allocation1 + $0x18] sm:$0xff pattern:$0x75316420]  ;;  %559 = vrot.lane.b32.xlu2 %v550_v0, %s4113_s7  ;;  %v1235_v0 = vmul.f32 %v4293_v2, %v4235_v10  ;;  %v1519_v3 = vmul.f32 %v4410_v6, %v4397_v1 }
  0xb6   : > { %v705_v20 = vld.sshfl [vmem:[#allocation1 + $0x20] sm:$0xff pattern:$0x75316420]  ;;  %854 = vst [vmem:[#allocation1 + $0x10] ss:$2 sm:$0xff] %v845_v11  ;;  %557 = vrot.lane.b32.xlu1 %v549_v63, %s4113_s7 }
  0xb7   : > { %856 = vst [vmem:[#allocation1 + $0x20] ss:$2 sm:$0xff] %v846_v15  ;;  %555 = vrot.lane.b32.xlu0 %v548_v61, %s4113_s7  ;;  %v1365_v15 = vmul.f32 %v4293_v2, %v4247_v24  ;;  %v1520_v2 = vmul.f32 %v4314_v16, %v4447_v22  ;;  %v1648_v16 = vld [vmem:[%s4221_s6 + $0x30] sm:$0xff] }
  0xbb   : > { %v4331_v28 = vld.sshfl [vmem:[#allocation1] sm:$0xff pattern:$0x75316420]  ;;  %v4333_v29 = vld.sshfl [vmem:[#allocation1 + $0x8] sm:$0xff pattern:$0x75316420] }
  0xbc   : > { %1112 = vst [vmem:[#allocation1] ss:$2 sm:$0xff] %v1104_v25 }
  0xbd   : > { %v4340_v34 = vld.sshfl [vmem:[#allocation1 + $0x10] sm:$0xff pattern:$0x75316420]  ;;  %v4342_v33 = vld.sshfl [vmem:[#allocation1 + $0x18] sm:$0xff pattern:$0x75316420]  ;;  %551 = vrot.lane.b32.xlu2 %v4264_v40, %s4113_s7  ;;  %v4358_v40 = vsel %vm1668_vm6, %v1670_v42, %v1665_v36 }
  0xbe   : > { %v861_v35 = vld.sshfl [vmem:[#allocation1 + $0x20] sm:$0xff pattern:$0x75316420]  ;;  %984 = vst [vmem:[#allocation1 + $0x10] ss:$2 sm:$0xff] %v975_v26  ;;  %708 = vrot.lane.b32.xlu1 %v702_v58, %s4115_s9  ;;  %v4366_v62 = vmul.f32 %v4358_v40, %v4235_v10  ;;  %v4370_v46 = vmul.f32 %v4358_v40, %v4247_v24  ;;  %v4380_v58 = vrot.slane %v1951_v53, 4  ;;  %v1676_v36 = vmul.f32 %v4358_v40, %v1648_v16 }
  0xbf   : > { %986 = vst [vmem:[#allocation1 + $0x20] ss:$2 sm:$0xff] %v976_v31  ;;  %714 = vrot.lane.b32.xlu0 %v705_v20, %s4115_s9 }
  0xc3   : > { %v4355_v43 = vld.sshfl [vmem:[#allocation1 + $0x8] sm:$0xff pattern:$0x75316420]  ;;  %v4360_v44 = vld.sshfl [vmem:[#allocation1] sm:$0xff pattern:$0x75316420] }
  0xc4   : > { %1242 = vst [vmem:[#allocation1] ss:$2 sm:$0xff] %v1234_v38 }
  0xc5   : > { %v989_v49 = vld.sshfl [vmem:[#allocation1 + $0x10] sm:$0xff pattern:$0x75316420]  ;;  %v990_v50 = vld.sshfl [vmem:[#allocation1 + $0x18] sm:$0xff pattern:$0x75316420]  ;;  %712 = vrot.lane.b32.xlu2 %v704_v19, %s4115_s9 }
  0xc6   : > { %1114 = vst [vmem:[#allocation1 + $0x10] ss:$2 sm:$0xff] %v1105_v45  ;;  %710 = vrot.lane.b32.xlu1 %v703_v18, %s4115_s9  ;;  %v991_v52 = vld.sshfl [vmem:[#allocation1 + $0x20] sm:$0xff pattern:$0x75316420]  ;;  %v1647_v18 = vld [vmem:[%s4221_s6 + $0x28] sm:$0xff] }
  0xc7   : > { %706 = vrot.lane.b32.xlu0 %v4285_v57, %s4115_s9  ;;  %1116 = vst [vmem:[#allocation1 + $0x20] ss:$2 sm:$0xff] %v1106_v47  ;;  %v1956_v57 = vsel %vm238_vm0, %v1952_v37, %v4380_v58  ;;  %v1933_v45 = vld [vmem:[%s4221_s6 + $0x14] sm:$0xff]  ;;  %v4486_v47 = vsel %vm1954_vm7, %v1952_v37, %v4377_v54  ;;  %v1807_v54 = vmul.f32 %v4358_v40, %v4447_v22 }
  0xc8   : > { %v4400_v48 = vsel %vm1954_vm7, %v1956_v57, %v1951_v53  ;;  %v1961_v53 = vmul.f32 %v4486_v47, %v1933_v45  ;;  %v2198_v45 = vld [vmem:[%s4221_s6 + $0x20] sm:$0xff] }
  0xc9   : > { %v4414_v10 = vmul.f32 %v4400_v48, %v4274_v51  ;;  %v4421_v12 = vmul.f32 %v4400_v48, %v4247_v24  ;;  %v1363_v51 = vld [vmem:[%s4221_s6 + $0x9c] sm:$0xf]  ;;  %v1493_v24 = vld [vmem:[%s4221_s6 + $0x4c] sm:$0xf] }
  0xca   : > { %v1366_v19 = vmul.f32 %v1363_v51, %v4281_v55  ;;  %v1675_v55 = vmul.f32 %v4329_v27, %v1647_v18  ;;  %v1521_v23 = vmul.f32 %v4301_v9, %v1493_v24 }
  0xcb   : > { %v4390_v61 = vld.sshfl [vmem:[#allocation1] sm:$0xff pattern:$0x75316420]  ;;  %v4392_v63 = vld.sshfl [vmem:[#allocation1 + $0x8] sm:$0xff pattern:$0x75316420] }
  0xcc   : > { %1372 = vst [vmem:[#allocation1] ss:$2 sm:$0xff] %v1364_v59 }
  0xcd   : > { %v4402_v4 = vld.sshfl [vmem:[#allocation1 + $0x18] sm:$0xff pattern:$0x75316420]  ;;  %862 = vrot.lane.b32.xlu2 %v4308_v13, %s4109_s25  ;;  %v4416_v7 = vld.sshfl [vmem:[#allocation1 + $0x10] sm:$0xff pattern:$0x75316420] }
  0xce   : > { %870 = vrot.lane.b32.xlu1 %v861_v35, %s4109_s25  ;;  %v1121_v11 = vld.sshfl [vmem:[#allocation1 + $0x20] sm:$0xff pattern:$0x75316420]  ;;  %1244 = vst [vmem:[#allocation1 + $0x10] ss:$2 sm:$0xff] %v1235_v0 }
  0xcf   : > { %864 = vrot.lane.b32.xlu0 %v4310_v14, %s4109_s25  ;;  %1246 = vst [vmem:[#allocation1 + $0x20] ss:$2 sm:$0xff] %v1236_v60  ;;  %v1649_v35 = vld [vmem:[%s4221_s6 + $0x38] sm:$0xf]  ;;  %v1934_v0 = vld [vmem:[%s4221_s6 + $0x1c] sm:$0xff] }
  0xd0   : > { %v1677_v38 = vmul.f32 %v4350_v39, %v1649_v35 }
  0xd3   : > { %v4428_v8 = vld.sshfl [vmem:[#allocation1 + $0x8] sm:$0xff pattern:$0x75316420]  ;;  %v4430_v13 = vld.sshfl [vmem:[#allocation1] sm:$0xff pattern:$0x75316420] }
  0xd4   : > { %1527 = vst [vmem:[#allocation1] ss:$2 sm:$0xff] %v1519_v3  ;;  %v2089_v3 = vld [vmem:[%s4221_s6 + $0x4] sm:$0xff] }
  0xd5   : > { %866 = vrot.lane.b32.xlu2 %v4340_v34, %s4109_s25  ;;  %v4438_v14 = vld.sshfl [vmem:[#allocation1 + $0x10] sm:$0xff pattern:$0x75316420]  ;;  %v4440_v20 = vld.sshfl [vmem:[#allocation1 + $0x18] sm:$0xff pattern:$0x75316420] }
  0xd6   : > { %994 = vrot.lane.b32.xlu1 %v4333_v29, %s4109_s25  ;;  %v4444_v21 = vld.sshfl [vmem:[#allocation1 + $0x20] sm:$0xff pattern:$0x75316420]  ;;  %1374 = vst [vmem:[#allocation1 + $0x10] ss:$2 sm:$0xff] %v1365_v15 }
  0xd7   : > { %868 = vrot.lane.b32.xlu0 %v4342_v33, %s4109_s25  ;;  %1376 = vst [vmem:[#allocation1 + $0x20] ss:$2 sm:$0xff] %v1366_v19  ;;  %v1806_v33 = vmul.f32 %v4329_v27, %v4397_v1 }
  0xdb   : > { %v4456_v25 = vld.sshfl [vmem:[#allocation1] sm:$0xff pattern:$0x75316420]  ;;  %v4458_v26 = vld.sshfl [vmem:[#allocation1 + $0x8] sm:$0xff pattern:$0x75316420] }
  0xdc   : > { %1683 = vst [vmem:[#allocation1] ss:$2 sm:$0xff] %v1675_v55  ;;  %v2307_v55 = vld [vmem:[%s4221_s6 + $0x4c] sm:$0xf] }
  0xdd   : > { %998 = vrot.lane.b32.xlu2 %v990_v50, %s4109_s25  ;;  %v4461_v29 = vld.sshfl [vmem:[#allocation1 + $0x18] sm:$0xff pattern:$0x75316420]  ;;  %v4463_v31 = vld.sshfl [vmem:[#allocation1 + $0x10] sm:$0xff pattern:$0x75316420] }
  0xde   : > { %996 = vrot.lane.b32.xlu1 %v989_v49, %s4109_s25  ;;  %v4466_v34 = vld.sshfl [vmem:[#allocation1 + $0x20] sm:$0xff pattern:$0x75316420]  ;;  %1529 = vst [vmem:[#allocation1 + $0x10] ss:$2 sm:$0xff] %v1520_v2  ;;  %v2197_v2 = vld [vmem:[%s4221_s6 + $0x18] sm:$0xff] }
  0xdf   : > { %1000 = vrot.lane.b32.xlu0 %v991_v52, %s4109_s25  ;;  %1531 = vst [vmem:[#allocation1 + $0x20] ss:$2 sm:$0xff] %v1521_v23  ;;  %v2310_v23 = vmul.f32 %v2307_v55, %v4380_v58 }
  0xe3   : > { %v4475_v41 = vld.sshfl [vmem:[#allocation1] sm:$0xff pattern:$0x75316420]  ;;  %v4477_v42 = vld.sshfl [vmem:[#allocation1 + $0x8] sm:$0xff pattern:$0x75316420] }
  0xe4   : > { %1814 = vst [vmem:[#allocation1] ss:$2 sm:$0xff] %v1806_v33 }
  0xe5   : > { %1122 = vrot.lane.b32.xlu2 %v4360_v44, %s4115_s9  ;;  %v4488_v49 = vld.sshfl [vmem:[#allocation1 + $0x10] sm:$0xff pattern:$0x75316420]  ;;  %v4490_v50 = vld.sshfl [vmem:[#allocation1 + $0x18] sm:$0xff pattern:$0x75316420] }
  0xe6   : > { %1130 = vrot.lane.b32.xlu1 %v1121_v11, %s4115_s9  ;;  %v4493_v52 = vld.sshfl [vmem:[#allocation1 + $0x20] sm:$0xff pattern:$0x75316420]  ;;  %1685 = vst [vmem:[#allocation1 + $0x10] ss:$2 sm:$0xff] %v1676_v36 }
  0xe7   : > { %992 = vrot.lane.b32.xlu0 %v4331_v28, %s4109_s25  ;;  %1687 = vst [vmem:[#allocation1 + $0x20] ss:$2 sm:$0xff] %v1677_v38  ;;  %v1805_v44 = vld [vmem:[%s4221_s6 + $0x4c] sm:$0xf]  ;;  %v1935_v11 = vld [vmem:[%s4221_s6 + $0x24] sm:$0xf] }
  0xe8   : > { %v1808_v56 = vmul.f32 %v1805_v44, %v4350_v39  ;;  %v1963_v51 = vmul.f32 %v4380_v58, %v1935_v11  ;;  %v2653_v38 = vld [vmem:[%s4221_s6 + $0x9c] sm:$0xf] }
  0xe9   : > { %v2656_v44 = vmul.f32 %v2653_v38, %v4301_v9 }
  0xeb   : > { %v4502_v37 = vld.sshfl [vmem:[#allocation1 + $0x8] sm:$0xff pattern:$0x75316420]  ;;  %v4504_v59 = vld.sshfl [vmem:[#allocation1] sm:$0xff pattern:$0x75316420] }
  0xec   : > { %1969 = vst [vmem:[#allocation1] ss:$2 sm:$0xff] %v1961_v53 }
  0xed   : > { %1126 = vrot.lane.b32.xlu2 %v4416_v7, %s4115_s9  ;;  %v4508_v28 = vld.sshfl [vmem:[#allocation1 + $0x18] sm:$0xff pattern:$0x75316420]  ;;  %v4510_v60 = vld.sshfl [vmem:[#allocation1 + $0x10] sm:$0xff pattern:$0x75316420]  ;;  %v1962_v7 = vmul.f32 %v4400_v48, %v1934_v0 }
  0xee   : > { %1252 = vrot.lane.b32.xlu1 %v4390_v61, %s4109_s25  ;;  %v305_v57 = vpop.permute.xlu2 %304  ;;  %1816 = vst [vmem:[#allocation1 + $0x10] ss:$2 sm:$0xff] %v1807_v54  ;;  %v4514_v40 = vld.sshfl [vmem:[#allocation1 + $0x20] sm:$0xff pattern:$0x75316420] }
  0xef   : > { %1124 = vrot.lane.b32.xlu0 %v4355_v43, %s4115_s9  ;;  %1818 = vst [vmem:[#allocation1 + $0x20] ss:$2 sm:$0xff] %v1808_v56 }
  0xf3   : > { %v4523_v15 = vld.sshfl [vmem:[#allocation1] sm:$0xff pattern:$0x75316420]  ;;  %v4525_v61 = vld.sshfl [vmem:[#allocation1 + $0x8] sm:$0xff pattern:$0x75316420] }
  0xf4   : > { %2095 = vst [vmem:[#allocation1] ss:$2 sm:$0xff] %v2089_v3  ;;  %v2783_v3 = vld [vmem:[%s4221_s6 + $0x88] sm:$0xf] }
  0xf5   : > { %1254 = vrot.lane.b32.xlu2 %v4392_v63, %s4109_s25  ;;  %v4529_v18 = vld.sshfl [vmem:[#allocation1 + $0x10] sm:$0xff pattern:$0x75316420]  ;;  %v4531_v43 = vld.sshfl [vmem:[#allocation1 + $0x18] sm:$0xff pattern:$0x75316420] }
  0xf6   : > { %1256 = vrot.lane.b32.xlu1 %v4438_v14, %s4109_s25  ;;  %1971 = vst [vmem:[#allocation1 + $0x10] ss:$2 sm:$0xff] %v1962_v7  ;;  %v4535_v19 = vld.sshfl [vmem:[#allocation1 + $0x20] sm:$0xff pattern:$0x75316420]  ;;  %v2090_v63 = vld [vmem:[%s4221_s6 + $0xc] sm:$0xff] }
  0xf7   : > { %1128 = vrot.lane.b32.xlu0 %v4402_v4, %s4115_s9  ;;  %v4539_v24 = vpop.permute.xlu2 %308  ;;  %1973 = vst [vmem:[#allocation1 + $0x20] ss:$2 sm:$0xff] %v1963_v51  ;;  %v2786_v51 = vmul.f32 %v2783_v3, %v4350_v39  ;;  %v257_v3 = vld [vmem:[%s5266_s2] sm:$0xff] }
  0xfb   : > { %v4545_v16 = vld.sshfl [vmem:[#allocation1] sm:$0xff pattern:$0x75316420]  ;;  %v4547_v33 = vld.sshfl [vmem:[#allocation1 + $0x8] sm:$0xff pattern:$0x75316420] }
  0xfc   : > { %2203 = vst [vmem:[#allocation1] ss:$2 sm:$0xff] %v2197_v2 }
  0xfd   : > { %1258 = vrot.lane.b32.xlu2 %v4440_v20, %s4109_s25  ;;  %v4551_v14 = vld.sshfl [vmem:[#allocation1 + $0x10] sm:$0xff pattern:$0x75316420]  ;;  %v4553_v4 = vld.sshfl [vmem:[#allocation1 + $0x18] sm:$0xff pattern:$0x75316420]  ;;  %v2308_v20 = vmul.f32 %v4486_v47, %v4397_v1 }
  0xfe   : > { %1384 = vrot.lane.b32.xlu1 %v4428_v8, %s4109_s25  ;;  %v4557_v35 = vld.sshfl [vmem:[#allocation1 + $0x20] sm:$0xff pattern:$0x75316420]  ;;  %2097 = vst [vmem:[#allocation1 + $0x10] ss:$2 sm:$0xff] %v2090_v63  ;;  %v3829_v8 = vld [vmem:[%s5266_s2 + $0x8] sm:$0xff] }
  0xff   : > { %1260 = vrot.lane.b32.xlu0 %v4444_v21, %s4109_s25  ;;  %v4561_v36 = vpop.permute.xlu2 %426  ;;  %2320 = vst [vmem:[#allocation1 + $0x20] ss:$2 sm:$0xff] %v2310_v23 }
 0x103   : > { %v4568_v53 = vld.sshfl [vmem:[#allocation1] sm:$0xff pattern:$0x75316420]  ;;  %v4570_v54 = vld.sshfl [vmem:[#allocation1 + $0x8] sm:$0xff pattern:$0x75316420] }
 0x104   : > { %2316 = vst [vmem:[#allocation1] ss:$2 sm:$0xff] %v2308_v20  ;;  %v2543_v20 = vld [vmem:[%s4221_s6 + $0x40] sm:$0xff] }
 0x105   : > { %1390 = vrot.lane.b32.xlu2 %v4466_v34, %s4109_s25  ;;  %v4577_v21 = vld.sshfl [vmem:[#allocation1 + $0x10] sm:$0xff pattern:$0x75316420]  ;;  %v4579_v1 = vld.sshfl [vmem:[#allocation1 + $0x18] sm:$0xff pattern:$0x75316420] }
 0x106   : > { %1388 = vrot.lane.b32.xlu1 %v4461_v29, %s4109_s25  ;;  %v307_v9 = vpop.permute.xlu0 %306  ;;  %v4583_v56 = vld.sshfl [vmem:[#allocation1 + $0x20] sm:$0xff pattern:$0x75316420]  ;;  %2205 = vst [vmem:[#allocation1 + $0x10] ss:$2 sm:$0xff] %v2198_v45  ;;  %v2435_v29 = vld [vmem:[%s4221_s6 + $0x2c] sm:$0xff] }
 0x107   : > { %1382 = vrot.lane.b32.xlu0 %v4430_v13, %s4109_s25  ;;  %v4587_v0 = vpop.permute.xlu2 %430  ;;  %v315_v34 = vsel %vm314_vm8, %v305_v57, %v307_v9  ;;  %v316_v11 = vsel %vm314_vm8, %v307_v9, %v4539_v24  ;;  %2666 = vst [vmem:[#allocation1 + $0x20] ss:$2 sm:$0xff] %v2656_v44  ;;  %v2309_v57 = vmul.f32 %v4400_v48, %v4447_v22  ;;  %v2913_v45 = vld [vmem:[%s4221_s6 + $0x9c] sm:$0xf] }
 0x108   : > { %3830 = vmatpush.msk.msra.mxu0 %vm238_vm0, %v315_v34  ;;  %3832 = vmatpush.msk.msra.mxu1 %vm238_vm0, %v316_v11 }
 0x109   : > { %3831 = vmatmul.msk.f32.vlgmr.msra.gmra.mxu0 %vm319_vm9, %v3829_v8  ;;  %3833 = vmatmul.msk.f32.vlgmr.msra.gmra.mxu1 %vm319_vm9, %v3829_v8 }
 0x10b   : > { %v4598_v7 = vld.sshfl [vmem:[#allocation1] sm:$0xff pattern:$0x75316420]  ;;  %v4600_v13 = vld.sshfl [vmem:[#allocation1 + $0x8] sm:$0xff pattern:$0x75316420] }
 0x10c   : > { %2441 = vst [vmem:[#allocation1] ss:$2 sm:$0xff] %v2435_v29 }
 0x10d   : > { %1537 = vrot.lane.b32.xlu2 %v4456_v25, %s4116_s12  ;;  %v4607_v55 = vld.sshfl [vmem:[#allocation1 + $0x10] sm:$0xff pattern:$0x75316420]  ;;  %v4609_v2 = vld.sshfl [vmem:[#allocation1 + $0x18] sm:$0xff pattern:$0x75316420] }
 0x10e   : > { %1545 = vrot.lane.b32.xlu1 %v4493_v52, %s4116_s12  ;;  %2318 = vst [vmem:[#allocation1 + $0x10] ss:$2 sm:$0xff] %v2309_v57  ;;  %v4613_v63 = vld.sshfl [vmem:[#allocation1 + $0x20] sm:$0xff pattern:$0x75316420]  ;;  %v2436_v52 = vld [vmem:[%s4221_s6 + $0x34] sm:$0xff] }
 0x10f   : > { %1386 = vrot.lane.b32.xlu0 %v4463_v31, %s4109_s25  ;;  %v4617_v48 = vpop.permute.xlu2 %559  ;;  %2796 = vst [vmem:[#allocation1 + $0x20] ss:$2 sm:$0xff] %v2786_v51  ;;  %v3043_v57 = vld [vmem:[%s4221_s6 + $0x74] sm:$0xf]  ;;  %v2544_v51 = vld [vmem:[%s4221_s6 + $0x48] sm:$0xff] }
 0x110   : > { %v313_v22 = vpop.permute.xlu1 %312  ;;  %v311_v23 = vpop.permute.xlu0 %310 }
 0x111   : > { %v317_v25 = vsel %vm314_vm8, %v4539_v24, %v311_v23  ;;  %v318_v38 = vsel %vm314_vm8, %v311_v23, %v313_v22  ;;  %v2916_v24 = vmul.f32 %v2913_v45, %v4350_v39 }
 0x112   : > { %3834 = vmatpush.msk.msra.mxu2 %vm238_vm0, %v317_v25  ;;  %3836 = vmatpush.msk.msra.mxu3 %vm238_vm0, %v318_v38 }
 0x113   : > { %3837 = vmatmul.msk.f32.vlgmr.msra.gmra.mxu3 %vm319_vm9, %v3829_v8  ;;  %3835 = vmatmul.msk.f32.vlgmr.msra.gmra.mxu2 %vm319_vm9, %v3829_v8  ;;  %v4629_v31 = vld.sshfl [vmem:[#allocation1] sm:$0xff pattern:$0x75316420]  ;;  %v4631_v44 = vld.sshfl [vmem:[#allocation1 + $0x8] sm:$0xff pattern:$0x75316420] }
 0x114   : > { %2549 = vst [vmem:[#allocation1] ss:$2 sm:$0xff] %v2543_v20 }
 0x115   : > { %1541 = vrot.lane.b32.xlu2 %v4488_v49, %s4116_s12  ;;  %v4636_v9 = vld.sshfl [vmem:[#allocation1 + $0x10] sm:$0xff pattern:$0x75316420]  ;;  %v4638_v34 = vld.sshfl [vmem:[#allocation1 + $0x18] sm:$0xff pattern:$0x75316420] }
 0x116   : > { %1693 = vrot.lane.b32.xlu1 %v4475_v41, %s4117_s13  ;;  %2443 = vst [vmem:[#allocation1 + $0x10] ss:$2 sm:$0xff] %v2436_v52  ;;  %v4642_v8 = vld.sshfl [vmem:[#allocation1 + $0x20] sm:$0xff pattern:$0x75316420]  ;;  %v2654_v41 = vmul.f32 %v4410_v6, %v4230_v5  ;;  %v3046_v6 = vmul.f32 %v3043_v57, %v4380_v58 }
 0x117   : > { %1539 = vrot.lane.b32.xlu0 %v4458_v26, %s4116_s12  ;;  %v552_v39 = vpop.permute.xlu2 %551  ;;  %2926 = vst [vmem:[#allocation1 + $0x20] ss:$2 sm:$0xff] %v2916_v24 }
 0x118   : > { %v425_v49 = vpop.permute.xlu1 %424 }
 0x119   : > { %v433_v11 = vpop.permute.xlu0 %432  ;;  %v435_v29 = vsel %vm434_vm10, %v425_v49, %v4561_v36 }
 0x11a   : > { %3838 = vmatpush.msk.msrb.mxu0 %vm238_vm0, %v435_v29  ;;  %v438_v26 = vsel %vm434_vm10, %v4587_v0, %v433_v11  ;;  %v3389_v11 = vld [vmem:[%s4221_s6 + $0x9c] sm:$0xf] }
 0x11b   : > { %3844 = vmatpush.msk.msrb.mxu3 %vm238_vm0, %v438_v26  ;;  %3839 = vmatmul.msk.f32.vlgmr.msrb.gmra.mxu0 %vm319_vm9, %v257_v3  ;;  %v4660_v22 = vld.sshfl [vmem:[#allocation1] sm:$0xff pattern:$0x75316420]  ;;  %v4662_v23 = vld.sshfl [vmem:[#allocation1 + $0x8] sm:$0xff pattern:$0x75316420]  ;;  %v2914_v26 = vmul.f32 %v4329_v27, %v4230_v5 }
 0x11c   : > { %3845 = vmatmul.msk.f32.vlgmr.msrb.gmra.mxu3 %vm319_vm9, %v257_v3  ;;  %2662 = vst [vmem:[#allocation1] ss:$2 sm:$0xff] %v2654_v41 }
 0x11d   : > { %1695 = vrot.lane.b32.xlu2 %v4477_v42, %s4117_s13  ;;  %v4668_v25 = vld.sshfl [vmem:[#allocation1 + $0x10] sm:$0xff pattern:$0x75316420]  ;;  %v4670_v38 = vld.sshfl [vmem:[#allocation1 + $0x18] sm:$0xff pattern:$0x75316420] }
 0x11e   : > { %1697 = vrot.lane.b32.xlu1 %v4510_v60, %s4117_s13  ;;  %2551 = vst [vmem:[#allocation1 + $0x10] ss:$2 sm:$0xff] %v2544_v51  ;;  %v4674_v20 = vld.sshfl [vmem:[#allocation1 + $0x20] sm:$0xff pattern:$0x75316420] }
 0x11f   : > { %1543 = vrot.lane.b32.xlu0 %v4490_v50, %s4116_s12  ;;  %v4678_v45 = vpop.permute.xlu2 %712  ;;  %3056 = vst [vmem:[#allocation1 + $0x20] ss:$2 sm:$0xff] %v3046_v6  ;;  %v3846_v50 = vld [vmem:[%s5266_s2 + $0x10] sm:$0xff] }
 0x120   : > { %v429_v52 = vpop.permute.xlu1 %428 }
 0x121   : > { %v436_v42 = vsel %vm434_vm10, %v4561_v36, %v429_v52  ;;  %v437_v24 = vsel %vm434_vm10, %v429_v52, %v4587_v0  ;;  %v554_v49 = vpop.permute.xlu0 %553  ;;  %v3392_v0 = vmul.f32 %v3389_v11, %v4380_v58 }
 0x122   : > { %3840 = vmatpush.msk.msrb.mxu1 %vm238_vm0, %v436_v42  ;;  %3842 = vmatpush.msk.msrb.mxu2 %vm238_vm0, %v437_v24  ;;  %v561_v60 = vsel %vm314_vm8, %v552_v39, %v554_v49 }
 0x123   : > { %3847 = vmatpush.msk.msra.mxu0 %vm238_vm0, %v561_v60  ;;  %3841 = vmatmul.msk.f32.vlgmr.msrb.gmra.mxu1 %vm319_vm9, %v257_v3  ;;  %v4693_v36 = vld.sshfl [vmem:[#allocation1 + $0x8] sm:$0xff pattern:$0x75316420]  ;;  %v4695_v29 = vld.sshfl [vmem:[#allocation1] sm:$0xff pattern:$0x75316420] }
 0x124   : > { %3843 = vmatmul.msk.f32.vlgmr.msrb.gmra.mxu2 %vm319_vm9, %v257_v3  ;;  %3848 = vmatmul.msk.f32.vlgmr.msra.gmra.mxu0 %vm319_vm9, %v3846_v50  ;;  %2792 = vst [vmem:[#allocation1] ss:$2 sm:$0xff] %v4338_v32 }
 0x125   : > { %1699 = vrot.lane.b32.xlu2 %v4508_v28, %s4117_s13  ;;  %v4703_v39 = vld.sshfl [vmem:[#allocation1 + $0x10] sm:$0xff pattern:$0x75316420]  ;;  %v4705_v41 = vld.sshfl [vmem:[#allocation1 + $0x18] sm:$0xff pattern:$0x75316420] }
 0x126   : > { %1830 = vrot.lane.b32.xlu1 %v4531_v43, %s4117_s13  ;;  %2664 = vst [vmem:[#allocation1 + $0x10] ss:$2 sm:$0xff] %v4318_v17  ;;  %v4710_v57 = vld.sshfl [vmem:[#allocation1 + $0x20] sm:$0xff pattern:$0x75316420] }
 0x127   : > { %1701 = vrot.lane.b32.xlu0 %v4514_v40, %s4117_s13  ;;  %v4714_v32 = vpop.permute.xlu2 %862  ;;  %3402 = vst [vmem:[#allocation1 + $0x20] ss:$2 sm:$0xff] %v3392_v0 }
 0x128   : > { %v558_v58 = vpop.permute.xlu1 %557 }
 0x129   : > { %v564_v28 = vsel %vm314_vm8, %v558_v58, %v4617_v48  ;;  %v556_v3 = vpop.permute.xlu0 %555 }
 0x12a   : > { %3853 = vmatpush.msk.msra.mxu3 %vm238_vm0, %v564_v28  ;;  %v562_v17 = vsel %vm314_vm8, %v554_v49, %v556_v3  ;;  %v563_v43 = vsel %vm314_vm8, %v556_v3, %v558_v58  ;;  %v3171_v58 = vld [vmem:[%s4221_s6 + $0x54] sm:$0xff] }
 0x12b   : > { %3849 = vmatpush.msk.msra.mxu1 %vm238_vm0, %v562_v17  ;;  %3851 = vmatpush.msk.msra.mxu2 %vm238_vm0, %v563_v43  ;;  %v4725_v40 = vld.sshfl [vmem:[#allocation1] sm:$0xff pattern:$0x75316420]  ;;  %v4727_v51 = vld.sshfl [vmem:[#allocation1 + $0x8] sm:$0xff pattern:$0x75316420] }
 0x12c   : > { %3850 = vmatmul.msk.f32.vlgmr.msra.gmra.mxu1 %vm319_vm9, %v3846_v50  ;;  %3852 = vmatmul.msk.f32.vlgmr.msra.gmra.mxu2 %vm319_vm9, %v3846_v50  ;;  %2922 = vst [vmem:[#allocation1] ss:$2 sm:$0xff] %v2914_v26  ;;  %v3279_v43 = vld [vmem:[%s4221_s6 + $0x68] sm:$0xff] }
 0x12d   : > { %1832 = vrot.lane.b32.xlu2 %v4535_v19, %s4117_s13  ;;  %3854 = vmatmul.msk.f32.vlgmr.msra.gmra.mxu3 %vm319_vm9, %v3846_v50  ;;  %v4734_v27 = vld.sshfl [vmem:[#allocation1 + $0x18] sm:$0xff pattern:$0x75316420]  ;;  %v4738_v48 = vld.sshfl [vmem:[#allocation1 + $0x10] sm:$0xff pattern:$0x75316420]  ;;  %v3044_v19 = vmul.f32 %v4486_v47, %v4251_v30 }
 0x12e   : > { %1826 = vrot.lane.b32.xlu1 %v4502_v37, %s4117_s13  ;;  %2794 = vst [vmem:[#allocation1 + $0x10] ss:$2 sm:$0xff] %v4366_v62 }
 0x12f   : > { %1824 = vrot.lane.b32.xlu0 %v4504_v59, %s4117_s13  ;;  %v4742_v6 = vpop.permute.xlu2 %866  ;;  %v3855_v59 = vld [vmem:[%s5266_s2 + $0x18] sm:$0xff] }
 0x130   : > { %v709_v52 = vpop.permute.xlu1 %708 }
 0x131   : > { %v715_v42 = vpop.permute.xlu0 %714 }
 0x132   : > { %v720_v24 = vsel %vm716_vm11, %v4678_v45, %v715_v42  ;;  %v3172_v42 = vld [vmem:[%s4221_s6 + $0x5c] sm:$0xff] }
 0x133   : > { %3862 = vmatpush.msk.msrb.mxu3 %vm238_vm0, %v720_v24  ;;  %v4750_v37 = vld.sshfl [vmem:[#allocation1] sm:$0xff pattern:$0x75316420]  ;;  %v4752_v49 = vld.sshfl [vmem:[#allocation1 + $0x8] sm:$0xff pattern:$0x75316420] }
 0x134   : > { %3052 = vst [vmem:[#allocation1] ss:$2 sm:$0xff] %v3044_v19 }
 0x135   : > { %1983 = vrot.lane.b32.xlu2 %v4551_v14, %s4118_s23  ;;  %3863 = vmatmul.msk.f32.vlgmr.msrb.gmra.mxu3 %vm319_vm9, %v3855_v59  ;;  %v4762_v30 = vld.sshfl [vmem:[#allocation1 + $0x10] sm:$0xff pattern:$0x75316420]  ;;  %v4764_v62 = vld.sshfl [vmem:[#allocation1 + $0x18] sm:$0xff pattern:$0x75316420] }
 0x136   : > { %1987 = vrot.lane.b32.xlu1 %v4557_v35, %s4118_s23  ;;  %2924 = vst [vmem:[#allocation1 + $0x10] ss:$2 sm:$0xff] %v4370_v46 }
 0x137   : > { %1828 = vrot.lane.b32.xlu0 %v4529_v18, %s4117_s13  ;;  %v4768_v11 = vpop.permute.xlu2 %998 }
 0x138   : > { %v711_v60 = vpop.permute.xlu1 %710 }
 0x139   : > { %v718_v50 = vsel %vm716_vm11, %v709_v52, %v711_v60  ;;  %v719_v14 = vsel %vm716_vm11, %v711_v60, %v4678_v45  ;;  %v707_v0 = vpop.permute.xlu0 %706 }
 0x13a   : > { %3858 = vmatpush.msk.msrb.mxu1 %vm238_vm0, %v718_v50  ;;  %3860 = vmatpush.msk.msrb.mxu2 %vm238_vm0, %v719_v14  ;;  %v717_v35 = vsel %vm716_vm11, %v707_v0, %v709_v52  ;;  %v3390_v50 = vmul.f32 %v4486_v47, %v4230_v5  ;;  %v3280_v0 = vld [vmem:[%s4221_s6 + $0x70] sm:$0xff] }
 0x13b   : > { %3856 = vmatpush.msk.msrb.mxu0 %vm238_vm0, %v717_v35  ;;  %3859 = vmatmul.msk.f32.vlgmr.msrb.gmra.mxu1 %vm319_vm9, %v3855_v59  ;;  %v4780_v46 = vld.sshfl [vmem:[#allocation1 + $0x8] sm:$0xff pattern:$0x75316420]  ;;  %v4782_v18 = vld.sshfl [vmem:[#allocation1] sm:$0xff pattern:$0x75316420] }
 0x13c   : > { %3857 = vmatmul.msk.f32.vlgmr.msrb.gmra.mxu0 %vm319_vm9, %v3855_v59  ;;  %3861 = vmatmul.msk.f32.vlgmr.msrb.gmra.mxu2 %vm319_vm9, %v3855_v59  ;;  %3177 = vst [vmem:[#allocation1] ss:$2 sm:$0xff] %v3171_v58  ;;  %v3873_v35 = vld [vmem:[%s5266_s2 + $0x28] sm:$0xff] }
 0x13d   : > { %1979 = vrot.lane.b32.xlu2 %v4523_v15, %s4118_s23  ;;  %v4790_v45 = vld.sshfl [vmem:[#allocation1 + $0x10] sm:$0xff pattern:$0x75316420]  ;;  %v4792_v28 = vld.sshfl [vmem:[#allocation1 + $0x18] sm:$0xff pattern:$0x75316420] }
 0x13e   : > { %2326 = vrot.lane.b32.xlu1 %v4598_v7, %s4118_s23  ;;  %3054 = vst [vmem:[#allocation1 + $0x10] ss:$2 sm:$0xff] %v4414_v10  ;;  %v3864_v15 = vld [vmem:[%s5266_s2 + $0x20] sm:$0xff] }
 0x13f   : > { %1985 = vrot.lane.b32.xlu0 %v4553_v4, %s4118_s23  ;;  %v4796_v3 = vpop.permute.xlu2 %1122 }
 0x140   : > { %v871_v26 = vpop.permute.xlu1 %870 }
 0x141   : > { %v865_v17 = vpop.permute.xlu0 %864 }
 0x142   : > { %v872_v7 = vsel %vm837_vm4, %v4714_v32, %v865_v17  ;;  %v873_v52 = vsel %vm837_vm4, %v865_v17, %v4742_v6 }
 0x143   : > { %3865 = vmatpush.msk.msra.mxu0 %vm238_vm0, %v872_v7  ;;  %3867 = vmatpush.msk.msra.mxu1 %vm238_vm0, %v873_v52  ;;  %v4809_v4 = vld.sshfl [vmem:[#allocation1] sm:$0xff pattern:$0x75316420]  ;;  %v4811_v10 = vld.sshfl [vmem:[#allocation1 + $0x8] sm:$0xff pattern:$0x75316420] }
 0x144   : > { %3866 = vmatmul.msk.f32.vlgmr.msra.gmra.mxu0 %vm319_vm9, %v3864_v15  ;;  %3868 = vmatmul.msk.f32.vlgmr.msra.gmra.mxu1 %vm319_vm9, %v3864_v15  ;;  %3285 = vst [vmem:[#allocation1] ss:$2 sm:$0xff] %v3279_v43 }
 0x145   : > { %2332 = vrot.lane.b32.xlu2 %v4638_v34, %s4118_s23  ;;  %v4820_v32 = vld.sshfl [vmem:[#allocation1 + $0x18] sm:$0xff pattern:$0x75316420]  ;;  %v4822_v19 = vld.sshfl [vmem:[#allocation1 + $0x10] sm:$0xff pattern:$0x75316420] }
 0x146   : > { %2330 = vrot.lane.b32.xlu1 %v4636_v9, %s4118_s23  ;;  %3179 = vst [vmem:[#allocation1 + $0x10] ss:$2 sm:$0xff] %v3172_v42 }
 0x147   : > { %1981 = vrot.lane.b32.xlu0 %v4525_v61, %s4118_s23  ;;  %v4826_v24 = vpop.permute.xlu2 %1126 }
 0x148   : > { %v995_v59 = vpop.permute.xlu1 %994 }
 0x149   : > { %v869_v60 = vpop.permute.xlu0 %868 }
 0x14a   : > { %v874_v34 = vsel %vm837_vm4, %v4742_v6, %v869_v60  ;;  %v875_v9 = vsel %vm837_vm4, %v869_v60, %v871_v26 }
 0x14b   : > { %3869 = vmatpush.msk.msra.mxu2 %vm238_vm0, %v874_v34  ;;  %3871 = vmatpush.msk.msra.mxu3 %vm238_vm0, %v875_v9  ;;  %v4835_v14 = vld.sshfl [vmem:[#allocation1] sm:$0xff pattern:$0x75316420]  ;;  %v4837_v61 = vld.sshfl [vmem:[#allocation1 + $0x8] sm:$0xff pattern:$0x75316420] }
 0x14c   : > { %3870 = vmatmul.msk.f32.vlgmr.msra.gmra.mxu2 %vm319_vm9, %v3864_v15  ;;  %3872 = vmatmul.msk.f32.vlgmr.msra.gmra.mxu3 %vm319_vm9, %v3864_v15  ;;  %3398 = vst [vmem:[#allocation1] ss:$2 sm:$0xff] %v3390_v50 }
 0x14d   : > { %2328 = vrot.lane.b32.xlu2 %v4600_v13, %s4118_s23  ;;  %v4846_v5 = vld.sshfl [vmem:[#allocation1 + $0x10] sm:$0xff pattern:$0x75316420]  ;;  %v4848_v47 = vld.sshfl [vmem:[#allocation1 + $0x18] sm:$0xff pattern:$0x75316420] }
 0x14e   : > { %2810 = vrot.lane.b32.xlu1 %v4642_v8, %s4117_s13  ;;  %3287 = vst [vmem:[#allocation1 + $0x10] ss:$2 sm:$0xff] %v3280_v0 }
 0x14f   : > { %2334 = vrot.lane.b32.xlu0 %v4583_v56, %s4118_s23  ;;  %v1255_v6 = vpop.permute.xlu2 %1254 }
 0x150   : > { %v997_v58 = vpop.permute.xlu1 %996 }
 0x151   : > { %v1003_v26 = vsel %vm837_vm4, %v995_v59, %v997_v58  ;;  %v1004_v13 = vsel %vm837_vm4, %v997_v58, %v4768_v11  ;;  %v1001_v8 = vpop.permute.xlu0 %1000  ;;  %v3900_v58 = vld [vmem:[%s5266_s2 + $0x40] sm:$0xff] }
 0x152   : > { %v1005_v17 = vsel %vm837_vm4, %v4768_v11, %v1001_v8  ;;  %3876 = vmatpush.msk.msrb.mxu1 %vm238_vm0, %v1003_v26  ;;  %3878 = vmatpush.msk.msrb.mxu2 %vm238_vm0, %v1004_v13 }
 0x153   : > { %3880 = vmatpush.msk.msrb.mxu3 %vm238_vm0, %v1005_v17  ;;  %3877 = vmatmul.msk.f32.vlgmr.msrb.gmra.mxu1 %vm319_vm9, %v3873_v35 }
 0x154   : > { %3879 = vmatmul.msk.f32.vlgmr.msrb.gmra.mxu2 %vm319_vm9, %v3873_v35  ;;  %3881 = vmatmul.msk.f32.vlgmr.msrb.gmra.mxu3 %vm319_vm9, %v3873_v35 }
 0x155   : > { %2680 = vrot.lane.b32.xlu2 %v4613_v63, %s4116_s12  ;;  %v4870_v56 = vld.sshfl [vmem:[#allocation1 + $0x10] sm:$0xff pattern:$0x75316420]  ;;  %v4872_v11 = vld.sshfl [vmem:[#allocation1 + $0x18] sm:$0xff pattern:$0x75316420] }
 0x156   : > { %2674 = vrot.lane.b32.xlu1 %v4693_v36, %s4116_s12  ;;  %3400 = vst [vmem:[#allocation1 + $0x10] ss:$2 sm:$0xff] %v4421_v12 }
 0x157   : > { %2672 = vrot.lane.b32.xlu0 %v4695_v29, %s4116_s12  ;;  %v1259_v15 = vpop.permute.xlu2 %1258  ;;  %v3882_v29 = vld [vmem:[%s5266_s2 + $0x30] sm:$0xff] }
 0x158   : > { %v1131_v43 = vpop.permute.xlu1 %1130 }
 0x159   : > { %v993_v7 = vpop.permute.xlu0 %992 }
 0x15a   : > { %v1002_v52 = vsel %vm837_vm4, %v993_v7, %v995_v59 }
 0x15b   : > { %3874 = vmatpush.msk.msrb.mxu0 %vm238_vm0, %v1002_v52  ;;  %v3403_v52 = vld.sshfl [vmem:[#allocation1] sm:$0xff pattern:$0x75316420] }
 0x15c   : > { %3875 = vmatmul.msk.f32.vlgmr.msrb.gmra.mxu0 %vm319_vm9, %v3873_v35 }
 0x15d   : > { %2802 = vrot.lane.b32.xlu2 %v4725_v40, %s4117_s13 }
 0x15e   : > { %2678 = vrot.lane.b32.xlu1 %v4734_v27, %s4116_s12 }
 0x15f   : > { %2676 = vrot.lane.b32.xlu0 %v4738_v48, %s4116_s12  ;;  %v1391_v63 = vpop.permute.xlu2 %1390 }
 0x160   : > { %v1253_v36 = vpop.permute.xlu1 %1252 }
 0x161   : > { %v1125_v12 = vpop.permute.xlu0 %1124  ;;  %v1262_v40 = vsel %vm837_vm4, %v1253_v36, %v1255_v6 }
 0x162   : > { %v1132_v42 = vsel %vm716_vm11, %v4796_v3, %v1125_v12  ;;  %v1133_v59 = vsel %vm716_vm11, %v1125_v12, %v4826_v24 }
 0x163   : > { %3883 = vmatpush.msk.msra.mxu0 %vm238_vm0, %v1132_v42  ;;  %3885 = vmatpush.msk.msra.mxu1 %vm238_vm0, %v1133_v59 }
 0x164   : > { %3886 = vmatmul.msk.f32.vlgmr.msra.gmra.mxu1 %vm319_vm9, %v3882_v29  ;;  %3884 = vmatmul.msk.f32.vlgmr.msra.gmra.mxu0 %vm319_vm9, %v3882_v29 }
 0x165   : > { %3892 = vmatpush.msk.msrb.mxu0 %vm238_vm0, %v1262_v40  ;;  %2806 = vrot.lane.b32.xlu2 %v4762_v30, %s4117_s13 }
 0x166   : > { %2932 = vrot.lane.b32.xlu1 %v4750_v37, %s4117_s13  ;;  %v3891_v37 = vld [vmem:[%s5266_s2 + $0x38] sm:$0xff] }
 0x167   : > { %2804 = vrot.lane.b32.xlu0 %v4727_v51, %s4117_s13  ;;  %v4905_v27 = vpop.permute.xlu2 %1537 }
 0x168   : > { %v1257_v48 = vpop.permute.xlu1 %1256 }
 0x169   : > { %v1263_v3 = vsel %vm837_vm4, %v1255_v6, %v1257_v48  ;;  %v1129_v60 = vpop.permute.xlu0 %1128  ;;  %v1264_v51 = vsel %vm837_vm4, %v1257_v48, %v1259_v15 }
 0x16a   : > { %v1134_v50 = vsel %vm716_vm11, %v4826_v24, %v1129_v60  ;;  %v1135_v34 = vsel %vm716_vm11, %v1129_v60, %v1131_v43  ;;  %3894 = vmatpush.msk.msrb.mxu1 %vm238_vm0, %v1263_v3  ;;  %v3404_v3 = vld.sshfl [vmem:[#allocation1 + $0x8] sm:$0xff pattern:$0x75316420] }
 0x16b   : > { %3887 = vmatpush.msk.msra.mxu2 %vm238_vm0, %v1134_v50  ;;  %3889 = vmatpush.msk.msra.mxu3 %vm238_vm0, %v1135_v34 }
 0x16c   : > { %3888 = vmatmul.msk.f32.vlgmr.msra.gmra.mxu2 %vm319_vm9, %v3882_v29  ;;  %3890 = vmatmul.msk.f32.vlgmr.msra.gmra.mxu3 %vm319_vm9, %v3882_v29 }
 0x16d   : > { %3896 = vmatpush.msk.msrb.mxu2 %vm238_vm0, %v1264_v51  ;;  %3893 = vmatmul.msk.f32.vlgmr.msrb.gmra.mxu0 %vm319_vm9, %v3891_v37 }
 0x16e   : > { %2936 = vrot.lane.b32.xlu1 %v4790_v45, %s4117_s13  ;;  %2938 = vrot.lane.b32.xlu2 %v4792_v28, %s4117_s13 }
 0x16f   : > { %2808 = vrot.lane.b32.xlu0 %v4764_v62, %s4117_s13  ;;  %3895 = vmatmul.msk.f32.vlgmr.msrb.gmra.mxu1 %vm319_vm9, %v3891_v37  ;;  %v1542_v30 = vpop.permute.xlu2 %1541 }
 0x170   : > { %v1385_v24 = vpop.permute.xlu1 %1384 }
 0x171   : > { %v1261_v9 = vpop.permute.xlu0 %1260 }
 0x172   : > { %v1265_v0 = vsel %vm837_vm4, %v1259_v15, %v1261_v9  ;;  %v3909_v15 = vld [vmem:[%s5266_s2 + $0x48] sm:$0xff] }
 0x173   : > { %3898 = vmatpush.msk.msrb.mxu3 %vm238_vm0, %v1265_v0 }
 0x174   : > { %3897 = vmatmul.msk.f32.vlgmr.msrb.gmra.mxu2 %vm319_vm9, %v3891_v37  ;;  %3899 = vmatmul.msk.f32.vlgmr.msrb.gmra.mxu3 %vm319_vm9, %v3891_v37 }
 0x176   : > { %3068 = vrot.lane.b32.xlu1 %v4820_v32, %s4118_s23  ;;  %2934 = vrot.lane.b32.xlu2 %v4752_v49, %s4117_s13 }
 0x177   : > { %2940 = vrot.lane.b32.xlu0 %v4674_v20, %s4117_s13  ;;  %v1696_v62 = vpop.permute.xlu2 %1695 }
 0x178   : > { %v1389_v45 = vpop.permute.xlu1 %1388 }
 0x179   : > { %v1395_v28 = vsel %vm837_vm4, %v1389_v45, %v1391_v63  ;;  %v1383_v6 = vpop.permute.xlu0 %1382  ;;  %v3406_v63 = vld.sshfl [vmem:[#allocation1 + $0x18] sm:$0xff pattern:$0x75316420] }
 0x17a   : > { %3907 = vmatpush.msk.msra.mxu3 %vm238_vm0, %v1395_v28  ;;  %v1392_v35 = vsel %vm837_vm4, %v1383_v6, %v1385_v24 }
 0x17b   : > { %3901 = vmatpush.msk.msra.mxu0 %vm238_vm0, %v1392_v35 }
 0x17c   : > { %3902 = vmatmul.msk.f32.vlgmr.msra.gmra.mxu0 %vm319_vm9, %v3900_v58  ;;  %3908 = vmatmul.msk.f32.vlgmr.msra.gmra.mxu3 %vm319_vm9, %v3900_v58 }
 0x17e   : > { %3064 = vrot.lane.b32.xlu1 %v4780_v46, %s4118_s23  ;;  %3070 = vrot.lane.b32.xlu2 %v4710_v57, %s4118_s23  ;;  %v3407_v46 = vld.sshfl [vmem:[#allocation1 + $0x20] sm:$0xff pattern:$0x75316420]  ;;  %v3405_v57 = vld.sshfl [vmem:[#allocation1 + $0x10] sm:$0xff pattern:$0x75316420] }
 0x17f   : > { %3066 = vrot.lane.b32.xlu0 %v4822_v19, %s4118_s23  ;;  %v1700_v20 = vpop.permute.xlu2 %1699 }
 0x180   : > { %v1546_v49 = vpop.permute.xlu1 %1545 }
 0x181   : > { %v1387_v32 = vpop.permute.xlu0 %1386 }
 0x182   : > { %v1393_v26 = vsel %vm837_vm4, %v1385_v24, %v1387_v32  ;;  %v1394_v13 = vsel %vm837_vm4, %v1387_v32, %v1389_v45 }
 0x183   : > { %3903 = vmatpush.msk.msra.mxu1 %vm238_vm0, %v1393_v26  ;;  %3905 = vmatpush.msk.msra.mxu2 %vm238_vm0, %v1394_v13 }
 0x184   : > { %3904 = vmatmul.msk.f32.vlgmr.msra.gmra.mxu1 %vm319_vm9, %v3900_v58  ;;  %3906 = vmatmul.msk.f32.vlgmr.msra.gmra.mxu2 %vm319_vm9, %v3900_v58 }
 0x186   : > { %3416 = vrot.lane.b32.xlu1 %v3407_v46, %s4118_s23  ;;  %3412 = vrot.lane.b32.xlu2 %v3405_v57, %s4118_s23  ;;  %v368_v37 = vpop.f32.mrf.mxu1  ;;  %v348_v51 = vpop.f32.mrf.mxu0 }
 0x187   : > { %3062 = vrot.lane.b32.xlu0 %v4782_v18, %s4118_s23  ;;  %v1833_v8 = vpop.permute.xlu2 %1832 }
 0x188   : > { %v1694_v19 = vpop.permute.xlu1 %1693 }
 0x189   : > { %v1540_v17 = vpop.permute.xlu0 %1539  ;;  %v1704_v18 = vsel %vm1703_vm13, %v1694_v19, %v1696_v62 }
 0x18a   : > { %v1548_v43 = vsel %vm1547_vm12, %v4905_v27, %v1540_v17  ;;  %v1549_v7 = vsel %vm1547_vm12, %v1540_v17, %v1542_v30  ;;  %v3918_v27 = vld [vmem:[%s5266_s2 + $0x50] sm:$0xff] }
 0x18b   : > { %3910 = vmatpush.msk.msrb.mxu0 %vm238_vm0, %v1548_v43  ;;  %3912 = vmatpush.msk.msrb.mxu1 %vm238_vm0, %v1549_v7  ;;  %v3936_v43 = vld [vmem:[%s5266_s2 + $0x60] sm:$0xff] }
 0x18c   : > { %3911 = vmatmul.msk.f32.vlgmr.msrb.gmra.mxu0 %vm319_vm9, %v3909_v15  ;;  %3913 = vmatmul.msk.f32.vlgmr.msrb.gmra.mxu1 %vm319_vm9, %v3909_v15 }
 0x18d   : > { %3919 = vmatpush.msk.msra.mxu0 %vm238_vm0, %v1704_v18 }
 0x18e   : > { %3408 = vrot.lane.b32.xlu2 %v3403_v52, %s4118_s23 }
 0x18f   : > { %3414 = vrot.lane.b32.xlu0 %v3406_v63, %s4118_s23  ;;  %v4981_v40 = vpop.permute.xlu2 %1983 }
 0x190   : > { %v1698_v36 = vpop.permute.xlu1 %1697 }
 0x191   : > { %v1705_v12 = vsel %vm1703_vm13, %v1696_v62, %v1698_v36  ;;  %v1544_v29 = vpop.permute.xlu0 %1543  ;;  %v1706_v48 = vsel %vm1703_vm13, %v1698_v36, %v1700_v20  ;;  %v3927_v62 = vld [vmem:[%s5266_s2 + $0x58] sm:$0xff] }
 0x192   : > { %v1550_v42 = vsel %vm1547_vm12, %v1542_v30, %v1544_v29  ;;  %v1551_v59 = vsel %vm1547_vm12, %v1544_v29, %v1546_v49  ;;  %3921 = vmatpush.msk.msra.mxu1 %vm238_vm0, %v1705_v12 }
 0x193   : > { %3914 = vmatpush.msk.msrb.mxu2 %vm238_vm0, %v1550_v42  ;;  %3916 = vmatpush.msk.msrb.mxu3 %vm238_vm0, %v1551_v59 }
 0x194   : > { %3915 = vmatmul.msk.f32.vlgmr.msrb.gmra.mxu2 %vm319_vm9, %v3909_v15  ;;  %3917 = vmatmul.msk.f32.vlgmr.msrb.gmra.mxu3 %vm319_vm9, %v3909_v15 }
 0x195   : > { %3920 = vmatmul.msk.f32.vlgmr.msra.gmra.mxu0 %vm319_vm9, %v3918_v27  ;;  %3922 = vmatmul.msk.f32.vlgmr.msra.gmra.mxu1 %vm319_vm9, %v3918_v27 }
 0x196   : > { %3923 = vmatpush.msk.msra.mxu2 %vm238_vm0, %v1706_v48  ;;  %v5009_v58 = vpop.f32.mrf.mxu3 }
 0x197   : > { %3410 = vrot.lane.b32.xlu0 %v3404_v3, %s4118_s23  ;;  %v1980_v24 = vpop.permute.xlu2 %1979 }
 0x198   : > { %v1831_v60 = vpop.permute.xlu1 %1830  ;;  %v467_v6 = vpop.f32.mrf.mxu0 }
 0x199   : > { %v1702_v50 = vpop.permute.xlu0 %1701  ;;  %v1837_v30 = vsel %vm1703_vm13, %v1831_v60, %v1833_v8  ;;  %v468_v63 = vadd.f32 %v467_v6, %v348_v51 }
 0x19a   : > { %v1707_v34 = vsel %vm1703_vm13, %v1700_v20, %v1702_v50  ;;  %v5011_v20 = vpop.f32.mrf.mxu2 }
 0x19b   : > { %3925 = vmatpush.msk.msra.mxu3 %vm238_vm0, %v1707_v34 }
 0x19c   : > { %3924 = vmatmul.msk.f32.vlgmr.msra.gmra.mxu2 %vm319_vm9, %v3918_v27  ;;  %3926 = vmatmul.msk.f32.vlgmr.msra.gmra.mxu3 %vm319_vm9, %v3918_v27 }
 0x19d   : > { %3934 = vmatpush.msk.msrb.mxu3 %vm238_vm0, %v1837_v30 }
 0x19f   : > { %v2333_v35 = vpop.permute.xlu2 %2332  ;;  %v527_v19 = vpop.f32.mrf.mxu3 }
 0x1a0   : > { %v1827_v9 = vpop.permute.xlu1 %1826  ;;  %v487_v28 = vpop.f32.mrf.mxu1 }
 0x1a1   : > { %v1825_v0 = vpop.permute.xlu0 %1824  ;;  %v593_v57 = vpop.f32.mrf.mxu0  ;;  %v488_v36 = vadd.f32 %v487_v28, %v368_v37 }
 0x1a2   : > { %v1834_v45 = vsel %vm1703_vm13, %v1825_v0, %v1827_v9 }
 0x1a3   : > { %3928 = vmatpush.msk.msrb.mxu0 %vm238_vm0, %v1834_v45 }
 0x1a4   : > { %3929 = vmatmul.msk.f32.vlgmr.msrb.gmra.mxu0 %vm319_vm9, %v3927_v62  ;;  %3935 = vmatmul.msk.f32.vlgmr.msrb.gmra.mxu3 %vm319_vm9, %v3927_v62 }
 0x1a7   : > { %v2329_v8 = vpop.permute.xlu2 %2328  ;;  %v507_v7 = vpop.f32.mrf.mxu2 }
 0x1a8   : > { %v1988_v49 = vpop.permute.xlu1 %1987 }
 0x1a9   : > { %v1829_v32 = vpop.permute.xlu0 %1828  ;;  %v613_v46 = vpop.f32.mrf.mxu1 }
 0x1aa   : > { %v1835_v26 = vsel %vm1703_vm13, %v1827_v9, %v1829_v32  ;;  %v1836_v13 = vsel %vm1703_vm13, %v1829_v32, %v1831_v60 }
 0x1ab   : > { %3930 = vmatpush.msk.msrb.mxu1 %vm238_vm0, %v1835_v26  ;;  %3932 = vmatpush.msk.msrb.mxu2 %vm238_vm0, %v1836_v13  ;;  %v3963_v26 = vld [vmem:[%s5266_s2 + $0x78] sm:$0xff] }
 0x1ac   : > { %3931 = vmatmul.msk.f32.vlgmr.msrb.gmra.mxu1 %vm319_vm9, %v3927_v62  ;;  %3933 = vmatmul.msk.f32.vlgmr.msrb.gmra.mxu2 %vm319_vm9, %v3927_v62  ;;  %v528_v62 = vadd.f32 %v527_v19, %v5009_v58 }
 0x1af   : > { %v5037_v27 = vpop.permute.xlu2 %2680  ;;  %v633_v3 = vpop.f32.mrf.mxu2 }
 0x1b0   : > { %v2327_v17 = vpop.permute.xlu1 %2326  ;;  %v653_v60 = vpop.f32.mrf.mxu3 }
 0x1b1   : > { %v1986_v15 = vpop.permute.xlu0 %1985  ;;  %v2336_v45 = vsel %vm1989_vm14, %v2327_v17, %v2329_v8 }
 0x1b2   : > { %v1992_v18 = vsel %vm1989_vm14, %v4981_v40, %v1986_v15  ;;  %v1993_v52 = vsel %vm1989_vm14, %v1986_v15, %v1988_v49  ;;  %v659_v49 = vadd.f32 %v653_v60, %v528_v62  ;;  %v3990_v60 = vld [vmem:[%s5266_s2 + $0x90] sm:$0xff] }
 0x1b3   : > { %3941 = vmatpush.msk.msra.mxu2 %vm238_vm0, %v1992_v18  ;;  %3943 = vmatpush.msk.msra.mxu3 %vm238_vm0, %v1993_v52 }
 0x1b4   : > { %3942 = vmatmul.msk.f32.vlgmr.msra.gmra.mxu2 %vm319_vm9, %v3936_v43  ;;  %3944 = vmatmul.msk.f32.vlgmr.msra.gmra.mxu3 %vm319_vm9, %v3936_v43 }
 0x1b5   : > { %3950 = vmatpush.msk.msrb.mxu2 %vm238_vm0, %v4577_v21  ;;  %3952 = vmatpush.msk.msrb.mxu3 %vm238_vm0, %v4579_v1  ;;  %v3945_v1 = vld [vmem:[%s5266_s2 + $0x68] sm:$0xff] }
 0x1b7   : > { %3959 = vmatpush.msk.msra.mxu2 %vm238_vm0, %v4607_v55  ;;  %3961 = vmatpush.msk.msra.mxu3 %vm238_vm0, %v4609_v2  ;;  %v656_v55 = vadd.f32 %v593_v57, %v468_v63  ;;  %v657_v2 = vadd.f32 %v613_v46, %v488_v36 }
 0x1b8   : > { %v2331_v12 = vpop.permute.xlu1 %2330  ;;  %v769_v29 = vpop.f32.mrf.mxu1 }
 0x1b9   : > { %v1982_v42 = vpop.permute.xlu0 %1981  ;;  %v749_v59 = vpop.f32.mrf.mxu0  ;;  %v2338_v50 = vsel %vm1989_vm14, %v2331_v12, %v2333_v35  ;;  %v813_v34 = vadd.f32 %v769_v29, %v657_v2  ;;  %v2337_v28 = vsel %vm1989_vm14, %v2329_v8, %v2331_v12 }
 0x1ba   : > { %v1990_v48 = vsel %vm1989_vm14, %v1980_v24, %v1982_v42  ;;  %v1991_v21 = vsel %vm1989_vm14, %v1982_v42, %v4981_v40  ;;  %v812_v40 = vadd.f32 %v749_v59, %v656_v55 }
 0x1bb   : > { %3937 = vmatpush.msk.msra.mxu0 %vm238_vm0, %v1990_v48  ;;  %3939 = vmatpush.msk.msra.mxu1 %vm238_vm0, %v1991_v21 }
 0x1bc   : > { %3938 = vmatmul.msk.f32.vlgmr.msra.gmra.mxu0 %vm319_vm9, %v3936_v43  ;;  %3940 = vmatmul.msk.f32.vlgmr.msra.gmra.mxu1 %vm319_vm9, %v3936_v43 }
 0x1bd   : > { %3951 = vmatmul.msk.f32.vlgmr.msrb.gmra.mxu2 %vm319_vm9, %v3945_v1  ;;  %3953 = vmatmul.msk.f32.vlgmr.msrb.gmra.mxu3 %vm319_vm9, %v3945_v1 }
 0x1be   : > { %3968 = vmatpush.msk.msrb.mxu2 %vm238_vm0, %v2338_v50  ;;  %3946 = vmatpush.msk.msrb.mxu0 %vm238_vm0, %v4545_v16  ;;  %v3954_v16 = vld [vmem:[%s5266_s2 + $0x70] sm:$0xff] }
 0x1bf   : > { %3948 = vmatpush.msk.msrb.mxu1 %vm238_vm0, %v4547_v33  ;;  %v789_v6 = vpop.f32.mrf.mxu2 }
 0x1c0   : > { %3955 = vmatpush.msk.msra.mxu0 %vm238_vm0, %v4568_v53  ;;  %v5059_v37 = vpop.permute.xlu1 %2810  ;;  %v5068_v53 = vpop.permute.xlu2 %2802 }
 0x1c1   : > { %3957 = vmatpush.msk.msra.mxu1 %vm238_vm0, %v4570_v54  ;;  %v2335_v51 = vpop.permute.xlu0 %2334  ;;  %v904_v30 = vpop.f32.mrf.mxu0  ;;  %v508_v54 = vadd.f32 %v507_v7, %v5011_v20 }
 0x1c2   : > { %v2339_v24 = vsel %vm1989_vm14, %v2333_v35, %v2335_v51  ;;  %v967_v9 = vadd.f32 %v904_v30, %v812_v40  ;;  %v924_v0 = vpop.f32.mrf.mxu1  ;;  %v809_v35 = vpop.f32.mrf.mxu3 }
 0x1c3   : > { %3970 = vmatpush.msk.msrb.mxu3 %vm238_vm0, %v2339_v24  ;;  %v968_v33 = vadd.f32 %v924_v0, %v813_v34  ;;  %v658_v20 = vadd.f32 %v633_v3, %v508_v54  ;;  %v815_v46 = vadd.f32 %v809_v35, %v659_v49 }
 0x1c4   : > { %3947 = vmatmul.msk.f32.vlgmr.msrb.gmra.mxu0 %vm319_vm9, %v3945_v1  ;;  %3949 = vmatmul.msk.f32.vlgmr.msrb.gmra.mxu1 %vm319_vm9, %v3945_v1 }
 0x1c5   : > { %3960 = vmatmul.msk.f32.vlgmr.msra.gmra.mxu2 %vm319_vm9, %v3954_v16  ;;  %3962 = vmatmul.msk.f32.vlgmr.msra.gmra.mxu3 %vm319_vm9, %v3954_v16  ;;  %v814_v13 = vadd.f32 %v789_v6, %v658_v20 }
 0x1c6   : > { %3964 = vmatpush.msk.msrb.mxu0 %vm238_vm0, %v2336_v45  ;;  %3966 = vmatpush.msk.msrb.mxu1 %vm238_vm0, %v2337_v28 }
 0x1c7   : > { %3977 = vmatpush.msk.msra.mxu2 %vm238_vm0, %v4668_v25  ;;  %3979 = vmatpush.msk.msra.mxu3 %vm238_vm0, %v4670_v38 }
 0x1c8   : > { %v2675_v58 = vpop.permute.xlu1 %2674  ;;  %v2807_v25 = vpop.permute.xlu2 %2806 }
 0x1c9   : > { %v2673_v32 = vpop.permute.xlu0 %2672 }
 0x1cc   : > { %3956 = vmatmul.msk.f32.vlgmr.msra.gmra.mxu0 %vm319_vm9, %v3954_v16  ;;  %3958 = vmatmul.msk.f32.vlgmr.msra.gmra.mxu1 %vm319_vm9, %v3954_v16 }
 0x1cd   : > { %3969 = vmatmul.msk.f32.vlgmr.msrb.gmra.mxu2 %vm319_vm9, %v3963_v26  ;;  %3971 = vmatmul.msk.f32.vlgmr.msrb.gmra.mxu3 %vm319_vm9, %v3963_v26 }
 0x1ce   : > { %3986 = vmatpush.msk.msrb.mxu2 %vm238_vm0, %v4703_v39  ;;  %3988 = vmatpush.msk.msrb.mxu3 %vm238_vm0, %v4705_v41  ;;  %v3972_v39 = vld [vmem:[%s5266_s2 + $0x80] sm:$0xff] }
 0x1cf   : > { %3973 = vmatpush.msk.msra.mxu0 %vm238_vm0, %v4629_v31  ;;  %3975 = vmatpush.msk.msra.mxu1 %vm238_vm0, %v4631_v44  ;;  %v944_v38 = vpop.f32.mrf.mxu2  ;;  %v964_v57 = vpop.f32.mrf.mxu3 }
 0x1d0   : > { %v2679_v19 = vpop.permute.xlu1 %2678  ;;  %v969_v8 = vadd.f32 %v944_v38, %v814_v13  ;;  %v970_v17 = vadd.f32 %v964_v57, %v815_v46  ;;  %v1054_v43 = vpop.f32.mrf.mxu1  ;;  %v3518_v57 = vld [vmem:[%s4221_s6 + $0x84] sm:$0xff] }
 0x1d1   : > { %v2677_v15 = vpop.permute.xlu0 %2676  ;;  %v1098_v7 = vadd.f32 %v1054_v43, %v968_v33  ;;  %v2685_v31 = vsel %vm1547_vm12, %v2679_v19, %v5037_v27  ;;  %v2939_v52 = vpop.permute.xlu2 %2938  ;;  %v3981_v27 = vld [vmem:[%s5266_s2 + $0x88] sm:$0xff]  ;;  %v3999_v33 = vld [vmem:[%s5266_s2 + $0x98] sm:$0xff]  ;;  %3525 = vst [vmem:[#allocation1 + $0x10] ss:$2 sm:$0xff] %v3518_v57 }
 0x1d2   : > { %v2684_v41 = vsel %vm1547_vm12, %v2677_v15, %v2679_v19 }
 0x1d4   : > { %3965 = vmatmul.msk.f32.vlgmr.msrb.gmra.mxu0 %vm319_vm9, %v3963_v26  ;;  %3967 = vmatmul.msk.f32.vlgmr.msrb.gmra.mxu1 %vm319_vm9, %v3963_v26 }
 0x1d5   : > { %3978 = vmatmul.msk.f32.vlgmr.msra.gmra.mxu2 %vm319_vm9, %v3972_v39  ;;  %3980 = vmatmul.msk.f32.vlgmr.msra.gmra.mxu3 %vm319_vm9, %v3972_v39 }
 0x1d6   : > { %3995 = vmatpush.msk.msra.mxu2 %vm238_vm0, %v2684_v41  ;;  %3997 = vmatpush.msk.msra.mxu3 %vm238_vm0, %v2685_v31  ;;  %v4017_v31 = vld [vmem:[%s5266_s2 + $0xa8] sm:$0xff] }
 0x1d7   : > { %3982 = vmatpush.msk.msrb.mxu0 %vm238_vm0, %v4660_v22  ;;  %3984 = vmatpush.msk.msrb.mxu1 %vm238_vm0, %v4662_v23  ;;  %v1074_v44 = vpop.f32.mrf.mxu2  ;;  %v1094_v18 = vpop.f32.mrf.mxu3  ;;  %v2682_v22 = vsel %vm1547_vm12, %v2673_v32, %v2675_v58  ;;  %v2683_v23 = vsel %vm1547_vm12, %v2675_v58, %v2677_v15 }
 0x1d8   : > { %v2933_v63 = vpop.permute.xlu1 %2932  ;;  %v1099_v36 = vadd.f32 %v1074_v44, %v969_v8  ;;  %v1100_v12 = vadd.f32 %v1094_v18, %v970_v17  ;;  %v3517_v44 = vld [vmem:[%s4221_s6 + $0x7c] sm:$0xff] }
 0x1d9   : > { %v2805_v29 = vpop.permute.xlu0 %2804  ;;  %v1034_v42 = vpop.f32.mrf.mxu0  ;;  %v3626_v18 = vld [vmem:[%s4221_s6 + $0x98] sm:$0xff]  ;;  %3523 = vst [vmem:[#allocation1] ss:$2 sm:$0xff] %v3517_v44 }
 0x1da   : > { %v1097_v59 = vadd.f32 %v1034_v42, %v967_v9  ;;  %v2935_v40 = vpop.permute.xlu2 %2934  ;;  %v2812_v51 = vsel %vm1703_vm13, %v5068_v53, %v2805_v29 }
 0x1db   : > { %v2942_v62 = vsel %vm1703_vm13, %v2933_v63, %v2935_v40 }
 0x1dc   : > { %3974 = vmatmul.msk.f32.vlgmr.msra.gmra.mxu0 %vm319_vm9, %v3972_v39  ;;  %3976 = vmatmul.msk.f32.vlgmr.msra.gmra.mxu1 %vm319_vm9, %v3972_v39 }
 0x1dd   : > { %3987 = vmatmul.msk.f32.vlgmr.msrb.gmra.mxu2 %vm319_vm9, %v3981_v27  ;;  %3989 = vmatmul.msk.f32.vlgmr.msrb.gmra.mxu3 %vm319_vm9, %v3981_v27 }
 0x1de   : > { %3991 = vmatpush.msk.msra.mxu0 %vm238_vm0, %v2682_v22  ;;  %3993 = vmatpush.msk.msra.mxu1 %vm238_vm0, %v2683_v23 }
 0x1e0   : > { %v2937_v48 = vpop.permute.xlu1 %2936  ;;  %v3527_v22 = vld.sshfl [vmem:[#allocation1 + $0x8] sm:$0xff pattern:$0x75316420] }
 0x1e1   : > { %v2809_v21 = vpop.permute.xlu0 %2808  ;;  %v1184_v1 = vpop.f32.mrf.mxu1  ;;  %v2944_v30 = vsel %vm1703_vm13, %v2937_v48, %v2939_v52  ;;  %v2943_v28 = vsel %vm1703_vm13, %v2935_v40, %v2937_v48 }
 0x1e2   : > { %v2814_v55 = vsel %vm1703_vm13, %v2807_v25, %v2809_v21  ;;  %v2815_v2 = vsel %vm1703_vm13, %v2809_v21, %v5059_v37  ;;  %v1164_v3 = vpop.f32.mrf.mxu0  ;;  %v1228_v50 = vadd.f32 %v1184_v1, %v1098_v7  ;;  %v2813_v37 = vsel %vm1703_vm13, %v2805_v29, %v2807_v25  ;;  %v3071_v45 = vpop.permute.xlu2 %3070  ;;  %v4008_v25 = vld [vmem:[%s5266_s2 + $0xa0] sm:$0xff] }
 0x1e3   : > { %4004 = vmatpush.msk.msrb.mxu2 %vm238_vm0, %v2814_v55  ;;  %4006 = vmatpush.msk.msrb.mxu3 %vm238_vm0, %v2815_v2  ;;  %v1227_v34 = vadd.f32 %v1164_v3, %v1097_v59 }
 0x1e4   : > { %3983 = vmatmul.msk.f32.vlgmr.msrb.gmra.mxu0 %vm319_vm9, %v3981_v27  ;;  %3985 = vmatmul.msk.f32.vlgmr.msrb.gmra.mxu1 %vm319_vm9, %v3981_v27  ;;  %v3526_v27 = vld.sshfl [vmem:[#allocation1] sm:$0xff pattern:$0x75316420] }
 0x1e5   : > { %3996 = vmatmul.msk.f32.vlgmr.msra.gmra.mxu2 %vm319_vm9, %v3990_v60  ;;  %3998 = vmatmul.msk.f32.vlgmr.msra.gmra.mxu3 %vm319_vm9, %v3990_v60 }
 0x1e6   : > { %4000 = vmatpush.msk.msrb.mxu0 %vm238_vm0, %v2812_v51  ;;  %4002 = vmatpush.msk.msrb.mxu1 %vm238_vm0, %v2813_v37  ;;  %v4044_v37 = vld [vmem:[%s5266_s2 + $0xc0] sm:$0xff] }
 0x1e7   : > { %4013 = vmatpush.msk.msra.mxu2 %vm238_vm0, %v2944_v30 }
 0x1e8   : > { %v3069_v24 = vpop.permute.xlu1 %3068 }
 0x1e9   : > { %v2941_v16 = vpop.permute.xlu0 %2940  ;;  %v3075_v35 = vsel %vm1989_vm14, %v3069_v24, %v3071_v45  ;;  %v4053_v45 = vld [vmem:[%s5266_s2 + $0xc8] sm:$0xff] }
 0x1ea   : > { %v2945_v9 = vsel %vm1703_vm13, %v2939_v52, %v2941_v16  ;;  %v1294_v0 = vpop.f32.mrf.mxu0  ;;  %v3413_v63 = vpop.permute.xlu2 %3412 }
 0x1eb   : > { %4015 = vmatpush.msk.msra.mxu3 %vm238_vm0, %v2945_v9  ;;  %v1357_v53 = vadd.f32 %v1294_v0, %v1227_v34 }
 0x1ec   : > { %3992 = vmatmul.msk.f32.vlgmr.msra.gmra.mxu0 %vm319_vm9, %v3990_v60  ;;  %3994 = vmatmul.msk.f32.vlgmr.msra.gmra.mxu1 %vm319_vm9, %v3990_v60  ;;  %v1314_v54 = vpop.f32.mrf.mxu1 }
 0x1ed   : > { %4005 = vmatmul.msk.f32.vlgmr.msrb.gmra.mxu2 %vm319_vm9, %v3999_v33  ;;  %4007 = vmatmul.msk.f32.vlgmr.msrb.gmra.mxu3 %vm319_vm9, %v3999_v33  ;;  %v1358_v6 = vadd.f32 %v1314_v54, %v1228_v50  ;;  %v4035_v50 = vld [vmem:[%s5266_s2 + $0xb8] sm:$0xff] }
 0x1ee   : > { %4009 = vmatpush.msk.msra.mxu0 %vm238_vm0, %v2942_v62  ;;  %4011 = vmatpush.msk.msra.mxu1 %vm238_vm0, %v2943_v28  ;;  %v3733_v62 = vld [vmem:[%s5267_s3] sm:$0xff] }
 0x1ef   : > { %4024 = vmatpush.msk.msrb.mxu3 %vm238_vm0, %v3075_v35  ;;  %v1204_v58 = vpop.f32.mrf.mxu2  ;;  %v1224_v20 = vpop.f32.mrf.mxu3 }
 0x1f0   : > { %v1229_v49 = vadd.f32 %v1204_v58, %v1099_v36  ;;  %v1230_v32 = vadd.f32 %v1224_v20, %v1100_v12  ;;  %v3065_v13 = vpop.permute.xlu1 %3064 }
 0x1f1   : > { %v3067_v26 = vpop.permute.xlu0 %3066 }
 0x1f2   : > { %v3074_v46 = vsel %vm1989_vm14, %v3067_v26, %v3069_v24  ;;  %v3073_v38 = vsel %vm1989_vm14, %v3065_v13, %v3067_v26  ;;  %v3409_v55 = vpop.permute.xlu2 %3408 }
 0x1f3   : > { %4022 = vmatpush.msk.msrb.mxu2 %vm238_vm0, %v3074_v46 }
 0x1f4   : > { %4001 = vmatmul.msk.f32.vlgmr.msrb.gmra.mxu0 %vm319_vm9, %v3999_v33  ;;  %4003 = vmatmul.msk.f32.vlgmr.msrb.gmra.mxu1 %vm319_vm9, %v3999_v33 }
 0x1f5   : > { %4014 = vmatmul.msk.f32.vlgmr.msra.gmra.mxu2 %vm319_vm9, %v4008_v25  ;;  %4016 = vmatmul.msk.f32.vlgmr.msra.gmra.mxu3 %vm319_vm9, %v4008_v25 }
 0x1f6   : > { %4020 = vmatpush.msk.msrb.mxu1 %vm238_vm0, %v3073_v38  ;;  %4031 = vmatpush.msk.msra.mxu2 %vm238_vm0, %v4846_v5  ;;  %v3528_v5 = vld.sshfl [vmem:[#allocation1 + $0x10] sm:$0xff pattern:$0x75316420] }
 0x1f7   : > { %v1334_v19 = vpop.f32.mrf.mxu2  ;;  %v1354_v8 = vpop.f32.mrf.mxu3  ;;  %4033 = vmatpush.msk.msra.mxu3 %vm238_vm0, %v4848_v47  ;;  %v3529_v47 = vld.sshfl [vmem:[#allocation1 + $0x18] sm:$0xff pattern:$0x75316420] }
 0x1f8   : > { %v1359_v17 = vadd.f32 %v1334_v19, %v1229_v49  ;;  %v1360_v15 = vadd.f32 %v1354_v8, %v1230_v32  ;;  %3633 = vst [vmem:[#allocation1 + $0x10] ss:$2 sm:$0xff] %v3626_v18 }
 0x1f9   : > { %v1424_v43 = vpop.f32.mrf.mxu0  ;;  %v3063_v39 = vpop.permute.xlu0 %3062 }
 0x1fa   : > { %v1487_v7 = vadd.f32 %v1424_v43, %v1357_v53  ;;  %v3072_v41 = vsel %vm1989_vm14, %v3063_v39, %v3065_v13  ;;  %v4062_v13 = vld [vmem:[%s5266_s2 + $0xd0] sm:$0xff] }
 0x1fb   : > { %4018 = vmatpush.msk.msrb.mxu0 %vm238_vm0, %v3072_v41 }
 0x1fc   : > { %4010 = vmatmul.msk.f32.vlgmr.msra.gmra.mxu0 %vm319_vm9, %v4008_v25  ;;  %4012 = vmatmul.msk.f32.vlgmr.msra.gmra.mxu1 %vm319_vm9, %v4008_v25 }
 0x1fd   : > { %4023 = vmatmul.msk.f32.vlgmr.msrb.gmra.mxu2 %vm319_vm9, %v4017_v31  ;;  %4025 = vmatmul.msk.f32.vlgmr.msrb.gmra.mxu3 %vm319_vm9, %v4017_v31 }
 0x1fe   : > { %4040 = vmatpush.msk.msrb.mxu2 %vm238_vm0, %v4870_v56  ;;  %4042 = vmatpush.msk.msrb.mxu3 %vm238_vm0, %v4872_v11  ;;  %v3417_v56 = vpop.permute.xlu1 %3416  ;;  %v4026_v11 = vld [vmem:[%s5266_s2 + $0xb0] sm:$0xff] }
 0x1ff   : > { %v1484_v52 = vpop.f32.mrf.mxu3  ;;  %4027 = vmatpush.msk.msra.mxu0 %vm238_vm0, %v4809_v4  ;;  %4029 = vmatpush.msk.msra.mxu1 %vm238_vm0, %v4811_v10  ;;  %v3625_v10 = vld [vmem:[%s4221_s6 + $0x90] sm:$0xff]  ;;  %v3637_v9 = vld.sshfl [vmem:[#allocation1 + $0x18] sm:$0xff pattern:$0x75316420] }
 0x200   : > { %v1490_v36 = vadd.f32 %v1484_v52, %v1360_v15  ;;  %3631 = vst [vmem:[#allocation1] ss:$2 sm:$0xff] %v3625_v10  ;;  %v3636_v16 = vld.sshfl [vmem:[#allocation1 + $0x10] sm:$0xff pattern:$0x75316420] }
 0x201   : > { %v1444_v12 = vpop.f32.mrf.mxu1  ;;  %v3415_v29 = vpop.permute.xlu0 %3414 }
 0x202   : > { %v1488_v42 = vadd.f32 %v1444_v12, %v1358_v6  ;;  %v3420_v59 = vsel %vm1989_vm14, %v3413_v63, %v3415_v29  ;;  %v3421_v4 = vsel %vm1989_vm14, %v3415_v29, %v3417_v56 }
 0x204   : > { %4019 = vmatmul.msk.f32.vlgmr.msrb.gmra.mxu0 %vm319_vm9, %v4017_v31  ;;  %4021 = vmatmul.msk.f32.vlgmr.msrb.gmra.mxu1 %vm319_vm9, %v4017_v31 }
 0x205   : > { %4032 = vmatmul.msk.f32.vlgmr.msra.gmra.mxu2 %vm319_vm9, %v4026_v11  ;;  %4034 = vmatmul.msk.f32.vlgmr.msra.gmra.mxu3 %vm319_vm9, %v4026_v11 }
 0x206   : > { %4049 = vmatpush.msk.msra.mxu2 %vm238_vm0, %v3420_v59  ;;  %4051 = vmatpush.msk.msra.mxu3 %vm238_vm0, %v3421_v4 }
 0x207   : > { %v1464_v23 = vpop.f32.mrf.mxu2  ;;  %4036 = vmatpush.msk.msrb.mxu0 %vm238_vm0, %v4835_v14  ;;  %4038 = vmatpush.msk.msrb.mxu1 %vm238_vm0, %v4837_v61  ;;  %v4119_v14 = vmov 0   ;;  %v3634_v28 = vld.sshfl [vmem:[#allocation1] sm:$0xff pattern:$0x75316420] }
 0x208   : > { %v1489_v48 = vadd.f32 %v1464_v23, %v1359_v17  ;;  %4096 = vset.pattern.permute.xlu1 %v4119_v14  ;;  %4097 = vset.pattern.permute.xlu0 %v4119_v14  ;;  %v3635_v6 = vld.sshfl [vmem:[#allocation1 + $0x8] sm:$0xff pattern:$0x75316420] }
 0x209   : > { %v1580_v21 = vpop.f32.mrf.mxu0  ;;  %v1600_v1 = vpop.f32.mrf.mxu1  ;;  %3736 = vperm.xlu1 %4096, %v3733_v62  }
 0x20a   : > { %v1643_v2 = vadd.f32 %v1580_v21, %v1487_v7  ;;  %v1644_v3 = vadd.f32 %v1600_v1, %v1488_v42  ;;  %v3411_v60 = vpop.permute.xlu0 %3410 }
 0x20b   : > { %v3418_v40 = vsel %vm1989_vm14, %v3409_v55, %v3411_v60  ;;  %v3419_v34 = vsel %vm1989_vm14, %v3411_v60, %v3413_v63 }
 0x20c   : > { %4028 = vmatmul.msk.f32.vlgmr.msra.gmra.mxu0 %vm319_vm9, %v4026_v11  ;;  %4030 = vmatmul.msk.f32.vlgmr.msra.gmra.mxu1 %vm319_vm9, %v4026_v11 }
 0x20d   : > { %4041 = vmatmul.msk.f32.vlgmr.msrb.gmra.mxu2 %vm319_vm9, %v4035_v50  ;;  %4043 = vmatmul.msk.f32.vlgmr.msrb.gmra.mxu3 %vm319_vm9, %v4035_v50 }
 0x20e   : > { %4045 = vmatpush.msk.msra.mxu0 %vm238_vm0, %v3418_v40  ;;  %4047 = vmatpush.msk.msra.mxu1 %vm238_vm0, %v3419_v34 }
 0x20f   : > { %4058 = vmatpush.msk.msrb.mxu2 %vm238_vm0, %v3528_v5  ;;  %4060 = vmatpush.msk.msrb.mxu3 %vm238_vm0, %v3529_v47 }
 0x212   : > { %v1736_v61 = vpop.f32.mrf.mxu0  ;;  %v1756_v51 = vpop.f32.mrf.mxu1 }
 0x213   : > { %v1799_v30 = vadd.f32 %v1736_v61, %v1643_v2  ;;  %v1800_v24 = vadd.f32 %v1756_v51, %v1644_v3 }
 0x214   : > { %4037 = vmatmul.msk.f32.vlgmr.msrb.gmra.mxu0 %vm319_vm9, %v4035_v50  ;;  %4039 = vmatmul.msk.f32.vlgmr.msrb.gmra.mxu1 %vm319_vm9, %v4035_v50 }
 0x215   : > { %4050 = vmatmul.msk.f32.vlgmr.msra.gmra.mxu2 %vm319_vm9, %v4044_v37  ;;  %4052 = vmatmul.msk.f32.vlgmr.msra.gmra.mxu3 %vm319_vm9, %v4044_v37 }
 0x216   : > { %4054 = vmatpush.msk.msrb.mxu0 %vm238_vm0, %v3526_v27  ;;  %4056 = vmatpush.msk.msrb.mxu1 %vm238_vm0, %v3527_v22 }
 0x217   : > { %v1620_v0 = vpop.f32.mrf.mxu2  ;;  %v1640_v33 = vpop.f32.mrf.mxu3  ;;  %4067 = vmatpush.msk.msra.mxu2 %vm238_vm0, %v3636_v16  ;;  %4069 = vmatpush.msk.msra.mxu3 %vm238_vm0, %v3637_v9 }
 0x218   : > { %v1645_v53 = vadd.f32 %v1620_v0, %v1489_v48  ;;  %v1646_v54 = vadd.f32 %v1640_v33, %v1490_v36 }
 0x21c   : > { %4046 = vmatmul.msk.f32.vlgmr.msra.gmra.mxu0 %vm319_vm9, %v4044_v37  ;;  %4048 = vmatmul.msk.f32.vlgmr.msra.gmra.mxu1 %vm319_vm9, %v4044_v37 }
 0x21d   : > { %4059 = vmatmul.msk.f32.vlgmr.msrb.gmra.mxu2 %vm319_vm9, %v4053_v45  ;;  %4061 = vmatmul.msk.f32.vlgmr.msrb.gmra.mxu3 %vm319_vm9, %v4053_v45 }
 0x21e   : > { %4063 = vmatpush.msk.msra.mxu0 %vm238_vm0, %v3634_v28  ;;  %4065 = vmatpush.msk.msra.mxu1 %vm238_vm0, %v3635_v6 }
 0x21f   : > { %v1776_v35 = vpop.f32.mrf.mxu2  ;;  %v1796_v58 = vpop.f32.mrf.mxu3 }
 0x220   : > { %v1801_v20 = vadd.f32 %v1776_v35, %v1645_v53  ;;  %v1802_v49 = vadd.f32 %v1796_v58, %v1646_v54 }
 0x221   : > { %v1866_v32 = vpop.f32.mrf.mxu0 }
 0x222   : > { %v1929_v26 = vadd.f32 %v1866_v32, %v1799_v30 }
 0x224   : > { %4055 = vmatmul.msk.f32.vlgmr.msrb.gmra.mxu0 %vm319_vm9, %v4053_v45  ;;  %4057 = vmatmul.msk.f32.vlgmr.msrb.gmra.mxu1 %vm319_vm9, %v4053_v45 }
 0x225   : > { %4068 = vmatmul.msk.f32.vlgmr.msra.gmra.mxu2 %vm319_vm9, %v4062_v13  ;;  %4070 = vmatmul.msk.f32.vlgmr.msra.gmra.mxu3 %vm319_vm9, %v4062_v13 }
 0x227   : > { %v1926_v46 = vpop.f32.mrf.mxu3 }
 0x228   : > { %v1932_v25 = vadd.f32 %v1926_v46, %v1802_v49 }
 0x229   : > { %v1886_v38 = vpop.f32.mrf.mxu1 }
 0x22a   : > { %v1930_v57 = vadd.f32 %v1886_v38, %v1800_v24 }
 0x22c   : > { %4064 = vmatmul.msk.f32.vlgmr.msra.gmra.mxu0 %vm319_vm9, %v4062_v13  ;;  %4066 = vmatmul.msk.f32.vlgmr.msra.gmra.mxu1 %vm319_vm9, %v4062_v13 }
 0x22f   : > { %v1906_v19 = vpop.f32.mrf.mxu2 }
 0x230   : > { %v1931_v8 = vadd.f32 %v1906_v19, %v1801_v20 }
 0x237   : > { %v2062_v17 = vpop.f32.mrf.mxu2  ;;  %v2082_v15 = vpop.f32.mrf.mxu3 }
 0x238   : > { %v2087_v43 = vadd.f32 %v2062_v17, %v1931_v8  ;;  %v2088_v39 = vadd.f32 %v2082_v15, %v1932_v25 }
 0x239   : > { %v2022_v7 = vpop.f32.mrf.mxu0  ;;  %v2042_v41 = vpop.f32.mrf.mxu1 }
 0x23a   : > { %v2085_v31 = vadd.f32 %v2022_v7, %v1929_v26  ;;  %v2086_v5 = vadd.f32 %v2042_v41, %v1930_v57 }
 0x240   : > { %v2170_v47 = vpop.f32.mrf.mxu2  ;;  %v2190_v44 = vpop.f32.mrf.mxu3 }
 0x241   : > { %v2195_v18 = vadd.f32 %v2170_v47, %v2087_v43  ;;  %v2196_v52 = vadd.f32 %v2190_v44, %v2088_v39  ;;  %v2130_v63 = vpop.f32.mrf.mxu0  ;;  %v2150_v36 = vpop.f32.mrf.mxu1 }
 0x242   : > { %v2193_v12 = vadd.f32 %v2130_v63, %v2085_v31  ;;  %v2194_v29 = vadd.f32 %v2150_v36, %v2086_v5 }
 0x248   : > { %v2278_v56 = vpop.f32.mrf.mxu2  ;;  %v2298_v42 = vpop.f32.mrf.mxu3 }
 0x249   : > { %v2303_v11 = vadd.f32 %v2278_v56, %v2195_v18  ;;  %v2304_v59 = vadd.f32 %v2298_v42, %v2196_v52  ;;  %v2238_v4 = vpop.f32.mrf.mxu0  ;;  %v2258_v10 = vpop.f32.mrf.mxu1 }
 0x24a   : > { %v2301_v27 = vadd.f32 %v2238_v4, %v2193_v12  ;;  %v2302_v22 = vadd.f32 %v2258_v10, %v2194_v29 }
 0x250   : > { %v2408_v23 = vpop.f32.mrf.mxu2  ;;  %v2428_v48 = vpop.f32.mrf.mxu3 }
 0x251   : > { %v2433_v21 = vadd.f32 %v2408_v23, %v2303_v11  ;;  %v2434_v1 = vadd.f32 %v2428_v48, %v2304_v59  ;;  %v2368_v55 = vpop.f32.mrf.mxu0  ;;  %v2388_v2 = vpop.f32.mrf.mxu1 }
 0x252   : > { %v2431_v3 = vadd.f32 %v2368_v55, %v2301_v27  ;;  %v2432_v60 = vadd.f32 %v2388_v2, %v2302_v22 }
 0x258   : > { %v2516_v50 = vpop.f32.mrf.mxu2  ;;  %v2536_v40 = vpop.f32.mrf.mxu3 }
 0x259   : > { %v2476_v34 = vpop.f32.mrf.mxu0  ;;  %v2496_v14 = vpop.f32.mrf.mxu1  ;;  %v2541_v17 = vadd.f32 %v2516_v50, %v2433_v21  ;;  %v2542_v15 = vadd.f32 %v2536_v40, %v2434_v1 }
 0x25a   : > { %v2539_v43 = vadd.f32 %v2476_v34, %v2431_v3  ;;  %v2540_v39 = vadd.f32 %v2496_v14, %v2432_v60 }
 0x260   : > { %v2624_v61 = vpop.f32.mrf.mxu2  ;;  %v2644_v51 = vpop.f32.mrf.mxu3 }
 0x261   : > { %v2584_v37 = vpop.f32.mrf.mxu0  ;;  %v2604_v30 = vpop.f32.mrf.mxu1  ;;  %v2649_v7 = vadd.f32 %v2624_v61, %v2541_v17  ;;  %v2650_v41 = vadd.f32 %v2644_v51, %v2542_v15 }
 0x262   : > { %v2647_v31 = vadd.f32 %v2584_v37, %v2539_v43  ;;  %v2648_v5 = vadd.f32 %v2604_v30, %v2540_v39 }
 0x268   : > { %v2754_v24 = vpop.f32.mrf.mxu2  ;;  %v2774_v16 = vpop.f32.mrf.mxu3 }
 0x269   : > { %v2714_v9 = vpop.f32.mrf.mxu0  ;;  %v2734_v0 = vpop.f32.mrf.mxu1  ;;  %v2779_v18 = vadd.f32 %v2754_v24, %v2649_v7  ;;  %v2780_v52 = vadd.f32 %v2774_v16, %v2650_v41 }
 0x26a   : > { %v2777_v12 = vadd.f32 %v2714_v9, %v2647_v31  ;;  %v2778_v29 = vadd.f32 %v2734_v0, %v2648_v5 }
 0x270   : > { %v2884_v33 = vpop.f32.mrf.mxu2  ;;  %v2904_v53 = vpop.f32.mrf.mxu3 }
 0x271   : > { %v2844_v54 = vpop.f32.mrf.mxu0  ;;  %v2864_v62 = vpop.f32.mrf.mxu1  ;;  %v2909_v56 = vadd.f32 %v2884_v33, %v2779_v18  ;;  %v2910_v42 = vadd.f32 %v2904_v53, %v2780_v52 }
 0x272   : > { %v2907_v11 = vadd.f32 %v2844_v54, %v2777_v12  ;;  %v2908_v59 = vadd.f32 %v2864_v62, %v2778_v29 }
 0x278   : > { %v3014_v45 = vpop.f32.mrf.mxu2  ;;  %v3034_v28 = vpop.f32.mrf.mxu3 }
 0x279   : > { %v2974_v6 = vpop.f32.mrf.mxu0  ;;  %v2994_v35 = vpop.f32.mrf.mxu1  ;;  %v3039_v4 = vadd.f32 %v3014_v45, %v2909_v56  ;;  %v3040_v10 = vadd.f32 %v3034_v28, %v2910_v42 }
 0x27a   : > { %v3037_v27 = vadd.f32 %v2974_v6, %v2907_v11  ;;  %v3038_v22 = vadd.f32 %v2994_v35, %v2908_v59 }
 0x27b   : > { %v3737_v54 = vpop.permute.xlu1 %3736 }
 0x280   : > { %v3144_v58 = vpop.f32.mrf.mxu2  ;;  %v3164_v20 = vpop.f32.mrf.mxu3 }
 0x281   : > { %v3104_v49 = vpop.f32.mrf.mxu0  ;;  %v3124_v32 = vpop.f32.mrf.mxu1  ;;  %v3169_v23 = vadd.f32 %v3144_v58, %v3039_v4  ;;  %v3170_v48 = vadd.f32 %v3164_v20, %v3040_v10 }
 0x282   : > { %v3167_v21 = vadd.f32 %v3104_v49, %v3037_v27  ;;  %v3168_v1 = vadd.f32 %v3124_v32, %v3038_v22 }
 0x288   : > { %v3252_v26 = vpop.f32.mrf.mxu2  ;;  %v3272_v13 = vpop.f32.mrf.mxu3 }
 0x289   : > { %v3212_v46 = vpop.f32.mrf.mxu0  ;;  %v3232_v25 = vpop.f32.mrf.mxu1  ;;  %v3277_v3 = vadd.f32 %v3252_v26, %v3169_v23  ;;  %v3278_v60 = vadd.f32 %v3272_v13, %v3170_v48 }
 0x28a   : > { %v3275_v34 = vadd.f32 %v3212_v46, %v3167_v21  ;;  %v3276_v14 = vadd.f32 %v3232_v25, %v3168_v1 }
 0x290   : > { %v3360_v38 = vpop.f32.mrf.mxu2  ;;  %v3380_v57 = vpop.f32.mrf.mxu3 }
 0x291   : > { %v3320_v19 = vpop.f32.mrf.mxu0  ;;  %v3340_v8 = vpop.f32.mrf.mxu1  ;;  %v3385_v61 = vadd.f32 %v3360_v38, %v3277_v3  ;;  %v3386_v51 = vadd.f32 %v3380_v57, %v3278_v60 }
 0x292   : > { %v3383_v37 = vadd.f32 %v3320_v19, %v3275_v34  ;;  %v3384_v30 = vadd.f32 %v3340_v8, %v3276_v14 }
 0x298   : > { %v3490_v47 = vpop.f32.mrf.mxu2  ;;  %v3510_v44 = vpop.f32.mrf.mxu3 }
 0x299   : > { %v3450_v63 = vpop.f32.mrf.mxu0  ;;  %v3470_v36 = vpop.f32.mrf.mxu1  ;;  %v3515_v24 = vadd.f32 %v3490_v47, %v3385_v61  ;;  %v3516_v16 = vadd.f32 %v3510_v44, %v3386_v51 }
 0x29a   : > { %v3513_v9 = vadd.f32 %v3450_v63, %v3383_v37  ;;  %v3514_v0 = vadd.f32 %v3470_v36, %v3384_v30 }
 0x2a0   : > { %v3598_v55 = vpop.f32.mrf.mxu2  ;;  %v3618_v2 = vpop.f32.mrf.mxu3 }
 0x2a1   : > { %v3558_v50 = vpop.f32.mrf.mxu0  ;;  %v3578_v40 = vpop.f32.mrf.mxu1  ;;  %v3623_v33 = vadd.f32 %v3598_v55, %v3515_v24  ;;  %v3624_v53 = vadd.f32 %v3618_v2, %v3516_v16 }
 0x2a2   : > { %v3621_v62 = vadd.f32 %v3558_v50, %v3513_v9  ;;  %v3622_v45 = vadd.f32 %v3578_v40, %v3514_v0 }
 0x2a8   : > { %v3706_v28 = vpop.f32.mrf.mxu2  ;;  %v3726_v6 = vpop.f32.mrf.mxu3 }
 0x2a9   : > { %v3731_v35 = vadd.f32 %v3706_v28, %v3623_v33  ;;  %v3732_v58 = vadd.f32 %v3726_v6, %v3624_v53  ;;  %v3666_v20 = vpop.f32.mrf.mxu0  ;;  %v3686_v49 = vpop.f32.mrf.mxu1 }
 0x2aa   : > { %v3729_v32 = vadd.f32 %v3666_v20, %v3621_v62  ;;  %v3730_v26 = vadd.f32 %v3686_v49, %v3622_v45 }
 0x2ab   : > { %v3741_v13 = vadd.f32 %v3737_v54, %v3731_v35  ;;  %v3742_v38 = vadd.f32 %v3737_v54, %v3732_v58 }
 0x2ac   : > { %v3739_v46 = vadd.f32 %v3737_v54, %v3729_v32  ;;  %v3740_v25 = vadd.f32 %v3737_v54, %v3730_v26 }
 0x2ad   : > { %v3745_v8 = vmax.f32 %v3741_v13, 0.0  ;;  %v3746_v17 = vmax.f32 %v3742_v38, 0.0 }
 0x2ae   : > { %v3743_v57 = vmax.f32 %v3739_v46, 0.0  ;;  %v3744_v19 = vmax.f32 %v3740_v25, 0.0 }
 0x2af   : > { %3749 = vst [vmem:[%s219_s29 + $0x10] sm:$0xff] %v3745_v8 }
 0x2b0   : > { %3747 = vst [vmem:[%s219_s29] sm:$0xff] %v3743_v57 }
 0x2b1   : > { %3748 = vst [vmem:[%s219_s29 + $0x8] sm:$0xff] %v3744_v19 }
 0x2b2   : > { %3750 = vst [vmem:[%s219_s29 + $0x18] sm:$0xff] %v3746_v17 }
 0x2b3 PF: > { %s14_s15 = sadd.s32 1, %s4104_s15  }
 0x2b4   : > { %p11_p5 = scmp.ge.s32.totalorder %s14_s15, 4  }
 0x2b6   :  { %13 = sbr.rel (!%p11_p5) target bundleno = 1 (0x1), region = 141 }

// kernel: encoder_forward.3
= control target key start
LH: loop header
LB: loop body
LE: loop exit
PB: predicated region body
PF: predicated region fallthrough
CT: control target
= control target key end

     0   :  { %s3997_s27 = smov 108   ;;  %s3998_s28 = smov 107   ;;  %vm71_vm0 = vcmask 162816   ;;  %vm74_vm1 = vcmask 64512   ;;  %vm183_vm2 = vcmask 138240   ;;  %vm104_vm3 = vcmask 171008   ;;  %s5075_s1 = inlined_call_operand.vmem [shape: f32[8,128], index: 1, kind: input, shape index: {}]   ;;  %s5076_s0 = inlined_call_operand.vmem [shape: f32[8,1024], index: 0, kind: input, shape index: {}]   ;;  %s5077_s2 = inlined_call_operand.vmem [shape: f32[27,8,8], index: 2, kind: input, shape index: {}]   ;;  %s5078_s3 = inlined_call_operand.vmem [shape: f32[8,1], index: 3, kind: input, shape index: {}]   ;;  %s5079_s10 = inlined_call_operand.vmem [shape: f32[128,128], index: 10, kind: input, shape index: {}]   ;;  %s5080_s4 = inlined_call_operand.vmem [shape: f32[8,16], index: 4, kind: input, shape index: {}]   ;;  %s5081_s12 = inlined_call_operand.vmem [shape: f32[8,128], index: 12, kind: output, shape index: {0}]   ;;  %s5082_s5 = inlined_call_operand.vmem [shape: f32[27,16,8], index: 5, kind: input, shape index: {}]   ;;  %s5083_s6 = inlined_call_operand.vmem [shape: f32[16,1], index: 6, kind: input, shape index: {}]   ;;  %s5084_s7 = inlined_call_operand.vmem [shape: f32[8,2], index: 7, kind: input, shape index: {}]   ;;  %s5085_s11 = inlined_call_operand.vmem [shape: f32[16,16], index: 11, kind: input, shape index: {}]   ;;  %s5086_s9 = inlined_call_operand.vmem [shape: f32[16,1], index: 9, kind: input, shape index: {}]   ;;  %s5087_s8 = inlined_call_operand.vmem [shape: f32[27,16,16], index: 8, kind: input, shape index: {}]   ;;  %s5088_s13 = inlined_call_operand.vmem [shape: f32[16,2], index: 13, kind: output, shape index: {1}]  }
   0x1   :  { %v43_v0 = vld [vmem:[%s5075_s1] sm:$0xff]  ;;  %s5092_s29 = smov 124   ;;  %s4000_s30 = smov 111   ;;  %v4151_v8 = vld [vmem:[%s5076_s0 + $0x30] sm:$0xff]  ;;  %v4156_v9 = vld [vmem:[%s5076_s0 + $0x38] sm:$0xff]  ;;  %vm227_vm4 = vcmask 130048  }
   0x2   :  { %v56_v1 = vperm.slane %v43_v0, 6  ;;  %v46_v2 = vperm.slane %v43_v0, 7  ;;  %v444_v3 = vperm.slane %v43_v0, 2  ;;  %v168_v4 = vperm.slane %v43_v0, 5  ;;  %s4001_s14 = smov 112   ;;  %s5090_s1 = smov 123  }
   0x3   :  { %v212_v5 = vperm.slane %v43_v0, 4  ;;  %v400_v6 = vperm.slane %v43_v0, 3  ;;  %v524_v7 = vperm.slane %v43_v0, 1  ;;  %s5089_s15 = smov 127   ;;  %v4161_v10 = vld [vmem:[%s5076_s0 + $0x28] sm:$0xff]  ;;  %s4004_s22 = smov 20  }
   0x4   :  { %58 = vrot.lane.b32.xlu0 %v56_v1, %s3997_s27  ;;  %48 = vrot.lane.b32.xlu1 %v46_v2, %s3998_s28  ;;  %v4171_v18 = vld [vmem:[%s5076_s0 + $0x20] sm:$0xff]  ;;  %v4182_v28 = vld [vmem:[%s5076_s0 + $0x18] sm:$0xff]  ;;  %s4005_s16 = smov 17   ;;  %s4006_s17 = smov 21   ;;  %vm459_vm5 = vcmask 31744   ;;  %vm539_vm6 = vcmask 7168  }
   0x5   :  { %446 = vrot.lane.b32.xlu2 %v444_v3, %s5092_s29  ;;  %v4194_v39 = vld [vmem:[%s5076_s0 + $0x8] sm:$0xff]  ;;  %v4199_v40 = vld [vmem:[%s5076_s0 + $0x10] sm:$0xff]  ;;  %s4007_s23 = smov 16   ;;  %v4211_v49 = vld [vmem:[%s5076_s0] sm:$0xff]  ;;  %s4008_s26 = smov 4   ;;  %vm415_vm7 = vcmask 39936  }
   0x6   :  { %s4009_s0 = smov 5   ;;  %s4010_s18 = smov 1   ;;  %vm3420_vm8 = vcmask 15360  }
   0x7   :  { %s4012_s20 = smov 106   ;;  %s4013_s21 = smov 90  }
   0x8   :  { %s4016_s19 = smov 105   ;;  %s4020_s24 = smov 92  }
   0x9   :  { %s4023_s25 = smov 23   ;;  %s4025_s29 = smov 15  }
   0xc   :  { %170 = vrot.lane.b32.xlu0 %v168_v4, %s4000_s30  ;;  %214 = vrot.lane.b32.xlu1 %v212_v5, %s4001_s14 }
   0xd   :  { %402 = vrot.lane.b32.xlu2 %v400_v6, %s5090_s1  ;;  %s4014_s1 = smov 76  }
  0x14   :  { %526 = vrot.lane.b32.xlu0 %v524_v7, %s5089_s15  ;;  %s4036_s15 = smov 110  }
  0x5f   :  { %v447_v35 = vpop.permute.xlu2 %446 }
  0x60   :  { %v449_v41 = vmul.f32 %v447_v35, %v4194_v39  ;;  %v450_v42 = vmul.f32 %v447_v35, %v4199_v40  ;;  %v487_v43 = vmul.f32 %v447_v35, %v4182_v28  ;;  %v779_v62 = vmul.f32 %v447_v35, %v4151_v8 }
  0x61   :  { %v780_v63 = vmul.f32 %v447_v35, %v4156_v9  ;;  %v743_v0 = vmul.f32 %v447_v35, %v4161_v10 }
  0x62   :  { %v3809_v45 = vpack.i.bf16 %v450_v42, %v449_v41  ;;  %v3819_v46 = vpack.i.bf16 %v487_v43, %v450_v42  ;;  %v3436_v41 = vld [vmem:[%s5077_s2 + $0x18] sm:$0xff]  ;;  %v3442_v43 = vld [vmem:[%s5077_s2 + $0x30] sm:$0xff] }
  0x63   :  { %v3849_v2 = vpack.i.bf16 %v780_v63, %v779_v62  ;;  %v3844_v3 = vpack.i.bf16 %v779_v62, %v743_v0  ;;  %v3444_v62 = vld [vmem:[%s5077_s2 + $0x38] sm:$0xff]  ;;  %v3440_v63 = vld [vmem:[%s5077_s2 + $0x28] sm:$0xff] }
  0x67   :  { %v403_v47 = vpop.permute.xlu2 %402 }
  0x68   :  { %v405_v51 = vmul.f32 %v4199_v40, %v403_v47  ;;  %v406_v52 = vmul.f32 %v403_v47, %v4182_v28  ;;  %v707_v60 = vmul.f32 %v403_v47, %v4151_v8  ;;  %v708_v61 = vmul.f32 %v403_v47, %v4156_v9 }
  0x6a   :  { %v3824_v57 = vpack.i.bf16 %v406_v52, %v405_v51  ;;  %v3839_v1 = vpack.i.bf16 %v708_v61, %v707_v60 }
  0x76   :  { %v59_v11 = vpop.permute.xlu0 %58  ;;  %v49_v12 = vpop.permute.xlu1 %48 }
  0x77   :  { %v61_v13 = vmul.f32 %v59_v11, %v4161_v10  ;;  %v62_v14 = vmul.f32 %v59_v11, %v4151_v8  ;;  %v131_v15 = vmul.f32 %v59_v11, %v4156_v9  ;;  %v51_v19 = vmul.f32 %v49_v12, %v4151_v8 }
  0x78   :  { %v52_v20 = vmul.f32 %v49_v12, %v4156_v9 }
  0x79   :  { %v3774_v16 = vpack.i.bf16 %v62_v14, %v61_v13  ;;  %v3769_v17 = vpack.i.bf16 %v131_v15, %v62_v14 }
  0x7a   :  { %v3784_v26 = vpack.i.bf16 %v52_v20, %v51_v19 }
  0x7b   :  { %3775 = vrot.lane.b32.xlu2 %v3774_v16, %s4004_s22  ;;  %3770 = vrot.lane.b32.xlu1 %v3769_v17, %s4004_s22  ;;  %v3431_v17 = vld [vmem:[%s5077_s2 + $0x8] sm:$0xff] }
  0x7e   :  { %v171_v21 = vpop.permute.xlu0 %170  ;;  %v215_v27 = vpop.permute.xlu1 %214 }
  0x7f   :  { %v173_v22 = vmul.f32 %v171_v21, %v4171_v18  ;;  %v174_v23 = vmul.f32 %v171_v21, %v4161_v10  ;;  %v290_v24 = vmul.f32 %v171_v21, %v4151_v8  ;;  %v291_v25 = vmul.f32 %v171_v21, %v4156_v9 }
  0x80   :  { %v217_v31 = vmul.f32 %v215_v27, %v4182_v28  ;;  %v218_v32 = vmul.f32 %v215_v27, %v4171_v18  ;;  %v255_v33 = vmul.f32 %v215_v27, %v4161_v10  ;;  %v327_v34 = vmul.f32 %v215_v27, %v4151_v8 }
  0x81   :  { %v3779_v29 = vpack.i.bf16 %v174_v23, %v173_v22  ;;  %v3789_v30 = vpack.i.bf16 %v291_v25, %v290_v24  ;;  %v363_v44 = vmul.f32 %v215_v27, %v4156_v9  ;;  %v3434_v27 = vld [vmem:[%s5077_s2 + $0x10] sm:$0xff] }
  0x82   :  { %v3794_v36 = vpack.i.bf16 %v218_v32, %v217_v31  ;;  %v3804_v37 = vpack.i.bf16 %v255_v33, %v218_v32  ;;  %v3799_v38 = vpack.i.bf16 %v327_v34, %v255_v33 }
  0x83   :  { %3780 = vrot.lane.b32.xlu0 %v3779_v29, %s4005_s16  ;;  %3790 = vrot.lane.b32.xlu2 %v3789_v30, %s4005_s16  ;;  %v3814_v50 = vpack.i.bf16 %v363_v44, %v327_v34 }
  0x84   :  { %3785 = vrot.lane.b32.xlu1 %v3784_v26, %s4006_s17 }
  0x86   :  { %v527_v48 = vpop.permute.xlu0 %526 }
  0x87   :  { %v619_v53 = vmul.f32 %v527_v48, %v4199_v40  ;;  %v620_v54 = vmul.f32 %v527_v48, %v4182_v28  ;;  %v529_v55 = vmul.f32 %v527_v48, %v4211_v49  ;;  %v530_v56 = vmul.f32 %v527_v48, %v4194_v39 }
  0x88   :  { %v815_v4 = vmul.f32 %v527_v48, %v4171_v18  ;;  %v816_v5 = vmul.f32 %v527_v48, %v4161_v10  ;;  %v903_v6 = vmul.f32 %v527_v48, %v4151_v8  ;;  %v904_v7 = vmul.f32 %v527_v48, %v4156_v9 }
  0x89   :  { %v3834_v58 = vpack.i.bf16 %v620_v54, %v619_v53  ;;  %v3829_v59 = vpack.i.bf16 %v530_v56, %v529_v55 }
  0x8a   :  { %v3854_v11 = vpack.i.bf16 %v816_v5, %v815_v4  ;;  %v3859_v12 = vpack.i.bf16 %v904_v7, %v903_v6 }
  0x8b   :  { %3795 = vrot.lane.b32.xlu0 %v3794_v36, %s4007_s23  ;;  %3805 = vrot.lane.b32.xlu2 %v3804_v37, %s4007_s23 }
  0x8c   :  { %3800 = vrot.lane.b32.xlu1 %v3799_v38, %s4007_s23 }
  0x93   :  { %3810 = vrot.lane.b32.xlu0 %v3809_v45, %s4008_s26  ;;  %3820 = vrot.lane.b32.xlu2 %v3819_v46, %s4008_s26  ;;  %v53_v45 = vld [vmem:[%s5077_s2] sm:$0xff] }
  0x94   :  { %3815 = vrot.lane.b32.xlu1 %v3814_v50, %s4007_s23 }
  0x9b   :  { %3825 = vrot.lane.b32.xlu0 %v3824_v57, %s4009_s0  ;;  %3835 = vrot.lane.b32.xlu2 %v3834_v58, %s4010_s18  ;;  %v3438_v57 = vld [vmem:[%s5077_s2 + $0x20] sm:$0xff] }
  0x9c   :  { %3830 = vrot.lane.b32.xlu1 %v3829_v59, %s4010_s18 }
  0xa3   :  { %3840 = vrot.lane.b32.xlu0 %v3839_v1, %s4009_s0  ;;  %3850 = vrot.lane.b32.xlu2 %v3849_v2, %s4008_s26 }
  0xa4   :  { %3845 = vrot.lane.b32.xlu1 %v3844_v3, %s4008_s26 }
  0xab   :  { %3855 = vrot.lane.b32.xlu0 %v3854_v11, %s4010_s18  ;;  %v3450_v11 = vld [vmem:[%s5077_s2 + $0x50] sm:$0xff] }
  0xac   :  { %3860 = vrot.lane.b32.xlu1 %v3859_v12, %s4010_s18 }
  0xd5   :  { %v3776_v13 = vpop.permute.xlu2 %3775 }
  0xd6   :  { %v3778_v14 = vunpack.i.h.bf16 %v3776_v13  ;;  %v3777_v15 = vunpack.i.l.bf16 %v3776_v13  ;;  %v3446_v13 = vld [vmem:[%s5077_s2 + $0x40] sm:$0xff] }
  0xd8   :  { %v72_v16 = vsel %vm71_vm0, %v3777_v15, %v3778_v14  ;;  %v3452_v15 = vld [vmem:[%s5077_s2 + $0x58] sm:$0xff] }
  0xd9   :  { %93 = vmatpush.msra.mxu0 %v72_v16 }
  0xda   :  { %3432 = vmatmul.msk.f32.vlgmr.msra.gmra.mxu0 %vm74_vm1, %v3431_v17 }
  0xdd   :  { %v3791_v19 = vpop.permute.xlu2 %3790 }
  0xde   :  { %v3793_v21 = vunpack.i.h.bf16 %v3791_v19  ;;  %v3792_v22 = vunpack.i.l.bf16 %v3791_v19 }
  0xe0   :  { %v300_v29 = vsel %vm183_vm2, %v3792_v22, %v3793_v21 }
  0xe5   :  { %v3806_v20 = vpop.permute.xlu2 %3805 }
  0xe6   :  { %v3808_v32 = vunpack.i.h.bf16 %v3806_v20  ;;  %v3807_v33 = vunpack.i.l.bf16 %v3806_v20 }
  0xe8   :  { %v264_v46 = vsel %vm227_vm4, %v3807_v33, %v3808_v32  ;;  %v991_v33 = vld [vmem:[%s5078_s3] sm:$0xff]  ;;  %s4015_s3 = smov 75  }
  0xed   :  { %v3771_v23 = vpop.permute.xlu1 %3770  ;;  %v3821_v30 = vpop.permute.xlu2 %3820 }
  0xee   :  { %v3773_v24 = vunpack.i.h.bf16 %v3771_v23  ;;  %v3772_v25 = vunpack.i.l.bf16 %v3771_v23  ;;  %v3823_v48 = vunpack.i.h.bf16 %v3821_v30  ;;  %v3822_v50 = vunpack.i.l.bf16 %v3821_v30  ;;  %v3454_v30 = vld [vmem:[%s5077_s2 + $0x60] sm:$0xff] }
  0xf0   :  { %v140_v26 = vsel %vm71_vm0, %v3772_v25, %v3773_v24  ;;  %v496_v0 = vsel %vm459_vm5, %v3822_v50, %v3823_v48  ;;  %v3448_v24 = vld [vmem:[%s5077_s2 + $0x48] sm:$0xff] }
  0xf1   :  { %160 = vmatpush.msra.mxu2 %v140_v26 }
  0xf2   :  { %3435 = vmatmul.msk.f32.vlgmr.msra.gmra.mxu2 %vm74_vm1, %v3434_v27 }
  0xf3   :  { %320 = vmatpush.msrb.mxu2 %v300_v29 }
  0xf5   :  { %v3781_v31 = vpop.permute.xlu0 %3780  ;;  %v3836_v54 = vpop.permute.xlu2 %3835 }
  0xf6   :  { %v3783_v34 = vunpack.i.h.bf16 %v3781_v31  ;;  %v3782_v35 = vunpack.i.l.bf16 %v3781_v31  ;;  %v3786_v36 = vpop.permute.xlu1 %3785  ;;  %v3838_v58 = vunpack.i.h.bf16 %v3836_v54  ;;  %v3837_v59 = vunpack.i.l.bf16 %v3836_v54  ;;  %v3460_v31 = vld [vmem:[%s5077_s2 + $0x78] sm:$0xff]  ;;  %v3474_v54 = vld [vmem:[%s5077_s2 + $0xb0] sm:$0xff] }
  0xf7   :  { %v3788_v37 = vunpack.i.h.bf16 %v3786_v36  ;;  %v3787_v38 = vunpack.i.l.bf16 %v3786_v36 }
  0xf8   :  { %v184_v42 = vsel %vm183_vm2, %v3782_v35, %v3783_v34  ;;  %v629_v1 = vsel %vm539_vm6, %v3837_v59, %v3838_v58  ;;  %v3478_v58 = vld [vmem:[%s5077_s2 + $0xc0] sm:$0xff] }
  0xf9   :  { %v105_v44 = vsel %vm104_vm3, %v3787_v38, %v3788_v37  ;;  %204 = vmatpush.msra.mxu3 %v184_v42  ;;  %v3456_v42 = vld [vmem:[%s5077_s2 + $0x68] sm:$0xff] }
  0xfa   :  { %125 = vmatpush.msra.mxu1 %v105_v44  ;;  %3437 = vmatmul.msk.f32.vlgmr.msra.gmra.mxu3 %vm74_vm1, %v3436_v41  ;;  %v3462_v44 = vld [vmem:[%s5077_s2 + $0x80] sm:$0xff] }
  0xfb   :  { %3443 = vmatmul.msk.f32.vlgmr.msrb.gmra.mxu2 %vm74_vm1, %v3442_v43  ;;  %3433 = vmatmul.msk.f32.vlgmr.msra.gmra.mxu1 %vm74_vm1, %v53_v45  ;;  %v3468_v45 = vld [vmem:[%s5077_s2 + $0x98] sm:$0xff] }
  0xfc   :  { %284 = vmatpush.msrb.mxu1 %v264_v46 }
  0xfd   :  { %v3796_v47 = vpop.permute.xlu0 %3795  ;;  %v3851_v16 = vpop.permute.xlu2 %3850 }
  0xfe   :  { %v3798_v51 = vunpack.i.h.bf16 %v3796_v47  ;;  %v3797_v52 = vunpack.i.l.bf16 %v3796_v47  ;;  %v3801_v53 = vpop.permute.xlu1 %3800  ;;  %v3853_v25 = vunpack.i.h.bf16 %v3851_v16  ;;  %v3852_v26 = vunpack.i.l.bf16 %v3851_v16 }
  0xff   :  { %v3803_v55 = vunpack.i.h.bf16 %v3801_v53  ;;  %v3802_v56 = vunpack.i.l.bf16 %v3801_v53  ;;  %v3464_v53 = vld [vmem:[%s5077_s2 + $0x88] sm:$0xff] }
 0x100   :  { %v228_v60 = vsel %vm227_vm4, %v3797_v52, %v3798_v51  ;;  %v789_v32 = vsel %vm459_vm5, %v3852_v26, %v3853_v25 }
 0x101   :  { %248 = vmatpush.msrb.mxu0 %v228_v60  ;;  %v336_v61 = vsel %vm227_vm4, %v3802_v56, %v3803_v55  ;;  %v3470_v55 = vld [vmem:[%s5077_s2 + $0xa0] sm:$0xff]  ;;  %v3472_v56 = vld [vmem:[%s5077_s2 + $0xa8] sm:$0xff] }
 0x102   :  { %356 = vmatpush.msrb.mxu3 %v336_v61  ;;  %3439 = vmatmul.msk.f32.vlgmr.msrb.gmra.mxu0 %vm74_vm1, %v3438_v57  ;;  %v3482_v57 = vld [vmem:[%s5077_s2 + $0xd0] sm:$0xff] }
 0x103   :  { %3445 = vmatmul.msk.f32.vlgmr.msrb.gmra.mxu3 %vm74_vm1, %v3444_v62  ;;  %3441 = vmatmul.msk.f32.vlgmr.msrb.gmra.mxu1 %vm74_vm1, %v3440_v63  ;;  %v1015_v63 = vld [vmem:[%s5079_s10 + $0x78] sm:$0xff] }
 0x104   :  { %516 = vmatpush.msra.mxu3 %v496_v0 }
 0x105   :  { %v3811_v2 = vpop.permute.xlu0 %3810 }
 0x106   :  { %649 = vmatpush.msrb.mxu3 %v629_v1  ;;  %v3813_v3 = vunpack.i.h.bf16 %v3811_v2  ;;  %v3812_v4 = vunpack.i.l.bf16 %v3811_v2  ;;  %v3816_v5 = vpop.permute.xlu1 %3815  ;;  %v1014_v1 = vld [vmem:[%s5079_s10 + $0x70] sm:$0xff] }
 0x107   :  { %v3818_v6 = vunpack.i.h.bf16 %v3816_v5  ;;  %v3817_v7 = vunpack.i.l.bf16 %v3816_v5 }
 0x108   :  { %v460_v12 = vsel %vm459_vm5, %v3812_v4, %v3813_v3  ;;  %v1013_v4 = vld [vmem:[%s5079_s10 + $0x68] sm:$0xff] }
 0x109   :  { %v372_v14 = vsel %vm227_vm4, %v3817_v7, %v3818_v6  ;;  %480 = vmatpush.msra.mxu2 %v460_v12  ;;  %v1012_v7 = vld [vmem:[%s5079_s10 + $0x60] sm:$0xff] }
 0x10a   :  { %392 = vmatpush.msra.mxu0 %v372_v14  ;;  %3451 = vmatmul.msk.f32.vlgmr.msra.gmra.mxu2 %vm74_vm1, %v3450_v11 }
 0x10b   :  { %3447 = vmatmul.msk.f32.vlgmr.msra.gmra.mxu0 %vm74_vm1, %v3446_v13  ;;  %613 = vmatpush.msrb.mxu2 %v4194_v39  ;;  %v3458_v39 = vld [vmem:[%s5077_s2 + $0x70] sm:$0xff]  ;;  %v1011_v13 = vld [vmem:[%s5079_s10 + $0x58] sm:$0xff] }
 0x10c   :  { %3453 = vmatmul.msk.f32.vlgmr.msra.gmra.mxu3 %vm74_vm1, %v3452_v15  ;;  %v1010_v15 = vld [vmem:[%s5079_s10 + $0x50] sm:$0xff] }
 0x10d   :  { %v3826_v17 = vpop.permute.xlu0 %3825 }
 0x10e   :  { %v3828_v19 = vunpack.i.h.bf16 %v3826_v17  ;;  %v3827_v20 = vunpack.i.l.bf16 %v3826_v17  ;;  %v3831_v21 = vpop.permute.xlu1 %3830  ;;  %v1009_v17 = vld [vmem:[%s5079_s10 + $0x48] sm:$0xff] }
 0x10f   :  { %v3833_v22 = vunpack.i.h.bf16 %v3831_v21  ;;  %v3832_v23 = vunpack.i.l.bf16 %v3831_v21 }
 0x110   :  { %v416_v27 = vsel %vm415_vm7, %v3827_v20, %v3828_v19  ;;  %v1008_v20 = vld [vmem:[%s5079_s10 + $0x40] sm:$0xff] }
 0x111   :  { %436 = vmatpush.msra.mxu1 %v416_v27  ;;  %v540_v29 = vsel %vm539_vm6, %v3832_v23, %v3833_v22  ;;  %v1007_v23 = vld [vmem:[%s5079_s10 + $0x38] sm:$0xff]  ;;  %v1005_v27 = vld [vmem:[%s5079_s10 + $0x28] sm:$0xff] }
 0x112   :  { %560 = vmatpush.msrb.mxu0 %v540_v29  ;;  %3449 = vmatmul.msk.f32.vlgmr.msra.gmra.mxu1 %vm74_vm1, %v3448_v24  ;;  %v1006_v24 = vld [vmem:[%s5079_s10 + $0x30] sm:$0xff] }
 0x113   :  { %3459 = vmatmul.msk.f32.vlgmr.msrb.gmra.mxu2 %vm74_vm1, %v3458_v39  ;;  %3455 = vmatmul.msk.f32.vlgmr.msrb.gmra.mxu0 %vm74_vm1, %v3454_v30 }
 0x114   :  { %675 = vmatpush.msra.mxu0 %v4199_v40  ;;  %3461 = vmatmul.msk.f32.vlgmr.msrb.gmra.mxu3 %vm74_vm1, %v3460_v31  ;;  %v4011_v40 = vmov 0   ;;  %v1004_v31 = vld [vmem:[%s5079_s10 + $0x20] sm:$0xff] }
 0x115   :  { %v3841_v34 = vpop.permute.xlu0 %3840  ;;  %587 = vmatpush.msrb.mxu1 %v4211_v49  ;;  %3864 = vset.pattern.permute.xlu2 %v4011_v40  ;;  %v3466_v49 = vld [vmem:[%s5077_s2 + $0x90] sm:$0xff] }
 0x116   :  { %809 = vmatpush.msrb.mxu0 %v789_v32  ;;  %v3843_v35 = vunpack.i.h.bf16 %v3841_v34  ;;  %v3842_v36 = vunpack.i.l.bf16 %v3841_v34  ;;  %v3846_v37 = vpop.permute.xlu1 %3845  ;;  %994 = vperm.xlu2 %3864, %v991_v33   ;;  %v4415_v32 = vld [vmem:[%s5080_s4] sm:$0xff]  ;;  %s4022_s4 = smov 38  }
 0x117   :  { %701 = vmatpush.msra.mxu1 %v4182_v28  ;;  %v3848_v38 = vunpack.i.h.bf16 %v3846_v37  ;;  %v3847_v41 = vunpack.i.l.bf16 %v3846_v37  ;;  %3865 = vset.pattern.permute.xlu0 %v4011_v40  ;;  %v1045_v34 = vperm.slane %v4415_v32, 6 }
 0x118   :  { %v717_v43 = vsel %vm415_vm7, %v3842_v36, %v3843_v35  ;;  %3866 = vset.pattern.permute.xlu1 %v4011_v40  ;;  %v1003_v36 = vld [vmem:[%s5079_s10 + $0x18] sm:$0xff]  ;;  %v1002_v40 = vld [vmem:[%s5079_s10 + $0x10] sm:$0xff] }
 0x119   :  { %737 = vmatpush.msra.mxu2 %v717_v43  ;;  %v753_v28 = vsel %vm459_vm5, %v3847_v41, %v3848_v38  ;;  %1120 = vrot.lane.b32.xlu0 %v1045_v34, %s4012_s20  ;;  %s4018_s20 = smov 45  }
 0x11a   :  { %773 = vmatpush.msra.mxu3 %v753_v28  ;;  %3457 = vmatmul.msk.f32.vlgmr.msrb.gmra.mxu1 %vm74_vm1, %v3456_v42  ;;  %v1001_v42 = vld [vmem:[%s5079_s10 + $0x8] sm:$0xff] }
 0x11b   :  { %3467 = vmatmul.msk.f32.vlgmr.msra.gmra.mxu2 %vm74_vm1, %v3466_v49  ;;  %3463 = vmatmul.msk.f32.vlgmr.msra.gmra.mxu0 %vm74_vm1, %v3462_v44  ;;  %v1000_v44 = vld [vmem:[%s5079_s10] sm:$0xff]  ;;  %s4017_s10 = smov 60  }
 0x11c   :  { %897 = vmatpush.msrb.mxu3 %v4161_v10  ;;  %871 = vmatpush.msrb.mxu2 %v4171_v18 }
 0x11d   :  { %3469 = vmatmul.msk.f32.vlgmr.msra.gmra.mxu3 %vm74_vm1, %v3468_v45  ;;  %v3856_v46 = vpop.permute.xlu0 %3855  ;;  %1047 = vrot.lane.b32.xlu1 %v1045_v34, %s4013_s21  ;;  %v1206_v45 = vperm.slane %v4415_v32, 4  ;;  %s4019_s21 = smov 30  }
 0x11e   :  { %v3858_v47 = vunpack.i.h.bf16 %v3856_v46  ;;  %v3857_v48 = vunpack.i.l.bf16 %v3856_v46  ;;  %v3861_v50 = vpop.permute.xlu1 %3860  ;;  %985 = vmatpush.msra.mxu2 %v4156_v9  ;;  %v3476_v9 = vld [vmem:[%s5077_s2 + $0xb8] sm:$0xff]  ;;  %1016 = vmatpush.msra.mxu3 %v1015_v63  ;;  %v1162_v46 = vperm.slane %v4415_v32, 5 }
 0x11f   :  { %v3863_v51 = vunpack.i.h.bf16 %v3861_v50  ;;  %v3862_v52 = vunpack.i.l.bf16 %v3861_v50 }
 0x120   :  { %v825_v10 = vsel %vm539_vm6, %v3857_v48, %v3858_v47  ;;  %1017 = vmatpush.msra.mxu3 %v1014_v1  ;;  %v1037_v48 = vperm.slane %v4415_v32, 7 }
 0x121   :  { %845 = vmatpush.msrb.mxu1 %v825_v10  ;;  %v913_v18 = vsel %vm539_vm6, %v3862_v52, %v3863_v51  ;;  %1250 = vrot.lane.b32.xlu0 %v1206_v45, %s4014_s1  ;;  %s4027_s1 = smov 53  }
 0x122   :  { %933 = vmatpush.msra.mxu0 %v913_v18  ;;  %3465 = vmatmul.msk.f32.vlgmr.msra.gmra.mxu1 %vm74_vm1, %v3464_v53  ;;  %v1418_v18 = vperm.slane %v4415_v32, 3 }
 0x123   :  { %3475 = vmatmul.msk.f32.vlgmr.msrb.gmra.mxu2 %vm74_vm1, %v3474_v54  ;;  %959 = vmatpush.msra.mxu1 %v4151_v8  ;;  %v3480_v8 = vld [vmem:[%s5077_s2 + $0xc8] sm:$0xff]  ;;  %s4026_s2 = smov 52  }
 0x124   :  { %3471 = vmatmul.msk.f32.vlgmr.msrb.gmra.mxu0 %vm74_vm1, %v3470_v55  ;;  %1018 = vmatpush.msra.mxu3 %v1013_v4 }
 0x125   :  { %3477 = vmatmul.msk.f32.vlgmr.msrb.gmra.mxu3 %vm74_vm1, %v3476_v9  ;;  %1164 = vrot.lane.b32.xlu1 %v1162_v46, %s4015_s3  ;;  %s4028_s3 = smov 68  }
 0x126   :  { %1019 = vmatpush.msra.mxu3 %v1012_v7  ;;  %1039 = vrot.lane.b32.xlu2 %v1037_v48, %s4016_s19  ;;  %s4029_s19 = smov 47  }
 0x128   :  { %1020 = vmatpush.msra.mxu3 %v1011_v13 }
 0x129   :  { %1208 = vrot.lane.b32.xlu0 %v1206_v45, %s4017_s10  ;;  %s4030_s10 = smov 109  }
 0x12a   :  { %3473 = vmatmul.msk.f32.vlgmr.msrb.gmra.mxu1 %vm74_vm1, %v3472_v56  ;;  %1021 = vmatpush.msra.mxu3 %v1010_v15 }
 0x12b   :  { %3483 = vmatmul.msk.f32.vlgmr.msra.gmra.mxu2 %vm74_vm1, %v3482_v57 }
 0x12c   :  { %3479 = vmatmul.msk.f32.vlgmr.msra.gmra.mxu0 %vm74_vm1, %v3478_v58  ;;  %1022 = vmatpush.msra.mxu3 %v1009_v17 }
 0x12d   :  { %1420 = vrot.lane.b32.xlu1 %v1418_v18, %s4018_s20  ;;  %s4031_s20 = smov 83  }
 0x12e   :  { %1023 = vmatpush.msra.mxu3 %v1008_v20  ;;  %1292 = vrot.lane.b32.xlu2 %v1162_v46, %s3998_s28  ;;  %s4035_s28 = smov 94  }
 0x130   :  { %1024 = vmatpush.msra.mxu3 %v1007_v23 }
 0x132   :  { %3481 = vmatmul.msk.f32.vlgmr.msra.gmra.mxu1 %vm74_vm1, %v3480_v8  ;;  %1025 = vmatpush.msra.mxu3 %v1006_v24 }
 0x134   :  { %1026 = vmatpush.msra.mxu3 %v1005_v27 }
 0x135   :  { %1376 = vrot.lane.b32.xlu1 %v1206_v45, %s3997_s27  ;;  %s4021_s27 = smov 22  }
 0x136   :  { %1027 = vmatpush.msra.mxu3 %v1004_v31  ;;  %1334 = vrot.lane.b32.xlu2 %v1206_v45, %s4020_s24  ;;  %s4034_s24 = smov 79   ;;  %v3484_v45 = vld [vmem:[%s5082_s5 + $0x10] sm:$0xff] }
 0x138   :  { %1028 = vmatpush.msra.mxu3 %v1003_v36 }
 0x13a   :  { %1029 = vmatpush.msra.mxu3 %v1002_v40 }
 0x13c   :  { %1030 = vmatpush.msra.mxu3 %v1001_v42 }
 0x13e   :  { %1031 = vmatpush.msra.mxu3 %v1000_v44 }
 0x157   :  { %v95_v59 = vpop.f32.mrf.mxu0 }
 0x175   :  { %v162_v61 = vpop.f32.mrf.mxu2 }
 0x178   :  { %v127_v60 = vpop.f32.mrf.mxu1 }
 0x179   :  { %v128_v62 = vadd.f32 %v127_v60, %v95_v59  ;;  %v4438_v60 = vperm.slane %v4415_v32, 2 }
 0x17b   :  { %v165_v0 = vadd.f32 %v162_v61, %v128_v62  ;;  %1464 = vrot.lane.b32.xlu0 %v4438_v60, %s4019_s21  ;;  %s4033_s21 = smov 98  }
 0x17d   :  { %v206_v2 = vpop.f32.mrf.mxu3 }
 0x17e   :  { %v209_v3 = vadd.f32 %v206_v2, %v165_v0  ;;  %v322_v14 = vpop.f32.mrf.mxu2 }
 0x17f   :  { %v250_v5 = vpop.f32.mrf.mxu0 }
 0x180   :  { %v253_v6 = vadd.f32 %v250_v5, %v209_v3  ;;  %v286_v11 = vpop.f32.mrf.mxu1 }
 0x182   :  { %v289_v12 = vadd.f32 %v286_v11, %v253_v6  ;;  %v995_v6 = vpop.permute.xlu2 %994 }
 0x184   :  { %v325_v16 = vadd.f32 %v322_v14, %v289_v12 }
 0x186   :  { %v358_v19 = vpop.f32.mrf.mxu3 }
 0x187   :  { %v361_v22 = vadd.f32 %v358_v19, %v325_v16 }
 0x188   :  { %v394_v21 = vpop.f32.mrf.mxu0 }
 0x189   :  { %v397_v26 = vadd.f32 %v394_v21, %v361_v22  ;;  %v4451_v22 = vperm.slane %v4415_v32, 1 }
 0x18a   :  { %v1040_v14 = vpop.permute.xlu2 %1039 }
 0x18b   :  { %v1121_v13 = vpop.permute.xlu0 %1120 }
 0x18d   :  { %v482_v25 = vpop.f32.mrf.mxu2 }
 0x18f   :  { %v438_v39 = vpop.f32.mrf.mxu1  ;;  %v518_v29 = vpop.f32.mrf.mxu3 }
 0x190   :  { %v441_v30 = vadd.f32 %v438_v39, %v397_v26  ;;  %v562_v33 = vpop.f32.mrf.mxu0  ;;  %v1048_v15 = vpop.permute.xlu1 %1047 }
 0x192   :  { %v485_v35 = vadd.f32 %v482_v25, %v441_v30  ;;  %v1293_v25 = vpop.permute.xlu2 %1292 }
 0x193   :  { %v1251_v21 = vpop.permute.xlu0 %1250 }
 0x194   :  { %v521_v37 = vadd.f32 %v518_v29, %v485_v35 }
 0x196   :  { %v565_v38 = vadd.f32 %v562_v33, %v521_v37  ;;  %v615_v41 = vpop.f32.mrf.mxu2 }
 0x197   :  { %v589_v43 = vpop.f32.mrf.mxu1  ;;  %v651_v49 = vpop.f32.mrf.mxu3 }
 0x198   :  { %v592_v28 = vadd.f32 %v589_v43, %v565_v38  ;;  %v677_v47 = vpop.f32.mrf.mxu0  ;;  %v1165_v24 = vpop.permute.xlu1 %1164  ;;  %v3490_v38 = vld [vmem:[%s5082_s5 + $0x20] sm:$0xff]  ;;  %v3491_v43 = vld [vmem:[%s5082_s5 + $0x28] sm:$0xff] }
 0x19a   :  { %v618_v50 = vadd.f32 %v615_v41, %v592_v28  ;;  %v1335_v34 = vpop.permute.xlu2 %1334 }
 0x19b   :  { %v1209_v26 = vpop.permute.xlu0 %1208 }
 0x19c   :  { %v654_v51 = vadd.f32 %v651_v49, %v618_v50 }
 0x19e   :  { %v680_v52 = vadd.f32 %v677_v47, %v654_v51  ;;  %v739_v53 = vpop.f32.mrf.mxu2  ;;  %v1043_v47 = vld [vmem:[%s5082_s5] sm:$0xff]  ;;  %v3502_v51 = vld [vmem:[%s5082_s5 + $0x50] sm:$0xff] }
 0x19f   :  { %v703_v10 = vpop.f32.mrf.mxu1 }
 0x1a0   :  { %v775_v54 = vpop.f32.mrf.mxu3  ;;  %v706_v55 = vadd.f32 %v703_v10, %v680_v52  ;;  %v1421_v30 = vpop.permute.xlu1 %1420 }
 0x1a1   :  { %v811_v9 = vpop.f32.mrf.mxu0 }
 0x1a2   :  { %v742_v56 = vadd.f32 %v739_v53, %v706_v55 }
 0x1a4   :  { %v778_v57 = vadd.f32 %v775_v54, %v742_v56  ;;  %v3503_v54 = vld [vmem:[%s5082_s5 + $0x58] sm:$0xff] }
 0x1a6   :  { %v814_v58 = vadd.f32 %v811_v9, %v778_v57  ;;  %v873_v8 = vpop.f32.mrf.mxu2 }
 0x1a7   :  { %v847_v59 = vpop.f32.mrf.mxu1 }
 0x1a8   :  { %v850_v61 = vadd.f32 %v847_v59, %v814_v58  ;;  %v899_v62 = vpop.f32.mrf.mxu3  ;;  %v1377_v35 = vpop.permute.xlu1 %1376  ;;  %v3518_v59 = vld [vmem:[%s5082_s5 + $0x90] sm:$0xff] }
 0x1a9   :  { %v935_v0 = vpop.f32.mrf.mxu0 }
 0x1aa   :  { %v876_v63 = vadd.f32 %v873_v8, %v850_v61 }
 0x1ac   :  { %v902_v1 = vadd.f32 %v899_v62, %v876_v63  ;;  %v3494_v63 = vld [vmem:[%s5082_s5 + $0x30] sm:$0xff] }
 0x1ae   :  { %v938_v2 = vadd.f32 %v935_v0, %v902_v1  ;;  %v987_v4 = vpop.f32.mrf.mxu2 }
 0x1af   :  { %v961_v3 = vpop.f32.mrf.mxu1 }
 0x1b0   :  { %v964_v5 = vadd.f32 %v961_v3, %v938_v2  ;;  %v1044_v2 = vld [vmem:[%s5082_s5 + $0x8] sm:$0xff] }
 0x1b2   :  { %v990_v7 = vadd.f32 %v987_v4, %v964_v5 }
 0x1b4   :  { %v997_v11 = vadd.f32 %v995_v6, %v990_v7  ;;  %v3495_v6 = vld [vmem:[%s5082_s5 + $0x38] sm:$0xff] }
 0x1b6   :  { %v998_v12 = vmax.f32 %v997_v11, 0.0  ;;  %v3498_v11 = vld [vmem:[%s5082_s5 + $0x40] sm:$0xff] }
 0x1b8   :  { %999 = vst [vmem:[%s5081_s12] sm:$0xff] %v998_v12  ;;  %1032 = vmatmul.f32.vlgmr.msra.gmra.mxu3 %v998_v12  ;;  %s4024_s12 = smov 46   ;;  %v3507_v12 = vld [vmem:[%s5082_s5 + $0x68] sm:$0xff] }
 0x1ed   :  { %v1465_v33 = vpop.permute.xlu0 %1464 }
 0x23b   :  { %v4445_v16 = vpop.f32.mrf.mxu3 }
 0x23c   :  { %v1123_v17 = vmul.f32 %v1121_v13, %v4445_v16  ;;  %v1050_v19 = vmul.f32 %v1048_v15, %v4445_v16  ;;  %v1042_v20 = vmul.f32 %v1040_v14, %v4445_v16  ;;  %v1253_v23 = vmul.f32 %v1251_v21, %v4445_v16  ;;  %v3510_v13 = vld [vmem:[%s5082_s5 + $0x70] sm:$0xff]  ;;  %v3499_v15 = vld [vmem:[%s5082_s5 + $0x48] sm:$0xff]  ;;  %v3514_v21 = vld [vmem:[%s5082_s5 + $0x80] sm:$0xff] }
 0x23d   :  { %v1167_v27 = vmul.f32 %v1165_v24, %v4445_v16  ;;  %v1295_v39 = vmul.f32 %v1293_v25, %v4445_v16  ;;  %v1211_v29 = vmul.f32 %v1209_v26, %v4445_v16  ;;  %v1423_v31 = vmul.f32 %v1421_v30, %v4445_v16  ;;  %v3526_v24 = vld [vmem:[%s5082_s5 + $0xb0] sm:$0xff]  ;;  %v3527_v26 = vld [vmem:[%s5082_s5 + $0xb8] sm:$0xff] }
 0x23e   :  { %1128 = vrot.lane.b32.xlu2 %v1123_v17, %s4021_s27  ;;  %1055 = vrot.lane.b32.xlu0 %v1050_v19, %s4022_s4  ;;  %v1337_v36 = vmul.f32 %v1335_v34, %v4445_v16  ;;  %v1467_v37 = vmul.f32 %v1465_v33, %v4445_v16  ;;  %v1379_v40 = vmul.f32 %v1377_v35, %v4445_v16  ;;  %s4037_s27 = smov 80   ;;  %s4038_s4 = smov 96   ;;  %v3519_v17 = vld [vmem:[%s5082_s5 + $0x98] sm:$0xff]  ;;  %v3534_v30 = vld [vmem:[%s5082_s5 + $0xd0] sm:$0xff] }
 0x23f   :  { %1088 = vrot.lane.b32.xlu1 %v1042_v20, %s4023_s25  ;;  %s4039_s25 = smov 64   ;;  %v3511_v19 = vld [vmem:[%s5082_s5 + $0x78] sm:$0xff]  ;;  %v3522_v20 = vld [vmem:[%s5082_s5 + $0xa0] sm:$0xff]  ;;  %v3550_v33 = vld [vmem:[%s5082_s5 + $0x110] sm:$0xff] }
 0x240   :  { %v3551_v35 = vld [vmem:[%s5082_s5 + $0x118] sm:$0xff] }
 0x246   :  { %1506 = vrot.lane.b32.xlu2 %v4438_v60, %s4024_s12  ;;  %1550 = vrot.lane.b32.xlu0 %v4451_v22, %s4025_s29  ;;  %s4051_s12 = smov 8  }
 0x247   :  { %1258 = vrot.lane.b32.xlu1 %v1253_v23, %s4026_s2  ;;  %s4045_s2 = smov 49   ;;  %v3515_v23 = vld [vmem:[%s5082_s5 + $0x88] sm:$0xff] }
 0x24e   :  { %1172 = vrot.lane.b32.xlu2 %v1167_v27, %s4027_s1  ;;  %1300 = vrot.lane.b32.xlu0 %v1295_v39, %s4006_s17  ;;  %s4032_s17 = smov 36   ;;  %s4041_s1 = smov 82  }
 0x24f   :  { %1216 = vrot.lane.b32.xlu1 %v1211_v29, %s4028_s3  ;;  %v3538_v29 = vld [vmem:[%s5082_s5 + $0xe0] sm:$0xff]  ;;  %s4056_s3 = smov 10  }
 0x256   :  { %1664 = vrot.lane.b32.xlu2 %v4451_v22, %s4029_s19  ;;  %1780 = vrot.lane.b32.xlu0 %v1418_v18, %s4030_s10  ;;  %v3506_v18 = vld [vmem:[%s5082_s5 + $0x60] sm:$0xff]  ;;  %s4057_s19 = smov 118   ;;  %s4059_s10 = smov 116  }
 0x257   :  { %1428 = vrot.lane.b32.xlu1 %v1423_v31, %s4031_s20  ;;  %s4046_s20 = smov 34   ;;  %v3539_v31 = vld [vmem:[%s5082_s5 + $0xe8] sm:$0xff] }
 0x25e   :  { %1342 = vrot.lane.b32.xlu2 %v1337_v36, %s4032_s17  ;;  %1472 = vrot.lane.b32.xlu0 %v1467_v37, %s4033_s21  ;;  %s4042_s21 = smov 113   ;;  %v3554_v37 = vld [vmem:[%s5082_s5 + $0x120] sm:$0xff]  ;;  %s5094_s17 = smov 124  }
 0x25f   :  { %1384 = vrot.lane.b32.xlu1 %v1379_v40, %s4004_s22  ;;  %s4040_s22 = smov 48  }
 0x266   :  { %1906 = vrot.lane.b32.xlu2 %v4451_v22, %s4034_s24  ;;  %1822 = vrot.lane.b32.xlu0 %v4438_v60, %s4035_s28  ;;  %s4065_s24 = smov 126   ;;  %s4066_s28 = smov 122  }
 0x267   :  { %1864 = vrot.lane.b32.xlu1 %v4438_v60, %s4036_s15  ;;  %v3485_v60 = vld [vmem:[%s5082_s5 + $0x18] sm:$0xff]  ;;  %s4048_s15 = smov 32  }
 0x26e   :  { %1630 = vrot.lane.b32.xlu0 %v4445_v16, %s4001_s14  ;;  %s4044_s14 = smov 19  }
 0x276   :  { %1746 = vrot.lane.b32.xlu0 %v4445_v16, %s4037_s27 }
 0x27e   :  { %1709 = vrot.lane.b32.xlu0 %v4445_v16, %s4038_s4  ;;  %s4043_s4 = smov 81  }
 0x286   :  { %1951 = vrot.lane.b32.xlu0 %v4445_v16, %s4039_s25  ;;  %s5095_s25 = smov 123  }
 0x28e   :  { %1988 = vrot.lane.b32.xlu0 %v4445_v16, %s4040_s22  ;;  %s4049_s22 = smov 12  }
 0x298   :  { %v1129_v32 = vpop.permute.xlu2 %1128 }
 0x299   :  { %1152 = vmatpush.msrb.mxu2 %v1129_v32  ;;  %v3530_v32 = vld [vmem:[%s5082_s5 + $0xc0] sm:$0xff] }
 0x29a   :  { %3492 = vmatmul.msk.f32.vlgmr.msrb.gmra.mxu2 %vm74_vm1, %v3490_v38 }
 0x2a0   :  { %v1507_v41 = vpop.permute.xlu2 %1506 }
 0x2a1   :  { %v1509_v42 = vmul.f32 %v1507_v41, %v4445_v16  ;;  %v3555_v41 = vld [vmem:[%s5082_s5 + $0x128] sm:$0xff] }
 0x2a2   :  { %3493 = vmatmul.msk.f32.gmra.mxu2 %vm74_vm1, %v3491_v43  ;;  %v3542_v43 = vld [vmem:[%s5082_s5 + $0xf0] sm:$0xff] }
 0x2a3   :  { %1514 = vrot.lane.b32.xlu2 %v1509_v42, %s4041_s1  ;;  %v3531_v42 = vld [vmem:[%s5082_s5 + $0xc8] sm:$0xff]  ;;  %s4054_s1 = smov 3  }
 0x2a8   :  { %v1173_v49 = vpop.permute.xlu2 %1172 }
 0x2ab   :  { %2022 = vrot.lane.b32.xlu2 %v4451_v22, %s4000_s30  ;;  %s4047_s30 = smov 18   ;;  %v3523_v22 = vld [vmem:[%s5082_s5 + $0xa8] sm:$0xff] }
 0x2b0   :  { %v1665_v28 = vpop.permute.xlu2 %1664  ;;  %v1056_v44 = vpop.permute.xlu0 %1055 }
 0x2b1   :  { %v1089_v46 = vpop.permute.xlu1 %1088  ;;  %1079 = vmatpush.msrb.mxu0 %v1056_v44  ;;  %v1667_v55 = vmul.f32 %v1665_v28, %v4445_v16  ;;  %v3570_v44 = vld [vmem:[%s5082_s5 + $0x160] sm:$0xff] }
 0x2b2   :  { %1112 = vmatpush.msrb.mxu1 %v1089_v46  ;;  %3486 = vmatmul.msk.f32.vlgmr.msrb.gmra.mxu0 %vm74_vm1, %v3484_v45  ;;  %v3543_v46 = vld [vmem:[%s5082_s5 + $0xf8] sm:$0xff] }
 0x2b3   :  { %1196 = vmatpush.msra.mxu0 %v1173_v49  ;;  %3488 = vmatmul.msk.f32.vlgmr.msrb.gmra.mxu1 %vm74_vm1, %v1043_v47 }
 0x2b8   :  { %v1343_v48 = vpop.permute.xlu2 %1342  ;;  %v1551_v50 = vpop.permute.xlu0 %1550 }
 0x2b9   :  { %v1553_v52 = vmul.f32 %v1551_v50, %v4445_v16  ;;  %v1259_v53 = vpop.permute.xlu1 %1258  ;;  %1366 = vmatpush.msrb.mxu0 %v1343_v48  ;;  %v3546_v48 = vld [vmem:[%s5082_s5 + $0x100] sm:$0xff] }
 0x2ba   :  { %1282 = vmatpush.msra.mxu2 %v1259_v53  ;;  %3487 = vmatmul.msk.f32.gmra.mxu0 %vm74_vm1, %v3485_v60  ;;  %v3558_v53 = vld [vmem:[%s5082_s5 + $0x130] sm:$0xff]  ;;  %v3586_v60 = vld [vmem:[%s5082_s5 + $0x1a0] sm:$0xff] }
 0x2bb   :  { %1558 = vrot.lane.b32.xlu1 %v1553_v52, %s4042_s21  ;;  %3504 = vmatmul.msk.f32.vlgmr.msra.gmra.mxu2 %vm74_vm1, %v3502_v51  ;;  %v3566_v51 = vld [vmem:[%s5082_s5 + $0x150] sm:$0xff]  ;;  %v3571_v52 = vld [vmem:[%s5082_s5 + $0x168] sm:$0xff]  ;;  %s4064_s21 = smov 125  }
 0x2bc   :  { %3489 = vmatmul.msk.f32.gmra.mxu1 %vm74_vm1, %v1044_v2 }
 0x2c0   :  { %v1301_v10 = vpop.permute.xlu0 %1300  ;;  %v1907_v56 = vpop.permute.xlu2 %1906 }
 0x2c1   :  { %v1217_v9 = vpop.permute.xlu1 %1216  ;;  %1324 = vmatpush.msrb.mxu3 %v1301_v10  ;;  %v1909_v61 = vmul.f32 %v1907_v56, %v4445_v16  ;;  %v3547_v10 = vld [vmem:[%s5082_s5 + $0x108] sm:$0xff]  ;;  %v3562_v56 = vld [vmem:[%s5082_s5 + $0x140] sm:$0xff] }
 0x2c2   :  { %1240 = vmatpush.msra.mxu1 %v1217_v9  ;;  %3508 = vmatmul.msk.f32.vlgmr.msrb.gmra.mxu3 %vm74_vm1, %v3506_v18  ;;  %v3559_v18 = vld [vmem:[%s5082_s5 + $0x138] sm:$0xff]  ;;  %v2139_v9 = vld [vmem:[%s5083_s6 + $0x8] sm:$0xff] }
 0x2c3   :  { %1672 = vrot.lane.b32.xlu1 %v1667_v55, %s4043_s4  ;;  %3505 = vmatmul.msk.f32.gmra.mxu2 %vm74_vm1, %v3503_v54  ;;  %v3567_v54 = vld [vmem:[%s5082_s5 + $0x158] sm:$0xff]  ;;  %v2138_v55 = vld [vmem:[%s5083_s6] sm:$0xff]  ;;  %s4052_s6 = smov 7  }
 0x2c4   :  { %3496 = vmatmul.msk.f32.vlgmr.msra.gmra.mxu0 %vm74_vm1, %v3494_v63  ;;  %3500 = vmatmul.msk.f32.vlgmr.msra.gmra.mxu1 %vm74_vm1, %v3498_v11  ;;  %v3575_v63 = vld [vmem:[%s5082_s5 + $0x178] sm:$0xff] }
 0x2c5   :  { %2142 = vperm.xlu0 %3865, %v2138_v55  }
 0x2c8   :  { %v1781_v57 = vpop.permute.xlu0 %1780 }
 0x2c9   :  { %v1783_v58 = vmul.f32 %v1781_v57, %v4445_v16  ;;  %v1429_v8 = vpop.permute.xlu1 %1428 }
 0x2ca   :  { %1452 = vmatpush.msrb.mxu2 %v1429_v8  ;;  %3509 = vmatmul.msk.f32.gmra.mxu3 %vm74_vm1, %v3507_v12  ;;  %v3574_v8 = vld [vmem:[%s5082_s5 + $0x170] sm:$0xff] }
 0x2cb   :  { %1788 = vrot.lane.b32.xlu2 %v1783_v58, %s4044_s14  ;;  %1914 = vrot.lane.b32.xlu1 %v1909_v61, %s4045_s2  ;;  %v3582_v58 = vld [vmem:[%s5082_s5 + $0x190] sm:$0xff] }
 0x2cc   :  { %1616 = vmatpush.msra.mxu2 %v4445_v16  ;;  %3497 = vmatmul.msk.f32.gmra.mxu0 %vm74_vm1, %v3495_v6 }
 0x2cd   :  { %3520 = vmatmul.msk.f32.vlgmr.msrb.gmra.mxu2 %vm74_vm1, %v3518_v59  ;;  %3501 = vmatmul.msk.f32.gmra.mxu1 %vm74_vm1, %v3499_v15  ;;  %v3563_v59 = vld [vmem:[%s5082_s5 + $0x148] sm:$0xff] }
 0x2d0   :  { %v1473_v62 = vpop.permute.xlu0 %1472 }
 0x2d1   :  { %v1385_v0 = vpop.permute.xlu1 %1384  ;;  %1496 = vmatpush.msra.mxu3 %v1473_v62  ;;  %v3583_v62 = vld [vmem:[%s5082_s5 + $0x198] sm:$0xff] }
 0x2d2   :  { %1408 = vmatpush.msrb.mxu1 %v1385_v0  ;;  %3524 = vmatmul.msk.f32.vlgmr.msra.gmra.mxu3 %vm74_vm1, %v3522_v20  ;;  %v3587_v0 = vld [vmem:[%s5082_s5 + $0x1a8] sm:$0xff] }
 0x2d4   :  { %3512 = vmatmul.msk.f32.vlgmr.msrb.gmra.mxu0 %vm74_vm1, %v3510_v13 }
 0x2d5   :  { %3521 = vmatmul.msk.f32.gmra.mxu2 %vm74_vm1, %v3519_v17  ;;  %3516 = vmatmul.msk.f32.vlgmr.msrb.gmra.mxu1 %vm74_vm1, %v3514_v21 }
 0x2d8   :  { %v1823_v1 = vpop.permute.xlu0 %1822 }
 0x2d9   :  { %v1825_v3 = vmul.f32 %v1823_v1, %v4445_v16  ;;  %v1865_v4 = vpop.permute.xlu1 %1864  ;;  %v3578_v1 = vld [vmem:[%s5082_s5 + $0x180] sm:$0xff] }
 0x2da   :  { %v1867_v5 = vmul.f32 %v1865_v4, %v4445_v16  ;;  %3525 = vmatmul.msk.f32.gmra.mxu3 %vm74_vm1, %v3523_v22  ;;  %v3579_v4 = vld [vmem:[%s5082_s5 + $0x188] sm:$0xff] }
 0x2db   :  { %1830 = vrot.lane.b32.xlu2 %v1825_v3, %s4046_s20  ;;  %s4060_s20 = smov 119  }
 0x2dc   :  { %1872 = vrot.lane.b32.xlu1 %v1867_v5, %s4047_s30  ;;  %3513 = vmatmul.msk.f32.gmra.mxu0 %vm74_vm1, %v3511_v19  ;;  %s4061_s30 = smov 121  }
 0x2dd   :  { %3517 = vmatmul.msk.f32.gmra.mxu1 %vm74_vm1, %v3515_v23  ;;  %3536 = vmatmul.msk.f32.vlgmr.msra.gmra.mxu2 %vm74_vm1, %v3534_v30 }
 0x2e0   :  { %v1631_v7 = vpop.permute.xlu0 %1630 }
 0x2e1   :  { %1654 = vmatpush.msrb.mxu3 %v1631_v7 }
 0x2e2   :  { %3540 = vmatmul.msk.f32.vlgmr.msrb.gmra.mxu3 %vm74_vm1, %v3538_v29 }
 0x2e3   :  { %2067 = vrot.lane.b32.xlu2 %v4445_v16, %s4048_s15 }
 0x2e4   :  { %2104 = vrot.lane.b32.xlu1 %v4445_v16, %s4007_s23 }
 0x2e8   :  { %v1747_v14 = vpop.permute.xlu0 %1746 }
 0x2e9   :  { %1770 = vmatpush.msrb.mxu2 %v1747_v14 }
 0x2ea   :  { %3541 = vmatmul.msk.f32.gmra.mxu3 %vm74_vm1, %v3539_v31 }
 0x2ec   :  { %2147 = vperm.xlu1 %3866, %v2139_v9  }
 0x2f0   :  { %v1710_v34 = vpop.permute.xlu0 %1709 }
 0x2f8   :  { %v1952_v40 = vpop.permute.xlu0 %1951 }
 0x2fd   :  { %v1515_v25 = vpop.permute.xlu2 %1514 }
 0x2fe   :  { %1538 = vmatpush.msra.mxu0 %v1515_v25 }
 0x2ff   :  { %3528 = vmatmul.msk.f32.vlgmr.msra.gmra.mxu0 %vm74_vm1, %v3526_v24 }
 0x300   :  { %v1989_v45 = vpop.permute.xlu0 %1988 }
 0x305   :  { %v2023_v27 = vpop.permute.xlu2 %2022 }
 0x306   :  { %v2025_v39 = vmul.f32 %v2023_v27, %v4445_v16  ;;  %v3535_v16 = vld [vmem:[%s5082_s5 + $0xd8] sm:$0xff] }
 0x307   :  { %3529 = vmatmul.msk.f32.gmra.mxu0 %vm74_vm1, %v3527_v26  ;;  %3537 = vmatmul.msk.f32.gmra.mxu2 %vm74_vm1, %v3535_v16 }
 0x308   :  { %2030 = vrot.lane.b32.xlu2 %v2025_v39, %s4005_s16  ;;  %s4058_s16 = smov 117  }
 0x30f   :  { %3552 = vmatmul.msk.f32.vlgmr.msrb.gmra.mxu2 %vm74_vm1, %v3550_v33 }
 0x317   :  { %3553 = vmatmul.msk.f32.gmra.mxu2 %vm74_vm1, %v3551_v35 }
 0x31d   :  { %v1154_v5 = vpop.f32.mrf.mxu2 }
 0x325   :  { %v1789_v36 = vpop.permute.xlu2 %1788  ;;  %v1157_v11 = vpop.f32.mrf.mxu2 }
 0x326   :  { %1812 = vmatpush.msra.mxu3 %v1789_v36 }
 0x327   :  { %3556 = vmatmul.msk.f32.vlgmr.msra.gmra.mxu3 %vm74_vm1, %v3554_v37 }
 0x328   :  { %1975 = vmatpush.msrb.mxu3 %v1952_v40 }
 0x32d   :  { %v1559_v38 = vpop.permute.xlu1 %1558 }
 0x32e   :  { %1582 = vmatpush.msra.mxu1 %v1559_v38 }
 0x32f   :  { %3532 = vmatmul.msk.f32.vlgmr.msra.gmra.mxu1 %vm74_vm1, %v3530_v32  ;;  %3557 = vmatmul.msk.f32.gmra.mxu3 %vm74_vm1, %v3555_v41  ;;  %v1081_v3 = vpop.f32.mrf.mxu0 }
 0x330   :  { %1733 = vmatpush.msrb.mxu1 %v1710_v34  ;;  %v1114_v7 = vpop.f32.mrf.mxu1 }
 0x331   :  { %v1115_v25 = vadd.f32 %v1114_v7, %v1081_v3 }
 0x333   :  { %v1160_v27 = vadd.f32 %v1154_v5, %v1115_v25 }
 0x335   :  { %v1831_v49 = vpop.permute.xlu2 %1830  ;;  %v1673_v28 = vpop.permute.xlu1 %1672 }
 0x336   :  { %1696 = vmatpush.msrb.mxu0 %v1673_v28 }
 0x337   :  { %3533 = vmatmul.msk.f32.gmra.mxu1 %vm74_vm1, %v3531_v42  ;;  %3544 = vmatmul.msk.f32.vlgmr.msrb.gmra.mxu0 %vm74_vm1, %v3542_v43  ;;  %v1084_v6 = vpop.f32.mrf.mxu0 }
 0x338   :  { %1854 = vmatpush.msra.mxu0 %v1831_v49  ;;  %3572 = vmatmul.msk.f32.vlgmr.msrb.gmra.mxu3 %vm74_vm1, %v3570_v44 }
 0x339   :  { %v1117_v13 = vpop.f32.mrf.mxu1 }
 0x33a   :  { %2012 = vmatpush.msrb.mxu0 %v1989_v45  ;;  %v1118_v16 = vadd.f32 %v1117_v13, %v1084_v6 }
 0x33c   :  { %v1161_v34 = vadd.f32 %v1157_v11, %v1118_v16 }
 0x33d   :  { %v2068_v47 = vpop.permute.xlu2 %2067  ;;  %v1915_v50 = vpop.permute.xlu1 %1914 }
 0x33e   :  { %1938 = vmatpush.msra.mxu2 %v1915_v50  ;;  %v1284_v14 = vpop.f32.mrf.mxu2 }
 0x33f   :  { %3545 = vmatmul.msk.f32.gmra.mxu0 %vm74_vm1, %v3543_v46  ;;  %3548 = vmatmul.msk.f32.vlgmr.msrb.gmra.mxu1 %vm74_vm1, %v3546_v48 }
 0x340   :  { %2091 = vmatpush.msrb.mxu2 %v2068_v47  ;;  %3573 = vmatmul.msk.f32.gmra.mxu3 %vm74_vm1, %v3571_v52 }
 0x341   :  { %3568 = vmatmul.msk.f32.vlgmr.msra.gmra.mxu2 %vm74_vm1, %v3566_v51  ;;  %v1198_v12 = vpop.f32.mrf.mxu0  ;;  %v1242_v19 = vpop.f32.mrf.mxu1 }
 0x342   :  { %v1204_v30 = vadd.f32 %v1198_v12, %v1160_v27 }
 0x344   :  { %v1248_v35 = vadd.f32 %v1242_v19, %v1204_v30 }
 0x345   :  { %v1326_v15 = vpop.f32.mrf.mxu3 }
 0x346   :  { %v1287_v20 = vpop.f32.mrf.mxu2  ;;  %v1290_v40 = vadd.f32 %v1284_v14, %v1248_v35 }
 0x347   :  { %3560 = vmatmul.msk.f32.vlgmr.msra.gmra.mxu0 %vm74_vm1, %v3558_v53  ;;  %3549 = vmatmul.msk.f32.gmra.mxu1 %vm74_vm1, %v3547_v10 }
 0x348   :  { %v1332_v42 = vadd.f32 %v1326_v15, %v1290_v40  ;;  %v2155_v15 = vld [vmem:[%s5085_s11 + $0x8] sm:$0xff] }
 0x349   :  { %3569 = vmatmul.msk.f32.gmra.mxu2 %vm74_vm1, %v3567_v54  ;;  %v1201_v17 = vpop.f32.mrf.mxu0  ;;  %2176 = vmatpush.msra.mxu0 %v2155_v15 }
 0x34a   :  { %v1245_v23 = vpop.f32.mrf.mxu1  ;;  %v1205_v37 = vadd.f32 %v1201_v17, %v1161_v34  ;;  %v2154_v17 = vld [vmem:[%s5085_s11] sm:$0xff]  ;;  %s4053_s11 = smov 11  }
 0x34b   :  { %2177 = vmatpush.msra.mxu0 %v2154_v17 }
 0x34c   :  { %v1249_v43 = vadd.f32 %v1245_v23, %v1205_v37 }
 0x34d   :  { %v1329_v21 = vpop.f32.mrf.mxu3 }
 0x34e   :  { %v1873_v57 = vpop.permute.xlu1 %1872  ;;  %v1291_v28 = vadd.f32 %v1287_v20, %v1249_v43 }
 0x34f   :  { %1896 = vmatpush.msra.mxu1 %v1873_v57  ;;  %3561 = vmatmul.msk.f32.gmra.mxu0 %vm74_vm1, %v3559_v18 }
 0x350   :  { %3564 = vmatmul.msk.f32.vlgmr.msra.gmra.mxu1 %vm74_vm1, %v3562_v56  ;;  %v1454_v24 = vpop.f32.mrf.mxu2  ;;  %v1333_v47 = vadd.f32 %v1329_v21, %v1291_v28 }
 0x351   :  { %3584 = vmatmul.msk.f32.vlgmr.msrb.gmra.mxu2 %vm74_vm1, %v3582_v58  ;;  %v1368_v22 = vpop.f32.mrf.mxu0 }
 0x352   :  { %v1410_v29 = vpop.f32.mrf.mxu1  ;;  %v1374_v49 = vadd.f32 %v1368_v22, %v1332_v42 }
 0x354   :  { %v1416_v48 = vadd.f32 %v1410_v29, %v1374_v49 }
 0x355   :  { %v1498_v26 = vpop.f32.mrf.mxu3 }
 0x356   :  { %v2105_v61 = vpop.permute.xlu1 %2104  ;;  %v1460_v52 = vadd.f32 %v1454_v24, %v1416_v48 }
 0x357   :  { %2128 = vmatpush.msra.mxu3 %v2105_v61  ;;  %3576 = vmatmul.msk.f32.vlgmr.msrb.gmra.mxu0 %vm74_vm1, %v3574_v8 }
 0x358   :  { %3565 = vmatmul.msk.f32.gmra.mxu1 %vm74_vm1, %v3563_v59  ;;  %3588 = vmatmul.msk.f32.vlgmr.msra.gmra.mxu3 %vm74_vm1, %v3586_v60  ;;  %v1457_v31 = vpop.f32.mrf.mxu2  ;;  %v1504_v54 = vadd.f32 %v1498_v26, %v1460_v52  ;;  %v4717_v59 = vld [vmem:[%s5084_s7] sm:$0xff]  ;;  %s4050_s7 = smov 9  }
 0x359   :  { %3585 = vmatmul.msk.f32.gmra.mxu2 %vm74_vm1, %v3583_v62  ;;  %v1371_v39 = vpop.f32.mrf.mxu0  ;;  %v2195_v61 = vperm.slane %v4717_v59, 6  ;;  %v4722_v6 = vperm.slane %v4717_v59, 4  ;;  %v2326_v11 = vperm.slane %v4717_v59, 5  ;;  %v2612_v22 = vperm.slane %v4717_v59, 3 }
 0x35a   :  { %v1413_v32 = vpop.f32.mrf.mxu1  ;;  %v1375_v51 = vadd.f32 %v1371_v39, %v1333_v47  ;;  %v4739_v30 = vperm.slane %v4717_v59, 2  ;;  %v2186_v16 = vperm.slane %v4717_v59, 7 }
 0x35b   :  { %2279 = vrot.lane.b32.xlu1 %v2195_v61, %s4049_s22  ;;  %2424 = vrot.lane.b32.xlu0 %v4722_v6, %s4050_s7 }
 0x35c   :  { %v1417_v18 = vadd.f32 %v1413_v32, %v1375_v51  ;;  %2188 = vrot.lane.b32.xlu2 %v2186_v16, %s4053_s11 }
 0x35d   :  { %v1501_v33 = vpop.f32.mrf.mxu3 }
 0x35e   :  { %v1461_v57 = vadd.f32 %v1457_v31, %v1417_v18 }
 0x35f   :  { %3577 = vmatmul.msk.f32.gmra.mxu0 %vm74_vm1, %v3575_v63 }
 0x360   :  { %3589 = vmatmul.msk.f32.gmra.mxu3 %vm74_vm1, %v3587_v0  ;;  %v1618_v38 = vpop.f32.mrf.mxu2  ;;  %v1505_v62 = vadd.f32 %v1501_v33, %v1461_v57 }
 0x362   :  { %v2031_v2 = vpop.permute.xlu2 %2030 }
 0x363   :  { %2054 = vmatpush.msrb.mxu1 %v2031_v2  ;;  %2328 = vrot.lane.b32.xlu1 %v2326_v11, %s4051_s12 }
 0x364   :  { %3580 = vmatmul.msk.f32.vlgmr.msrb.gmra.mxu1 %vm74_vm1, %v3578_v1  ;;  %2377 = vrot.lane.b32.xlu0 %v4722_v6, %s4052_s6 }
 0x365   :  { %v1656_v41 = vpop.f32.mrf.mxu3  ;;  %2197 = vrot.lane.b32.xlu2 %v2195_v61, %s4056_s3 }
 0x36b   :  { %2614 = vrot.lane.b32.xlu1 %v2612_v22, %s4008_s26  ;;  %s4055_s26 = smov 13  }
 0x36c   :  { %3581 = vmatmul.msk.f32.gmra.mxu1 %vm74_vm1, %v3579_v4  ;;  %2663 = vrot.lane.b32.xlu0 %v4739_v30, %s4054_s1 }
 0x36d   :  { %v1659_v50 = vpop.f32.mrf.mxu3  ;;  %2471 = vrot.lane.b32.xlu2 %v2326_v11, %s4049_s22 }
 0x373   :  { %2565 = vrot.lane.b32.xlu1 %v4722_v6, %s4055_s26 }
 0x375   :  { %2518 = vrot.lane.b32.xlu2 %v4722_v6, %s4053_s11 }
 0x37c   :  { %v1540_v36 = vpop.f32.mrf.mxu0 }
 0x37d   :  { %v1546_v56 = vadd.f32 %v1540_v36, %v1504_v54 }
 0x384   :  { %v1543_v44 = vpop.f32.mrf.mxu0 }
 0x385   :  { %v1547_v1 = vadd.f32 %v1543_v44, %v1505_v62 }
 0x38a   :  { %v1621_v46 = vpop.f32.mrf.mxu2 }
 0x392   :  { %v1772_v55 = vpop.f32.mrf.mxu2 }
 0x39a   :  { %v1775_v0 = vpop.f32.mrf.mxu2 }
 0x3aa   :  { %v1814_v9 = vpop.f32.mrf.mxu3 }
 0x3ac   :  { %v1584_v45 = vpop.f32.mrf.mxu1 }
 0x3ad   :  { %v1590_v60 = vadd.f32 %v1584_v45, %v1546_v56 }
 0x3af   :  { %v1624_v63 = vadd.f32 %v1618_v38, %v1590_v60 }
 0x3b1   :  { %v1662_v4 = vadd.f32 %v1656_v41, %v1624_v63 }
 0x3b2   :  { %v1817_v3 = vpop.f32.mrf.mxu3 }
 0x3b4   :  { %v1587_v53 = vpop.f32.mrf.mxu1  ;;  %v1698_v10 = vpop.f32.mrf.mxu0 }
 0x3b5   :  { %v1591_v5 = vadd.f32 %v1587_v53, %v1547_v1  ;;  %v1704_v12 = vadd.f32 %v1698_v10, %v1662_v4 }
 0x3b6   :  { %v2189_v62 = vpop.permute.xlu2 %2188 }
 0x3b7   :  { %v1625_v13 = vadd.f32 %v1621_v46, %v1591_v5 }
 0x3b9   :  { %v1663_v20 = vadd.f32 %v1659_v50, %v1625_v13  ;;  %v2143_v50 = vpop.permute.xlu0 %2142 }
 0x3bb   :  { %v1977_v24 = vpop.f32.mrf.mxu3 }
 0x3bc   :  { %v1701_v58 = vpop.f32.mrf.mxu0  ;;  %v1735_v8 = vpop.f32.mrf.mxu1 }
 0x3bd   :  { %v1741_v14 = vadd.f32 %v1735_v8, %v1704_v12  ;;  %v1705_v25 = vadd.f32 %v1701_v58, %v1663_v20  ;;  %v2148_v58 = vpop.permute.xlu1 %2147 }
 0x3bf   :  { %v1778_v21 = vadd.f32 %v1772_v55, %v1741_v14 }
 0x3c1   :  { %v1820_v27 = vadd.f32 %v1814_v9, %v1778_v21  ;;  %v4767_v21 = vperm.slane %v4717_v59, 1 }
 0x3c3   :  { %v1980_v36 = vpop.f32.mrf.mxu3 }
 0x3c4   :  { %v1738_v2 = vpop.f32.mrf.mxu1  ;;  %v1856_v7 = vpop.f32.mrf.mxu0 }
 0x3c5   :  { %v1940_v19 = vpop.f32.mrf.mxu2  ;;  %v1742_v39 = vadd.f32 %v1738_v2, %v1705_v25  ;;  %v1862_v29 = vadd.f32 %v1856_v7, %v1820_v27 }
 0x3c7   :  { %v1779_v31 = vadd.f32 %v1775_v0, %v1742_v39  ;;  %v2198_v0 = vpop.permute.xlu2 %2197 }
 0x3c9   :  { %v1821_v37 = vadd.f32 %v1817_v3, %v1779_v31 }
 0x3cc   :  { %v1859_v26 = vpop.f32.mrf.mxu0 }
 0x3cd   :  { %v1898_v23 = vpop.f32.mrf.mxu1  ;;  %v1943_v34 = vpop.f32.mrf.mxu2  ;;  %v1863_v38 = vadd.f32 %v1859_v26, %v1821_v37 }
 0x3ce   :  { %v1904_v33 = vadd.f32 %v1898_v23, %v1862_v29  ;;  %v2280_v1 = vpop.permute.xlu1 %2279  ;;  %v2425_v15 = vpop.permute.xlu0 %2424 }
 0x3cf   :  { %v2472_v25 = vpop.permute.xlu2 %2471 }
 0x3d0   :  { %v1946_v40 = vadd.f32 %v1940_v19, %v1904_v33 }
 0x3d2   :  { %v1983_v41 = vadd.f32 %v1977_v24, %v1946_v40 }
 0x3d4   :  { %v2014_v32 = vpop.f32.mrf.mxu0 }
 0x3d5   :  { %v1901_v35 = vpop.f32.mrf.mxu1  ;;  %v2093_v43 = vpop.f32.mrf.mxu2  ;;  %v2020_v49 = vadd.f32 %v2014_v32, %v1983_v41 }
 0x3d6   :  { %v1905_v42 = vadd.f32 %v1901_v35, %v1863_v38  ;;  %v2329_v20 = vpop.permute.xlu1 %2328  ;;  %v2378_v24 = vpop.permute.xlu0 %2377 }
 0x3d7   :  { %v2519_v38 = vpop.permute.xlu2 %2518 }
 0x3d8   :  { %v1947_v45 = vadd.f32 %v1943_v34, %v1905_v42 }
 0x3da   :  { %v1984_v51 = vadd.f32 %v1980_v36, %v1947_v45 }
 0x3db   :  { %v2130_v44 = vpop.f32.mrf.mxu3 }
 0x3dc   :  { %v2017_v48 = vpop.f32.mrf.mxu0 }
 0x3dd   :  { %v2021_v53 = vadd.f32 %v2017_v48, %v1984_v51  ;;  %v2096_v18 = vpop.f32.mrf.mxu2 }
 0x3de   :  { %v2615_v35 = vpop.permute.xlu1 %2614  ;;  %v2664_v42 = vpop.permute.xlu0 %2663 }
 0x3e1   :  { %v2056_v28 = vpop.f32.mrf.mxu1 }
 0x3e2   :  { %v2062_v46 = vadd.f32 %v2056_v28, %v2020_v49 }
 0x3e3   :  { %v2133_v56 = vpop.f32.mrf.mxu3 }
 0x3e4   :  { %v2099_v47 = vadd.f32 %v2093_v43, %v2062_v46 }
 0x3e6   :  { %v2136_v52 = vadd.f32 %v2130_v44, %v2099_v47  ;;  %v2566_v41 = vpop.permute.xlu1 %2565 }
 0x3e8   :  { %v2150_v10 = vadd.f32 %v2143_v50, %v2136_v52 }
 0x3e9   :  { %v2059_v54 = vpop.f32.mrf.mxu1 }
 0x3ea   :  { %v2152_v55 = vmax.f32 %v2150_v10, 0.0  ;;  %v2063_v9 = vadd.f32 %v2059_v54, %v2021_v53  ;;  %v2193_v53 = vld [vmem:[%s5087_s8] sm:$0xff] }
 0x3ec   :  { %v2100_v57 = vadd.f32 %v2096_v18, %v2063_v9  ;;  %3590 = vmatmul.msk.f32.vlgmr.msra.gmra.mxu0 %vm227_vm4, %v2152_v55  ;;  %v2194_v9 = vld [vmem:[%s5087_s8 + $0x8] sm:$0xff] }
 0x3ee   :  { %v2137_v8 = vadd.f32 %v2133_v56, %v2100_v57 }
 0x3f0   :  { %v2151_v60 = vadd.f32 %v2148_v58, %v2137_v8 }
 0x3f2   :  { %v2153_v61 = vmax.f32 %v2151_v60, 0.0 }
 0x3f4   :  { %3591 = vmatmul.msk.f32.gmra.mxu0 %vm227_vm4, %v2153_v61 }
 0x469   :  { %v4751_v63 = vpop.f32.mrf.mxu0 }
 0x46a   :  { %v2200_v3 = vmul.f32 %v2198_v0, %v4751_v63  ;;  %v2191_v4 = vmul.f32 %v2189_v62, %v4751_v63  ;;  %v2282_v6 = vmul.f32 %v2280_v1, %v4751_v63  ;;  %v2427_v19 = vmul.f32 %v2425_v15, %v4751_v63 }
 0x46b   :  { %v2380_v29 = vmul.f32 %v2378_v24, %v4751_v63  ;;  %v2331_v16 = vmul.f32 %v2329_v20, %v4751_v63  ;;  %v2474_v31 = vmul.f32 %v2472_v25, %v4751_v63  ;;  %v2617_v40 = vmul.f32 %v2615_v35, %v4751_v63 }
 0x46c   :  { %v2568_v44 = vmul.f32 %v2566_v41, %v4751_v63  ;;  %v2521_v45 = vmul.f32 %v2519_v38, %v4751_v63  ;;  %v2666_v46 = vmul.f32 %v2664_v42, %v4751_v63 }
 0x471   :  { %v4753_v2 = vpop.f32.mrf.mxu0 }
 0x472   :  { %v2201_v5 = vmul.f32 %v2198_v0, %v4753_v2  ;;  %v2192_v7 = vmul.f32 %v2189_v62, %v4753_v2  ;;  %v2283_v11 = vmul.f32 %v2280_v1, %v4753_v2  ;;  %v2428_v17 = vmul.f32 %v2425_v15, %v4753_v2 }
 0x473   :  { %v2381_v26 = vmul.f32 %v2378_v24, %v4753_v2  ;;  %v2332_v27 = vmul.f32 %v2329_v20, %v4753_v2  ;;  %v2475_v39 = vmul.f32 %v2472_v25, %v4753_v2  ;;  %v2618_v37 = vmul.f32 %v2615_v35, %v4753_v2  ;;  %v3610_v20 = vld [vmem:[%s5087_s8 + $0x50] sm:$0xff]  ;;  %v3614_v35 = vld [vmem:[%s5087_s8 + $0x60] sm:$0xff] }
 0x474   :  { %v3877_v12 = vpack.i.bf16 %v2200_v3, %v2201_v5  ;;  %v3867_v13 = vpack.i.bf16 %v2191_v4, %v2192_v7  ;;  %v3872_v14 = vpack.i.bf16 %v2282_v6, %v2283_v11  ;;  %v3882_v23 = vpack.i.bf16 %v2427_v19, %v2428_v17  ;;  %v3592_v3 = vld [vmem:[%s5087_s8 + $0x10] sm:$0xff]  ;;  %v3598_v5 = vld [vmem:[%s5087_s8 + $0x20] sm:$0xff] }
 0x475   :  { %v3897_v33 = vpack.i.bf16 %v2380_v29, %v2381_v26  ;;  %v3887_v34 = vpack.i.bf16 %v2331_v16, %v2332_v27  ;;  %v3892_v36 = vpack.i.bf16 %v2474_v31, %v2475_v39  ;;  %v3902_v32 = vpack.i.bf16 %v2617_v40, %v2618_v37 }
 0x476   :  { %3878 = vrot.lane.b32.xlu1 %v3877_v12, %s4057_s19  ;;  %3868 = vrot.lane.b32.xlu2 %v3867_v13, %s4058_s16  ;;  %v2522_v43 = vmul.f32 %v2519_v38, %v4753_v2  ;;  %v2569_v49 = vmul.f32 %v2566_v41, %v4753_v2  ;;  %v2667_v28 = vmul.f32 %v2664_v42, %v4753_v2 }
 0x477   :  { %3873 = vrot.lane.b32.xlu0 %v3872_v14, %s4059_s10  ;;  %v4806_v59 = vpack.i.bf16 %v4751_v63, %v4753_v2 }
 0x478   :  { %v3907_v47 = vpack.i.bf16 %v2521_v45, %v2522_v43  ;;  %v3917_v48 = vpack.i.bf16 %v2568_v44, %v2569_v49  ;;  %v3912_v50 = vpack.i.bf16 %v2666_v46, %v2667_v28  ;;  %v3626_v45 = vld [vmem:[%s5087_s8 + $0x90] sm:$0xff] }
 0x47e   :  { %3883 = vrot.lane.b32.xlu1 %v3882_v23, %s4060_s20  ;;  %2710 = vrot.lane.b32.xlu2 %v4739_v30, %s4009_s0  ;;  %v3599_v23 = vld [vmem:[%s5087_s8 + $0x28] sm:$0xff] }
 0x47f   :  { %2759 = vrot.lane.b32.xlu0 %v4767_v21, %s4010_s18  ;;  %s4062_s18 = smov 120  }
 0x486   :  { %3898 = vrot.lane.b32.xlu1 %v3897_v33, %s4061_s30  ;;  %3888 = vrot.lane.b32.xlu2 %v3887_v34, %s4062_s18  ;;  %v3611_v34 = vld [vmem:[%s5087_s8 + $0x58] sm:$0xff] }
 0x487   :  { %3893 = vrot.lane.b32.xlu0 %v3892_v36, %s4059_s10 }
 0x48e   :  { %2882 = vrot.lane.b32.xlu2 %v4767_v21, %s4009_s0  ;;  %3903 = vrot.lane.b32.xlu1 %v3902_v32, %s5094_s17  ;;  %s4063_s0 = smov 115  }
 0x48f   :  { %3009 = vrot.lane.b32.xlu0 %v2612_v22, %s4049_s22  ;;  %v3404_v22 = vld [vmem:[%s5086_s9] sm:$0xff] }
 0x496   :  { %3908 = vrot.lane.b32.xlu2 %v3907_v47, %s4058_s16  ;;  %3918 = vrot.lane.b32.xlu1 %v3917_v48, %s4063_s0 }
 0x497   :  { %3913 = vrot.lane.b32.xlu0 %v3912_v50, %s4064_s21 }
 0x49e   :  { %3150 = vrot.lane.b32.xlu2 %v4767_v21, %s4050_s7  ;;  %3103 = vrot.lane.b32.xlu1 %v4739_v30, %s4055_s26 }
 0x49f   :  { %3056 = vrot.lane.b32.xlu0 %v4739_v30, %s4053_s11 }
 0x4a7   :  { %3923 = vrot.lane.b32.xlu0 %v4806_v59, %s4065_s24 }
 0x4af   :  { %3938 = vrot.lane.b32.xlu0 %v4806_v59, %s4066_s28  ;;  %s4067_s28 = smov 114  }
 0x4b7   :  { %3953 = vrot.lane.b32.xlu0 %v4806_v59, %s5094_s17 }
 0x4bf   :  { %3968 = vrot.lane.b32.xlu0 %v4806_v59, %s4062_s18 }
 0x4c7   :  { %3983 = vrot.lane.b32.xlu0 %v4806_v59, %s4057_s19 }
 0x4cf   :  { %3408 = vperm.xlu0 %3865, %v3404_v22  }
 0x4d0   :  { %v3869_v30 = vpop.permute.xlu2 %3868 }
 0x4d1   :  { %v3870_v51 = vunpack.i.l.bf16 %v3869_v30  ;;  %v3871_v52 = vunpack.i.h.bf16 %v3869_v30 }
 0x4d3   :  { %2270 = vmatpush.msra.mxu2 %v3870_v51 }
 0x4d5   :  { %2271 = vmatpush.msra.mxu2 %v3871_v52 }
 0x4d6   :  { %3596 = vmatmul.msk.f32.vlgmr.msra.gmra.mxu2 %vm227_vm4, %v2193_v53 }
 0x4d8   :  { %v2711_v10 = vpop.permute.xlu2 %2710 }
 0x4d9   :  { %v2713_v54 = vmul.f32 %v2711_v10, %v4751_v63  ;;  %v2714_v18 = vmul.f32 %v2711_v10, %v4753_v2 }
 0x4db   :  { %v3927_v55 = vpack.i.bf16 %v2713_v54, %v2714_v18 }
 0x4dd   :  { %3928 = vrot.lane.b32.xlu2 %v3927_v55, %s5095_s25 }
 0x4de   :  { %3597 = vmatmul.msk.f32.gmra.mxu2 %vm227_vm4, %v2194_v9 }
 0x4e0   :  { %v3889_v56 = vpop.permute.xlu2 %3888 }
 0x4e1   :  { %v3890_v57 = vunpack.i.l.bf16 %v3889_v56  ;;  %v3891_v58 = vunpack.i.h.bf16 %v3889_v56 }
 0x4e3   :  { %2364 = vmatpush.msrb.mxu0 %v3890_v57 }
 0x4e5   :  { %3277 = vrot.lane.b32.xlu2 %v4767_v21, %s4055_s26  ;;  %2365 = vmatpush.msrb.mxu0 %v3891_v58  ;;  %s5096_s26 = smov 127   ;;  %v3602_v58 = vld [vmem:[%s5087_s8 + $0x30] sm:$0xff] }
 0x4e6   :  { %3604 = vmatmul.msk.f32.vlgmr.msrb.gmra.mxu0 %vm227_vm4, %v3602_v58  ;;  %v3651_v58 = vld [vmem:[%s5087_s8 + $0xf8] sm:$0xff] }
 0x4e8   :  { %v2883_v8 = vpop.permute.xlu2 %2882  ;;  %v3879_v60 = vpop.permute.xlu1 %3878 }
 0x4e9   :  { %v3874_v61 = vpop.permute.xlu0 %3873  ;;  %v3880_v62 = vunpack.i.l.bf16 %v3879_v60  ;;  %v3881_v1 = vunpack.i.h.bf16 %v3879_v60  ;;  %v2885_v24 = vmul.f32 %v2883_v8, %v4751_v63  ;;  %v2886_v25 = vmul.f32 %v2883_v8, %v4753_v2  ;;  %v3593_v60 = vld [vmem:[%s5087_s8 + $0x18] sm:$0xff] }
 0x4ea   :  { %v3875_v0 = vunpack.i.l.bf16 %v3874_v61  ;;  %v3876_v4 = vunpack.i.h.bf16 %v3874_v61 }
 0x4eb   :  { %2233 = vmatpush.msra.mxu1 %v3880_v62  ;;  %v3942_v31 = vpack.i.bf16 %v2885_v24, %v2886_v25  ;;  %v3623_v25 = vld [vmem:[%s5087_s8 + $0x88] sm:$0xff] }
 0x4ec   :  { %2315 = vmatpush.msrb.mxu3 %v3875_v0  ;;  %v3405_v0 = vld [vmem:[%s5086_s9 + $0x8] sm:$0xff] }
 0x4ed   :  { %2234 = vmatpush.msra.mxu1 %v3881_v1 }
 0x4ee   :  { %2316 = vmatpush.msrb.mxu3 %v3876_v4  ;;  %3594 = vmatmul.msk.f32.vlgmr.msra.gmra.mxu1 %vm227_vm4, %v3592_v3  ;;  %v3603_v3 = vld [vmem:[%s5087_s8 + $0x38] sm:$0xff]  ;;  %v3606_v4 = vld [vmem:[%s5087_s8 + $0x40] sm:$0xff] }
 0x4ef   :  { %3600 = vmatmul.msk.f32.vlgmr.msrb.gmra.mxu3 %vm227_vm4, %v3598_v5  ;;  %3605 = vmatmul.msk.f32.gmra.mxu0 %vm227_vm4, %v3603_v3  ;;  %v3618_v5 = vld [vmem:[%s5087_s8 + $0x70] sm:$0xff] }
 0x4f0   :  { %v3909_v7 = vpop.permute.xlu2 %3908  ;;  %v3884_v6 = vpop.permute.xlu1 %3883  ;;  %v3666_v3 = vld [vmem:[%s5087_s8 + $0x130] sm:$0xff] }
 0x4f1   :  { %v2760_v11 = vpop.permute.xlu0 %2759  ;;  %v3910_v12 = vunpack.i.l.bf16 %v3909_v7  ;;  %v3885_v13 = vunpack.i.l.bf16 %v3884_v6  ;;  %v3911_v17 = vunpack.i.h.bf16 %v3909_v7  ;;  %v3886_v19 = vunpack.i.h.bf16 %v3884_v6  ;;  %v3630_v7 = vld [vmem:[%s5087_s8 + $0xa0] sm:$0xff]  ;;  %v3607_v6 = vld [vmem:[%s5087_s8 + $0x48] sm:$0xff] }
 0x4f2   :  { %v2762_v14 = vmul.f32 %v2760_v11, %v4751_v63  ;;  %v2763_v15 = vmul.f32 %v2760_v11, %v4753_v2  ;;  %v3619_v11 = vld [vmem:[%s5087_s8 + $0x78] sm:$0xff] }
 0x4f3   :  { %2460 = vmatpush.msrb.mxu2 %v3885_v13  ;;  %2554 = vmatpush.msra.mxu0 %v3910_v12  ;;  %v3631_v12 = vld [vmem:[%s5087_s8 + $0xa8] sm:$0xff]  ;;  %v3622_v13 = vld [vmem:[%s5087_s8 + $0x80] sm:$0xff] }
 0x4f4   :  { %v3932_v21 = vpack.i.bf16 %v2762_v14, %v2763_v15 }
 0x4f5   :  { %2555 = vmatpush.msra.mxu0 %v3911_v17  ;;  %2461 = vmatpush.msrb.mxu2 %v3886_v19  ;;  %v3627_v19 = vld [vmem:[%s5087_s8 + $0x98] sm:$0xff] }
 0x4f6   :  { %3933 = vrot.lane.b32.xlu1 %v3932_v21, %s5096_s26  ;;  %3612 = vmatmul.msk.f32.vlgmr.msrb.gmra.mxu2 %vm227_vm4, %v3610_v20  ;;  %v3634_v20 = vld [vmem:[%s5087_s8 + $0xb0] sm:$0xff] }
 0x4f7   :  { %3601 = vmatmul.msk.f32.gmra.mxu3 %vm227_vm4, %v3599_v23  ;;  %3595 = vmatmul.msk.f32.gmra.mxu1 %vm227_vm4, %v3593_v60  ;;  %v3679_v60 = vld [vmem:[%s5087_s8 + $0x168] sm:$0xff] }
 0x4f8   :  { %v3899_v26 = vpop.permute.xlu1 %3898  ;;  %v3151_v36 = vpop.permute.xlu2 %3150  ;;  %3620 = vmatmul.msk.f32.vlgmr.msra.gmra.mxu0 %vm227_vm4, %v3618_v5 }
 0x4f9   :  { %v3894_v27 = vpop.permute.xlu0 %3893  ;;  %v3900_v39 = vunpack.i.l.bf16 %v3899_v26  ;;  %v3901_v16 = vunpack.i.h.bf16 %v3899_v26  ;;  %v3153_v37 = vmul.f32 %v3151_v36, %v4751_v63  ;;  %v3154_v40 = vmul.f32 %v3151_v36, %v4753_v2  ;;  %v3659_v36 = vld [vmem:[%s5087_s8 + $0x118] sm:$0xff] }
 0x4fa   :  { %v3895_v29 = vunpack.i.l.bf16 %v3894_v27  ;;  %v3896_v33 = vunpack.i.h.bf16 %v3894_v27  ;;  %v3646_v27 = vld [vmem:[%s5087_s8 + $0xe0] sm:$0xff] }
 0x4fb   :  { %2413 = vmatpush.msrb.mxu1 %v3900_v39  ;;  %v3957_v28 = vpack.i.bf16 %v3153_v37, %v3154_v40  ;;  %v3643_v39 = vld [vmem:[%s5087_s8 + $0xd8] sm:$0xff] }
 0x4fc   :  { %2507 = vmatpush.msra.mxu3 %v3895_v29  ;;  %v3647_v29 = vld [vmem:[%s5087_s8 + $0xe8] sm:$0xff] }
 0x4fd   :  { %2414 = vmatpush.msrb.mxu1 %v3901_v16 }
 0x4fe   :  { %2508 = vmatpush.msra.mxu3 %v3896_v33  ;;  %3943 = vrot.lane.b32.xlu1 %v3942_v31, %s5095_s25  ;;  %v3658_v31 = vld [vmem:[%s5087_s8 + $0x110] sm:$0xff] }
 0x4ff   :  { %3613 = vmatmul.msk.f32.gmra.mxu2 %vm227_vm4, %v3611_v34  ;;  %3616 = vmatmul.msk.f32.vlgmr.msra.gmra.mxu3 %vm227_vm4, %v3614_v35 }
 0x500   :  { %v3904_v32 = vpop.permute.xlu1 %3903  ;;  %3608 = vmatmul.msk.f32.vlgmr.msrb.gmra.mxu1 %vm227_vm4, %v3606_v4  ;;  %3621 = vmatmul.msk.f32.gmra.mxu0 %vm227_vm4, %v3619_v11  ;;  %v3670_v11 = vld [vmem:[%s5087_s8 + $0x140] sm:$0xff] }
 0x501   :  { %v3010_v38 = vpop.permute.xlu0 %3009  ;;  %v3905_v41 = vunpack.i.l.bf16 %v3904_v32  ;;  %v3906_v49 = vunpack.i.h.bf16 %v3904_v32  ;;  %v3662_v32 = vld [vmem:[%s5087_s8 + $0x120] sm:$0xff] }
 0x502   :  { %v3012_v42 = vmul.f32 %v3010_v38, %v4751_v63  ;;  %v3013_v43 = vmul.f32 %v3010_v38, %v4753_v2 }
 0x503   :  { %2650 = vmatpush.msra.mxu2 %v3905_v41 }
 0x504   :  { %v3947_v44 = vpack.i.bf16 %v3012_v42, %v3013_v43 }
 0x505   :  { %2651 = vmatpush.msra.mxu2 %v3906_v49  ;;  %v3638_v49 = vld [vmem:[%s5087_s8 + $0xc0] sm:$0xff] }
 0x506   :  { %3948 = vrot.lane.b32.xlu2 %v3947_v44, %s4059_s10  ;;  %3958 = vrot.lane.b32.xlu1 %v3957_v28, %s4060_s20  ;;  %v3663_v28 = vld [vmem:[%s5087_s8 + $0x128] sm:$0xff] }
 0x507   :  { %2829 = vmatpush.msrb.mxu2 %v4753_v2 }
 0x508   :  { %v3919_v46 = vpop.permute.xlu1 %3918  ;;  %3628 = vmatmul.msk.f32.vlgmr.msra.gmra.mxu2 %vm227_vm4, %v3626_v45  ;;  %3609 = vmatmul.msk.f32.gmra.mxu1 %vm227_vm4, %v3607_v6  ;;  %v3667_v6 = vld [vmem:[%s5087_s8 + $0x138] sm:$0xff] }
 0x509   :  { %v3914_v47 = vpop.permute.xlu0 %3913  ;;  %v3920_v48 = vunpack.i.l.bf16 %v3919_v46  ;;  %2830 = vmatpush.msrb.mxu2 %v4751_v63  ;;  %v3921_v22 = vunpack.i.h.bf16 %v3919_v46 }
 0x50a   :  { %v3915_v50 = vunpack.i.l.bf16 %v3914_v47  ;;  %v3916_v30 = vunpack.i.h.bf16 %v3914_v47 }
 0x50b   :  { %2601 = vmatpush.msra.mxu1 %v3920_v48 }
 0x50c   :  { %2699 = vmatpush.msrb.mxu3 %v3915_v50 }
 0x50d   :  { %2602 = vmatpush.msra.mxu1 %v3921_v22  ;;  %v3639_v22 = vld [vmem:[%s5087_s8 + $0xc8] sm:$0xff] }
 0x50e   :  { %2700 = vmatpush.msrb.mxu3 %v3916_v30  ;;  %v3650_v30 = vld [vmem:[%s5087_s8 + $0xf0] sm:$0xff] }
 0x510   :  { %v3104_v51 = vpop.permute.xlu1 %3103  ;;  %3624 = vmatmul.msk.f32.vlgmr.msra.gmra.mxu1 %vm227_vm4, %v3622_v13  ;;  %3629 = vmatmul.msk.f32.gmra.mxu2 %vm227_vm4, %v3627_v19  ;;  %v3671_v19 = vld [vmem:[%s5087_s8 + $0x148] sm:$0xff] }
 0x511   :  { %v3057_v52 = vpop.permute.xlu0 %3056  ;;  %v3106_v53 = vmul.f32 %v3104_v51, %v4751_v63  ;;  %v3107_v10 = vmul.f32 %v3104_v51, %v4753_v2  ;;  %v3678_v51 = vld [vmem:[%s5087_s8 + $0x160] sm:$0xff] }
 0x512   :  { %v3059_v54 = vmul.f32 %v3057_v52, %v4751_v63  ;;  %v3060_v18 = vmul.f32 %v3057_v52, %v4753_v2 }
 0x513   :  { %v3972_v55 = vpack.i.bf16 %v3106_v53, %v3107_v10 }
 0x514   :  { %v3962_v9 = vpack.i.bf16 %v3059_v54, %v3060_v18 }
 0x515   :  { %3973 = vrot.lane.b32.xlu1 %v3972_v55, %s4063_s0 }
 0x516   :  { %3963 = vrot.lane.b32.xlu2 %v3962_v9, %s4058_s16 }
 0x518   :  { %3625 = vmatmul.msk.f32.gmra.mxu1 %vm227_vm4, %v3623_v25 }
 0x519   :  { %v3924_v56 = vpop.permute.xlu0 %3923 }
 0x51a   :  { %v3925_v57 = vunpack.i.l.bf16 %v3924_v56  ;;  %v3926_v8 = vunpack.i.h.bf16 %v3924_v56 }
 0x51c   :  { %2871 = vmatpush.msra.mxu3 %v3925_v57 }
 0x51d   :  { %3988 = vrot.lane.b32.xlu1 %v4806_v59, %s4067_s28 }
 0x51e   :  { %2872 = vmatpush.msra.mxu3 %v3926_v8  ;;  %3978 = vrot.lane.b32.xlu2 %v4806_v59, %s4059_s10  ;;  %v3615_v59 = vld [vmem:[%s5087_s8 + $0x68] sm:$0xff]  ;;  %v3654_v8 = vld [vmem:[%s5087_s8 + $0x100] sm:$0xff] }
 0x51f   :  { %3617 = vmatmul.msk.f32.gmra.mxu3 %vm227_vm4, %v3615_v59  ;;  %v3675_v59 = vld [vmem:[%s5087_s8 + $0x158] sm:$0xff] }
 0x521   :  { %v3939_v61 = vpop.permute.xlu0 %3938 }
 0x522   :  { %v3940_v62 = vunpack.i.l.bf16 %v3939_v61  ;;  %v3941_v1 = vunpack.i.h.bf16 %v3939_v61 }
 0x524   :  { %2998 = vmatpush.msra.mxu2 %v3940_v62  ;;  %v3674_v62 = vld [vmem:[%s5087_s8 + $0x150] sm:$0xff] }
 0x525   :  { %3413 = vperm.xlu1 %3866, %v3405_v0  }
 0x526   :  { %2999 = vmatpush.msra.mxu2 %v3941_v1  ;;  %v3655_v1 = vld [vmem:[%s5087_s8 + $0x108] sm:$0xff] }
 0x527   :  { %3632 = vmatmul.msk.f32.vlgmr.msrb.gmra.mxu3 %vm227_vm4, %v3630_v7 }
 0x529   :  { %v3954_v16 = vpop.permute.xlu0 %3953 }
 0x52a   :  { %v3955_v44 = vunpack.i.l.bf16 %v3954_v16  ;;  %v3956_v45 = vunpack.i.h.bf16 %v3954_v16 }
 0x52f   :  { %3633 = vmatmul.msk.f32.gmra.mxu3 %vm227_vm4, %v3631_v12  ;;  %v3690_v12 = vld [vmem:[%s5087_s8 + $0x190] sm:$0xff] }
 0x531   :  { %v3969_v34 = vpop.permute.xlu0 %3968 }
 0x532   :  { %v3970_v40 = vunpack.i.l.bf16 %v3969_v34  ;;  %v3971_v38 = vunpack.i.h.bf16 %v3969_v34 }
 0x537   :  { %v3929_v14 = vpop.permute.xlu2 %3928  ;;  %3648 = vmatmul.msk.f32.vlgmr.msra.gmra.mxu3 %vm227_vm4, %v3646_v27 }
 0x538   :  { %v3930_v15 = vunpack.i.l.bf16 %v3929_v14  ;;  %v3931_v17 = vunpack.i.h.bf16 %v3929_v14 }
 0x539   :  { %v3984_v52 = vpop.permute.xlu0 %3983 }
 0x53a   :  { %2746 = vmatpush.msrb.mxu0 %v3930_v15  ;;  %v3985_v54 = vunpack.i.l.bf16 %v3984_v52  ;;  %v3986_v9 = vunpack.i.h.bf16 %v3984_v52 }
 0x53c   :  { %2747 = vmatpush.msrb.mxu0 %v3931_v17  ;;  %v3694_v17 = vld [vmem:[%s5087_s8 + $0x1a0] sm:$0xff] }
 0x53d   :  { %3636 = vmatmul.msk.f32.vlgmr.msrb.gmra.mxu0 %vm227_vm4, %v3634_v20  ;;  %v3682_v20 = vld [vmem:[%s5087_s8 + $0x170] sm:$0xff] }
 0x53f   :  { %v3278_v21 = vpop.permute.xlu2 %3277  ;;  %3649 = vmatmul.msk.f32.gmra.mxu3 %vm227_vm4, %v3647_v29 }
 0x540   :  { %v3280_v23 = vmul.f32 %v3278_v21, %v4751_v63  ;;  %v3281_v24 = vmul.f32 %v3278_v21, %v4753_v2  ;;  %v3635_v63 = vld [vmem:[%s5087_s8 + $0xb8] sm:$0xff]  ;;  %v3642_v2 = vld [vmem:[%s5087_s8 + $0xd0] sm:$0xff] }
 0x541   :  { %3644 = vmatmul.msk.f32.vlgmr.msrb.gmra.mxu2 %vm227_vm4, %v3642_v2  ;;  %v3691_v21 = vld [vmem:[%s5087_s8 + $0x198] sm:$0xff]  ;;  %v3687_v2 = vld [vmem:[%s5087_s8 + $0x188] sm:$0xff] }
 0x542   :  { %v3992_v26 = vpack.i.bf16 %v3280_v23, %v3281_v24  ;;  %v3695_v23 = vld [vmem:[%s5087_s8 + $0x1a8] sm:$0xff]  ;;  %v3683_v24 = vld [vmem:[%s5087_s8 + $0x178] sm:$0xff] }
 0x544   :  { %3993 = vrot.lane.b32.xlu2 %v3992_v26, %s4063_s0 }
 0x545   :  { %3637 = vmatmul.msk.f32.gmra.mxu0 %vm227_vm4, %v3635_v63  ;;  %v3686_v63 = vld [vmem:[%s5087_s8 + $0x180] sm:$0xff] }
 0x549   :  { %3645 = vmatmul.msk.f32.gmra.mxu2 %vm227_vm4, %v3643_v39 }
 0x551   :  { %3660 = vmatmul.msk.f32.vlgmr.msra.gmra.mxu2 %vm227_vm4, %v3658_v31 }
 0x559   :  { %3661 = vmatmul.msk.f32.gmra.mxu2 %vm227_vm4, %v3659_v36  ;;  %v2273_v39 = vpop.f32.mrf.mxu2 }
 0x560   :  { %v3949_v33 = vpop.permute.xlu2 %3948 }
 0x561   :  { %v3950_v35 = vunpack.i.l.bf16 %v3949_v33  ;;  %v3951_v37 = vunpack.i.h.bf16 %v3949_v33  ;;  %v2276_v31 = vpop.f32.mrf.mxu2 }
 0x563   :  { %3045 = vmatpush.msrb.mxu3 %v3950_v35  ;;  %v2367_v34 = vpop.f32.mrf.mxu0 }
 0x565   :  { %3046 = vmatpush.msrb.mxu3 %v3951_v37 }
 0x566   :  { %3664 = vmatmul.msk.f32.vlgmr.msrb.gmra.mxu3 %vm227_vm4, %v3662_v32 }
 0x567   :  { %3226 = vmatpush.msra.mxu3 %v3970_v40 }
 0x568   :  { %v3934_v41 = vpop.permute.xlu1 %3933 }
 0x569   :  { %3227 = vmatpush.msra.mxu3 %v3971_v38  ;;  %v3935_v42 = vunpack.i.l.bf16 %v3934_v41  ;;  %v3936_v43 = vunpack.i.h.bf16 %v3934_v41 }
 0x56b   :  { %2795 = vmatpush.msrb.mxu1 %v3935_v42  ;;  %v2236_v16 = vpop.f32.mrf.mxu1 }
 0x56c   :  { %v2370_v40 = vpop.f32.mrf.mxu0 }
 0x56d   :  { %2796 = vmatpush.msrb.mxu1 %v3936_v43 }
 0x56e   :  { %3640 = vmatmul.msk.f32.vlgmr.msrb.gmra.mxu1 %vm227_vm4, %v3638_v49  ;;  %3665 = vmatmul.msk.f32.gmra.mxu3 %vm227_vm4, %v3663_v28  ;;  %v2274_v28 = vadd.f32 %v2273_v39, %v2236_v16 }
 0x56f   :  { %2958 = vmatpush.msra.mxu1 %v3955_v44 }
 0x570   :  { %v3964_v46 = vpop.permute.xlu2 %3963  ;;  %v3944_v47 = vpop.permute.xlu1 %3943 }
 0x571   :  { %v3945_v48 = vunpack.i.l.bf16 %v3944_v47  ;;  %2959 = vmatpush.msra.mxu1 %v3956_v45  ;;  %v3946_v50 = vunpack.i.h.bf16 %v3944_v47  ;;  %v3965_v53 = vunpack.i.l.bf16 %v3964_v46  ;;  %v3966_v10 = vunpack.i.h.bf16 %v3964_v46 }
 0x572   :  { %v2318_v29 = vpop.f32.mrf.mxu3 }
 0x573   :  { %2918 = vmatpush.msra.mxu0 %v3945_v48  ;;  %v2324_v46 = vadd.f32 %v2318_v29, %v2274_v28 }
 0x574   :  { %v2239_v35 = vpop.f32.mrf.mxu1 }
 0x575   :  { %2919 = vmatpush.msra.mxu0 %v3946_v50  ;;  %v2557_v42 = vpop.f32.mrf.mxu0  ;;  %v2373_v48 = vadd.f32 %v2367_v34, %v2324_v46  ;;  %v2277_v50 = vadd.f32 %v2276_v31, %v2239_v35 }
 0x576   :  { %3641 = vmatmul.msk.f32.gmra.mxu1 %vm227_vm4, %v3639_v22  ;;  %3652 = vmatmul.msk.f32.vlgmr.msra.gmra.mxu0 %vm227_vm4, %v3650_v30 }
 0x577   :  { %3092 = vmatpush.msrb.mxu0 %v3965_v53  ;;  %3680 = vmatmul.msk.f32.vlgmr.msra.gmra.mxu3 %vm227_vm4, %v3678_v51 }
 0x578   :  { %v3959_v18 = vpop.permute.xlu1 %3958  ;;  %v3979_v56 = vpop.permute.xlu2 %3978 }
 0x579   :  { %v3960_v55 = vunpack.i.l.bf16 %v3959_v18  ;;  %3093 = vmatpush.msrb.mxu0 %v3966_v10  ;;  %v3961_v57 = vunpack.i.h.bf16 %v3959_v18  ;;  %v3980_v61 = vunpack.i.l.bf16 %v3979_v56  ;;  %v3981_v0 = vunpack.i.h.bf16 %v3979_v56  ;;  %v2463_v36 = vpop.f32.mrf.mxu2 }
 0x57a   :  { %v2321_v33 = vpop.f32.mrf.mxu3 }
 0x57b   :  { %3266 = vmatpush.msra.mxu0 %v3985_v54  ;;  %3186 = vmatpush.msrb.mxu2 %v3960_v55  ;;  %v2325_v51 = vadd.f32 %v2321_v33, %v2277_v50 }
 0x57d   :  { %3267 = vmatpush.msra.mxu0 %v3986_v9  ;;  %3187 = vmatpush.msrb.mxu2 %v3961_v57  ;;  %v2416_v32 = vpop.f32.mrf.mxu1  ;;  %v2560_v45 = vpop.f32.mrf.mxu0  ;;  %v2374_v54 = vadd.f32 %v2370_v40, %v2325_v51 }
 0x57e   :  { %3653 = vmatmul.msk.f32.gmra.mxu0 %vm227_vm4, %v3651_v58  ;;  %3656 = vmatmul.msk.f32.vlgmr.msra.gmra.mxu1 %vm227_vm4, %v3654_v8  ;;  %v2422_v52 = vadd.f32 %v2416_v32, %v2373_v48 }
 0x57f   :  { %3353 = vmatpush.msra.mxu2 %v3980_v61  ;;  %3681 = vmatmul.msk.f32.gmra.mxu3 %vm227_vm4, %v3679_v60 }
 0x580   :  { %3676 = vmatmul.msk.f32.vlgmr.msrb.gmra.mxu2 %vm227_vm4, %v3674_v62  ;;  %v2469_v18 = vadd.f32 %v2463_v36, %v2422_v52 }
 0x581   :  { %3354 = vmatpush.msra.mxu2 %v3981_v0 }
 0x582   :  { %v2510_v37 = vpop.f32.mrf.mxu3  ;;  %v2466_v38 = vpop.f32.mrf.mxu2 }
 0x583   :  { %v2516_v56 = vadd.f32 %v2510_v37, %v2469_v18 }
 0x585   :  { %v2419_v43 = vpop.f32.mrf.mxu1  ;;  %v2563_v60 = vadd.f32 %v2557_v42, %v2516_v56 }
 0x586   :  { %3657 = vmatmul.msk.f32.gmra.mxu1 %vm227_vm4, %v3655_v1  ;;  %3668 = vmatmul.msk.f32.vlgmr.msrb.gmra.mxu0 %vm227_vm4, %v3666_v3  ;;  %v2423_v57 = vadd.f32 %v2419_v43, %v2374_v54 }
 0x587   :  { %v3974_v4 = vpop.permute.xlu1 %3973 }
 0x588   :  { %v3975_v5 = vunpack.i.l.bf16 %v3974_v4  ;;  %3677 = vmatmul.msk.f32.gmra.mxu2 %vm227_vm4, %v3675_v59  ;;  %v3976_v7 = vunpack.i.h.bf16 %v3974_v4  ;;  %v2470_v61 = vadd.f32 %v2466_v38, %v2423_v57 }
 0x58a   :  { %3139 = vmatpush.msrb.mxu1 %v3975_v5 }
 0x58b   :  { %v2653_v49 = vpop.f32.mrf.mxu2 }
 0x58c   :  { %3140 = vmatpush.msrb.mxu1 %v3976_v7 }
 0x58d   :  { %v2604_v47 = vpop.f32.mrf.mxu1 }
 0x58e   :  { %3669 = vmatmul.msk.f32.gmra.mxu0 %vm227_vm4, %v3667_v6  ;;  %3672 = vmatmul.msk.f32.vlgmr.msrb.gmra.mxu1 %vm227_vm4, %v3670_v11  ;;  %v2610_v1 = vadd.f32 %v2604_v47, %v2563_v60 }
 0x58f   :  { %v3989_v13 = vpop.permute.xlu1 %3988 }
 0x590   :  { %v3990_v14 = vunpack.i.l.bf16 %v3989_v13  ;;  %3692 = vmatmul.msk.f32.vlgmr.msra.gmra.mxu2 %vm227_vm4, %v3690_v12  ;;  %v3991_v15 = vunpack.i.h.bf16 %v3989_v13  ;;  %v2659_v7 = vadd.f32 %v2653_v49, %v2610_v1 }
 0x592   :  { %3393 = vmatpush.msrb.mxu3 %v3990_v14 }
 0x593   :  { %v2656_v22 = vpop.f32.mrf.mxu2 }
 0x594   :  { %3394 = vmatpush.msrb.mxu3 %v3991_v15 }
 0x595   :  { %3696 = vmatmul.msk.f32.vlgmr.msrb.gmra.mxu3 %vm227_vm4, %v3694_v17  ;;  %v2607_v10 = vpop.f32.mrf.mxu1 }
 0x596   :  { %3673 = vmatmul.msk.f32.gmra.mxu1 %vm227_vm4, %v3671_v19  ;;  %3684 = vmatmul.msk.f32.vlgmr.msra.gmra.mxu0 %vm227_vm4, %v3682_v20 }
 0x598   :  { %3693 = vmatmul.msk.f32.gmra.mxu2 %vm227_vm4, %v3691_v21 }
 0x59d   :  { %3697 = vmatmul.msk.f32.gmra.mxu3 %vm227_vm4, %v3695_v23 }
 0x59e   :  { %3685 = vmatmul.msk.f32.gmra.mxu0 %vm227_vm4, %v3683_v24  ;;  %v3994_v25 = vpop.permute.xlu2 %3993 }
 0x59f   :  { %v3995_v26 = vunpack.i.l.bf16 %v3994_v25  ;;  %v3996_v27 = vunpack.i.h.bf16 %v3994_v25 }
 0x5a1   :  { %3313 = vmatpush.msra.mxu1 %v3995_v26 }
 0x5a2   :  { %v2513_v41 = vpop.f32.mrf.mxu3 }
 0x5a3   :  { %3314 = vmatpush.msra.mxu1 %v3996_v27  ;;  %v2517_v0 = vadd.f32 %v2513_v41, %v2470_v61 }
 0x5a4   :  { %3688 = vmatmul.msk.f32.vlgmr.msra.gmra.mxu1 %vm227_vm4, %v3686_v63 }
 0x5a5   :  { %v2564_v5 = vadd.f32 %v2560_v45, %v2517_v0 }
 0x5a7   :  { %v2611_v11 = vadd.f32 %v2607_v10, %v2564_v5  ;;  %v3414_v5 = vpop.permute.xlu1 %3413 }
 0x5a9   :  { %v2660_v17 = vadd.f32 %v2656_v22, %v2611_v11 }
 0x5aa   :  { %v2702_v44 = vpop.f32.mrf.mxu3 }
 0x5ab   :  { %v2708_v6 = vadd.f32 %v2702_v44, %v2659_v7 }
 0x5ac   :  { %3689 = vmatmul.msk.f32.gmra.mxu1 %vm227_vm4, %v3687_v2 }
 0x5b2   :  { %v2705_v30 = vpop.f32.mrf.mxu3 }
 0x5b3   :  { %v2709_v21 = vadd.f32 %v2705_v30, %v2660_v17 }
 0x5ba   :  { %v2749_v53 = vpop.f32.mrf.mxu0  ;;  %v2874_v9 = vpop.f32.mrf.mxu3 }
 0x5bb   :  { %v2755_v15 = vadd.f32 %v2749_v53, %v2708_v6 }
 0x5c2   :  { %v2752_v58 = vpop.f32.mrf.mxu0  ;;  %v2877_v3 = vpop.f32.mrf.mxu3 }
 0x5c3   :  { %v2756_v25 = vadd.f32 %v2752_v58, %v2709_v21  ;;  %v3409_v58 = vpop.permute.xlu0 %3408 }
 0x5c4   :  { %v2832_v55 = vpop.f32.mrf.mxu2 }
 0x5cc   :  { %v2835_v62 = vpop.f32.mrf.mxu2 }
 0x5d4   :  { %v3001_v12 = vpop.f32.mrf.mxu2 }
 0x5dc   :  { %v3004_v24 = vpop.f32.mrf.mxu2 }
 0x5e9   :  { %v3048_v14 = vpop.f32.mrf.mxu3 }
 0x5eb   :  { %v2798_v8 = vpop.f32.mrf.mxu1 }
 0x5ec   :  { %v2804_v20 = vadd.f32 %v2798_v8, %v2755_v15 }
 0x5ee   :  { %v2838_v23 = vadd.f32 %v2832_v55, %v2804_v20 }
 0x5f0   :  { %v2880_v63 = vadd.f32 %v2874_v9, %v2838_v23 }
 0x5f1   :  { %v3051_v27 = vpop.f32.mrf.mxu3 }
 0x5f3   :  { %v2801_v59 = vpop.f32.mrf.mxu1  ;;  %v2921_v4 = vpop.f32.mrf.mxu0 }
 0x5f4   :  { %v2805_v2 = vadd.f32 %v2801_v59, %v2756_v25  ;;  %v2927_v29 = vadd.f32 %v2921_v4, %v2880_v63 }
 0x5f6   :  { %v2839_v16 = vadd.f32 %v2835_v62, %v2805_v2 }
 0x5f8   :  { %v2881_v34 = vadd.f32 %v2877_v3, %v2839_v16 }
 0x5fa   :  { %v3229_v37 = vpop.f32.mrf.mxu3 }
 0x5fb   :  { %v2961_v13 = vpop.f32.mrf.mxu1  ;;  %v2924_v19 = vpop.f32.mrf.mxu0 }
 0x5fc   :  { %v2967_v31 = vadd.f32 %v2961_v13, %v2927_v29  ;;  %v2928_v40 = vadd.f32 %v2924_v19, %v2881_v34 }
 0x5fe   :  { %v3007_v35 = vadd.f32 %v3001_v12, %v2967_v31 }
 0x600   :  { %v3054_v38 = vadd.f32 %v3048_v14, %v3007_v35 }
 0x602   :  { %v3232_v45 = vpop.f32.mrf.mxu3 }
 0x603   :  { %v2964_v26 = vpop.f32.mrf.mxu1  ;;  %v3095_v39 = vpop.f32.mrf.mxu0 }
 0x604   :  { %v3189_v33 = vpop.f32.mrf.mxu2  ;;  %v2968_v41 = vadd.f32 %v2964_v26, %v2928_v40  ;;  %v3101_v42 = vadd.f32 %v3095_v39, %v3054_v38 }
 0x606   :  { %v3008_v43 = vadd.f32 %v3004_v24, %v2968_v41 }
 0x608   :  { %v3055_v46 = vadd.f32 %v3051_v27, %v3008_v43 }
 0x60b   :  { %v3142_v36 = vpop.f32.mrf.mxu1  ;;  %v3098_v32 = vpop.f32.mrf.mxu0 }
 0x60c   :  { %v3148_v49 = vadd.f32 %v3142_v36, %v3101_v42  ;;  %v3192_v28 = vpop.f32.mrf.mxu2  ;;  %v3102_v50 = vadd.f32 %v3098_v32, %v3055_v46 }
 0x60e   :  { %v3195_v47 = vadd.f32 %v3189_v33, %v3148_v49 }
 0x610   :  { %v3235_v22 = vadd.f32 %v3229_v37, %v3195_v47 }
 0x613   :  { %v3145_v44 = vpop.f32.mrf.mxu1  ;;  %v3269_v48 = vpop.f32.mrf.mxu0 }
 0x614   :  { %v3149_v30 = vadd.f32 %v3145_v44, %v3102_v50  ;;  %v3356_v51 = vpop.f32.mrf.mxu2  ;;  %v3275_v52 = vadd.f32 %v3269_v48, %v3235_v22 }
 0x616   :  { %v3196_v54 = vadd.f32 %v3192_v28, %v3149_v30 }
 0x618   :  { %v3396_v10 = vpop.f32.mrf.mxu3  ;;  %v3236_v56 = vadd.f32 %v3232_v45, %v3196_v54 }
 0x61b   :  { %v3272_v9 = vpop.f32.mrf.mxu0 }
 0x61c   :  { %v3276_v8 = vadd.f32 %v3272_v9, %v3236_v56  ;;  %v3359_v62 = vpop.f32.mrf.mxu2 }
 0x620   :  { %v3399_v3 = vpop.f32.mrf.mxu3 }
 0x621   :  { %v3316_v53 = vpop.f32.mrf.mxu1 }
 0x622   :  { %v3322_v18 = vadd.f32 %v3316_v53, %v3275_v52 }
 0x624   :  { %v3362_v55 = vadd.f32 %v3356_v51, %v3322_v18 }
 0x626   :  { %v3402_v57 = vadd.f32 %v3396_v10, %v3362_v55 }
 0x628   :  { %v3416_v60 = vadd.f32 %v3409_v58, %v3402_v57 }
 0x629   :  { %v3319_v61 = vpop.f32.mrf.mxu1 }
 0x62a   :  { %v3418_v0 = vmax.f32 %v3416_v60, 0.0  ;;  %v3323_v1 = vadd.f32 %v3319_v61, %v3276_v8 }
 0x62c   :  { %3421 = vst.msk [vmem:[%s5088_s13] sm:$0xff] %vm3420_vm8, %v3418_v0  ;;  %v3363_v59 = vadd.f32 %v3359_v62, %v3323_v1 }
 0x62e   :  { %v3403_v4 = vadd.f32 %v3399_v3, %v3363_v59 }
 0x630   :  { %v3417_v7 = vadd.f32 %v3414_v5, %v3403_v4 }
 0x632   :  { %v3419_v6 = vmax.f32 %v3417_v7, 0.0 }
 0x634   :  { %3422 = vst.msk [vmem:[%s5088_s13 + $0x8] sm:$0xff] %vm3420_vm8, %v3419_v6 }

</bundles_post_ra>
